<compile_context>
chip_gen: v6e
topology: v6e:2x2x1
jax: 0.10.0
libtpu: 0.0.40
codegen_flags: <defaults>
</compile_context>

<pallas_src>
import functools

import jax
import jax.numpy as jnp
from jax.experimental import pallas as pl
from jax.experimental.pallas import tpu as pltpu

BN_EPS = 1e-5
LOG_EPS = 1e-6

K1, S1B = 32, 4         # conv_1a / conv_1b kernel length (time); conv_1b time stride
K2, S2B = 12, 2         # conv_2b kernel length / time stride
POOL_K, POOL_S = 42, 8  # AvgPool2d window / stride (time)


def _kernel(x_ref,
            w1_ref, g1a_ref, be1a_ref, g1b_ref, be1b_ref,
            w2_ref, g2b_ref, be2b_ref, pool_ref,
            out_ref, yb_scr, zb1_scr,
            *, B, F, Ta1, Tb1, Tpool, Tb2, Tout, Cpad):
    f32 = jnp.float32

    def bn_affine(y, g_ref, be_ref, n):
        # training-mode BN folded into a single y*scale + shift pass
        # (one sum / sum-of-squares sweep, biased variance, eps=1e-5).
        s1 = jnp.sum(y, axis=(0, 1), keepdims=True)
        s2 = jnp.sum(y * y, axis=(0, 1), keepdims=True)
        mean = s1 * (1.0 / n)
        var = s2 * (1.0 / n) - mean * mean
        scale = g_ref[...] * jax.lax.rsqrt(var + BN_EPS)
        shift = be_ref[...] - mean * scale
        return y * scale + shift

    def elu(y):
        return jnp.where(y > 0, y, jnp.exp(jnp.minimum(y, 0.0)) - 1.0)

    # ---- fused conv_1a | conv_1b: ONE wide-K im2col matmul (K = 32*21) -----------------
    col1 = jnp.concatenate([x_ref[:, pl.ds(k, Ta1), :] for k in range(K1)],
                           axis=-1)                                    # (B, Ta1, K1*Cin)
    y1 = jnp.einsum('btk,kf->btf', col1, w1_ref[...],
                    preferred_element_type=f32)                        # (B, Ta1, 2F)
    # conv biases intentionally omitted: a per-channel constant cancels in training-mode BN.

    # keep the path-B half in scratch for the strided (stride-4 / stride-2) re-reads below
    yb_scr[...] = y1[:, :, F:2 * F]

    # ---- path A: BN -> square -> avg-pool(42, stride 8) as one matmul -> safe_log ------
    za = bn_affine(y1[:, :, 0:F], g1a_ref, be1a_ref, float(B * Ta1))
    sq_t = jnp.swapaxes(za * za, 1, 2)                                 # (B, F, Ta1)
    pooled = jnp.swapaxes(
        jnp.einsum('bft,tp->bfp', sq_t, pool_ref[...],
                   preferred_element_type=f32), 1, 2)                  # (B, Tpool, F)
    out_a = jnp.log(jnp.maximum(pooled, LOG_EPS))

    # ---- path B: conv_1b == stride-4 time slice of the fused conv -> BN -> ELU ---------
    yb = yb_scr[:, pl.ds(0, Tb1, stride=S1B), :]                       # (B, Tb1, F)
    zb1_scr[...] = elu(bn_affine(yb, g1b_ref, be1b_ref, float(B * Tb1)))

    # ---- conv_2b as ONE wide-K matmul; de-interleave the stride-2 phases just once -----
    nph = Tb2 + K2 // 2 - 1                                            # rows needed / phase
    ze = zb1_scr[:, pl.ds(0, nph, stride=2), :]                        # zb1[2s]
    zo = zb1_scr[:, pl.ds(1, nph, stride=2), :]                        # zb1[2s+1]
    col2 = jnp.concatenate(
        [(ze if k % 2 == 0 else zo)[:, k // 2:k // 2 + Tb2, :] for k in range(K2)],
        axis=-1)                                                       # (B, Tb2, K2*F)
    y2 = jnp.einsum('btk,kg->btg', col2, w2_ref[...],
                    preferred_element_type=f32)                        # (B, Tb2, 2F)
    out_b = elu(bn_affine(y2, g2b_ref, be2b_ref, float(B * Tb2)))

    # ---- zero-pad in time, concat on channels, ONE lane-dense store --------------------
    if Tout > Tpool:
        out_a = jnp.concatenate([out_a, jnp.zeros((B, Tout - Tpool, F), f32)], axis=1)
    if Tout > Tb2:
        out_b = jnp.concatenate([out_b, jnp.zeros((B, Tout - Tb2, 2 * F), f32)], axis=1)
    out_ref[...] = jnp.concatenate(
        [out_a, out_b, jnp.zeros((B, Tout, Cpad - 3 * F), f32)], axis=-1)


def two_path_start_block(x_nchw, p):
    """x_nchw: (N, 21, T, W) float32 -> (N, 3*F, T_out, W) float32."""
    N, C, T, W = x_nchw.shape
    F = p['w1a'].shape[-1]
    B = N * W
    Ta1 = T - K1 + 1
    Tb1 = (T - K1) // S1B + 1
    Tpool = (Ta1 - POOL_K) // POOL_S + 1
    Tb2 = (Tb1 - K2) // S2B + 1
    Tout = max(Tpool, Tb2)
    Cout = 3 * F
    Cpad = max(128, ((Cout + 127) // 128) * 128)   # lane-dense (unmasked) output store

    # NCHW -> (B = N*W, T, C)
    x_btc = jnp.transpose(x_nchw, (0, 3, 2, 1)).reshape(B, T, C)

    # fused conv1 weight [path A | path B], im2col (k-major, cin-minor) row order
    w1 = jnp.concatenate([p['w1a'], p['w1b']], axis=-1).reshape(K1 * C, 2 * F)
    w2 = p['w2b'].reshape(K2 * F, 2 * F)

    # (Ta1, Tpool) averaging matrix for AvgPool(42, stride 8): a pure compile-time
    # constant built outside the kernel (no in-kernel iota/compare/select work).
    t_idx = jnp.arange(Ta1, dtype=jnp.int32)[:, None]
    p_idx = jnp.arange(Tpool, dtype=jnp.int32)[None, :]
    pool_mat = (((t_idx >= POOL_S * p_idx) & (t_idx < POOL_S * p_idx + POOL_K))
                .astype(jnp.float32) * (1.0 / POOL_K))

    kern = functools.partial(_kernel, B=B, F=F, Ta1=Ta1, Tb1=Tb1,
                             Tpool=Tpool, Tb2=Tb2, Tout=Tout, Cpad=Cpad)
    vmem = pl.BlockSpec(memory_space=pltpu.MemorySpace.VMEM)
    out = pl.pallas_call(
        kern,
        out_shape=jax.ShapeDtypeStruct((B, Tout, Cpad), jnp.float32),
        in_specs=[vmem] * 10,
        out_specs=vmem,
        scratch_shapes=[pltpu.VMEM((B, Ta1, F), jnp.float32),   # path-B conv1 (pre-BN)
                        pltpu.VMEM((B, Tb1, F), jnp.float32)],  # path-B conv1 activations
    )(x_btc,
      w1, p['g1a'].reshape(1, F), p['be1a'].reshape(1, F),
      p['g1b'].reshape(1, F), p['be1b'].reshape(1, F),
      w2, p['g2b'].reshape(1, 2 * F), p['be2b'].reshape(1, 2 * F),
      pool_mat)

    # drop the lane pad, (B, Tout, Cout) -> NCHW
    out = out[:, :, :Cout]
    return jnp.transpose(out.reshape(N, W, Tout, Cout), (0, 3, 2, 1))


# ----------------------- pure-JAX reference (for correctness check) -----------------------
def reference_forward(x, p):
    def conv(x, w_kco, b, stride):
        w = jnp.transpose(w_kco, (2, 1, 0))[:, :, :, None]     # (O, C, K, 1)
        y = jax.lax.conv_general_dilated(
            x, w, window_strides=(stride, 1), padding='VALID',
            dimension_numbers=('NCHW', 'OIHW', 'NCHW'),
            precision=jax.lax.Precision.HIGHEST)
        return y + b[None, :, None, None]

    def bn(y, g, b):
        m = y.mean(axis=(0, 2, 3), keepdims=True)
        v = ((y - m) ** 2).mean(axis=(0, 2, 3), keepdims=True)
        return (y - m) / jnp.sqrt(v + BN_EPS) * g[None, :, None, None] + b[None, :, None, None]

    a = conv(x, p['w1a'], p['b1a'], 1)
    a = bn(a, p['g1a'], p['be1a'])
    a = a * a
    a = jax.lax.reduce_window(a, 0.0, jax.lax.add,
                              (1, 1, POOL_K, 1), (1, 1, POOL_S, 1), 'VALID') / POOL_K
    a = jnp.log(jnp.maximum(a, LOG_EPS))

    b_ = conv(x, p['w1b'], p['b1b'], S1B)
    b_ = jax.nn.elu(bn(b_, p['g1b'], p['be1b']))
    b_ = conv(b_, p['w2b'], p['b2b'], S2B)
    b_ = jax.nn.elu(bn(b_, p['g2b'], p['be2b']))

    td = a.shape[2] - b_.shape[2]
    if td > 0:
        b_ = jnp.pad(b_, ((0, 0), (0, 0), (0, td), (0, 0)))
    elif td < 0:
        a = jnp.pad(a, ((0, 0), (0, 0), (0, -td), (0, 0)))
    return jnp.concatenate([a, b_], axis=1)


def init_params(key, n_start_filters):
    F = n_start_filters
    ks = jax.random.split(key, 12)
    f32 = jnp.float32
    return dict(
        # conv weights stored as (K_time, C_in, C_out)
        w1a=0.05 * jax.random.normal(ks[0], (K1, 21, F), f32),
        b1a=0.05 * jax.random.normal(ks[1], (F,), f32),
        g1a=1.0 + 0.1 * jax.random.normal(ks[2], (F,), f32),
        be1a=0.1 * jax.random.normal(ks[3], (F,), f32),
        w1b=0.05 * jax.random.normal(ks[4], (K1, 21, F), f32),
        b1b=0.05 * jax.random.normal(ks[5], (F,), f32),
        g1b=1.0 + 0.1 * jax.random.normal(ks[6], (F,), f32),
        be1b=0.1 * jax.random.normal(ks[7], (F,), f32),
        w2b=0.1 * jax.random.normal(ks[8], (K2, F, 2 * F), f32),
        b2b=0.05 * jax.random.normal(ks[9], (2 * F,), f32),
        g2b=1.0 + 0.1 * jax.random.normal(ks[10], (2 * F,), f32),
        be2b=0.1 * jax.random.normal(ks[11], (2 * F,), f32),
    )


if __name__ == "__main__":
    # conv_1b hard-codes 21 input channels in the PyTorch module, so in_chans must be 21.
    N, C_in, T, W = 2, 21, 96, 1
    n_start_filters = 8

    key = jax.random.PRNGKey(0)
    kx, kp = jax.random.split(key)
    x = jax.random.normal(kx, (N, C_in, T, W), jnp.float32)
    params = init_params(kp, n_start_filters)

    out = jax.block_until_ready(two_path_start_block(x, params))
    ref = jax.block_until_ready(reference_forward(x, params))

    assert out.shape == ref.shape == (N, 3 * n_start_filters, 3, W), (out.shape, ref.shape)
    max_err = float(jnp.max(jnp.abs(out - ref)))
    assert max_err < 2e-2, f"max abs error too large: {max_err}"
    print("KERNEL_OK")
</pallas_src>

<mosaic_0001>
module attributes {stable_mosaic.version = 11 : i64} {
  func.func @_kernel(%arg0: memref<2x96x21xf32, #tpu.memory_space<vmem>>, %arg1: memref<672x16xf32, #tpu.memory_space<vmem>>, %arg2: memref<1x8xf32, #tpu.memory_space<vmem>>, %arg3: memref<1x8xf32, #tpu.memory_space<vmem>>, %arg4: memref<1x8xf32, #tpu.memory_space<vmem>>, %arg5: memref<1x8xf32, #tpu.memory_space<vmem>>, %arg6: memref<96x16xf32, #tpu.memory_space<vmem>>, %arg7: memref<1x16xf32, #tpu.memory_space<vmem>>, %arg8: memref<1x16xf32, #tpu.memory_space<vmem>>, %arg9: memref<65x3xf32, #tpu.memory_space<vmem>>, %arg10: memref<2x3x128xf32, #tpu.memory_space<vmem>>, %arg11: memref<2x65x8xf32, #tpu.memory_space<vmem>>, %arg12: memref<2x17x8xf32, #tpu.memory_space<vmem>>) attributes {dimension_semantics = [], scalar_prefetch = 0 : i64, scratch_operands = 2 : i64, tpu.core_type = #tpu.core_type<tc>} {
    %c0 = arith.constant 0 : index
    %c0_0 = arith.constant 0 : index
    %c0_1 = arith.constant 0 : index
    %0 = vector.load %arg0[%c0, %c0_0, %c0_1] : memref<2x96x21xf32, #tpu.memory_space<vmem>>, vector<2x65x21xf32>
    %c0_2 = arith.constant 0 : index
    %c1 = arith.constant 1 : index
    %c0_3 = arith.constant 0 : index
    %1 = vector.load %arg0[%c0_2, %c1, %c0_3] : memref<2x96x21xf32, #tpu.memory_space<vmem>>, vector<2x65x21xf32>
    %c0_4 = arith.constant 0 : index
    %c2 = arith.constant 2 : index
    %c0_5 = arith.constant 0 : index
    %2 = vector.load %arg0[%c0_4, %c2, %c0_5] : memref<2x96x21xf32, #tpu.memory_space<vmem>>, vector<2x65x21xf32>
    %c0_6 = arith.constant 0 : index
    %c3 = arith.constant 3 : index
    %c0_7 = arith.constant 0 : index
    %3 = vector.load %arg0[%c0_6, %c3, %c0_7] : memref<2x96x21xf32, #tpu.memory_space<vmem>>, vector<2x65x21xf32>
    %c0_8 = arith.constant 0 : index
    %c4 = arith.constant 4 : index
    %c0_9 = arith.constant 0 : index
    %4 = vector.load %arg0[%c0_8, %c4, %c0_9] : memref<2x96x21xf32, #tpu.memory_space<vmem>>, vector<2x65x21xf32>
    %c0_10 = arith.constant 0 : index
    %c5 = arith.constant 5 : index
    %c0_11 = arith.constant 0 : index
    %5 = vector.load %arg0[%c0_10, %c5, %c0_11] : memref<2x96x21xf32, #tpu.memory_space<vmem>>, vector<2x65x21xf32>
    %c0_12 = arith.constant 0 : index
    %c6 = arith.constant 6 : index
    %c0_13 = arith.constant 0 : index
    %6 = vector.load %arg0[%c0_12, %c6, %c0_13] : memref<2x96x21xf32, #tpu.memory_space<vmem>>, vector<2x65x21xf32>
    %c0_14 = arith.constant 0 : index
    %c7 = arith.constant 7 : index
    %c0_15 = arith.constant 0 : index
    %7 = vector.load %arg0[%c0_14, %c7, %c0_15] : memref<2x96x21xf32, #tpu.memory_space<vmem>>, vector<2x65x21xf32>
    %c0_16 = arith.constant 0 : index
    %c8 = arith.constant 8 : index
    %c0_17 = arith.constant 0 : index
    %8 = vector.load %arg0[%c0_16, %c8, %c0_17] : memref<2x96x21xf32, #tpu.memory_space<vmem>>, vector<2x65x21xf32>
    %c0_18 = arith.constant 0 : index
    %c9 = arith.constant 9 : index
    %c0_19 = arith.constant 0 : index
    %9 = vector.load %arg0[%c0_18, %c9, %c0_19] : memref<2x96x21xf32, #tpu.memory_space<vmem>>, vector<2x65x21xf32>
    %c0_20 = arith.constant 0 : index
    %c10 = arith.constant 10 : index
    %c0_21 = arith.constant 0 : index
    %10 = vector.load %arg0[%c0_20, %c10, %c0_21] : memref<2x96x21xf32, #tpu.memory_space<vmem>>, vector<2x65x21xf32>
    %c0_22 = arith.constant 0 : index
    %c11 = arith.constant 11 : index
    %c0_23 = arith.constant 0 : index
    %11 = vector.load %arg0[%c0_22, %c11, %c0_23] : memref<2x96x21xf32, #tpu.memory_space<vmem>>, vector<2x65x21xf32>
    %c0_24 = arith.constant 0 : index
    %c12 = arith.constant 12 : index
    %c0_25 = arith.constant 0 : index
    %12 = vector.load %arg0[%c0_24, %c12, %c0_25] : memref<2x96x21xf32, #tpu.memory_space<vmem>>, vector<2x65x21xf32>
    %c0_26 = arith.constant 0 : index
    %c13 = arith.constant 13 : index
    %c0_27 = arith.constant 0 : index
    %13 = vector.load %arg0[%c0_26, %c13, %c0_27] : memref<2x96x21xf32, #tpu.memory_space<vmem>>, vector<2x65x21xf32>
    %c0_28 = arith.constant 0 : index
    %c14 = arith.constant 14 : index
    %c0_29 = arith.constant 0 : index
    %14 = vector.load %arg0[%c0_28, %c14, %c0_29] : memref<2x96x21xf32, #tpu.memory_space<vmem>>, vector<2x65x21xf32>
    %c0_30 = arith.constant 0 : index
    %c15 = arith.constant 15 : index
    %c0_31 = arith.constant 0 : index
    %15 = vector.load %arg0[%c0_30, %c15, %c0_31] : memref<2x96x21xf32, #tpu.memory_space<vmem>>, vector<2x65x21xf32>
    %c0_32 = arith.constant 0 : index
    %c16 = arith.constant 16 : index
    %c0_33 = arith.constant 0 : index
    %16 = vector.load %arg0[%c0_32, %c16, %c0_33] : memref<2x96x21xf32, #tpu.memory_space<vmem>>, vector<2x65x21xf32>
    %c0_34 = arith.constant 0 : index
    %c17 = arith.constant 17 : index
    %c0_35 = arith.constant 0 : index
    %17 = vector.load %arg0[%c0_34, %c17, %c0_35] : memref<2x96x21xf32, #tpu.memory_space<vmem>>, vector<2x65x21xf32>
    %c0_36 = arith.constant 0 : index
    %c18 = arith.constant 18 : index
    %c0_37 = arith.constant 0 : index
    %18 = vector.load %arg0[%c0_36, %c18, %c0_37] : memref<2x96x21xf32, #tpu.memory_space<vmem>>, vector<2x65x21xf32>
    %c0_38 = arith.constant 0 : index
    %c19 = arith.constant 19 : index
    %c0_39 = arith.constant 0 : index
    %19 = vector.load %arg0[%c0_38, %c19, %c0_39] : memref<2x96x21xf32, #tpu.memory_space<vmem>>, vector<2x65x21xf32>
    %c0_40 = arith.constant 0 : index
    %c20 = arith.constant 20 : index
    %c0_41 = arith.constant 0 : index
    %20 = vector.load %arg0[%c0_40, %c20, %c0_41] : memref<2x96x21xf32, #tpu.memory_space<vmem>>, vector<2x65x21xf32>
    %c0_42 = arith.constant 0 : index
    %c21 = arith.constant 21 : index
    %c0_43 = arith.constant 0 : index
    %21 = vector.load %arg0[%c0_42, %c21, %c0_43] : memref<2x96x21xf32, #tpu.memory_space<vmem>>, vector<2x65x21xf32>
    %c0_44 = arith.constant 0 : index
    %c22 = arith.constant 22 : index
    %c0_45 = arith.constant 0 : index
    %22 = vector.load %arg0[%c0_44, %c22, %c0_45] : memref<2x96x21xf32, #tpu.memory_space<vmem>>, vector<2x65x21xf32>
    %c0_46 = arith.constant 0 : index
    %c23 = arith.constant 23 : index
    %c0_47 = arith.constant 0 : index
    %23 = vector.load %arg0[%c0_46, %c23, %c0_47] : memref<2x96x21xf32, #tpu.memory_space<vmem>>, vector<2x65x21xf32>
    %c0_48 = arith.constant 0 : index
    %c24 = arith.constant 24 : index
    %c0_49 = arith.constant 0 : index
    %24 = vector.load %arg0[%c0_48, %c24, %c0_49] : memref<2x96x21xf32, #tpu.memory_space<vmem>>, vector<2x65x21xf32>
    %c0_50 = arith.constant 0 : index
    %c25 = arith.constant 25 : index
    %c0_51 = arith.constant 0 : index
    %25 = vector.load %arg0[%c0_50, %c25, %c0_51] : memref<2x96x21xf32, #tpu.memory_space<vmem>>, vector<2x65x21xf32>
    %c0_52 = arith.constant 0 : index
    %c26 = arith.constant 26 : index
    %c0_53 = arith.constant 0 : index
    %26 = vector.load %arg0[%c0_52, %c26, %c0_53] : memref<2x96x21xf32, #tpu.memory_space<vmem>>, vector<2x65x21xf32>
    %c0_54 = arith.constant 0 : index
    %c27 = arith.constant 27 : index
    %c0_55 = arith.constant 0 : index
    %27 = vector.load %arg0[%c0_54, %c27, %c0_55] : memref<2x96x21xf32, #tpu.memory_space<vmem>>, vector<2x65x21xf32>
    %c0_56 = arith.constant 0 : index
    %c28 = arith.constant 28 : index
    %c0_57 = arith.constant 0 : index
    %28 = vector.load %arg0[%c0_56, %c28, %c0_57] : memref<2x96x21xf32, #tpu.memory_space<vmem>>, vector<2x65x21xf32>
    %c0_58 = arith.constant 0 : index
    %c29 = arith.constant 29 : index
    %c0_59 = arith.constant 0 : index
    %29 = vector.load %arg0[%c0_58, %c29, %c0_59] : memref<2x96x21xf32, #tpu.memory_space<vmem>>, vector<2x65x21xf32>
    %c0_60 = arith.constant 0 : index
    %c30 = arith.constant 30 : index
    %c0_61 = arith.constant 0 : index
    %30 = vector.load %arg0[%c0_60, %c30, %c0_61] : memref<2x96x21xf32, #tpu.memory_space<vmem>>, vector<2x65x21xf32>
    %c0_62 = arith.constant 0 : index
    %c31 = arith.constant 31 : index
    %c0_63 = arith.constant 0 : index
    %31 = vector.load %arg0[%c0_62, %c31, %c0_63] : memref<2x96x21xf32, #tpu.memory_space<vmem>>, vector<2x65x21xf32>
    %32 = tpu.concatenate %0, %1, %2, %3, %4, %5, %6, %7, %8, %9, %10, %11, %12, %13, %14, %15 in 2 : vector<2x65x21xf32>, vector<2x65x21xf32>, vector<2x65x21xf32>, vector<2x65x21xf32>, vector<2x65x21xf32>, vector<2x65x21xf32>, vector<2x65x21xf32>, vector<2x65x21xf32>, vector<2x65x21xf32>, vector<2x65x21xf32>, vector<2x65x21xf32>, vector<2x65x21xf32>, vector<2x65x21xf32>, vector<2x65x21xf32>, vector<2x65x21xf32>, vector<2x65x21xf32> -> vector<2x65x336xf32>
    %33 = tpu.concatenate %16, %17, %18, %19, %20, %21, %22, %23, %24, %25, %26, %27, %28, %29, %30, %31 in 2 : vector<2x65x21xf32>, vector<2x65x21xf32>, vector<2x65x21xf32>, vector<2x65x21xf32>, vector<2x65x21xf32>, vector<2x65x21xf32>, vector<2x65x21xf32>, vector<2x65x21xf32>, vector<2x65x21xf32>, vector<2x65x21xf32>, vector<2x65x21xf32>, vector<2x65x21xf32>, vector<2x65x21xf32>, vector<2x65x21xf32>, vector<2x65x21xf32>, vector<2x65x21xf32> -> vector<2x65x336xf32>
    %34 = tpu.concatenate %32, %33 in 2 : vector<2x65x336xf32>, vector<2x65x336xf32> -> vector<2x65x672xf32>
    %c0_64 = arith.constant 0 : index
    %c0_65 = arith.constant 0 : index
    %35 = vector.load %arg1[%c0_64, %c0_65] : memref<672x16xf32, #tpu.memory_space<vmem>>, vector<672x16xf32>
    "tpu.trace_start"() <{level = 10 : i32, message = "btk,kf->btf"}> : () -> ()
    %cst = arith.constant dense<0.000000e+00> : vector<2x65x16xf32>
    %36 = tpu.matmul %34, %35, %cst {dimension_numbers = #tpu.dot_dimension_numbers<[2], [0], [0, 1], [1], [0, 0, 0, 1, 1, 1], [], []>} : vector<2x65x672xf32>, vector<672x16xf32>, vector<2x65x16xf32> -> vector<2x65x16xf32>
    "tpu.trace_stop"() : () -> ()
    %37 = vector.extract_strided_slice %36 {offsets = [0, 0, 8], sizes = [2, 65, 8], strides = [1, 1, 1]} : vector<2x65x16xf32> to vector<2x65x8xf32>
    %c0_66 = arith.constant 0 : index
    %c0_67 = arith.constant 0 : index
    %c0_68 = arith.constant 0 : index
    %38 = vector.load %arg11[%c0_66, %c0_67, %c0_68] : memref<2x65x8xf32, #tpu.memory_space<vmem>>, vector<2x65x8xf32>
    tpu.vector_store %arg11[%c0_66, %c0_67, %c0_68], %37 {strides = array<i32>} : memref<2x65x8xf32, #tpu.memory_space<vmem>>, vector<2x65x8xf32>,
    %39 = vector.extract_strided_slice %36 {offsets = [0, 0, 0], sizes = [2, 65, 8], strides = [1, 1, 1]} : vector<2x65x16xf32> to vector<2x65x8xf32>
    %cst_69 = arith.constant dense<0.000000e+00> : vector<8xf32>
    %40 = vector.multi_reduction <add>, %39, %cst_69 [0, 1] : vector<2x65x8xf32> to vector<8xf32>
    %41 = vector.shape_cast %40 : vector<8xf32> to vector<1x1x8xf32>
    %42 = arith.mulf %39, %39 : vector<2x65x8xf32>
    %cst_70 = arith.constant dense<0.000000e+00> : vector<8xf32>
    %43 = vector.multi_reduction <add>, %42, %cst_70 [0, 1] : vector<2x65x8xf32> to vector<8xf32>
    %44 = vector.shape_cast %43 : vector<8xf32> to vector<1x1x8xf32>
    %cst_71 = arith.constant 0.0076923077 : f32
    %45 = vector.broadcast %cst_71 : f32 to vector<1x1x8xf32>
    %46 = arith.mulf %41, %45 : vector<1x1x8xf32>
    %cst_72 = arith.constant 0.0076923077 : f32
    %47 = vector.broadcast %cst_72 : f32 to vector<1x1x8xf32>
    %48 = arith.mulf %44, %47 : vector<1x1x8xf32>
    %49 = arith.mulf %46, %46 : vector<1x1x8xf32>
    %50 = arith.subf %48, %49 : vector<1x1x8xf32>
    %c0_73 = arith.constant 0 : index
    %c0_74 = arith.constant 0 : index
    %51 = vector.load %arg2[%c0_73, %c0_74] : memref<1x8xf32, #tpu.memory_space<vmem>>, vector<1x8xf32>
    %cst_75 = arith.constant 9.99999974E-6 : f32
    %52 = vector.broadcast %cst_75 : f32 to vector<1x1x8xf32>
    %53 = arith.addf %50, %52 : vector<1x1x8xf32>
    %54 = math.rsqrt %53 : vector<1x1x8xf32>
    %55 = vector.shape_cast %51 : vector<1x8xf32> to vector<1x1x8xf32>
    %56 = arith.mulf %55, %54 : vector<1x1x8xf32>
    %c0_76 = arith.constant 0 : index
    %c0_77 = arith.constant 0 : index
    %57 = vector.load %arg3[%c0_76, %c0_77] : memref<1x8xf32, #tpu.memory_space<vmem>>, vector<1x8xf32>
    %58 = arith.mulf %46, %56 : vector<1x1x8xf32>
    %59 = vector.shape_cast %57 : vector<1x8xf32> to vector<1x1x8xf32>
    %60 = arith.subf %59, %58 : vector<1x1x8xf32>
    %61 = vector.broadcast %56 : vector<1x1x8xf32> to vector<2x65x8xf32>
    %62 = arith.mulf %39, %61 : vector<2x65x8xf32>
    %63 = vector.broadcast %60 : vector<1x1x8xf32> to vector<2x65x8xf32>
    %64 = arith.addf %62, %63 : vector<2x65x8xf32>
    %65 = arith.mulf %64, %64 : vector<2x65x8xf32>
    %66 = tpu.transpose %65, [0, 2, 1] : vector<2x65x8xf32> -> vector<2x8x65xf32>
    %c0_78 = arith.constant 0 : index
    %c0_79 = arith.constant 0 : index
    %67 = vector.load %arg9[%c0_78, %c0_79] : memref<65x3xf32, #tpu.memory_space<vmem>>, vector<65x3xf32>
    "tpu.trace_start"() <{level = 10 : i32, message = "bft,tp->bfp"}> : () -> ()
    %cst_80 = arith.constant dense<0.000000e+00> : vector<2x8x3xf32>
    %68 = tpu.matmul %66, %67, %cst_80 {dimension_numbers = #tpu.dot_dimension_numbers<[2], [0], [0, 1], [1], [0, 0, 0, 1, 1, 1], [], []>} : vector<2x8x65xf32>, vector<65x3xf32>, vector<2x8x3xf32> -> vector<2x8x3xf32>
    "tpu.trace_stop"() : () -> ()
    %69 = tpu.transpose %68, [0, 2, 1] : vector<2x8x3xf32> -> vector<2x3x8xf32>
    %cst_81 = arith.constant 9.99999997E-7 : f32
    %70 = vector.broadcast %cst_81 : f32 to vector<2x3x8xf32>
    %71 = arith.maximumf %69, %70 : vector<2x3x8xf32>
    %72 = math.log %71 : vector<2x3x8xf32>
    %c0_82 = arith.constant 0 : index
    %c0_83 = arith.constant 0 : index
    %c0_84 = arith.constant 0 : index
    %73 = tpu.strided_load %arg11[%c0_82, %c0_83, %c0_84] {strides = array<i32: 1, 4, 1>} : memref<2x65x8xf32, #tpu.memory_space<vmem>>, vector<2x17x8xf32>
    %cst_85 = arith.constant dense<0.000000e+00> : vector<8xf32>
    %74 = vector.multi_reduction <add>, %73, %cst_85 [0, 1] : vector<2x17x8xf32> to vector<8xf32>
    %75 = vector.shape_cast %74 : vector<8xf32> to vector<1x1x8xf32>
    %76 = arith.mulf %73, %73 : vector<2x17x8xf32>
    %cst_86 = arith.constant dense<0.000000e+00> : vector<8xf32>
    %77 = vector.multi_reduction <add>, %76, %cst_86 [0, 1] : vector<2x17x8xf32> to vector<8xf32>
    %78 = vector.shape_cast %77 : vector<8xf32> to vector<1x1x8xf32>
    %cst_87 = arith.constant 0.0294117648 : f32
    %79 = vector.broadcast %cst_87 : f32 to vector<1x1x8xf32>
    %80 = arith.mulf %75, %79 : vector<1x1x8xf32>
    %cst_88 = arith.constant 0.0294117648 : f32
    %81 = vector.broadcast %cst_88 : f32 to vector<1x1x8xf32>
    %82 = arith.mulf %78, %81 : vector<1x1x8xf32>
    %83 = arith.mulf %80, %80 : vector<1x1x8xf32>
    %84 = arith.subf %82, %83 : vector<1x1x8xf32>
    %c0_89 = arith.constant 0 : index
    %c0_90 = arith.constant 0 : index
    %85 = vector.load %arg4[%c0_89, %c0_90] : memref<1x8xf32, #tpu.memory_space<vmem>>, vector<1x8xf32>
    %cst_91 = arith.constant 9.99999974E-6 : f32
    %86 = vector.broadcast %cst_91 : f32 to vector<1x1x8xf32>
    %87 = arith.addf %84, %86 : vector<1x1x8xf32>
    %88 = math.rsqrt %87 : vector<1x1x8xf32>
    %89 = vector.shape_cast %85 : vector<1x8xf32> to vector<1x1x8xf32>
    %90 = arith.mulf %89, %88 : vector<1x1x8xf32>
    %c0_92 = arith.constant 0 : index
    %c0_93 = arith.constant 0 : index
    %91 = vector.load %arg5[%c0_92, %c0_93] : memref<1x8xf32, #tpu.memory_space<vmem>>, vector<1x8xf32>
    %92 = arith.mulf %80, %90 : vector<1x1x8xf32>
    %93 = vector.shape_cast %91 : vector<1x8xf32> to vector<1x1x8xf32>
    %94 = arith.subf %93, %92 : vector<1x1x8xf32>
    %95 = vector.broadcast %90 : vector<1x1x8xf32> to vector<2x17x8xf32>
    %96 = arith.mulf %73, %95 : vector<2x17x8xf32>
    %97 = vector.broadcast %94 : vector<1x1x8xf32> to vector<2x17x8xf32>
    %98 = arith.addf %96, %97 : vector<2x17x8xf32>
    %cst_94 = arith.constant 0.000000e+00 : f32
    %99 = vector.broadcast %cst_94 : f32 to vector<2x17x8xf32>
    %100 = arith.cmpf ogt, %98, %99 : vector<2x17x8xf32>
    %cst_95 = arith.constant 0.000000e+00 : f32
    %101 = vector.broadcast %cst_95 : f32 to vector<2x17x8xf32>
    %102 = arith.minimumf %98, %101 : vector<2x17x8xf32>
    %103 = math.exp %102 : vector<2x17x8xf32>
    %cst_96 = arith.constant 1.000000e+00 : f32
    %104 = vector.broadcast %cst_96 : f32 to vector<2x17x8xf32>
    %105 = arith.subf %103, %104 : vector<2x17x8xf32>
    %106 = arith.select %100, %98, %105 : vector<2x17x8xi1>, vector<2x17x8xf32>
    %c0_97 = arith.constant 0 : index
    %c0_98 = arith.constant 0 : index
    %c0_99 = arith.constant 0 : index
    %107 = vector.load %arg12[%c0_97, %c0_98, %c0_99] : memref<2x17x8xf32, #tpu.memory_space<vmem>>, vector<2x17x8xf32>
    tpu.vector_store %arg12[%c0_97, %c0_98, %c0_99], %106 {strides = array<i32>} : memref<2x17x8xf32, #tpu.memory_space<vmem>>, vector<2x17x8xf32>,
    %c0_100 = arith.constant 0 : index
    %c0_101 = arith.constant 0 : index
    %c0_102 = arith.constant 0 : index
    %108 = tpu.strided_load %arg12[%c0_100, %c0_101, %c0_102] {strides = array<i32: 1, 2, 1>} : memref<2x17x8xf32, #tpu.memory_space<vmem>>, vector<2x8x8xf32>
    %c0_103 = arith.constant 0 : index
    %c1_104 = arith.constant 1 : index
    %c0_105 = arith.constant 0 : index
    %109 = tpu.strided_load %arg12[%c0_103, %c1_104, %c0_105] {strides = array<i32: 1, 2, 1>} : memref<2x17x8xf32, #tpu.memory_space<vmem>>, vector<2x8x8xf32>
    %110 = vector.extract_strided_slice %108 {offsets = [0, 0, 0], sizes = [2, 3, 8], strides = [1, 1, 1]} : vector<2x8x8xf32> to vector<2x3x8xf32>
    %111 = vector.extract_strided_slice %109 {offsets = [0, 0, 0], sizes = [2, 3, 8], strides = [1, 1, 1]} : vector<2x8x8xf32> to vector<2x3x8xf32>
    %112 = vector.extract_strided_slice %108 {offsets = [0, 1, 0], sizes = [2, 3, 8], strides = [1, 1, 1]} : vector<2x8x8xf32> to vector<2x3x8xf32>
    %113 = vector.extract_strided_slice %109 {offsets = [0, 1, 0], sizes = [2, 3, 8], strides = [1, 1, 1]} : vector<2x8x8xf32> to vector<2x3x8xf32>
    %114 = vector.extract_strided_slice %108 {offsets = [0, 2, 0], sizes = [2, 3, 8], strides = [1, 1, 1]} : vector<2x8x8xf32> to vector<2x3x8xf32>
    %115 = vector.extract_strided_slice %109 {offsets = [0, 2, 0], sizes = [2, 3, 8], strides = [1, 1, 1]} : vector<2x8x8xf32> to vector<2x3x8xf32>
    %116 = vector.extract_strided_slice %108 {offsets = [0, 3, 0], sizes = [2, 3, 8], strides = [1, 1, 1]} : vector<2x8x8xf32> to vector<2x3x8xf32>
    %117 = vector.extract_strided_slice %109 {offsets = [0, 3, 0], sizes = [2, 3, 8], strides = [1, 1, 1]} : vector<2x8x8xf32> to vector<2x3x8xf32>
    %118 = vector.extract_strided_slice %108 {offsets = [0, 4, 0], sizes = [2, 3, 8], strides = [1, 1, 1]} : vector<2x8x8xf32> to vector<2x3x8xf32>
    %119 = vector.extract_strided_slice %109 {offsets = [0, 4, 0], sizes = [2, 3, 8], strides = [1, 1, 1]} : vector<2x8x8xf32> to vector<2x3x8xf32>
    %120 = vector.extract_strided_slice %108 {offsets = [0, 5, 0], sizes = [2, 3, 8], strides = [1, 1, 1]} : vector<2x8x8xf32> to vector<2x3x8xf32>
    %121 = vector.extract_strided_slice %109 {offsets = [0, 5, 0], sizes = [2, 3, 8], strides = [1, 1, 1]} : vector<2x8x8xf32> to vector<2x3x8xf32>
    %122 = tpu.concatenate %110, %111, %112, %113, %114, %115, %116, %117, %118, %119, %120, %121 in 2 : vector<2x3x8xf32>, vector<2x3x8xf32>, vector<2x3x8xf32>, vector<2x3x8xf32>, vector<2x3x8xf32>, vector<2x3x8xf32>, vector<2x3x8xf32>, vector<2x3x8xf32>, vector<2x3x8xf32>, vector<2x3x8xf32>, vector<2x3x8xf32>, vector<2x3x8xf32> -> vector<2x3x96xf32>
    %c0_106 = arith.constant 0 : index
    %c0_107 = arith.constant 0 : index
    %123 = vector.load %arg6[%c0_106, %c0_107] : memref<96x16xf32, #tpu.memory_space<vmem>>, vector<96x16xf32>
    "tpu.trace_start"() <{level = 10 : i32, message = "btk,kg->btg"}> : () -> ()
    %cst_108 = arith.constant dense<0.000000e+00> : vector<2x3x16xf32>
    %124 = tpu.matmul %122, %123, %cst_108 {dimension_numbers = #tpu.dot_dimension_numbers<[2], [0], [0, 1], [1], [0, 0, 0, 1, 1, 1], [], []>} : vector<2x3x96xf32>, vector<96x16xf32>, vector<2x3x16xf32> -> vector<2x3x16xf32>
    "tpu.trace_stop"() : () -> ()
    %cst_109 = arith.constant dense<0.000000e+00> : vector<16xf32>
    %125 = vector.multi_reduction <add>, %124, %cst_109 [0, 1] : vector<2x3x16xf32> to vector<16xf32>
    %126 = vector.shape_cast %125 : vector<16xf32> to vector<1x1x16xf32>
    %127 = arith.mulf %124, %124 : vector<2x3x16xf32>
    %cst_110 = arith.constant dense<0.000000e+00> : vector<16xf32>
    %128 = vector.multi_reduction <add>, %127, %cst_110 [0, 1] : vector<2x3x16xf32> to vector<16xf32>
    %129 = vector.shape_cast %128 : vector<16xf32> to vector<1x1x16xf32>
    %cst_111 = arith.constant 0.166666672 : f32
    %130 = vector.broadcast %cst_111 : f32 to vector<1x1x16xf32>
    %131 = arith.mulf %126, %130 : vector<1x1x16xf32>
    %cst_112 = arith.constant 0.166666672 : f32
    %132 = vector.broadcast %cst_112 : f32 to vector<1x1x16xf32>
    %133 = arith.mulf %129, %132 : vector<1x1x16xf32>
    %134 = arith.mulf %131, %131 : vector<1x1x16xf32>
    %135 = arith.subf %133, %134 : vector<1x1x16xf32>
    %c0_113 = arith.constant 0 : index
    %c0_114 = arith.constant 0 : index
    %136 = vector.load %arg7[%c0_113, %c0_114] : memref<1x16xf32, #tpu.memory_space<vmem>>, vector<1x16xf32>
    %cst_115 = arith.constant 9.99999974E-6 : f32
    %137 = vector.broadcast %cst_115 : f32 to vector<1x1x16xf32>
    %138 = arith.addf %135, %137 : vector<1x1x16xf32>
    %139 = math.rsqrt %138 : vector<1x1x16xf32>
    %140 = vector.shape_cast %136 : vector<1x16xf32> to vector<1x1x16xf32>
    %141 = arith.mulf %140, %139 : vector<1x1x16xf32>
    %c0_116 = arith.constant 0 : index
    %c0_117 = arith.constant 0 : index
    %142 = vector.load %arg8[%c0_116, %c0_117] : memref<1x16xf32, #tpu.memory_space<vmem>>, vector<1x16xf32>
    %143 = arith.mulf %131, %141 : vector<1x1x16xf32>
    %144 = vector.shape_cast %142 : vector<1x16xf32> to vector<1x1x16xf32>
    %145 = arith.subf %144, %143 : vector<1x1x16xf32>
    %146 = vector.broadcast %141 : vector<1x1x16xf32> to vector<2x3x16xf32>
    %147 = arith.mulf %124, %146 : vector<2x3x16xf32>
    %148 = vector.broadcast %145 : vector<1x1x16xf32> to vector<2x3x16xf32>
    %149 = arith.addf %147, %148 : vector<2x3x16xf32>
    %cst_118 = arith.constant 0.000000e+00 : f32
    %150 = vector.broadcast %cst_118 : f32 to vector<2x3x16xf32>
    %151 = arith.cmpf ogt, %149, %150 : vector<2x3x16xf32>
    %cst_119 = arith.constant 0.000000e+00 : f32
    %152 = vector.broadcast %cst_119 : f32 to vector<2x3x16xf32>
    %153 = arith.minimumf %149, %152 : vector<2x3x16xf32>
    %154 = math.exp %153 : vector<2x3x16xf32>
    %cst_120 = arith.constant 1.000000e+00 : f32
    %155 = vector.broadcast %cst_120 : f32 to vector<2x3x16xf32>
    %156 = arith.subf %154, %155 : vector<2x3x16xf32>
    %157 = arith.select %151, %149, %156 : vector<2x3x16xi1>, vector<2x3x16xf32>
    %cst_121 = arith.constant 0.000000e+00 : f32
    %158 = vector.broadcast %cst_121 : f32 to vector<2x3x104xf32>
    %159 = tpu.concatenate %72, %157, %158 in 2 : vector<2x3x8xf32>, vector<2x3x16xf32>, vector<2x3x104xf32> -> vector<2x3x128xf32>
    %c0_122 = arith.constant 0 : index
    %c0_123 = arith.constant 0 : index
    %c0_124 = arith.constant 0 : index
    %160 = vector.load %arg10[%c0_122, %c0_123, %c0_124] : memref<2x3x128xf32, #tpu.memory_space<vmem>>, vector<2x3x128xf32>
    tpu.vector_store %arg10[%c0_122, %c0_123, %c0_124], %159 {strides = array<i32>} : memref<2x3x128xf32, #tpu.memory_space<vmem>>, vector<2x3x128xf32>,
    return
  }
}

</mosaic_0001>

<bundles_post_ra>
// kernel: tpu_custom_call.1
= control target key start
LH: loop header
LB: loop body
LE: loop exit
PB: predicated region body
PF: predicated region fallthrough
CT: control target
= control target key end

     0   :  { %s20465_s17 = smov 19   ;;  %s20467_s18 = smov 21   ;;  %vm1257_vm0 = vcmask 171008   ;;  %vm1276_vm1 = vcmask 343040   ;;  %vm1371_vm2 = vcmask 154624   ;;  %vm1295_vm3 = vcmask 515072   ;;  %s20419_s0 = inlined_call_operand.vmem [shape: f32[2,96,21], index: 0, kind: input, shape index: {}]   ;;  %s20420_s1 = inlined_call_operand.vmem [shape: f32[672,16], index: 1, kind: input, shape index: {}]   ;;  %s20421_s2 = inlined_call_operand.vmem [shape: f32[1,8], index: 2, kind: input, shape index: {}]   ;;  %s20422_s3 = inlined_call_operand.vmem [shape: f32[1,8], index: 3, kind: input, shape index: {}]   ;;  %s20423_s4 = inlined_call_operand.vmem [shape: f32[1,8], index: 4, kind: input, shape index: {}]   ;;  %s20424_s5 = inlined_call_operand.vmem [shape: f32[1,8], index: 5, kind: input, shape index: {}]   ;;  %s20425_s9 = inlined_call_operand.vmem [shape: f32[65,3], index: 9, kind: input, shape index: {}]   ;;  %s20426_s6 = inlined_call_operand.vmem [shape: f32[96,16], index: 6, kind: input, shape index: {}]   ;;  %s20427_s7 = inlined_call_operand.vmem [shape: f32[1,16], index: 7, kind: input, shape index: {}]   ;;  %s20428_s8 = inlined_call_operand.vmem [shape: f32[1,16], index: 8, kind: input, shape index: {}]   ;;  %s20429_s10 = inlined_call_operand.vmem [shape: f32[2,3,128], index: 10, kind: output, shape index: {}]  }
   0x1   :  { %20686 = sst [smem:[#allocation162_spill]] %s20425_s9  ;;  %v163_v0 = vld [vmem:[%s20419_s0 + $0x17] sm:$0xff]  ;;  %s20432_s23 = smov 42   ;;  %v164_v12 = vld [vmem:[%s20419_s0 + $0x1f] sm:$0xff]  ;;  %v165_v20 = vld [vmem:[%s20419_s0 + $0x27] sm:$0xff]  ;;  %vm1390_vm4 = vcmask 326656  }
   0x2   :  { %20687 = sst [smem:[#allocation163_spill]] %s20426_s6  ;;  %v55_v1 = vld [vmem:[%s20419_s0 + $0x11] sm:$0xff]  ;;  %729 = vrot.lane.b32.xlu1 %v163_v0, %s20465_s17  ;;  %s20454_s24 = smov 126   ;;  %v56_v7 = vld [vmem:[%s20419_s0 + $0x19] sm:$0xff]  ;;  %v57_v15 = vld [vmem:[%s20419_s0 + $0x21] sm:$0xff]  ;;  %vm1314_vm5 = vcmask 687104  }
   0x3   :  { %20688 = sst [smem:[#allocation164_spill]] %s20427_s7  ;;  %297 = vrot.lane.b32.xlu0 %v55_v1, %s20467_s18  ;;  %v73_v2 = vld [vmem:[%s20419_s0 + $0x12] sm:$0xff]  ;;  %s20442_s29 = smov 63   ;;  %v74_v8 = vld [vmem:[%s20419_s0 + $0x1a] sm:$0xff]  ;;  %v75_v16 = vld [vmem:[%s20419_s0 + $0x22] sm:$0xff]  ;;  %vm1409_vm6 = vcmask 498688  }
   0x4   :  { %20689 = sst [smem:[#allocation165_spill]] %s20428_s8  ;;  %v145_v3 = vld [vmem:[%s20419_s0 + $0x16] sm:$0xff]  ;;  %s20451_s30 = smov 40   ;;  %v146_v9 = vld [vmem:[%s20419_s0 + $0x1e] sm:$0xff]  ;;  %v147_v17 = vld [vmem:[%s20419_s0 + $0x26] sm:$0xff]  ;;  %vm1333_vm7 = vcmask 859136  }
   0x5   :  { %20690 = sst [smem:[#allocation166_spill]] %s20429_s10  ;;  %v91_v4 = vld [vmem:[%s20419_s0 + $0x13] sm:$0xff]  ;;  %s20436_s15 = smov 84   ;;  %v92_v11 = vld [vmem:[%s20419_s0 + $0x1b] sm:$0xff]  ;;  %v93_v19 = vld [vmem:[%s20419_s0 + $0x23] sm:$0xff]  ;;  %vm1428_vm8 = vcmask 670720  }
   0x6   :  { %369 = vrot.lane.b32.xlu1 %v73_v2, %s20432_s23  ;;  %v38_v5 = vld [vmem:[%s20419_s0 + $0x18] sm:$0xff]  ;;  %s20434_s16 = smov 61   ;;  %s20473_s21 = smov 82   ;;  %v39_v13 = vld [vmem:[%s20419_s0 + $0x20] sm:$0xff]  ;;  %v40_v21 = vld [vmem:[%s20419_s0 + $0x28] sm:$0xff]  ;;  %vm1447_vm9 = vcmask 842752  }
   0x7   :  { %657 = vrot.lane.b32.xlu0 %v145_v3, %s20454_s24  ;;  %v109_v6 = vld [vmem:[%s20419_s0 + $0x14] sm:$0xff]  ;;  %s20463_s28 = smov 105   ;;  %s20471_s19 = smov 103   ;;  %v110_v14 = vld [vmem:[%s20419_s0 + $0x1c] sm:$0xff]  ;;  %v111_v22 = vld [vmem:[%s20419_s0 + $0x24] sm:$0xff]  ;;  %vm1466_vm10 = vcmask 1014784  }
   0x8   :  { %v127_v10 = vld [vmem:[%s20419_s0 + $0x15] sm:$0xff]  ;;  %s20478_s27 = smov 124   ;;  %v128_v18 = vld [vmem:[%s20419_s0 + $0x1d] sm:$0xff]  ;;  %v58_v23 = vld [vmem:[%s20419_s0 + $0x29] sm:$0xff]  ;;  %s20480_s25 = smov 17   ;;  %vm1352_vm11 = vcmask 1031168  }
   0x9   :  { %v76_v24 = vld [vmem:[%s20419_s0 + $0x2a] sm:$0xff]  ;;  %v77_v32 = vld [vmem:[%s20419_s0 + $0x32] sm:$0xff]  ;;  %v78_v40 = vld [vmem:[%s20419_s0 + $0x3a] sm:$0xff]  ;;  %s20459_s20 = smov 38   ;;  %s20446_s11 = smov 59   ;;  %vm1485_vm12 = vcmask 138240  }
   0xa   :  { %441 = vrot.lane.b32.xlu1 %v91_v4, %s20442_s29  ;;  %v148_v25 = vld [vmem:[%s20419_s0 + $0x2e] sm:$0xff]  ;;  %v129_v26 = vld [vmem:[%s20419_s0 + $0x25] sm:$0xff]  ;;  %v149_v33 = vld [vmem:[%s20419_s0 + $0x36] sm:$0xff]  ;;  %s20731_s14 = smov 84   ;;  %s20732_s22 = smov 61   ;;  %vm1504_vm13 = vcmask 310272  }
   0xb   :  { %801 = vrot.lane.b32.xlu0 %v38_v5, %s20451_s30  ;;  %v94_v27 = vld [vmem:[%s20419_s0 + $0x2b] sm:$0xff]  ;;  %v95_v35 = vld [vmem:[%s20419_s0 + $0x33] sm:$0xff]  ;;  %v150_v41 = vld [vmem:[%s20419_s0 + $0x3e] sm:$0xff]  ;;  %s20790_s12 = smov 126   ;;  %s20836_s26 = smov 21   ;;  %vm2126_vm14 = vcmask 654336  }
   0xc   :  { %v166_v28 = vld [vmem:[%s20419_s0 + $0x2f] sm:$0xff]  ;;  %v167_v36 = vld [vmem:[%s20419_s0 + $0x37] sm:$0xff]  ;;  %v168_v46 = vld [vmem:[%s20419_s0 + $0x3f] sm:$0xff]  ;;  %s20855_s8 = smov 80   ;;  %vm1523_vm15 = vcmask 482304   ;;  %s13011_s9 = smov 32  }
   0xd   :  { %v41_v29 = vld [vmem:[%s20419_s0 + $0x30] sm:$0xff]  ;;  %v42_v37 = vld [vmem:[%s20419_s0 + $0x38] sm:$0xff]  ;;  %v179_v49 = vld [vmem:[%s20419_s0 + $0x40] sm:$0xff]  ;;  %s13016_s7 = smov 88  }
   0xe   :  { %513 = vrot.lane.b32.xlu1 %v109_v6, %s20436_s15  ;;  %v112_v30 = vld [vmem:[%s20419_s0 + $0x2c] sm:$0xff]  ;;  %v113_v38 = vld [vmem:[%s20419_s0 + $0x34] sm:$0xff]  ;;  %v114_v52 = vld [vmem:[%s20419_s0 + $0x3c] sm:$0xff] }
   0xf   :  { %859 = vrot.lane.b32.xlu0 %v56_v7, %s20434_s16  ;;  %v59_v31 = vld [vmem:[%s20419_s0 + $0x31] sm:$0xff]  ;;  %v60_v39 = vld [vmem:[%s20419_s0 + $0x39] sm:$0xff]  ;;  %v183_v55 = vld [vmem:[%s20419_s0 + $0x41] sm:$0xff] }
  0x10   :  { %v130_v34 = vld [vmem:[%s20419_s0 + $0x2d] sm:$0xff]  ;;  %v131_v42 = vld [vmem:[%s20419_s0 + $0x35] sm:$0xff]  ;;  %v132_v58 = vld [vmem:[%s20419_s0 + $0x3d] sm:$0xff] }
  0x11   :  { %v96_v45 = vld [vmem:[%s20419_s0 + $0x3b] sm:$0xff]  ;;  %v191_v62 = vld [vmem:[%s20419_s0 + $0x43] sm:$0xff] }
  0x12   :  { %299 = vrot.lane.b32.xlu1 %v56_v7, %s20467_s18  ;;  %v187_v59 = vld [vmem:[%s20419_s0 + $0x42] sm:$0xff] }
  0x13   :  { %917 = vrot.lane.b32.xlu0 %v74_v8, %s20473_s21  ;;  %v207_v1 = vld [vmem:[%s20419_s0 + $0x47] sm:$0xff] }
  0x14   :  { %v203_v2 = vld [vmem:[%s20419_s0 + $0x46] sm:$0xff] }
  0x15   :  { %v195_v5 = vld [vmem:[%s20419_s0 + $0x44] sm:$0xff] }
  0x16   :  { %659 = vrot.lane.b32.xlu1 %v146_v9, %s20454_s24 }
  0x17   :  { %585 = vrot.lane.b32.xlu0 %v127_v10, %s20463_s28 }
  0x1a   :  { %975 = vrot.lane.b32.xlu1 %v92_v11, %s20471_s19 }
  0x1b   :  { %731 = vrot.lane.b32.xlu0 %v164_v12, %s20465_s17 }
  0x1e   :  { %803 = vrot.lane.b32.xlu1 %v39_v13, %s20451_s30 }
  0x1f   :  { %371 = vrot.lane.b32.xlu0 %v74_v8, %s20432_s23  ;;  %v211_v8 = vld [vmem:[%s20419_s0 + $0x48] sm:$0xff] }
  0x22   :  { %443 = vrot.lane.b32.xlu1 %v92_v11, %s20442_s29  ;;  %v215_v11 = vld [vmem:[%s20419_s0 + $0x49] sm:$0xff] }
  0x23   :  { %1033 = vrot.lane.b32.xlu0 %v110_v14, %s20478_s27 }
  0x26   :  { %515 = vrot.lane.b32.xlu1 %v110_v14, %s20436_s15  ;;  %v219_v14 = vld [vmem:[%s20419_s0 + $0x4a] sm:$0xff] }
  0x27   :  { %861 = vrot.lane.b32.xlu0 %v57_v15, %s20434_s16 }
  0x2a   :  { %301 = vrot.lane.b32.xlu1 %v57_v15, %s20467_s18 }
  0x2b   :  { %919 = vrot.lane.b32.xlu0 %v75_v16, %s20473_s21 }
  0x2e   :  { %661 = vrot.lane.b32.xlu1 %v147_v17, %s20454_s24  ;;  %v235_v17 = vld [vmem:[%s20419_s0 + $0x4e] sm:$0xff] }
  0x2f   :  { %587 = vrot.lane.b32.xlu0 %v128_v18, %s20463_s28  ;;  %v199_v18 = vld [vmem:[%s20419_s0 + $0x45] sm:$0xff] }
  0x32   :  { %977 = vrot.lane.b32.xlu1 %v93_v19, %s20471_s19 }
  0x33   :  { %733 = vrot.lane.b32.xlu0 %v165_v20, %s20465_s17 }
  0x36   :  { %805 = vrot.lane.b32.xlu1 %v40_v21, %s20451_s30  ;;  %v223_v21 = vld [vmem:[%s20419_s0 + $0x4b] sm:$0xff] }
  0x37   :  { %373 = vrot.lane.b32.xlu0 %v75_v16, %s20432_s23 }
  0x3a   :  { %445 = vrot.lane.b32.xlu1 %v93_v19, %s20442_s29 }
  0x3b   :  { %1035 = vrot.lane.b32.xlu0 %v111_v22, %s20478_s27 }
  0x3e   :  { %517 = vrot.lane.b32.xlu1 %v111_v22, %s20436_s15  ;;  %v239_v22 = vld [vmem:[%s20419_s0 + $0x4f] sm:$0xff] }
  0x3f   :  { %863 = vrot.lane.b32.xlu0 %v58_v23, %s20434_s16 }
  0x42   :  { %303 = vrot.lane.b32.xlu1 %v58_v23, %s20467_s18 }
  0x43   :  { %921 = vrot.lane.b32.xlu0 %v76_v24, %s20473_s21 }
  0x46   :  { %663 = vrot.lane.b32.xlu1 %v148_v25, %s20454_s24  ;;  %v243_v25 = vld [vmem:[%s20419_s0 + $0x50] sm:$0xff] }
  0x47   :  { %589 = vrot.lane.b32.xlu0 %v129_v26, %s20463_s28 }
  0x4a   :  { %979 = vrot.lane.b32.xlu1 %v94_v27, %s20471_s19 }
  0x4b   :  { %735 = vrot.lane.b32.xlu0 %v166_v28, %s20465_s17  ;;  %v64_v28 = vld [vmem:[%s20419_s0 + $0x71] sm:$0xff] }
  0x4e   :  { %807 = vrot.lane.b32.xlu1 %v41_v29, %s20451_s30  ;;  %v227_v29 = vld [vmem:[%s20419_s0 + $0x4c] sm:$0xff] }
  0x4f   :  { %375 = vrot.lane.b32.xlu0 %v76_v24, %s20432_s23 }
  0x52   :  { %447 = vrot.lane.b32.xlu1 %v94_v27, %s20442_s29 }
  0x53   :  { %1037 = vrot.lane.b32.xlu0 %v112_v30, %s20478_s27 }
  0x56   :  { %519 = vrot.lane.b32.xlu1 %v112_v30, %s20436_s15 }
  0x57   :  { %865 = vrot.lane.b32.xlu0 %v59_v31, %s20434_s16 }
  0x5a   :  { %305 = vrot.lane.b32.xlu1 %v59_v31, %s20467_s18 }
  0x5b   :  { %923 = vrot.lane.b32.xlu0 %v77_v32, %s20473_s21 }
  0x5e   :  { %665 = vrot.lane.b32.xlu1 %v149_v33, %s20454_s24  ;;  %v154_v33 = vld [vmem:[%s20419_s0 + $0x76] sm:$0xff] }
  0x5f   :  { %591 = vrot.lane.b32.xlu0 %v130_v34, %s20463_s28 }
  0x62   :  { %981 = vrot.lane.b32.xlu1 %v95_v35, %s20471_s19 }
  0x63   :  { %737 = vrot.lane.b32.xlu0 %v167_v36, %s20465_s17  ;;  %v247_v36 = vld [vmem:[%s20419_s0 + $0x51] sm:$0xff] }
  0x66   :  { %809 = vrot.lane.b32.xlu1 %v42_v37, %s20451_s30 }
  0x67   :  { %377 = vrot.lane.b32.xlu0 %v77_v32, %s20432_s23  ;;  %v172_v32 = vld [vmem:[%s20419_s0 + $0x77] sm:$0xff] }
  0x6a   :  { %449 = vrot.lane.b32.xlu1 %v95_v35, %s20442_s29 }
  0x6b   :  { %1039 = vrot.lane.b32.xlu0 %v113_v38, %s20478_s27 }
  0x6e   :  { %521 = vrot.lane.b32.xlu1 %v113_v38, %s20436_s15 }
  0x6f   :  { %867 = vrot.lane.b32.xlu0 %v60_v39, %s20434_s16 }
  0x72   :  { %307 = vrot.lane.b32.xlu1 %v60_v39, %s20467_s18  ;;  %v47_v39 = vld [vmem:[%s20419_s0 + $0x78] sm:$0xff] }
  0x73   :  { %925 = vrot.lane.b32.xlu0 %v78_v40, %s20473_s21 }
  0x74   :  { %v13260_v43 = vpop.permute.xlu1 %729 }
  0x75   :  { %v13262_v44 = vpop.permute.xlu0 %297 }
  0x76   :  { %667 = vrot.lane.b32.xlu1 %v150_v41, %s20454_s24 }
  0x77   :  { %593 = vrot.lane.b32.xlu0 %v131_v42, %s20463_s28 }
  0x78   :  { %v13272_v47 = vpop.permute.xlu1 %369 }
  0x79   :  { %v13274_v48 = vpop.permute.xlu0 %657 }
  0x7a   :  { %983 = vrot.lane.b32.xlu1 %v96_v45, %s20471_s19 }
  0x7b   :  { %739 = vrot.lane.b32.xlu0 %v168_v46, %s20465_s17 }
  0x7c   :  { %v13281_v50 = vpop.permute.xlu1 %441 }
  0x7d   :  { %v13283_v51 = vpop.permute.xlu0 %801 }
  0x7e   :  { %811 = vrot.lane.b32.xlu1 %v179_v49, %s20451_s30 }
  0x7f   :  { %379 = vrot.lane.b32.xlu0 %v78_v40, %s20432_s23  ;;  %v82_v40 = vld [vmem:[%s20419_s0 + $0x72] sm:$0xff] }
  0x80   :  { %v13290_v53 = vpop.permute.xlu1 %513 }
  0x81   :  { %v13292_v54 = vpop.permute.xlu0 %859 }
  0x82   :  { %451 = vrot.lane.b32.xlu1 %v96_v45, %s20442_s29  ;;  %v251_v45 = vld [vmem:[%s20419_s0 + $0x52] sm:$0xff] }
  0x83   :  { %1041 = vrot.lane.b32.xlu0 %v114_v52, %s20478_s27 }
  0x84   :  { %v13299_v56 = vpop.permute.xlu1 %299 }
  0x85   :  { %v13301_v57 = vpop.permute.xlu0 %917 }
  0x86   :  { %523 = vrot.lane.b32.xlu1 %v114_v52, %s20436_s15  ;;  %v65_v52 = vld [vmem:[%s20419_s0 + $0x79] sm:$0xff] }
  0x87   :  { %869 = vrot.lane.b32.xlu0 %v183_v55, %s20434_s16 }
  0x88   :  { %v13311_v60 = vpop.permute.xlu1 %659 }
  0x89   :  { %v13313_v61 = vpop.permute.xlu0 %585 }
  0x8a   :  { %595 = vrot.lane.b32.xlu1 %v132_v58, %s20463_s28 }
  0x8b   :  { %927 = vrot.lane.b32.xlu0 %v187_v59, %s20473_s21 }
  0x8c   :  { %v13320_v63 = vpop.permute.xlu1 %975 }
  0x8d   :  { %v13322_v0 = vpop.permute.xlu0 %731 }
  0x8e   :  { %1546 = vrot.lane.b32.xlu1 %v183_v55, %s20467_s18  ;;  %v100_v55 = vld [vmem:[%s20419_s0 + $0x73] sm:$0xff] }
  0x8f   :  { %985 = vrot.lane.b32.xlu0 %v191_v62, %s20471_s19 }
  0x90   :  { %v13332_v3 = vpop.permute.xlu1 %803 }
  0x91   :  { %v13334_v4 = vpop.permute.xlu0 %371 }
  0x92   :  { %1678 = vrot.lane.b32.xlu1 %v207_v1, %s20465_s17  ;;  %v216_v1 = vld [vmem:[%s20419_s0 + $0x51] sm:$0x1] }
  0x93   :  { %1656 = vrot.lane.b32.xlu0 %v203_v2, %s20454_s24 }
  0x94   :  { %v13341_v6 = vpop.permute.xlu1 %443 }
  0x95   :  { %v13343_v7 = vpop.permute.xlu0 %1033 }
  0x96   :  { %1568 = vrot.lane.b32.xlu1 %v187_v59, %s20432_s23 }
  0x97   :  { %1043 = vrot.lane.b32.xlu0 %v195_v5, %s20478_s27 }
  0x98   :  { %v13350_v9 = vpop.permute.xlu1 %515 }
  0x99   :  { %v13352_v10 = vpop.permute.xlu0 %861 }
  0x9a   :  { %1590 = vrot.lane.b32.xlu1 %v191_v62, %s20442_s29  ;;  %v231_v62 = vld [vmem:[%s20419_s0 + $0x4d] sm:$0xff] }
  0x9b   :  { %1702 = vrot.lane.b32.xlu0 %v211_v8, %s20451_s30  ;;  %v240_v8 = vld [vmem:[%s20419_s0 + $0x57] sm:$0x1] }
  0x9c   :  { %v13359_v12 = vpop.permute.xlu1 %301 }
  0x9d   :  { %v13361_v13 = vpop.permute.xlu0 %919 }
  0x9e   :  { %1612 = vrot.lane.b32.xlu1 %v195_v5, %s20436_s15 }
  0x9f   :  { %1724 = vrot.lane.b32.xlu0 %v215_v11, %s20434_s16 }
  0xa0   :  { %v13368_v15 = vpop.permute.xlu1 %661 }
  0xa1   :  { %v13370_v16 = vpop.permute.xlu0 %587 }
  0xa2   :  { %1548 = vrot.lane.b32.xlu1 %v215_v11, %s20467_s18  ;;  %v236_v11 = vld [vmem:[%s20419_s0 + $0x56] sm:$0x1] }
  0xa3   :  { %1746 = vrot.lane.b32.xlu0 %v219_v14, %s20473_s21 }
  0xa4   :  { %v13380_v19 = vpop.permute.xlu1 %977 }
  0xa5   :  { %v13382_v20 = vpop.permute.xlu0 %733 }
  0xa6   :  { %1658 = vrot.lane.b32.xlu1 %v235_v17, %s20454_s24 }
  0xa7   :  { %1634 = vrot.lane.b32.xlu0 %v199_v18, %s20463_s28  ;;  %v118_v18 = vld [vmem:[%s20419_s0 + $0x74] sm:$0xff] }
  0xa8   :  { %v13392_v23 = vpop.permute.xlu1 %805 }
  0xa9   :  { %v13394_v24 = vpop.permute.xlu0 %373 }
  0xaa   :  { %1768 = vrot.lane.b32.xlu1 %v223_v21, %s20471_s19 }
  0xab   :  { %1680 = vrot.lane.b32.xlu0 %v239_v22, %s20465_s17 }
  0xac   :  { %v13401_v26 = vpop.permute.xlu1 %445 }
  0xad   :  { %v13403_v27 = vpop.permute.xlu0 %1035 }
  0xae   :  { %1704 = vrot.lane.b32.xlu1 %v243_v25, %s20451_s30 }
  0xaf   :  { %1570 = vrot.lane.b32.xlu0 %v219_v14, %s20432_s23 }
  0xb0   :  { %v13413_v30 = vpop.permute.xlu1 %517 }
  0xb1   :  { %v13415_v31 = vpop.permute.xlu0 %863 }
  0xb2   :  { %315 = vrot.lane.b32.xlu1 %v64_v28, %s20467_s18  ;;  %v13512_v28 = vld [vmem:[%s20419_s0 + $0x7c] sm:$0xff] }
  0xb3   :  { %1790 = vrot.lane.b32.xlu0 %v227_v29, %s20478_s27 }
  0xb4   :  { %v13425_v34 = vpop.permute.xlu1 %303 }
  0xb5   :  { %v13427_v35 = vpop.permute.xlu0 %921 }
  0xb6   :  { %747 = vrot.lane.b32.xlu1 %v172_v32, %s20465_s17 }
  0xb7   :  { %675 = vrot.lane.b32.xlu0 %v154_v33, %s20454_s24 }
  0xb8   :  { %v13434_v37 = vpop.permute.xlu1 %663 }
  0xb9   :  { %v13436_v38 = vpop.permute.xlu0 %589 }
  0xba   :  { %1726 = vrot.lane.b32.xlu1 %v247_v36, %s20434_s16  ;;  %v220_v36 = vld [vmem:[%s20419_s0 + $0x52] sm:$0x1] }
  0xbb   :  { %1592 = vrot.lane.b32.xlu0 %v223_v21, %s20442_s29  ;;  %v255_v21 = vld [vmem:[%s20419_s0 + $0x53] sm:$0xff] }
  0xbc   :  { %v13446_v41 = vpop.permute.xlu1 %979 }
  0xbd   :  { %v13448_v42 = vpop.permute.xlu0 %735 }
  0xbe   :  { %819 = vrot.lane.b32.xlu1 %v47_v39, %s20451_s30  ;;  %v13530_v39 = vld [vmem:[%s20419_s0 + $0x7d] sm:$0xff] }
  0xbf   :  { %387 = vrot.lane.b32.xlu0 %v82_v40, %s20432_s23 }
  0xc0   :  { %v13455_v46 = vpop.permute.xlu1 %807 }
  0xc1   :  { %v13457_v49 = vpop.permute.xlu0 %375 }
  0xc2   :  { %1748 = vrot.lane.b32.xlu1 %v251_v45, %s20473_s21 }
  0xc3   :  { %1614 = vrot.lane.b32.xlu0 %v227_v29, %s20436_s15  ;;  %v83_v29 = vld [vmem:[%s20419_s0 + $0x7a] sm:$0xff] }
  0xc4   :  { %v13467_v58 = vpop.permute.xlu1 %447 }
  0xc5   :  { %v13469_v59 = vpop.permute.xlu0 %1037 }
  0xc6   :  { %877 = vrot.lane.b32.xlu1 %v65_v52, %s20434_s16 }
  0xc7   :  { %459 = vrot.lane.b32.xlu0 %v100_v55, %s20442_s29  ;;  %v259_v55 = vld [vmem:[%s20419_s0 + $0x54] sm:$0xff] }
  0xc8   :  { %v13479_v2 = vpop.permute.xlu1 %519 }
  0xc9   :  { %v13481_v5 = vpop.permute.xlu0 %865 }
  0xca   :  { %1636 = vrot.lane.b32.xlu1 %v231_v62, %s20463_s28  ;;  %v244_v62 = vld [vmem:[%s20419_s0 + $0x58] sm:$0x1] }
  0xcb   :  { %1550 = vrot.lane.b32.xlu0 %v216_v1, %s20467_s18 }
  0xcc   :  { %v13491_v14 = vpop.permute.xlu1 %305 }
  0xcd   :  { %v13493_v17 = vpop.permute.xlu0 %923 }
  0xce   :  { %1682 = vrot.lane.b32.xlu1 %v240_v8, %s20465_s17 }
  0xcf   :  { %1660 = vrot.lane.b32.xlu0 %v236_v11, %s20454_s24  ;;  %v136_v11 = vld [vmem:[%s20419_s0 + $0x75] sm:$0xff] }
  0xd0   :  { %v13503_v22 = vpop.permute.xlu1 %665 }
  0xd1   :  { %20691 = vst [vmem:[#allocation4_spill] sm:$0xff] %v13503_v22  ;;  %v13505_v25 = vpop.permute.xlu0 %591 }
  0xd2   :  { %531 = vrot.lane.b32.xlu1 %v118_v18, %s20436_s15 }
  0xd3   :  { %1770 = vrot.lane.b32.xlu0 %v255_v21, %s20471_s19 }
  0xd4   :  { %v13517_v32 = vpop.permute.xlu1 %981 }
  0xd5   :  { %v13519_v33 = vpop.permute.xlu0 %737 }
  0xd6   :  { %20692 = vst [vmem:[#allocation5_spill] sm:$0xff] %v13519_v33  ;;  %1051 = vrot.lane.b32.xlu1 %v13512_v28, %s20478_s27 }
  0xd7   :  { %935 = vrot.lane.b32.xlu0 %v83_v29, %s20473_s21 }
  0xd8   :  { %v13532_v40 = vpop.permute.xlu1 %809 }
  0xd9   :  { %20693 = vst [vmem:[#allocation6_spill] sm:$0xff] %v13532_v40  ;;  %v13534_v45 = vpop.permute.xlu0 %377 }
  0xda   :  { %20694 = vst [vmem:[#allocation7_spill] sm:$0xff] %v13534_v45  ;;  %1572 = vrot.lane.b32.xlu1 %v220_v36, %s20432_s23  ;;  %v173_v36 = vld [vmem:[%s20419_s0 + $0x7f] sm:$0xff] }
  0xdb   :  { %1109 = vrot.lane.b32.xlu0 %v13530_v39, %s20480_s25  ;;  %v2238_v45 = vld [vmem:[%s20420_s1 + $0x138] sm:$0xff] }
  0xdc   :  { %v13545_v1 = vpop.permute.xlu1 %449 }
  0xdd   :  { %20695 = vst [vmem:[#allocation8_spill] sm:$0xff] %v13545_v1  ;;  %v13547_v8 = vpop.permute.xlu0 %1039  ;;  %v2206_v1 = vld [vmem:[%s20420_s1 + $0x38] sm:$0xff] }
  0xde   :  { %1792 = vrot.lane.b32.xlu1 %v259_v55, %s20478_s27  ;;  %v155_v55 = vld [vmem:[%s20419_s0 + $0x7e] sm:$0xff] }
  0xdf   :  { %1706 = vrot.lane.b32.xlu0 %v244_v62, %s20451_s30 }
  0xe0   :  { %v13554_v18 = vpop.permute.xlu1 %521 }
  0xe1   :  { %20696 = vst [vmem:[#allocation9_spill] sm:$0xff] %v13554_v18  ;;  %v13556_v21 = vpop.permute.xlu0 %867 }
  0xe2   :  { %20697 = vst [vmem:[#allocation10_spill] sm:$0xff] %v13556_v21  ;;  %603 = vrot.lane.b32.xlu1 %v136_v11, %s20463_s28 }
  0xe3   :  { %317 = vrot.lane.b32.xlu0 %v65_v52, %s20467_s18  ;;  %v101_v52 = vld [vmem:[%s20419_s0 + $0x7b] sm:$0xff] }
  0xe4   :  { %v13566_v62 = vpop.permute.xlu1 %307 }
  0xe5   :  { %20698 = vst [vmem:[#allocation11_spill] sm:$0xff] %v13566_v62  ;;  %v13568_v40 = vpop.permute.xlu0 %925  ;;  %v248_v62 = vld [vmem:[%s20419_s0 + $0x59] sm:$0x1] }
  0xe6   :  { %20699 = vst [vmem:[#allocation12_spill] sm:$0xff] %v13568_v40  ;;  %749 = vrot.lane.b32.xlu1 %v173_v36, %s20465_s17  ;;  %v224_v40 = vld [vmem:[%s20419_s0 + $0x53] sm:$0x1] }
  0xe7   :  { %677 = vrot.lane.b32.xlu0 %v155_v55, %s20454_s24 }
  0xe8   :  { %v13575_v11 = vpop.permute.xlu1 %667 }
  0xe9   :  { %20700 = vst [vmem:[#allocation13_spill] sm:$0xff] %v13575_v11  ;;  %v13577_v21 = vpop.permute.xlu0 %593 }
  0xea   :  { %20701 = vst [vmem:[#allocation14_spill] sm:$0xff] %v13577_v21  ;;  %1167 = vrot.lane.b32.xlu1 %v155_v55, %s20459_s20  ;;  %v48_v55 = vld [vmem:[%s20419_s0 + $0x80] sm:$0xff] }
  0xeb   :  { %993 = vrot.lane.b32.xlu0 %v101_v52, %s20471_s19 }
  0xec   :  { %v13587_v22 = vpop.permute.xlu1 %983 }
  0xed   :  { %20702 = vst [vmem:[#allocation15_spill] sm:$0xff] %v13587_v22  ;;  %v13589_v33 = vpop.permute.xlu0 %739 }
  0xee   :  { %20703 = vst [vmem:[#allocation16_spill] sm:$0xff] %v13589_v33  ;;  %1728 = vrot.lane.b32.xlu1 %v248_v62, %s20434_s16  ;;  %v228_v33 = vld [vmem:[%s20419_s0 + $0x54] sm:$0x1] }
  0xef   :  { %1594 = vrot.lane.b32.xlu0 %v224_v40, %s20442_s29  ;;  %v252_v40 = vld [vmem:[%s20419_s0 + $0x5a] sm:$0x1] }
  0xf0   :  { %v13596_v11 = vpop.permute.xlu1 %811 }
  0xf1   :  { %20704 = vst [vmem:[#allocation17_spill] sm:$0xff] %v13596_v11  ;;  %v13598_v21 = vpop.permute.xlu0 %379  ;;  %v232_v11 = vld [vmem:[%s20419_s0 + $0x55] sm:$0x1] }
  0xf2   :  { %20705 = vst [vmem:[#allocation18_spill] sm:$0xff] %v13598_v21  ;;  %821 = vrot.lane.b32.xlu1 %v48_v55, %s20451_s30  ;;  %v174_v21 = vld [vmem:[%s20419_s0 + $0x87] sm:$0xff] }
  0xf3   :  { %389 = vrot.lane.b32.xlu0 %v83_v29, %s20432_s23  ;;  %s20726_s23 = smov 42  }
  0xf4   :  { %v13605_v22 = vpop.permute.xlu1 %451 }
  0xf5   :  { %20706 = vst [vmem:[#allocation19_spill] sm:$0xff] %v13605_v22  ;;  %v13607_v62 = vpop.permute.xlu0 %1041 }
  0xf6   :  { %20707 = vst [vmem:[#allocation20_spill] sm:$0xff] %v13607_v62  ;;  %1616 = vrot.lane.b32.xlu1 %v228_v33, %s20436_s15  ;;  %v66_v33 = vld [vmem:[%s20419_s0 + $0x81] sm:$0xff] }
  0xf7   :  { %1225 = vrot.lane.b32.xlu0 %v173_v36, %s20446_s11 }
  0xf8   :  { %v13614_v55 = vpop.permute.xlu1 %523 }
  0xf9   :  { %20708 = vst [vmem:[#allocation21_spill] sm:$0xff] %v13614_v55  ;;  %v13616_v29 = vpop.permute.xlu0 %869 }
  0xfa   :  { %20709 = vst [vmem:[#allocation22_spill] sm:$0xff] %v13616_v29  ;;  %461 = vrot.lane.b32.xlu1 %v101_v52, %s20442_s29  ;;  %v256_v52 = vld [vmem:[%s20419_s0 + $0x5b] sm:$0x1] }
  0xfb   :  { %1750 = vrot.lane.b32.xlu0 %v252_v40, %s20473_s21 }
  0xfc   :  { %v13626_v36 = vpop.permute.xlu1 %595 }
  0xfd   :  { %20710 = vst [vmem:[#allocation23_spill] sm:$0xff] %v13626_v36  ;;  %v13628_v22 = vpop.permute.xlu0 %927 }
  0xfe   :  { %20711 = vst [vmem:[#allocation24_spill] sm:$0xff] %v13628_v22  ;;  %1638 = vrot.lane.b32.xlu1 %v232_v11, %s20463_s28  ;;  %v120_v22 = vld [vmem:[%s20419_s0 + $0x84] sm:$0xff] }
  0xff   :  { %879 = vrot.lane.b32.xlu0 %v66_v33, %s20434_s16  ;;  %v84_v11 = vld [vmem:[%s20419_s0 + $0x82] sm:$0xff]  ;;  %s20777_s16 = smov 40  }
 0x100   :  { %v13635_v40 = vpop.permute.xlu1 %1546 }
 0x101   :  { %20712 = vst [vmem:[#allocation25_spill] sm:$0xff] %v13635_v40  ;;  %v13637_v29 = vpop.permute.xlu0 %985 }
 0x102   :  { %20713 = vst [vmem:[#allocation26_spill] sm:$0xff] %v13637_v29  ;;  %533 = vrot.lane.b32.xlu1 %v13512_v28, %s20436_s15  ;;  %v260_v28 = vld [vmem:[%s20419_s0 + $0x5c] sm:$0x1]  ;;  %s20747_s15 = smov 63  }
 0x103   :  { %1772 = vrot.lane.b32.xlu0 %v256_v52, %s20471_s19  ;;  %v138_v52 = vld [vmem:[%s20419_s0 + $0x85] sm:$0xff] }
 0x104   :  { %v13648_v36 = vpop.permute.xlu1 %1678 }
 0x105   :  { %20714 = vst [vmem:[#allocation27_spill] sm:$0xff] %v13648_v36  ;;  %v13650_v55 = vpop.permute.xlu0 %1656 }
 0x106   :  { %20715 = vst [vmem:[#allocation28_spill] sm:$0xff] %v13650_v55  ;;  %1053 = vrot.lane.b32.xlu1 %v120_v22, %s20478_s27 }
 0x107   :  { %937 = vrot.lane.b32.xlu0 %v84_v11, %s20473_s21 }
 0x108   :  { %v13660_v40 = vpop.permute.xlu1 %1568 }
 0x109   :  { %20716 = vst [vmem:[#allocation29_spill] sm:$0xff] %v13660_v40  ;;  %v13662_v29 = vpop.permute.xlu0 %1043  ;;  %v156_v40 = vld [vmem:[%s20419_s0 + $0x86] sm:$0xff] }
 0x10a   :  { %20717 = vst [vmem:[#allocation30_spill] sm:$0xff] %v13662_v29  ;;  %1794 = vrot.lane.b32.xlu1 %v260_v28, %s20478_s27 }
 0x10b   :  { %1111 = vrot.lane.b32.xlu0 %v138_v52, %s20480_s25 }
 0x10c   :  { %v13666_v55 = vpop.permute.xlu1 %1590 }
 0x10d   :  { %20718 = vst [vmem:[#allocation31_spill] sm:$0xff] %v13666_v55  ;;  %v13668_v36 = vpop.permute.xlu0 %1702 }
 0x10e   :  { %20719 = vst [vmem:[#allocation32_spill] sm:$0xff] %v13668_v36  ;;  %605 = vrot.lane.b32.xlu1 %v13530_v39, %s20463_s28  ;;  %v102_v39 = vld [vmem:[%s20419_s0 + $0x83] sm:$0xff] }
 0x10f   :  { %319 = vrot.lane.b32.xlu0 %v66_v33, %s20467_s18 }
 0x110   :  { %v13679_v28 = vpop.permute.xlu1 %1612 }
 0x111   :  { %20720 = vst [vmem:[#allocation33_spill] sm:$0xff] %v13679_v28  ;;  %v13681_v29 = vpop.permute.xlu0 %1724 }
 0x112   :  { %20721 = vst [vmem:[#allocation34_spill] sm:$0xff] %v13681_v29  ;;  %751 = vrot.lane.b32.xlu1 %v174_v21, %s20465_s17  ;;  %v49_v29 = vld [vmem:[%s20419_s0 + $0x88] sm:$0xff] }
 0x113   :  { %679 = vrot.lane.b32.xlu0 %v156_v40, %s20454_s24 }
 0x114   :  { %v13688_v33 = vpop.permute.xlu1 %1548 }
 0x115   :  { %20722 = vst [vmem:[#allocation35_spill] sm:$0xff] %v13688_v33  ;;  %v13690_v36 = vpop.permute.xlu0 %1746 }
 0x116   :  { %20723 = vst [vmem:[#allocation36_spill] sm:$0xff] %v13690_v36  ;;  %1169 = vrot.lane.b32.xlu1 %v156_v40, %s20459_s20  ;;  %v67_v40 = vld [vmem:[%s20419_s0 + $0x89] sm:$0xff] }
 0x117   :  { %995 = vrot.lane.b32.xlu0 %v102_v39, %s20471_s19 }
 0x118   :  { %v13697_v28 = vpop.permute.xlu1 %1658 }
 0x119   :  { %20724 = vst [vmem:[#allocation37_spill] sm:$0xff] %v13697_v28  ;;  %v13699_v55 = vpop.permute.xlu0 %1634 }
 0x11a   :  { %20725 = vst [vmem:[#allocation38_spill] sm:$0xff] %v13699_v55  ;;  %823 = vrot.lane.b32.xlu1 %v49_v29, %s20451_s30  ;;  %v121_v29 = vld [vmem:[%s20419_s0 + $0x8c] sm:$0xff] }
 0x11b   :  { %391 = vrot.lane.b32.xlu0 %v84_v11, %s20726_s23 }
 0x11c   :  { %v13703_v62 = vpop.permute.xlu1 %1768 }
 0x11d   :  { %20727 = vst [vmem:[#allocation39_spill] sm:$0xff] %v13703_v62  ;;  %v13705_v33 = vpop.permute.xlu0 %1680 }
 0x11e   :  { %20728 = vst [vmem:[#allocation40_spill] sm:$0xff] %v13705_v33  ;;  %463 = vrot.lane.b32.xlu1 %v102_v39, %s20442_s29  ;;  %s20832_s29 = smov 103  }
 0x11f   :  { %1227 = vrot.lane.b32.xlu0 %v174_v21, %s20446_s11  ;;  %v85_v21 = vld [vmem:[%s20419_s0 + $0x8a] sm:$0xff] }
 0x120   :  { %v13712_v36 = vpop.permute.xlu1 %1704 }
 0x121   :  { %20729 = vst [vmem:[#allocation41_spill] sm:$0xff] %v13712_v36  ;;  %v13714_v28 = vpop.permute.xlu0 %1570 }
 0x122   :  { %20730 = vst [vmem:[#allocation42_spill] sm:$0xff] %v13714_v28  ;;  %535 = vrot.lane.b32.xlu1 %v120_v22, %s20731_s14  ;;  %v139_v22 = vld [vmem:[%s20419_s0 + $0x8d] sm:$0xff] }
 0x123   :  { %881 = vrot.lane.b32.xlu0 %v67_v40, %s20732_s22 }
 0x124   :  { %v13724_v11 = vpop.permute.xlu1 %315 }
 0x125   :  { %20733 = vst [vmem:[#allocation43_spill] sm:$0xff] %v13724_v11  ;;  %v13726_v39 = vpop.permute.xlu0 %1790  ;;  %v157_v11 = vld [vmem:[%s20419_s0 + $0x8e] sm:$0xff] }
 0x126   :  { %20734 = vst [vmem:[#allocation44_spill] sm:$0xff] %v13726_v39  ;;  %1055 = vrot.lane.b32.xlu1 %v121_v29, %s20478_s27 }
 0x127   :  { %939 = vrot.lane.b32.xlu0 %v85_v21, %s20473_s21 }
 0x128   :  { %v13733_v36 = vpop.permute.xlu1 %747 }
 0x129   :  { %20735 = vst [vmem:[#allocation45_spill] sm:$0xff] %v13733_v36  ;;  %v13735_v33 = vpop.permute.xlu0 %675 }
 0x12a   :  { %20736 = vst [vmem:[#allocation46_spill] sm:$0xff] %v13735_v33  ;;  %321 = vrot.lane.b32.xlu1 %v67_v40, %s20467_s18  ;;  %v103_v33 = vld [vmem:[%s20419_s0 + $0x8b] sm:$0xff] }
 0x12b   :  { %1113 = vrot.lane.b32.xlu0 %v139_v22, %s20480_s25  ;;  %v175_v40 = vld [vmem:[%s20419_s0 + $0x8f] sm:$0xff] }
 0x12c   :  { %v13742_v28 = vpop.permute.xlu1 %1726 }
 0x12d   :  { %20737 = vst [vmem:[#allocation47_spill] sm:$0xff] %v13742_v28  ;;  %v13744_v39 = vpop.permute.xlu0 %1592 }
 0x12e   :  { %20738 = vst [vmem:[#allocation48_spill] sm:$0xff] %v13744_v39  ;;  %681 = vrot.lane.b32.xlu1 %v157_v11, %s20454_s24 }
 0x12f   :  { %607 = vrot.lane.b32.xlu0 %v138_v52, %s20463_s28  ;;  %v50_v52 = vld [vmem:[%s20419_s0 + $0x90] sm:$0xff] }
 0x130   :  { %v13754_v36 = vpop.permute.xlu1 %819 }
 0x131   :  { %20739 = vst [vmem:[#allocation49_spill] sm:$0xff] %v13754_v36  ;;  %v13756_v62 = vpop.permute.xlu0 %387 }
 0x132   :  { %20740 = vst [vmem:[#allocation50_spill] sm:$0xff] %v13756_v62  ;;  %997 = vrot.lane.b32.xlu1 %v103_v33, %s20471_s19  ;;  %v68_v62 = vld [vmem:[%s20419_s0 + $0x91] sm:$0xff] }
 0x133   :  { %753 = vrot.lane.b32.xlu0 %v175_v40, %s20465_s17 }
 0x134   :  { %v13760_v28 = vpop.permute.xlu1 %1748 }
 0x135   :  { %20741 = vst [vmem:[#allocation51_spill] sm:$0xff] %v13760_v28  ;;  %v13762_v39 = vpop.permute.xlu0 %1614 }
 0x136   :  { %20742 = vst [vmem:[#allocation52_spill] sm:$0xff] %v13762_v39  ;;  %393 = vrot.lane.b32.xlu1 %v85_v21, %s20726_s23 }
 0x137   :  { %1171 = vrot.lane.b32.xlu0 %v157_v11, %s20459_s20  ;;  %v86_v11 = vld [vmem:[%s20419_s0 + $0x92] sm:$0xff] }
 0x138   :  { %v13769_v55 = vpop.permute.xlu1 %877 }
 0x139   :  { %20743 = vst [vmem:[#allocation53_spill] sm:$0xff] %v13769_v55  ;;  %v13771_v36 = vpop.permute.xlu0 %459 }
 0x13a   :  { %20744 = vst [vmem:[#allocation54_spill] sm:$0xff] %v13771_v36  ;;  %1229 = vrot.lane.b32.xlu1 %v175_v40, %s20446_s11  ;;  %s20762_s11 = smov 59  }
 0x13b   :  { %825 = vrot.lane.b32.xlu0 %v50_v52, %s20451_s30  ;;  %v140_v52 = vld [vmem:[%s20419_s0 + $0x95] sm:$0xff] }
 0x13c   :  { %v13778_v28 = vpop.permute.xlu1 %1636 }
 0x13d   :  { %20745 = vst [vmem:[#allocation55_spill] sm:$0xff] %v13778_v28  ;;  %v13780_v21 = vpop.permute.xlu0 %1550 }
 0x13e   :  { %20746 = vst [vmem:[#allocation56_spill] sm:$0xff] %v13780_v21  ;;  %883 = vrot.lane.b32.xlu1 %v68_v62, %s20732_s22 }
 0x13f   :  { %465 = vrot.lane.b32.xlu0 %v103_v33, %s20747_s15  ;;  %v122_v33 = vld [vmem:[%s20419_s0 + $0x94] sm:$0xff] }
 0x140   :  { %v13787_v55 = vpop.permute.xlu1 %1682 }
 0x141   :  { %20748 = vst [vmem:[#allocation57_spill] sm:$0xff] %v13787_v55  ;;  %v13789_v40 = vpop.permute.xlu0 %1660 }
 0x142   :  { %20749 = vst [vmem:[#allocation58_spill] sm:$0xff] %v13789_v40  ;;  %941 = vrot.lane.b32.xlu1 %v86_v11, %s20473_s21 }
 0x143   :  { %537 = vrot.lane.b32.xlu0 %v121_v29, %s20731_s14  ;;  %v176_v29 = vld [vmem:[%s20419_s0 + $0x97] sm:$0xff] }
 0x144   :  { %v13799_v21 = vpop.permute.xlu1 %531 }
 0x145   :  { %20750 = vst [vmem:[#allocation59_spill] sm:$0xff] %v13799_v21  ;;  %v13801_v36 = vpop.permute.xlu0 %1770  ;;  %v158_v21 = vld [vmem:[%s20419_s0 + $0x96] sm:$0xff] }
 0x146   :  { %20751 = vst [vmem:[#allocation60_spill] sm:$0xff] %v13801_v36  ;;  %1115 = vrot.lane.b32.xlu1 %v140_v52, %s20480_s25 }
 0x147   :  { %1057 = vrot.lane.b32.xlu0 %v122_v33, %s20478_s27 }
 0x148   :  { %v13805_v40 = vpop.permute.xlu1 %1051 }
 0x149   :  { %20752 = vst [vmem:[#allocation61_spill] sm:$0xff] %v13805_v40  ;;  %v13807_v55 = vpop.permute.xlu0 %935 }
 0x14a   :  { %20753 = vst [vmem:[#allocation62_spill] sm:$0xff] %v13807_v55  ;;  %609 = vrot.lane.b32.xlu1 %v139_v22, %s20463_s28 }
 0x14b   :  { %323 = vrot.lane.b32.xlu0 %v68_v62, %s20467_s18  ;;  %v104_v62 = vld [vmem:[%s20419_s0 + $0x93] sm:$0xff] }
 0x14c   :  { %v13817_v36 = vpop.permute.xlu1 %1572 }
 0x14d   :  { %20754 = vst [vmem:[#allocation63_spill] sm:$0xff] %v13817_v36  ;;  %v13819_v28 = vpop.permute.xlu0 %1109 }
 0x14e   :  { %20755 = vst [vmem:[#allocation64_spill] sm:$0xff] %v13819_v28  ;;  %755 = vrot.lane.b32.xlu1 %v176_v29, %s20465_s17  ;;  %v51_v28 = vld [vmem:[%s20419_s0 + $0x98] sm:$0xff] }
 0x14f   :  { %683 = vrot.lane.b32.xlu0 %v158_v21, %s20454_s24 }
 0x150   :  { %v13826_v22 = vpop.permute.xlu1 %1792 }
 0x151   :  { %20756 = vst [vmem:[#allocation65_spill] sm:$0xff] %v13826_v22  ;;  %v13828_v40 = vpop.permute.xlu0 %1706 }
 0x152   :  { %20757 = vst [vmem:[#allocation66_spill] sm:$0xff] %v13828_v40  ;;  %1173 = vrot.lane.b32.xlu1 %v158_v21, %s20459_s20  ;;  %v69_v21 = vld [vmem:[%s20419_s0 + $0x99] sm:$0xff] }
 0x153   :  { %999 = vrot.lane.b32.xlu0 %v104_v62, %s20471_s19 }
 0x154   :  { %v13835_v36 = vpop.permute.xlu1 %603 }
 0x155   :  { %20758 = vst [vmem:[#allocation67_spill] sm:$0xff] %v13835_v36  ;;  %v13837_v55 = vpop.permute.xlu0 %317 }
 0x156   :  { %20759 = vst [vmem:[#allocation68_spill] sm:$0xff] %v13837_v55  ;;  %827 = vrot.lane.b32.xlu1 %v51_v28, %s20451_s30  ;;  %v123_v28 = vld [vmem:[%s20419_s0 + $0x9c] sm:$0xff]  ;;  %s20807_s30 = smov 38  }
 0x157   :  { %395 = vrot.lane.b32.xlu0 %v86_v11, %s20726_s23  ;;  %v87_v11 = vld [vmem:[%s20419_s0 + $0x9a] sm:$0xff] }
 0x158   :  { %v13841_v39 = vpop.permute.xlu1 %749 }
 0x159   :  { %20760 = vst [vmem:[#allocation69_spill] sm:$0xff] %v13841_v39  ;;  %v13843_v22 = vpop.permute.xlu0 %677 }
 0x15a   :  { %20761 = vst [vmem:[#allocation70_spill] sm:$0xff] %v13843_v22  ;;  %467 = vrot.lane.b32.xlu1 %v104_v62, %s20747_s15 }
 0x15b   :  { %1231 = vrot.lane.b32.xlu0 %v176_v29, %s20762_s11 }
 0x15c   :  { %v13850_v40 = vpop.permute.xlu1 %1167 }
 0x15d   :  { %20763 = vst [vmem:[#allocation71_spill] sm:$0xff] %v13850_v40  ;;  %v13852_v36 = vpop.permute.xlu0 %993 }
 0x15e   :  { %20764 = vst [vmem:[#allocation72_spill] sm:$0xff] %v13852_v36  ;;  %539 = vrot.lane.b32.xlu1 %v122_v33, %s20731_s14  ;;  %v141_v33 = vld [vmem:[%s20419_s0 + $0x9d] sm:$0xff] }
 0x15f   :  { %885 = vrot.lane.b32.xlu0 %v69_v21, %s20732_s22 }
 0x160   :  { %v13862_v29 = vpop.permute.xlu1 %1728 }
 0x161   :  { %20765 = vst [vmem:[#allocation73_spill] sm:$0xff] %v13862_v29  ;;  %v13864_v62 = vpop.permute.xlu0 %1594 }
 0x162   :  { %20766 = vst [vmem:[#allocation74_spill] sm:$0xff] %v13864_v62  ;;  %1059 = vrot.lane.b32.xlu1 %v123_v28, %s20478_s27  ;;  %v159_v62 = vld [vmem:[%s20419_s0 + $0x9e] sm:$0xff] }
 0x163   :  { %943 = vrot.lane.b32.xlu0 %v87_v11, %s20473_s21 }
 0x164   :  { %v13871_v40 = vpop.permute.xlu1 %821 }
 0x165   :  { %20767 = vst [vmem:[#allocation75_spill] sm:$0xff] %v13871_v40  ;;  %v13873_v22 = vpop.permute.xlu0 %389 }
 0x166   :  { %20768 = vst [vmem:[#allocation76_spill] sm:$0xff] %v13873_v22  ;;  %325 = vrot.lane.b32.xlu1 %v69_v21, %s20467_s18  ;;  %v105_v22 = vld [vmem:[%s20419_s0 + $0x9b] sm:$0xff] }
 0x167   :  { %1117 = vrot.lane.b32.xlu0 %v141_v33, %s20480_s25  ;;  %v177_v21 = vld [vmem:[%s20419_s0 + $0x9f] sm:$0xff] }
 0x168   :  { %v13880_v29 = vpop.permute.xlu1 %1616 }
 0x169   :  { %20769 = vst [vmem:[#allocation77_spill] sm:$0xff] %v13880_v29  ;;  %v13882_v39 = vpop.permute.xlu0 %1225 }
 0x16a   :  { %20770 = vst [vmem:[#allocation78_spill] sm:$0xff] %v13882_v39  ;;  %685 = vrot.lane.b32.xlu1 %v159_v62, %s20454_s24  ;;  %s20845_s24 = smov 124  }
 0x16b   :  { %611 = vrot.lane.b32.xlu0 %v140_v52, %s20463_s28  ;;  %v181_v52 = vld [vmem:[%s20419_s0 + $0xa0] sm:$0xff] }
 0x16c   :  { %v13892_v40 = vpop.permute.xlu1 %461 }
 0x16d   :  { %20771 = vst [vmem:[#allocation79_spill] sm:$0xff] %v13892_v40  ;;  %v13894_v55 = vpop.permute.xlu0 %1750 }
 0x16e   :  { %20772 = vst [vmem:[#allocation80_spill] sm:$0xff] %v13894_v55  ;;  %1001 = vrot.lane.b32.xlu1 %v105_v22, %s20471_s19 }
 0x16f   :  { %757 = vrot.lane.b32.xlu0 %v177_v21, %s20465_s17 }
 0x170   :  { %v13898_v39 = vpop.permute.xlu1 %1638 }
 0x171   :  { %20773 = vst [vmem:[#allocation81_spill] sm:$0xff] %v13898_v39  ;;  %v13900_v29 = vpop.permute.xlu0 %879 }
 0x172   :  { %20774 = vst [vmem:[#allocation82_spill] sm:$0xff] %v13900_v29  ;;  %397 = vrot.lane.b32.xlu1 %v87_v11, %s20726_s23  ;;  %v185_v29 = vld [vmem:[%s20419_s0 + $0xa1] sm:$0xff] }
 0x173   :  { %1175 = vrot.lane.b32.xlu0 %v159_v62, %s20459_s20  ;;  %v189_v62 = vld [vmem:[%s20419_s0 + $0xa2] sm:$0xff] }
 0x174   :  { %v13907_v36 = vpop.permute.xlu1 %533 }
 0x175   :  { %20775 = vst [vmem:[#allocation83_spill] sm:$0xff] %v13907_v36  ;;  %v13909_v40 = vpop.permute.xlu0 %1772 }
 0x176   :  { %20776 = vst [vmem:[#allocation84_spill] sm:$0xff] %v13909_v40  ;;  %1233 = vrot.lane.b32.xlu1 %v177_v21, %s20762_s11 }
 0x177   :  { %829 = vrot.lane.b32.xlu0 %v181_v52, %s20777_s16  ;;  %v201_v52 = vld [vmem:[%s20419_s0 + $0xa5] sm:$0xff] }
 0x178   :  { %v13916_v55 = vpop.permute.xlu1 %1053 }
 0x179   :  { %20778 = vst [vmem:[#allocation85_spill] sm:$0xff] %v13916_v55  ;;  %v13918_v11 = vpop.permute.xlu0 %937 }
 0x17a   :  { %20779 = vst [vmem:[#allocation86_spill] sm:$0xff] %v13918_v11  ;;  %887 = vrot.lane.b32.xlu1 %v185_v29, %s20732_s22 }
 0x17b   :  { %469 = vrot.lane.b32.xlu0 %v105_v22, %s20747_s15  ;;  %v197_v22 = vld [vmem:[%s20419_s0 + $0xa4] sm:$0xff] }
 0x17c   :  { %v13925_v40 = vpop.permute.xlu1 %1794 }
 0x17d   :  { %20780 = vst [vmem:[#allocation87_spill] sm:$0xff] %v13925_v40  ;;  %v13927_v21 = vpop.permute.xlu0 %1111 }
 0x17e   :  { %20781 = vst [vmem:[#allocation88_spill] sm:$0xff] %v13927_v21  ;;  %945 = vrot.lane.b32.xlu1 %v189_v62, %s20473_s21 }
 0x17f   :  { %541 = vrot.lane.b32.xlu0 %v123_v28, %s20731_s14  ;;  %v193_v28 = vld [vmem:[%s20419_s0 + $0xa3] sm:$0xff] }
 0x180   :  { %v13937_v55 = vpop.permute.xlu1 %605 }
 0x181   :  { %20782 = vst [vmem:[#allocation89_spill] sm:$0xff] %v13937_v55  ;;  %v13939_v11 = vpop.permute.xlu0 %319 }
 0x182   :  { %20783 = vst [vmem:[#allocation90_spill] sm:$0xff] %v13939_v11  ;;  %1119 = vrot.lane.b32.xlu1 %v201_v52, %s20480_s25  ;;  %v205_v11 = vld [vmem:[%s20419_s0 + $0xa6] sm:$0xff] }
 0x183   :  { %1061 = vrot.lane.b32.xlu0 %v197_v22, %s20478_s27 }
 0x184   :  { %v13946_v40 = vpop.permute.xlu1 %751 }
 0x185   :  { %20784 = vst [vmem:[#allocation91_spill] sm:$0xff] %v13946_v40  ;;  %v13948_v21 = vpop.permute.xlu0 %679 }
 0x186   :  { %20785 = vst [vmem:[#allocation92_spill] sm:$0xff] %v13948_v21  ;;  %1003 = vrot.lane.b32.xlu1 %v193_v28, %s20471_s19  ;;  %v209_v21 = vld [vmem:[%s20419_s0 + $0xa7] sm:$0xff] }
 0x187   :  { %613 = vrot.lane.b32.xlu0 %v141_v33, %s20463_s28 }
 0x188   :  { %v13955_v55 = vpop.permute.xlu1 %1169 }
 0x189   :  { %20786 = vst [vmem:[#allocation93_spill] sm:$0xff] %v13955_v55  ;;  %v13957_v36 = vpop.permute.xlu0 %995 }
 0x18a   :  { %20787 = vst [vmem:[#allocation94_spill] sm:$0xff] %v13957_v36  ;;  %1552 = vrot.lane.b32.xlu1 %v185_v29, %s20467_s18  ;;  %v213_v29 = vld [vmem:[%s20419_s0 + $0xa8] sm:$0xff] }
 0x18b   :  { %1177 = vrot.lane.b32.xlu0 %v205_v11, %s20459_s20 }
 0x18c   :  { %v13964_v40 = vpop.permute.xlu1 %823 }
 0x18d   :  { %20788 = vst [vmem:[#allocation95_spill] sm:$0xff] %v13964_v40  ;;  %v13966_v39 = vpop.permute.xlu0 %391 }
 0x18e   :  { %20789 = vst [vmem:[#allocation96_spill] sm:$0xff] %v13966_v39  ;;  %1684 = vrot.lane.b32.xlu1 %v209_v21, %s20465_s17 }
 0x18f   :  { %1662 = vrot.lane.b32.xlu0 %v205_v11, %s20790_s12  ;;  %v217_v11 = vld [vmem:[%s20419_s0 + $0xa9] sm:$0xff] }
 0x190   :  { %v13970_v33 = vpop.permute.xlu1 %463 }
 0x191   :  { %20791 = vst [vmem:[#allocation97_spill] sm:$0xff] %v13970_v33  ;;  %v13972_v55 = vpop.permute.xlu0 %1227 }
 0x192   :  { %20792 = vst [vmem:[#allocation98_spill] sm:$0xff] %v13972_v55  ;;  %1574 = vrot.lane.b32.xlu1 %v189_v62, %s20726_s23 }
 0x193   :  { %1235 = vrot.lane.b32.xlu0 %v209_v21, %s20762_s11  ;;  %v13997_v21 = vld [vmem:[%s20419_s0 + $0xac] sm:$0xff] }
 0x194   :  { %v13979_v36 = vpop.permute.xlu1 %535 }
 0x195   :  { %20793 = vst [vmem:[#allocation99_spill] sm:$0xff] %v13979_v36  ;;  %v13981_v40 = vpop.permute.xlu0 %881 }
 0x196   :  { %20794 = vst [vmem:[#allocation100_spill] sm:$0xff] %v13981_v40  ;;  %1596 = vrot.lane.b32.xlu1 %v193_v28, %s20747_s15  ;;  %v221_v28 = vld [vmem:[%s20419_s0 + $0xaa] sm:$0xff] }
 0x197   :  { %1708 = vrot.lane.b32.xlu0 %v213_v29, %s20777_s16 }
 0x198   :  { %v13988_v55 = vpop.permute.xlu1 %1055 }
 0x199   :  { %20795 = vst [vmem:[#allocation101_spill] sm:$0xff] %v13988_v55  ;;  %v13990_v62 = vpop.permute.xlu0 %939 }
 0x19a   :  { %20796 = vst [vmem:[#allocation102_spill] sm:$0xff] %v13990_v62  ;;  %1618 = vrot.lane.b32.xlu1 %v197_v22, %s20731_s14  ;;  %v14012_v22 = vld [vmem:[%s20419_s0 + $0xad] sm:$0xff] }
 0x19b   :  { %1730 = vrot.lane.b32.xlu0 %v217_v11, %s20732_s22 }
 0x19c   :  { %v14002_v29 = vpop.permute.xlu1 %321 }
 0x19d   :  { %20797 = vst [vmem:[#allocation103_spill] sm:$0xff] %v14002_v29  ;;  %v14004_v40 = vpop.permute.xlu0 %1113  ;;  %v237_v29 = vld [vmem:[%s20419_s0 + $0xae] sm:$0xff] }
 0x19e   :  { %20798 = vst [vmem:[#allocation104_spill] sm:$0xff] %v14004_v40  ;;  %1796 = vrot.lane.b32.xlu1 %v13997_v21, %s20478_s27 }
 0x19f   :  { %1752 = vrot.lane.b32.xlu0 %v221_v28, %s20473_s21 }
 0x1a0   :  { %v14014_v62 = vpop.permute.xlu1 %681 }
 0x1a1   :  { %20799 = vst [vmem:[#allocation105_spill] sm:$0xff] %v14014_v62  ;;  %v14016_v55 = vpop.permute.xlu0 %607  ;;  %v225_v62 = vld [vmem:[%s20419_s0 + $0xab] sm:$0xff] }
 0x1a2   :  { %20800 = vst [vmem:[#allocation106_spill] sm:$0xff] %v14016_v55  ;;  %1554 = vrot.lane.b32.xlu1 %v217_v11, %s20467_s18  ;;  %v241_v11 = vld [vmem:[%s20419_s0 + $0xaf] sm:$0xff] }
 0x1a3   :  { %1818 = vrot.lane.b32.xlu0 %v14012_v22, %s20480_s25 }
 0x1a4   :  { %v14024_v40 = vpop.permute.xlu1 %997 }
 0x1a5   :  { %20801 = vst [vmem:[#allocation107_spill] sm:$0xff] %v14024_v40  ;;  %v14026_v36 = vpop.permute.xlu0 %753 }
 0x1a6   :  { %20802 = vst [vmem:[#allocation108_spill] sm:$0xff] %v14026_v36  ;;  %1664 = vrot.lane.b32.xlu1 %v237_v29, %s20790_s12 }
 0x1a7   :  { %1640 = vrot.lane.b32.xlu0 %v201_v52, %s20463_s28  ;;  %v53_v52 = vld [vmem:[%s20419_s0 + $0x1] sm:$0xff]  ;;  %s20844_s28 = smov 17  }
 0x1a8   :  { %v14036_v55 = vpop.permute.xlu1 %393 }
 0x1a9   :  { %20803 = vst [vmem:[#allocation109_spill] sm:$0xff] %v14036_v55  ;;  %v14038_v33 = vpop.permute.xlu0 %1171  ;;  %v161_v55 = vld [vmem:[%s20419_s0 + $0x7] sm:$0xff] }
 0x1aa   :  { %20804 = vst [vmem:[#allocation110_spill] sm:$0xff] %v14038_v33  ;;  %1774 = vrot.lane.b32.xlu1 %v225_v62, %s20471_s19  ;;  %v143_v33 = vld [vmem:[%s20419_s0 + $0x6] sm:$0xff]  ;;  %s20841_s19 = smov 19  }
 0x1ab   :  { %1686 = vrot.lane.b32.xlu0 %v241_v11, %s20465_s17 }
 0x1ac   :  { %v14045_v36 = vpop.permute.xlu1 %1229 }
 0x1ad   :  { %20805 = vst [vmem:[#allocation111_spill] sm:$0xff] %v14045_v36  ;;  %v14047_v40 = vpop.permute.xlu0 %825  ;;  %v2244_v36 = vld [vmem:[%s20420_s1 + $0x168] sm:$0xff] }
 0x1ae   :  { %20806 = vst [vmem:[#allocation112_spill] sm:$0xff] %v14047_v40  ;;  %293 = vrot.lane.b32.xlu1 %v53_v52, %s20467_s18  ;;  %s20833_s18 = smov 105  }
 0x1af   :  { %1840 = vrot.lane.b32.xlu0 %v237_v29, %s20807_s30  ;;  %v245_v29 = vld [vmem:[%s20419_s0 + $0xb0] sm:$0xff] }
 0x1b0   :  { %v14057_v39 = vpop.permute.xlu1 %883 }
 0x1b1   :  { %20808 = vst [vmem:[#allocation113_spill] sm:$0xff] %v14057_v39  ;;  %v14059_v18 = vpop.permute.xlu0 %465 }
 0x1b2   :  { %20809 = vst [vmem:[#allocation114_spill] sm:$0xff] %v14059_v18  ;;  %725 = vrot.lane.b32.xlu1 %v161_v55, %s20465_s17  ;;  %v71_v18 = vld [vmem:[%s20419_s0 + $0x2] sm:$0xff]  ;;  %s20825_s17 = smov 82  }
 0x1b3   :  { %653 = vrot.lane.b32.xlu0 %v143_v33, %s20790_s12  ;;  %v20469_v33 = vmov 0.0  }
 0x1b4   :  { %v14066_v52 = vpop.permute.xlu1 %941  ;;  %6593 = vmatprep.subr.mxu0 %v20469_v33  ;;  %6743 = vmatprep.subr.mxu1 %v20469_v33  ;;  %v2245_v33 = vld [vmem:[%s20420_s1 + $0x170] sm:$0xff] }
 0x1b5   :  { %20810 = vst [vmem:[#allocation115_spill] sm:$0xff] %v14066_v52  ;;  %v14068_v40 = vpop.permute.xlu0 %537 }
 0x1b6   :  { %20811 = vst [vmem:[#allocation116_spill] sm:$0xff] %v14068_v40  ;;  %1710 = vrot.lane.b32.xlu1 %v245_v29, %s20777_s16  ;;  %v2214_v40 = vld [vmem:[%s20420_s1 + $0x78] sm:$0xff]  ;;  %v2213_v29 = vld [vmem:[%s20420_s1 + $0x70] sm:$0xff] }
 0x1b7   :  { %1576 = vrot.lane.b32.xlu0 %v221_v28, %s20726_s23  ;;  %v2246_v28 = vld [vmem:[%s20420_s1 + $0x178] sm:$0xff]  ;;  %6594 = vmatpush1.msra.mxu0 %v2214_v40  ;;  %v89_v40 = vld [vmem:[%s20419_s0 + $0x3] sm:$0xff] }
 0x1b8   :  { %v14075_v39 = vpop.permute.xlu1 %1115  ;;  %6744 = vmatpush1.msra.mxu1 %v2246_v28 }
 0x1b9   :  { %20812 = vst [vmem:[#allocation117_spill] sm:$0xff] %v14075_v39  ;;  %v14077_v55 = vpop.permute.xlu0 %1057  ;;  %v36_v39 = vld [vmem:[%s20419_s0 + $0x8] sm:$0xff] }
 0x1ba   :  { %20813 = vst [vmem:[#allocation118_spill] sm:$0xff] %v14077_v55  ;;  %365 = vrot.lane.b32.xlu1 %v71_v18, %s20726_s23  ;;  %v20816_v18 = vmov 0.0  }
 0x1bb   :  { %1862 = vrot.lane.b32.xlu0 %v241_v11, %s20762_s11  ;;  %6595 = vmatprep.subr.mxu0 %v20816_v18  ;;  %v2212_v11 = vld [vmem:[%s20420_s1 + $0x68] sm:$0xff] }
 0x1bc   :  { %v14098_v55 = vpop.permute.xlu1 %609  ;;  %6745 = vmatprep.subr.mxu1 %v20816_v18  ;;  %6596 = vmatpush1.msra.mxu0 %v2213_v29 }
 0x1bd   :  { %20814 = vst [vmem:[#allocation119_spill] sm:$0xff] %v14098_v55  ;;  %v14100_v52 = vpop.permute.xlu0 %323  ;;  %6746 = vmatpush1.msra.mxu1 %v2245_v33  ;;  %v249_v33 = vld [vmem:[%s20419_s0 + $0xb1] sm:$0xff]  ;;  %6597 = vmatprep.subr.mxu0 %v20816_v18 }
 0x1be   :  { %20815 = vst [vmem:[#allocation120_spill] sm:$0xff] %v14100_v52  ;;  %1598 = vrot.lane.b32.xlu1 %v225_v62, %s20747_s15  ;;  %6747 = vmatprep.subr.mxu1 %v20816_v18  ;;  %v2243_v62 = vld [vmem:[%s20420_s1 + $0x160] sm:$0xff]  ;;  %v14143_v52 = vld [vmem:[%s20419_s0 + $0xc] sm:$0xff] }
 0x1bf   :  { %797 = vrot.lane.b32.xlu0 %v36_v39, %s20777_s16  ;;  %6598 = vmatpush1.msra.mxu0 %v2212_v11  ;;  %v2211_v39 = vld [vmem:[%s20420_s1 + $0x60] sm:$0xff]  ;;  %v2242_v11 = vld [vmem:[%s20420_s1 + $0x158] sm:$0xff]  ;;  %v2241_v55 = vld [vmem:[%s20420_s1 + $0x150] sm:$0xff] }
 0x1c0   :  { %v14120_v28 = vpop.permute.xlu1 %755  ;;  %6748 = vmatpush1.msra.mxu1 %v2244_v36  ;;  %6599 = vmatprep.subr.mxu0 %v20816_v18  ;;  %v2210_v36 = vld [vmem:[%s20420_s1 + $0x58] sm:$0xff] }
 0x1c1   :  { %20817 = vst [vmem:[#allocation121_spill] sm:$0xff] %v14120_v28  ;;  %v14122_v29 = vpop.permute.xlu0 %683  ;;  %6749 = vmatprep.subr.mxu1 %v20816_v18  ;;  %6600 = vmatpush1.msra.mxu0 %v2211_v39  ;;  %v2209_v28 = vld [vmem:[%s20420_s1 + $0x50] sm:$0xff] }
 0x1c2   :  { %20818 = vst [vmem:[#allocation122_spill] sm:$0xff] %v14122_v29  ;;  %437 = vrot.lane.b32.xlu1 %v89_v40, %s20747_s15  ;;  %v14148_v29 = vld [vmem:[%s20419_s0 + $0x9] sm:$0xff]  ;;  %6750 = vmatpush1.msra.mxu1 %v2243_v62 }
 0x1c3   :  { %1732 = vrot.lane.b32.xlu0 %v249_v33, %s20732_s22  ;;  %6601 = vmatprep.subr.mxu0 %v20816_v18  ;;  %v14169_v39 = vld [vmem:[%s20419_s0 + $0xd] sm:$0xff] }
 0x1c4   :  { %v14150_v40 = vpop.permute.xlu1 %1173  ;;  %6751 = vmatprep.subr.mxu1 %v20816_v18  ;;  %6602 = vmatpush1.msra.mxu0 %v2210_v36 }
 0x1c5   :  { %20819 = vst [vmem:[#allocation123_spill] sm:$0xff] %v14150_v40  ;;  %v14152_v33 = vpop.permute.xlu0 %999  ;;  %6752 = vmatpush1.msra.mxu1 %v2242_v11  ;;  %6603 = vmatprep.subr.mxu0 %v20816_v18  ;;  %v2208_v11 = vld [vmem:[%s20420_s1 + $0x48] sm:$0xff] }
 0x1c6   :  { %20820 = vst [vmem:[#allocation124_spill] sm:$0xff] %v14152_v33  ;;  %1029 = vrot.lane.b32.xlu1 %v14143_v52, %s20478_s27  ;;  %6753 = vmatprep.subr.mxu1 %v20816_v18  ;;  %v2240_v40 = vld [vmem:[%s20420_s1 + $0x148] sm:$0xff] }
 0x1c7   :  { %855 = vrot.lane.b32.xlu0 %v14148_v29, %s20732_s22  ;;  %6604 = vmatpush1.msra.mxu0 %v2209_v28  ;;  %v2239_v28 = vld [vmem:[%s20420_s1 + $0x140] sm:$0xff] }
 0x1c8   :  { %v14173_v62 = vpop.permute.xlu1 %827  ;;  %6754 = vmatpush1.msra.mxu1 %v2241_v55  ;;  %6605 = vmatprep.subr.mxu0 %v20816_v18  ;;  %v2207_v55 = vld [vmem:[%s20420_s1 + $0x40] sm:$0xff] }
 0x1c9   :  { %20821 = vst [vmem:[#allocation125_spill] sm:$0xff] %v14173_v62  ;;  %v14175_v36 = vpop.permute.xlu0 %395  ;;  %6755 = vmatprep.subr.mxu1 %v20816_v18  ;;  %v253_v62 = vld [vmem:[%s20419_s0 + $0xb2] sm:$0xff]  ;;  %6606 = vmatpush1.msra.mxu0 %v2208_v11 }
 0x1ca   :  { %20822 = vst [vmem:[#allocation126_spill] sm:$0xff] %v14175_v36  ;;  %1620 = vrot.lane.b32.xlu1 %v13997_v21, %s20731_s14  ;;  %v261_v36 = vld [vmem:[%s20419_s0 + $0xb4] sm:$0xff]  ;;  %6756 = vmatpush1.msra.mxu1 %v2240_v40  ;;  %v107_v40 = vld [vmem:[%s20419_s0 + $0x4] sm:$0xff] }
 0x1cb   :  { %1087 = vrot.lane.b32.xlu0 %v14169_v39, %s20480_s25  ;;  %6607 = vmatprep.subr.mxu0 %v20816_v18  ;;  %v265_v11 = vld [vmem:[%s20419_s0 + $0xb5] sm:$0xff] }
 0x1cc   :  { %v14201_v21 = vpop.permute.xlu1 %467  ;;  %6757 = vmatprep.subr.mxu1 %v20816_v18  ;;  %6608 = vmatpush1.msra.mxu0 %v2207_v55 }
 0x1cd   :  { %20823 = vst [vmem:[#allocation127_spill] sm:$0xff] %v14201_v21  ;;  %v14203_v33 = vpop.permute.xlu0 %1231  ;;  %6758 = vmatpush1.msra.mxu1 %v2239_v28  ;;  %6609 = vmatprep.subr.mxu0 %v20816_v18  ;;  %v2203_v21 = vld [vmem:[%s20420_s1 + $0x20] sm:$0xff] }
 0x1ce   :  { %20824 = vst [vmem:[#allocation128_spill] sm:$0xff] %v14203_v33  ;;  %1798 = vrot.lane.b32.xlu1 %v261_v36, %s20478_s27  ;;  %6759 = vmatprep.subr.mxu1 %v20816_v18  ;;  %v2237_v36 = vld [vmem:[%s20420_s1 + $0x130] sm:$0xff]  ;;  %s20484_s27 = smov 80  }
 0x1cf   :  { %1754 = vrot.lane.b32.xlu0 %v253_v62, %s20825_s17  ;;  %6610 = vmatpush1.msra.mxu0 %v2206_v1  ;;  %v2205_v62 = vld [vmem:[%s20420_s1 + $0x30] sm:$0xff]  ;;  %v2236_v1 = vld [vmem:[%s20420_s1 + $0x128] sm:$0xff] }
 0x1d0   :  { %v14223_v55 = vpop.permute.xlu1 %539  ;;  %6760 = vmatpush1.msra.mxu1 %v2238_v45  ;;  %6611 = vmatprep.subr.mxu0 %v20816_v18  ;;  %v2204_v45 = vld [vmem:[%s20420_s1 + $0x28] sm:$0xff] }
 0x1d1   :  { %20826 = vst [vmem:[#allocation129_spill] sm:$0xff] %v14223_v55  ;;  %v14225_v28 = vpop.permute.xlu0 %885  ;;  %6761 = vmatprep.subr.mxu1 %v20816_v18  ;;  %v144_v55 = vld [vmem:[%s20419_s0 + $0xe] sm:$0xff]  ;;  %6612 = vmatpush1.msra.mxu0 %v2205_v62 }
 0x1d2   :  { %20827 = vst [vmem:[#allocation130_spill] sm:$0xff] %v14225_v28  ;;  %509 = vrot.lane.b32.xlu1 %v107_v40, %s20731_s14  ;;  %v14249_v33 = vld [vmem:[%s20419_s0 + $0xa] sm:$0xff]  ;;  %6762 = vmatpush1.msra.mxu1 %v2237_v36  ;;  %v2235_v28 = vld [vmem:[%s20420_s1 + $0x120] sm:$0xff]  ;;  %v257_v62 = vld [vmem:[%s20419_s0 + $0xb3] sm:$0xff] }
 0x1d3   :  { %1820 = vrot.lane.b32.xlu0 %v265_v11, %s20480_s25  ;;  %6613 = vmatprep.subr.mxu0 %v20816_v18 }
 0x1d4   :  { %v14251_v40 = vpop.permute.xlu1 %1059  ;;  %6763 = vmatprep.subr.mxu1 %v20816_v18  ;;  %6614 = vmatpush1.msra.mxu0 %v2204_v45 }
 0x1d5   :  { %20828 = vst [vmem:[#allocation131_spill] sm:$0xff] %v14251_v40  ;;  %v14253_v11 = vpop.permute.xlu0 %943  ;;  %6764 = vmatpush1.msra.mxu1 %v2236_v1  ;;  %6615 = vmatprep.subr.mxu0 %v20816_v18  ;;  %v2202_v1 = vld [vmem:[%s20420_s1 + $0x18] sm:$0xff] }
 0x1d6   :  { %20829 = vst [vmem:[#allocation132_spill] sm:$0xff] %v14253_v11  ;;  %1145 = vrot.lane.b32.xlu1 %v144_v55, %s20807_s30  ;;  %6765 = vmatprep.subr.mxu1 %v20816_v18  ;;  %v2234_v40 = vld [vmem:[%s20420_s1 + $0x118] sm:$0xff]  ;;  %v2232_v11 = vld [vmem:[%s20420_s1 + $0x108] sm:$0xff] }
 0x1d7   :  { %913 = vrot.lane.b32.xlu0 %v14249_v33, %s20825_s17  ;;  %6616 = vmatpush1.msra.mxu0 %v2203_v21  ;;  %v2201_v21 = vld [vmem:[%s20420_s1 + $0x10] sm:$0xff] }
 0x1d8   :  { %v14271_v36 = vpop.permute.xlu1 %325  ;;  %6766 = vmatpush1.msra.mxu1 %v2235_v28  ;;  %6617 = vmatprep.subr.mxu0 %v20816_v18  ;;  %v2233_v28 = vld [vmem:[%s20420_s1 + $0x110] sm:$0xff] }
 0x1d9   :  { %20830 = vst [vmem:[#allocation133_spill] sm:$0xff] %v14271_v36  ;;  %v14273_v45 = vpop.permute.xlu0 %1117  ;;  %6767 = vmatprep.subr.mxu1 %v20816_v18  ;;  %6618 = vmatpush1.msra.mxu0 %v2202_v1 }
 0x1da   :  { %20831 = vst [vmem:[#allocation134_spill] sm:$0xff] %v14273_v45  ;;  %1776 = vrot.lane.b32.xlu1 %v257_v62, %s20832_s29  ;;  %v269_v45 = vld [vmem:[%s20419_s0 + $0xb6] sm:$0xff]  ;;  %6768 = vmatpush1.msra.mxu1 %v2234_v40  ;;  %v125_v40 = vld [vmem:[%s20419_s0 + $0x5] sm:$0xff] }
 0x1db   :  { %1642 = vrot.lane.b32.xlu0 %v14012_v22, %s20833_s18  ;;  %6619 = vmatprep.subr.mxu0 %v20816_v18  ;;  %v2200_v22 = vld [vmem:[%s20420_s1 + $0x8] sm:$0xff] }
 0x1dc   :  { %v14295_v36 = vpop.permute.xlu1 %685  ;;  %6769 = vmatprep.subr.mxu1 %v20816_v18  ;;  %6620 = vmatpush1.msra.mxu0 %v2201_v21 }
 0x1dd   :  { %20834 = vst [vmem:[#allocation135_spill] sm:$0xff] %v14295_v36  ;;  %v14297_v62 = vpop.permute.xlu0 %611  ;;  %6770 = vmatpush1.msra.mxu1 %v2233_v28  ;;  %6621 = vmatprep.subr.mxu0 %v20816_v18  ;;  %v2262_v28 = vld [vmem:[%s20420_s1 + $0x1f8] sm:$0xff]  ;;  %v162_v36 = vld [vmem:[%s20419_s0 + $0xf] sm:$0xff] }
 0x1de   :  { %20835 = vst [vmem:[#allocation136_spill] sm:$0xff] %v14297_v62  ;;  %295 = vrot.lane.b32.xlu1 %v14148_v29, %s20836_s26  ;;  %6771 = vmatprep.subr.mxu1 %v20816_v18  ;;  %v2199_v29 = vld [vmem:[%s20420_s1] sm:$0xff] }
 0x1df   :  { %1842 = vrot.lane.b32.xlu0 %v269_v45, %s20807_s30  ;;  %6622 = vmatpush1.msra.mxu0 %v2200_v22  ;;  %v2231_v45 = vld [vmem:[%s20420_s1 + $0x100] sm:$0xff]  ;;  %v14338_v22 = vld [vmem:[%s20419_s0 + $0xb] sm:$0xff] }
 0x1e0   :  { %v14315_v1 = vpop.permute.xlu1 %1001  ;;  %6772 = vmatpush1.msra.mxu1 %v2232_v11  ;;  %6623 = vmatprep.subr.mxu0 %v20816_v18  ;;  %v2230_v11 = vld [vmem:[%s20420_s1 + $0xf8] sm:$0xff] }
 0x1e1   :  { %20837 = vst [vmem:[#allocation137_spill] sm:$0xff] %v14315_v1  ;;  %v14317_v21 = vpop.permute.xlu0 %757  ;;  %6773 = vmatprep.subr.mxu1 %v20816_v18  ;;  %6624 = vmatpush1.msra.mxu0 %v2199_v29  ;;  %v2229_v29 = vld [vmem:[%s20420_s1 + $0xf0] sm:$0xff]  ;;  %v2260_v1 = vld [vmem:[%s20420_s1 + $0x1e8] sm:$0xff] }
 0x1e2   :  { %20838 = vst [vmem:[#allocation138_spill] sm:$0xff] %v14317_v21  ;;  %655 = vrot.lane.b32.xlu1 %v144_v55, %s20790_s12  ;;  %6774 = vmatpush1.msra.mxu1 %v2231_v45  ;;  %v37_v21 = vld [vmem:[%s20419_s0 + $0x10] sm:$0xff] }
 0x1e3   :  { %581 = vrot.lane.b32.xlu0 %v125_v40, %s20833_s18  ;;  %6625 = vmatprep.subr.mxu0 %v20816_v18  ;;  %v2261_v45 = vld [vmem:[%s20420_s1 + $0x1f0] sm:$0xff] }
 0x1e4   :  { %v14343_v55 = vpop.permute.xlu1 %397  ;;  %6775 = vmatprep.subr.mxu1 %v20816_v18  ;;  %6626 = vmatpush2.msra.mxu0 %v2230_v11  ;;  %v1260_v11 = vsel %vm1257_vm0, %v37_v21, %v13262_v44  ;;  %v2227_v44 = vld [vmem:[%s20420_s1 + $0xe0] sm:$0xff] }
 0x1e5   :  { %20839 = vst [vmem:[#allocation139_spill] sm:$0xff] %v14343_v55  ;;  %v14345_v40 = vpop.permute.xlu0 %1175  ;;  %6776 = vmatpush2.msra.mxu1 %v2262_v28  ;;  %6627 = vmatprep.subr.mxu0 %v20816_v18  ;;  %v2228_v55 = vld [vmem:[%s20420_s1 + $0xe8] sm:$0xff] }
 0x1e6   :  { %20840 = vst [vmem:[#allocation140_spill] sm:$0xff] %v14345_v40  ;;  %971 = vrot.lane.b32.xlu1 %v14338_v22, %s20832_s29  ;;  %v273_v40 = vld [vmem:[%s20419_s0 + $0xb7] sm:$0xff]  ;;  %6777 = vmatprep.subr.mxu1 %v20816_v18 }
 0x1e7   :  { %727 = vrot.lane.b32.xlu0 %v162_v36, %s20841_s19  ;;  %6628 = vmatpush2.msra.mxu0 %v2229_v29  ;;  %v2259_v29 = vld [vmem:[%s20420_s1 + $0x1e0] sm:$0xff] }
 0x1e8   :  { %v14368_v28 = vpop.permute.xlu1 %1233  ;;  %6778 = vmatpush2.msra.mxu1 %v2261_v45  ;;  %6629 = vmatprep.subr.mxu0 %v20816_v18  ;;  %v1279_v45 = vsel %vm1276_vm1, %v1260_v11, %v13272_v47 }
 0x1e9   :  { %20842 = vst [vmem:[#allocation141_spill] sm:$0xff] %v14368_v28  ;;  %v14370_v62 = vpop.permute.xlu0 %829  ;;  %6779 = vmatprep.subr.mxu1 %v20816_v18  ;;  %6630 = vmatpush2.msra.mxu0 %v2228_v55 }
 0x1ea   :  { %20843 = vst [vmem:[#allocation142_spill] sm:$0xff] %v14370_v62  ;;  %1864 = vrot.lane.b32.xlu1 %v273_v40, %s20762_s11  ;;  %6780 = vmatpush2.msra.mxu1 %v2260_v1  ;;  %v1374_v40 = vsel %vm1371_vm2, %v13274_v48, %v13260_v43  ;;  %v2226_v43 = vld [vmem:[%s20420_s1 + $0xd8] sm:$0xff] }
 0x1eb   :  { %1203 = vrot.lane.b32.xlu0 %v162_v36, %s20762_s11  ;;  %v1298_v36 = vsel %vm1295_vm3, %v1279_v45, %v13281_v50  ;;  %6631 = vmatprep.subr.mxu0 %v20816_v18  ;;  %v1393_v47 = vsel %vm1390_vm4, %v1374_v40, %v13283_v51  ;;  %v2258_v50 = vld [vmem:[%s20420_s1 + $0x1d8] sm:$0xff]  ;;  %v2223_v40 = vld [vmem:[%s20420_s1 + $0xc0] sm:$0xff] }
 0x1ec   :  { %v14395_v28 = vpop.permute.xlu1 %887  ;;  %6781 = vmatprep.subr.mxu1 %v20816_v18  ;;  %v1317_v1 = vsel %vm1314_vm5, %v1298_v36, %v13290_v53  ;;  %6632 = vmatpush2.msra.mxu0 %v2227_v44  ;;  %v1412_v55 = vsel %vm1409_vm6, %v1393_v47, %v13292_v54  ;;  %v2224_v44 = vld [vmem:[%s20420_s1 + $0xc8] sm:$0xff]  ;;  %v2255_v36 = vld [vmem:[%s20420_s1 + $0x1c0] sm:$0xff]  ;;  %v12937_v47 = vld [vmem:[%s20419_s0 + $0x11] sm:$0xff] }
 0x1ed   :  { %v14397_v62 = vpop.permute.xlu0 %469  ;;  %6782 = vmatpush2.msra.mxu1 %v2259_v29  ;;  %v1336_v51 = vsel %vm1333_vm7, %v1317_v1, %v13313_v61  ;;  %v1431_v53 = vsel %vm1428_vm8, %v1412_v55, %v13301_v57  ;;  %6633 = vmatprep.subr.mxu0 %v20816_v18  ;;  %v2257_v57 = vld [vmem:[%s20420_s1 + $0x1d0] sm:$0xff]  ;;  %v2254_v55 = vld [vmem:[%s20420_s1 + $0x1b8] sm:$0xff] }
 0x1ee   :  { %799 = vrot.lane.b32.xlu1 %v37_v21, %s20777_s16  ;;  %6783 = vmatprep.subr.mxu1 %v20816_v18  ;;  %v1450_v54 = vsel %vm1447_vm9, %v1431_v53, %v13320_v63  ;;  %v14440_v63 = vsel %vm1352_vm11, %v1336_v51, %v13274_v48  ;;  %v2256_v48 = vld [vmem:[%s20420_s1 + $0x1c8] sm:$0xff]  ;;  %v12939_v51 = vld [vmem:[%s20419_s0 + $0x14] sm:$0xff] }
 0x1ef   :  { %367 = vrot.lane.b32.xlu0 %v14249_v33, %s20726_s23  ;;  %6634 = vmatpush2.msra.mxu0 %v2226_v43  ;;  %v2225_v33 = vld [vmem:[%s20420_s1 + $0xd0] sm:$0xff]  ;;  %v14436_v21 = vsel %vm1466_vm10, %v1450_v54, %v13343_v7 }
 0x1f0   :  { %v14424_v11 = vpop.permute.xlu1 %945  ;;  %6784 = vmatpush2.msra.mxu1 %v2258_v50  ;;  %6635 = vmatprep.subr.mxu0 %v20816_v18  ;;  %v2222_v50 = vld [vmem:[%s20420_s1 + $0xb8] sm:$0xff]  ;;  %v2221_v53 = vld [vmem:[%s20420_s1 + $0xb0] sm:$0xff] }
 0x1f1   :  { %v14426_v61 = vpop.permute.xlu0 %541  ;;  %6785 = vmatprep.subr.mxu1 %v20816_v18  ;;  %6636 = vmatpush2.msra.mxu0 %v2225_v33  ;;  %v2253_v54 = vld [vmem:[%s20420_s1 + $0x1b0] sm:$0xff] }
 0x1f2   :  { %2020 = vrot.lane.b32.xlu1 %v14436_v21, %s20484_s27  ;;  %6786 = vmatpush2.msra.mxu1 %v2257_v57 }
 0x1f3   :  { %2018 = vrot.lane.b32.xlu0 %v14440_v63, %s20484_s27  ;;  %6637 = vmatprep.subr.mxu0 %v20816_v18  ;;  %s13012_s27 = smov 48  }
 0x1f4   :  { %v14454_v29 = vpop.permute.xlu1 %1119  ;;  %6787 = vmatprep.subr.mxu1 %v20816_v18  ;;  %6638 = vmatpush2.msra.mxu0 %v2224_v44  ;;  %v2220_v44 = vld [vmem:[%s20420_s1 + $0xa8] sm:$0xff] }
 0x1f5   :  { %v14456_v45 = vpop.permute.xlu0 %1061  ;;  %6788 = vmatpush2.msra.mxu1 %v2256_v48  ;;  %6639 = vmatprep.subr.mxu0 %v20816_v18  ;;  %v2252_v48 = vld [vmem:[%s20420_s1 + $0x1a8] sm:$0xff] }
 0x1f6   :  { %857 = vrot.lane.b32.xlu1 %v12937_v47, %s20732_s22  ;;  %6789 = vmatprep.subr.mxu1 %v20816_v18 }
 0x1f7   :  { %439 = vrot.lane.b32.xlu0 %v14338_v22, %s20747_s15  ;;  %6640 = vmatpush2.msra.mxu0 %v2223_v40  ;;  %v12938_v22 = vld [vmem:[%s20419_s0 + $0x15] sm:$0xff] }
 0x1f8   :  { %v14474_v1 = vpop.permute.xlu1 %1003  ;;  %6790 = vmatpush2.msra.mxu1 %v2255_v36  ;;  %6641 = vmatprep.subr.mxu0 %v20816_v18  ;;  %v12940_v40 = vld [vmem:[%s20419_s0 + $0x12] sm:$0xff]  ;;  %v218_v36 = vld [vmem:[%s20419_s0 + $0xb1] sm:$0x1] }
 0x1f9   :  { %v14476_v43 = vpop.permute.xlu0 %613  ;;  %6791 = vmatprep.subr.mxu1 %v20816_v18  ;;  %6642 = vmatpush2.msra.mxu0 %v2222_v50 }
 0x1fa   :  { %1089 = vrot.lane.b32.xlu1 %v12938_v22, %s20844_s28  ;;  %6792 = vmatpush2.msra.mxu1 %v2254_v55  ;;  %v2219_v55 = vld [vmem:[%s20420_s1 + $0xa0] sm:$0xff]  ;;  %v12941_v22 = vld [vmem:[%s20419_s0 + $0x16] sm:$0xff] }
 0x1fb   :  { %1031 = vrot.lane.b32.xlu0 %v12939_v51, %s20845_s24  ;;  %6643 = vmatprep.subr.mxu0 %v20816_v18  ;;  %v2218_v51 = vld [vmem:[%s20420_s1 + $0x98] sm:$0xff] }
 0x1fc   :  { %v14500_v33 = vpop.permute.xlu1 %1552  ;;  %6793 = vmatprep.subr.mxu1 %v20816_v18  ;;  %6644 = vmatpush2.msra.mxu0 %v2221_v53  ;;  %v2250_v53 = vld [vmem:[%s20420_s1 + $0x198] sm:$0xff] }
 0x1fd   :  { %v14502_v57 = vpop.permute.xlu0 %1177  ;;  %6794 = vmatpush2.msra.mxu1 %v2253_v54  ;;  %6645 = vmatprep.subr.mxu0 %v20816_v18  ;;  %v242_v54 = vld [vmem:[%s20419_s0 + $0xb7] sm:$0x1] }
 0x1fe   :  { %915 = vrot.lane.b32.xlu1 %v12940_v40, %s20825_s17  ;;  %6795 = vmatprep.subr.mxu1 %v20816_v18 }
 0x1ff   :  { %511 = vrot.lane.b32.xlu0 %v14143_v52, %s20731_s14  ;;  %6646 = vmatpush2.msra.mxu0 %v2220_v44  ;;  %v2251_v52 = vld [vmem:[%s20420_s1 + $0x1a0] sm:$0xff]  ;;  %v238_v44 = vld [vmem:[%s20419_s0 + $0xb6] sm:$0x1] }
 0x200   :  { %v14523_v47 = vpop.permute.xlu1 %1684  ;;  %6796 = vmatpush2.msra.mxu1 %v2252_v48  ;;  %6647 = vmatprep.subr.mxu0 %v20816_v18 }
 0x201   :  { %v14525_v50 = vpop.permute.xlu0 %1662  ;;  %6797 = vmatprep.subr.mxu1 %v20816_v18  ;;  %6648 = vmatpush2.msra.mxu0 %v2219_v55 }
 0x202   :  { %1556 = vrot.lane.b32.xlu1 %v218_v36, %s20836_s26  ;;  %6798 = vmatpush2.msra.mxu1 %v2251_v52  ;;  %v2217_v36 = vld [vmem:[%s20420_s1 + $0x90] sm:$0xff] }
 0x203   :  { %1147 = vrot.lane.b32.xlu0 %v12941_v22, %s20807_s30  ;;  %6649 = vmatprep.subr.mxu0 %v20816_v18  ;;  %v2249_v22 = vld [vmem:[%s20420_s1 + $0x190] sm:$0xff] }
 0x204   :  { %v14552_v48 = vpop.permute.xlu1 %1574  ;;  %6799 = vmatprep.subr.mxu1 %v20816_v18  ;;  %6650 = vmatpush2.msra.mxu0 %v2218_v51  ;;  %v2216_v51 = vld [vmem:[%s20420_s1 + $0x88] sm:$0xff] }
 0x205   :  { %20846 = vst [vmem:[#allocation143_spill] sm:$0xff] %v14552_v48  ;;  %v14554_v40 = vpop.permute.xlu0 %1235  ;;  %6800 = vmatpush2.msra.mxu1 %v2250_v53  ;;  %6651 = vmatprep.subr.mxu0 %v20816_v18  ;;  %v2248_v53 = vld [vmem:[%s20420_s1 + $0x188] sm:$0xff] }
 0x206   :  { %20847 = vst [vmem:[#allocation144_spill] sm:$0xff] %v14554_v40  ;;  %1688 = vrot.lane.b32.xlu1 %v242_v54, %s20841_s19  ;;  %6801 = vmatprep.subr.mxu1 %v20816_v18  ;;  %v12942_v54 = vld [vmem:[%s20419_s0 + $0x13] sm:$0xff] }
 0x207   :  { %1666 = vrot.lane.b32.xlu0 %v238_v44, %s20790_s12  ;;  %6652 = vmatpush2.msra.mxu0 %v2217_v36  ;;  %v2215_v44 = vld [vmem:[%s20420_s1 + $0x80] sm:$0xff] }
 0x208   :  { %v14568_v55 = vpop.permute.xlu1 %1596  ;;  %6802 = vmatpush2.msra.mxu1 %v2249_v22  ;;  %6653 = vmatprep.subr.mxu0 %v20816_v18  ;;  %v2247_v36 = vld [vmem:[%s20420_s1 + $0x180] sm:$0xff]  ;;  %v222_v22 = vld [vmem:[%s20419_s0 + $0xb2] sm:$0x1] }
 0x209   :  { %20848 = vst [vmem:[#allocation145_spill] sm:$0xff] %v14568_v55  ;;  %v14570_v52 = vpop.permute.xlu0 %1708  ;;  %6803 = vmatprep.subr.mxu1 %v20816_v18  ;;  %6654 = vmatpush2.msra.mxu0 %v2216_v51  ;;  %v12944_v51 = vld [vmem:[%s20419_s0 + $0x17] sm:$0xff] }
 0x20a   :  { %973 = vrot.lane.b32.xlu1 %v12942_v54, %s20832_s29  ;;  %6804 = vmatpush2.msra.mxu1 %v2248_v53 }
 0x20b   :  { %583 = vrot.lane.b32.xlu0 %v14169_v39, %s20833_s18  ;;  %6655 = vmatprep.subr.mxu0 %v20816_v18  ;;  %v12943_v39 = vld [vmem:[%s20419_s0 + $0x18] sm:$0xff] }
 0x20c   :  { %v14595_v55 = vpop.permute.xlu1 %1618  ;;  %6805 = vmatprep.subr.mxu1 %v20816_v18  ;;  %6656 = vmatpush2.msra.mxu0 %v2215_v44  ;;  %v1261_v40 = vsel %vm1257_vm0, %v12943_v39, %v13299_v56  ;;  %v226_v44 = vld [vmem:[%s20419_s0 + $0xb3] sm:$0x1] }
 0x20d   :  { %20849 = vst [vmem:[#allocation146_spill] sm:$0xff] %v14595_v55  ;;  %v14597_v54 = vpop.permute.xlu0 %1730  ;;  %6806 = vmatpush2.msra.mxu1 %v2247_v36  ;;  %v1280_v53 = vsel %vm1276_vm1, %v1261_v40, %v13334_v4  ;;  %v246_v36 = vld [vmem:[%s20419_s0 + $0xb8] sm:$0x1]  ;;  %6893 = vmatprep.subr.mxu0 %v20816_v18 }
 0x20e   :  { %20850 = vst [vmem:[#allocation147_spill] sm:$0xff] %v14597_v54  ;;  %1578 = vrot.lane.b32.xlu1 %v222_v22, %s20726_s23  ;;  %12834 = vmatprep.subr.mxu1 %v20816_v18  ;;  %v1299_v56 = vsel %vm1295_vm3, %v1280_v53, %v13341_v6  ;;  %v1375_v6 = vsel %vm1371_vm2, %v13311_v60, %v13322_v0 }
 0x20f   :  { %1205 = vrot.lane.b32.xlu0 %v12944_v51, %s20762_s11  ;;  %v1318_v4 = vsel %vm1314_vm5, %v1299_v56, %v13350_v9  ;;  %v250_v51 = vld [vmem:[%s20419_s0 + $0xb9] sm:$0x1]  ;;  %v1394_v9 = vsel %vm1390_vm4, %v1375_v6, %v13332_v3 }
 0x210   :  { %v14623_v22 = vpop.permute.xlu1 %1796  ;;  %v1337_v40 = vsel %vm1333_vm7, %v1318_v4, %v13370_v16 }
 0x211   :  { %20851 = vst [vmem:[#allocation148_spill] sm:$0xff] %v14623_v22  ;;  %v14625_v39 = vpop.permute.xlu0 %1752  ;;  %v14647_v16 = vsel %vm1352_vm11, %v1337_v40, %v13311_v60 }
 0x212   :  { %20852 = vst [vmem:[#allocation149_spill] sm:$0xff] %v14625_v39  ;;  %1600 = vrot.lane.b32.xlu1 %v226_v44, %s20747_s15  ;;  %v1413_v44 = vsel %vm1409_vm6, %v1394_v9, %v13352_v10  ;;  %v12945_v10 = vld [vmem:[%s20419_s0 + $0x1d] sm:$0xff] }
 0x213   :  { %1712 = vrot.lane.b32.xlu0 %v246_v36, %s20777_s16  ;;  %v1432_v0 = vsel %vm1428_vm8, %v1413_v44, %v13361_v13  ;;  %v254_v13 = vld [vmem:[%s20419_s0 + $0xba] sm:$0x1]  ;;  %v12946_v44 = vld [vmem:[%s20419_s0 + $0x20] sm:$0xff] }
 0x214   :  { %v14639_v53 = vpop.permute.xlu1 %1554  ;;  %v1451_v36 = vsel %vm1447_vm9, %v1432_v0, %v13380_v19  ;;  %v230_v19 = vld [vmem:[%s20419_s0 + $0xb4] sm:$0x1]  ;;  %v1262_v0 = vsel %vm1257_vm0, %v12946_v44, %v13359_v12 }
 0x215   :  { %20853 = vst [vmem:[#allocation150_spill] sm:$0xff] %v14639_v53  ;;  %v14641_v18 = vpop.permute.xlu0 %1818  ;;  %v14664_v60 = vsel %vm1466_vm10, %v1451_v36, %v13403_v27  ;;  %v12947_v36 = vld [vmem:[%s20419_s0 + $0x1e] sm:$0xff] }
 0x216   :  { %20854 = vst [vmem:[#allocation151_spill] sm:$0xff] %v14641_v18  ;;  %2024 = vrot.lane.b32.xlu1 %v14647_v16, %s20855_s8  ;;  %v20887_v18 = vld [vmem:[#allocation21_spill] sm:$0xff] }
 0x217   :  { %1734 = vrot.lane.b32.xlu0 %v250_v51, %s20732_s22  ;;  %v234_v51 = vld [vmem:[%s20419_s0 + $0xb5] sm:$0x1] }
 0x218   :  { %v14658_v56 = vpop.permute.xlu1 %1664 }
 0x219   :  { %20856 = vst [vmem:[#allocation152_spill] sm:$0xff] %v14658_v56  ;;  %v14660_v3 = vpop.permute.xlu0 %1640  ;;  %v20888_v56 = vld [vmem:[#allocation22_spill] sm:$0xff] }
 0x21a   :  { %20857 = vst [vmem:[#allocation153_spill] sm:$0xff] %v14660_v3  ;;  %1091 = vrot.lane.b32.xlu1 %v12945_v10, %s20844_s28  ;;  %v1281_v10 = vsel %vm1276_vm1, %v1262_v0, %v13394_v24  ;;  %v12948_v24 = vld [vmem:[%s20419_s0 + $0x1f] sm:$0xff]  ;;  %v1376_v0 = vsel %vm1371_vm2, %v13368_v15, %v13382_v20 }
 0x21b   :  { %2026 = vrot.lane.b32.xlu0 %v14664_v60, %s20855_s8 }
 0x21c   :  { %v14678_v4 = vpop.permute.xlu1 %1774 }
 0x21d   :  { %20858 = vst [vmem:[#allocation154_spill] sm:$0xff] %v14678_v4  ;;  %v14680_v40 = vpop.permute.xlu0 %1686 }
 0x21e   :  { %20859 = vst [vmem:[#allocation155_spill] sm:$0xff] %v14680_v40  ;;  %1756 = vrot.lane.b32.xlu1 %v254_v13, %s20825_s17  ;;  %v258_v13 = vld [vmem:[%s20419_s0 + $0xbb] sm:$0x1] }
 0x21f   :  { %1622 = vrot.lane.b32.xlu0 %v230_v19, %s20731_s14  ;;  %v1300_v19 = vsel %vm1295_vm3, %v1281_v10, %v13401_v26  ;;  %v262_v26 = vld [vmem:[%s20419_s0 + $0xbc] sm:$0x1] }
 0x220   :  { %v14687_v6 = vpop.permute.xlu1 %293 }
 0x221   :  { %v14689_v9 = vpop.permute.xlu0 %1840 }
 0x222   :  { %20860 = vst [vmem:[#allocation156_spill] sm:$0xff] %v14689_v9  ;;  %1644 = vrot.lane.b32.xlu1 %v234_v51, %s20833_s18  ;;  %v1319_v51 = vsel %vm1314_vm5, %v1300_v19, %v13413_v30 }
 0x223   :  { %1149 = vrot.lane.b32.xlu0 %v12947_v36, %s20807_s30  ;;  %v1338_v44 = vsel %vm1333_vm7, %v1319_v51, %v13436_v38  ;;  %v1395_v38 = vsel %vm1390_vm4, %v1376_v0, %v13392_v23 }
 0x224   :  { %v14708_v9 = vpop.permute.xlu1 %725  ;;  %v14735_v10 = vsel %vm1352_vm11, %v1338_v44, %v13368_v15 }
 0x225   :  { %v14710_v12 = vpop.permute.xlu0 %653 }
 0x226   :  { %1207 = vrot.lane.b32.xlu1 %v12948_v24, %s20762_s11  ;;  %v1377_v24 = vsel %vm1371_vm2, %v13434_v37, %v13448_v42  ;;  %v12951_v42 = vld [vmem:[%s20419_s0 + $0x27] sm:$0xff] }
 0x227   :  { %1778 = vrot.lane.b32.xlu0 %v258_v13, %s20832_s29  ;;  %v1414_v13 = vsel %vm1409_vm6, %v1395_v38, %v13415_v31  ;;  %v12949_v31 = vld [vmem:[%s20419_s0 + $0x28] sm:$0xff]  ;;  %v1396_v38 = vsel %vm1390_vm4, %v1377_v24, %v13455_v46 }
 0x228   :  { %v14727_v30 = vpop.permute.xlu1 %1710  ;;  %v1433_v20 = vsel %vm1428_vm8, %v1414_v13, %v13427_v35  ;;  %v1263_v44 = vsel %vm1257_vm0, %v12949_v31, %v13425_v34  ;;  %v12950_v35 = vld [vmem:[%s20419_s0 + $0x25] sm:$0xff] }
 0x229   :  { %20861 = vst [vmem:[#allocation157_spill] sm:$0xff] %v14727_v30  ;;  %v14729_v36 = vpop.permute.xlu0 %1576  ;;  %v1452_v19 = vsel %vm1447_vm9, %v1433_v20, %v13446_v41  ;;  %v1282_v41 = vsel %vm1276_vm1, %v1263_v44, %v13457_v49  ;;  %v1415_v49 = vsel %vm1409_vm6, %v1396_v38, %v13481_v5  ;;  %v12953_v44 = vld [vmem:[%s20419_s0 + $0x30] sm:$0xff]  ;;  %v20868_v38 = vld [vmem:[#allocation9_spill] sm:$0xff] }
 0x22a   :  { %20862 = vst [vmem:[#allocation158_spill] sm:$0xff] %v14729_v36  ;;  %2030 = vrot.lane.b32.xlu1 %v14735_v10, %s20855_s8  ;;  %v14752_v15 = vsel %vm1466_vm10, %v1452_v19, %v13469_v59  ;;  %v1434_v46 = vsel %vm1428_vm8, %v1415_v49, %v13493_v17  ;;  %v1264_v17 = vsel %vm1257_vm0, %v12953_v44, %v13491_v14  ;;  %v20869_v14 = vld [vmem:[#allocation14_spill] sm:$0xff]  ;;  %v13006_v36 = vmov 1966171168  }
 0x22b   :  { %1800 = vrot.lane.b32.xlu0 %v262_v26, %s20845_s24  ;;  %v1301_v26 = vsel %vm1295_vm3, %v1282_v41, %v13467_v58  ;;  %v12952_v58 = vld [vmem:[%s20419_s0 + $0x26] sm:$0xff] }
 0x22c   :  { %v14746_v51 = vpop.permute.xlu1 %365  ;;  %v1320_v13 = vsel %vm1314_vm5, %v1301_v26, %v13479_v2  ;;  %v1453_v2 = vsel %vm1447_vm9, %v1434_v46, %v13517_v32  ;;  %v20866_v32 = vld [vmem:[#allocation7_spill] sm:$0xff]  ;;  %v20867_v41 = vld [vmem:[#allocation8_spill] sm:$0xff] }
 0x22d   :  { %v14748_v23 = vpop.permute.xlu0 %1862  ;;  %v1339_v20 = vsel %vm1333_vm7, %v1320_v13, %v13505_v25  ;;  %v14802_v19 = vsel %vm1466_vm10, %v1453_v2, %v13547_v8  ;;  %v20871_v46 = vld [vmem:[#allocation4_spill] sm:$0xff] }
 0x22e   :  { %20863 = vst [vmem:[#allocation159_spill] sm:$0xff] %v14748_v23  ;;  %1093 = vrot.lane.b32.xlu1 %v12950_v35, %s20844_s28  ;;  %v14806_v31 = vsel %vm1352_vm11, %v1339_v20, %v13434_v37  ;;  %v1283_v35 = vsel %vm1276_vm1, %v1264_v17, %v20866_v32  ;;  %v12954_v20 = vld [vmem:[%s20419_s0 + $0x2e] sm:$0xff] }
 0x22f   :  { %2032 = vrot.lane.b32.xlu0 %v14752_v15, %s20855_s8  ;;  %v1302_v37 = vsel %vm1295_vm3, %v1283_v35, %v20867_v41  ;;  %v20873_v32 = vld [vmem:[#allocation6_spill] sm:$0xff] }
 0x230   :  { %v14772_v34 = vpop.permute.xlu1 %1598  ;;  %v1321_v13 = vsel %vm1314_vm5, %v1302_v37, %v20868_v38  ;;  %v20874_v37 = vld [vmem:[#allocation10_spill] sm:$0xff] }
 0x231   :  { %20864 = vst [vmem:[#allocation160_spill] sm:$0xff] %v14772_v34  ;;  %v14774_v0 = vpop.permute.xlu0 %797  ;;  %v1340_v49 = vsel %vm1333_vm7, %v1321_v13, %v20869_v14  ;;  %v12956_v13 = vld [vmem:[%s20419_s0 + $0x2f] sm:$0xff]  ;;  %v20875_v14 = vld [vmem:[#allocation12_spill] sm:$0xff] }
 0x232   :  { %1209 = vrot.lane.b32.xlu1 %v12951_v42, %s20762_s11  ;;  %v12955_v42 = vld [vmem:[%s20419_s0 + $0x2d] sm:$0xff]  ;;  %v14848_v41 = vsel %vm1352_vm11, %v1340_v49, %v20871_v46 }
 0x233   :  { %1151 = vrot.lane.b32.xlu0 %v12952_v58, %s20807_s30  ;;  %v20870_v58 = vld [vmem:[#allocation5_spill] sm:$0xff] }
 0x234   :  { %v14796_v5 = vpop.permute.xlu1 %437  ;;  %v1378_v2 = vsel %vm1371_vm2, %v20871_v46, %v20870_v58 }
 0x235   :  { %v14798_v25 = vpop.permute.xlu0 %1732  ;;  %v1397_v35 = vsel %vm1390_vm4, %v1378_v2, %v20873_v32  ;;  %v20879_v2 = vld [vmem:[#allocation20_spill] sm:$0xff] }
 0x236   :  { %20865 = vst [vmem:[#allocation161_spill] sm:$0xff] %v14798_v25  ;;  %2038 = vrot.lane.b32.xlu1 %v14802_v19, %s20855_s8  ;;  %v1416_v38 = vsel %vm1409_vm6, %v1397_v35, %v20874_v37  ;;  %v12957_v35 = vld [vmem:[%s20419_s0 + $0x38] sm:$0xff]  ;;  %v20886_v25 = vld [vmem:[#allocation17_spill] sm:$0xff] }
 0x237   :  { %2036 = vrot.lane.b32.xlu0 %v14806_v31, %s20855_s8  ;;  %v20880_v37 = vld [vmem:[#allocation11_spill] sm:$0xff] }
 0x238   :  { %v14821_v24 = vpop.permute.xlu1 %1029 }
 0x239   :  { %v14823_v26 = vpop.permute.xlu0 %855 }
 0x23a   :  { %1153 = vrot.lane.b32.xlu1 %v12954_v20, %s20807_s30  ;;  %v1435_v20 = vsel %vm1428_vm8, %v1416_v38, %v20875_v14  ;;  %v12958_v38 = vld [vmem:[%s20419_s0 + $0x35] sm:$0xff] }
 0x23b   :  { %1095 = vrot.lane.b32.xlu0 %v12955_v42, %s20844_s28  ;;  %v20876_v42 = vld [vmem:[#allocation15_spill] sm:$0xff]  ;;  %v20881_v14 = vld [vmem:[#allocation18_spill] sm:$0xff] }
 0x23c   :  { %v14840_v44 = vpop.permute.xlu1 %1620  ;;  %v1454_v58 = vsel %vm1447_vm9, %v1435_v20, %v20876_v42  ;;  %v20882_v42 = vld [vmem:[#allocation16_spill] sm:$0xff] }
 0x23d   :  { %20872 = vst [vmem:[#allocation7_spill] sm:$0xff] %v14840_v44  ;;  %v14842_v17 = vpop.permute.xlu0 %1087  ;;  %v14868_v32 = vsel %vm1466_vm10, %v1454_v58, %v20879_v2  ;;  %v20883_v58 = vld [vmem:[#allocation13_spill] sm:$0xff]  ;;  %v12962_v44 = vld [vmem:[%s20419_s0 + $0x3e] sm:$0xff] }
 0x23e   :  { %2042 = vrot.lane.b32.xlu1 %v14848_v41, %s20855_s8  ;;  %v1379_v23 = vsel %vm1371_vm2, %v20883_v58, %v20882_v42  ;;  %v20892_v42 = vld [vmem:[#allocation30_spill] sm:$0xff] }
 0x23f   :  { %1211 = vrot.lane.b32.xlu0 %v12956_v13, %s20762_s11  ;;  %v1265_v13 = vsel %vm1257_vm0, %v12957_v35, %v20880_v37 }
 0x240   :  { %v14862_v49 = vpop.permute.xlu1 %1798  ;;  %v1284_v20 = vsel %vm1276_vm1, %v1265_v13, %v20881_v14  ;;  %v20889_v14 = vld [vmem:[#allocation23_spill] sm:$0xff] }
 0x241   :  { %20877 = vst [vmem:[#allocation8_spill] sm:$0xff] %v14862_v49  ;;  %v14864_v46 = vpop.permute.xlu0 %1754  ;;  %v20884_v49 = vld [vmem:[#allocation19_spill] sm:$0xff] }
 0x242   :  { %20878 = vst [vmem:[#allocation9_spill] sm:$0xff] %v14864_v46  ;;  %1097 = vrot.lane.b32.xlu1 %v12958_v38, %s20844_s28  ;;  %v1303_v46 = vsel %vm1295_vm3, %v1284_v20, %v20884_v49  ;;  %v1398_v38 = vsel %vm1390_vm4, %v1379_v23, %v20886_v25  ;;  %v12959_v49 = vld [vmem:[%s20419_s0 + $0x37] sm:$0xff]  ;;  %v20890_v23 = vld [vmem:[#allocation24_spill] sm:$0xff] }
 0x243   :  { %2044 = vrot.lane.b32.xlu0 %v14868_v32, %s20855_s8  ;;  %v1322_v30 = vsel %vm1314_vm5, %v1303_v46, %v20887_v18  ;;  %v1417_v13 = vsel %vm1409_vm6, %v1398_v38, %v20888_v56  ;;  %v12960_v20 = vld [vmem:[%s20419_s0 + $0x36] sm:$0xff] }
 0x244   :  { %v14888_v35 = vpop.permute.xlu1 %509  ;;  %v1341_v40 = vsel %vm1333_vm7, %v1322_v30, %v20889_v14  ;;  %v1436_v18 = vsel %vm1428_vm8, %v1417_v13, %v20890_v23  ;;  %v20891_v25 = vld [vmem:[#allocation26_spill] sm:$0xff]  ;;  %v20894_v23 = vld [vmem:[#allocation29_spill] sm:$0xff] }
 0x245   :  { %v14890_v37 = vpop.permute.xlu0 %1820  ;;  %v1455_v56 = vsel %vm1447_vm9, %v1436_v18, %v20891_v25  ;;  %v14920_v14 = vsel %vm1352_vm11, %v1341_v40, %v20883_v58  ;;  %v20895_v25 = vld [vmem:[#allocation31_spill] sm:$0xff] }
 0x246   :  { %20885 = vst [vmem:[#allocation14_spill] sm:$0xff] %v14890_v37  ;;  %1213 = vrot.lane.b32.xlu1 %v12959_v49, %s20762_s11  ;;  %v14916_v38 = vsel %vm1466_vm10, %v1455_v56, %v20892_v42  ;;  %v12961_v49 = vld [vmem:[%s20419_s0 + $0x40] sm:$0xff]  ;;  %v20898_v37 = vld [vmem:[#allocation33_spill] sm:$0xff] }
 0x247   :  { %1155 = vrot.lane.b32.xlu0 %v12960_v20, %s20807_s30  ;;  %v20893_v20 = vld [vmem:[#allocation25_spill] sm:$0xff] }
 0x248   :  { %v14912_v46 = vpop.permute.xlu1 %1145  ;;  %v1874_v13 = vsel %vm1257_vm0, %v12961_v49, %v20893_v20  ;;  %v20899_v49 = vld [vmem:[#allocation38_spill] sm:$0xff] }
 0x249   :  { %v914_v30 = vpop.permute.xlu0 %913  ;;  %v1880_v18 = vsel %vm1276_vm1, %v1874_v13, %v20894_v23  ;;  %v12963_v13 = vld [vmem:[%s20419_s0 + $0x3d] sm:$0xff] }
 0x24a   :  { %2050 = vrot.lane.b32.xlu1 %v14916_v38, %s20855_s8  ;;  %v1886_v40 = vsel %vm1295_vm3, %v1880_v18, %v20895_v25  ;;  %v20900_v23 = vld [vmem:[#allocation27_spill] sm:$0xff]  ;;  %v20901_v18 = vld [vmem:[#allocation28_spill] sm:$0xff] }
 0x24b   :  { %2048 = vrot.lane.b32.xlu0 %v14920_v14, %s20855_s8  ;;  %v1892_v22 = vsel %vm1314_vm5, %v1886_v40, %v20898_v37  ;;  %v1910_v25 = vsel %vm1371_vm2, %v20901_v18, %v20900_v23  ;;  %v20905_v23 = vld [vmem:[#allocation36_spill] sm:$0xff] }
 0x24c   :  { %v14935_v58 = vpop.permute.xlu1 %1776  ;;  %v1898_v20 = vsel %vm1333_vm7, %v1892_v22, %v20899_v49  ;;  %v20903_v22 = vld [vmem:[#allocation32_spill] sm:$0xff] }
 0x24d   :  { %20896 = vst [vmem:[#allocation5_spill] sm:$0xff] %v14935_v58  ;;  %v14937_v56 = vpop.permute.xlu0 %1642  ;;  %v1916_v49 = vsel %vm1390_vm4, %v1910_v25, %v20903_v22  ;;  %v20904_v58 = vld [vmem:[#allocation34_spill] sm:$0xff]  ;;  %v62_v25 = vld [vmem:[%s20419_s0 + $0x61] sm:$0xff]  ;;  %v20906_v22 = vld [vmem:[#allocation39_spill] sm:$0xff] }
 0x24e   :  { %20897 = vst [vmem:[#allocation4_spill] sm:$0xff] %v14937_v56  ;;  %1157 = vrot.lane.b32.xlu1 %v12962_v44, %s20807_s30  ;;  %v1904_v44 = vsel %vm1352_vm11, %v1898_v20, %v20901_v18  ;;  %v1922_v56 = vsel %vm1409_vm6, %v1916_v49, %v20904_v58  ;;  %v20907_v49 = vld [vmem:[#allocation44_spill] sm:$0xff] }
 0x24f   :  { %1099 = vrot.lane.b32.xlu0 %v12963_v13, %s20844_s28  ;;  %v12964_v13 = vld [vmem:[%s20419_s0 + $0x3f] sm:$0xff] }
 0x250   :  { %v14954_v37 = vpop.permute.xlu1 %295 }
 0x251   :  { %v14956_v40 = vpop.permute.xlu0 %1842 }
 0x252   :  { %20902 = vst [vmem:[#allocation6_spill] sm:$0xff] %v14956_v40  ;;  %2054 = vrot.lane.b32.xlu1 %v1904_v44, %s20855_s8  ;;  %v1928_v40 = vsel %vm1428_vm8, %v1922_v56, %v20905_v23  ;;  %v170_v56 = vld [vmem:[%s20419_s0 + $0x67] sm:$0xff] }
 0x253   :  { %1215 = vrot.lane.b32.xlu0 %v12964_v13, %s20762_s11  ;;  %v1934_v20 = vsel %vm1447_vm9, %v1928_v40, %v20906_v22  ;;  %v152_v13 = vld [vmem:[%s20419_s0 + $0x66] sm:$0xff] }
 0x254   :  { %v14976_v18 = vpop.permute.xlu1 %655  ;;  %v1940_v44 = vsel %vm1466_vm10, %v1934_v20, %v20907_v49  ;;  %v35_v22 = vld [vmem:[%s20419_s0] sm:$0xff] }
 0x255   :  { %v582_v58 = vpop.permute.xlu0 %581  ;;  %v1258_v49 = vsel %vm1257_vm0, %v35_v22, %v14687_v6  ;;  %v12965_v6 = vld [vmem:[%s20419_s0 + $0x45] sm:$0xff] }
 0x256   :  { %311 = vrot.lane.b32.xlu1 %v62_v25, %s20836_s26  ;;  %v1372_v25 = vsel %vm1371_vm2, %v14710_v12, %v14708_v9 }
 0x257   :  { %2056 = vrot.lane.b32.xlu0 %v1940_v44, %s20855_s8  ;;  %v1391_v20 = vsel %vm1390_vm4, %v1372_v25, %v14774_v0  ;;  %v80_v44 = vld [vmem:[%s20419_s0 + $0x62] sm:$0xff]  ;;  %v2322_v25 = vlaneseq }
 0x258   :  { %v972_v23 = vpop.permute.xlu1 %971  ;;  %v1410_v34 = vsel %vm1409_vm6, %v1391_v20, %v14823_v26 }
 0x259   :  { %v14988_v40 = vpop.permute.xlu0 %727  ;;  %v1429_v0 = vsel %vm1428_vm8, %v1410_v34, %v914_v30 }
 0x25a   :  { %743 = vrot.lane.b32.xlu1 %v170_v56, %s20841_s19  ;;  %v2320_v56 = vunpack.c.l.s4 %v13006_v36  ;;  %v1448_v42 = vsel %vm1447_vm9, %v1429_v0, %v972_v23  ;;  %v15032_v23 = vshrl.u32 %v2322_v25, 7 }
 0x25b   :  { %671 = vrot.lane.b32.xlu0 %v152_v13, %s20790_s12  ;;  %v1277_v13 = vsel %vm1276_vm1, %v1258_v49, %v14746_v51  ;;  %v45_v51 = vld [vmem:[%s20419_s0 + $0x68] sm:$0xff]  ;;  %v1467_v49 = vsel %vm1466_vm10, %v1448_v42, %v14821_v24 }
 0x25c   :  { %v15007_v3 = vpop.permute.xlu1 %1864  ;;  %v1296_v55 = vsel %vm1295_vm3, %v1277_v13, %v14796_v5  ;;  %v2321_v30 = vunpack.c.0.s8 %v2320_v56  ;;  %20909 = vst [vmem:[#allocation12_spill] sm:$0xff] %v15032_v23 }
 0x25d   :  { %20908 = vst [vmem:[#allocation10_spill] sm:$0xff] %v15007_v3  ;;  %v1204_v9 = vpop.permute.xlu0 %1203  ;;  %v1315_v36 = vsel %vm1314_vm5, %v1296_v55, %v14888_v35  ;;  %v1486_v55 = vsel %vm1485_vm12, %v14821_v24, %v14842_v17  ;;  %v12966_v35 = vld [vmem:[%s20419_s0 + $0x46] sm:$0xff]  ;;  %v61_v17 = vld [vmem:[%s20419_s0 + $0x41] sm:$0x1]  ;;  %v20912_v3 = vld [vmem:[#allocation35_spill] sm:$0xff] }
 0x25e   :  { %383 = vrot.lane.b32.xlu1 %v80_v44, %s20726_s23  ;;  %v1334_v34 = vsel %vm1333_vm7, %v1315_v36, %v582_v58  ;;  %v1505_v42 = vsel %vm1504_vm13, %v1486_v55, %v14912_v46  ;;  %v98_v24 = vld [vmem:[%s20419_s0 + $0x63] sm:$0xff]  ;;  %v15059_v0 = vsub.s32 %v2321_v30, %v15032_v23 }
 0x25f   :  { %1101 = vrot.lane.b32.xlu0 %v12965_v6, %s20844_s28  ;;  %v1353_v58 = vsel %vm1352_vm11, %v1334_v34, %v14710_v12  ;;  %v1524_v44 = vsel %vm1523_vm15, %v1505_v42, %v1204_v9  ;;  %v169_v9 = vld [vmem:[%s20419_s0 + $0x47] sm:$0x1] }
 0x260   :  { %v15026_v5 = vpop.permute.xlu1 %799  ;;  %v2313_v22 = vcombine.low %v1353_v58, %v1467_v49  ;;  %v2314_v20 = vcombine.high %v1353_v58, %v1467_v49 }
 0x261   :  { %v15028_v26 = vpop.permute.xlu0 %367 }
 0x262   :  { %1159 = vrot.lane.b32.xlu1 %v12966_v35, %s20807_s30  ;;  %v2325_v36 = vrot.slane %v2313_v22, %v15059_v0  ;;  %v151_v35 = vld [vmem:[%s20419_s0 + $0x46] sm:$0x1]  ;;  %v15082_v22 = vld [vmem:[%s20419_s0 + $0x6c] sm:$0xff] }
 0x263   :  { %815 = vrot.lane.b32.xlu0 %v45_v51, %s20777_s16  ;;  %v2332_v51 = vrot.slane %v2314_v20, %v15059_v0 }
 0x264   :  { %v15053_v56 = vpop.permute.xlu1 %2020 }
 0x265   :  { %20910 = vst [vmem:[#allocation15_spill] sm:$0xff] %v15053_v56  ;;  %v2019_v13 = vpop.permute.xlu0 %2018 }
 0x266   :  { %v2127_v46 = vsel %vm2126_vm14, %v2019_v13, %v15053_v56  ;;  %v2181_v12 = vsel %vm2126_vm14, %v1524_v44, %v2019_v13  ;;  %455 = vrot.lane.b32.xlu1 %v98_v24, %s20747_s15  ;;  %v15091_v13 = vld [vmem:[%s20419_s0 + $0x69] sm:$0xff] }
 0x267   :  { %v2315_v25 = vcombine.low %v2181_v12, %v2127_v46  ;;  %v2316_v6 = vcombine.high %v2181_v12, %v2127_v46  ;;  %309 = vrot.lane.b32.xlu0 %v61_v17, %s20836_s26 }
 0x268   :  { %v15070_v30 = vpop.permute.xlu1 %857 }
 0x269   :  { %v2339_v34 = vrot.slane %v2315_v25, %v15059_v0  ;;  %v2346_v49 = vrot.slane %v2316_v6, %v15059_v0  ;;  %v15072_v55 = vpop.permute.xlu0 %439 }
 0x26a   :  { %741 = vrot.lane.b32.xlu1 %v169_v9, %s20841_s19 }
 0x26b   :  { %v2361_v42 = vcombine.low %v2325_v36, %v2339_v34  ;;  %v2362_v58 = vcombine.high %v2325_v36, %v2339_v34  ;;  %v2363_v24 = vcombine.low %v2332_v51, %v2346_v49  ;;  %v2364_v17 = vcombine.high %v2332_v51, %v2346_v49  ;;  %669 = vrot.lane.b32.xlu0 %v151_v35, %s20790_s12 }
 0x26c   :  { %v15084_v20 = vpop.permute.xlu1 %1089 }
 0x26d   :  { %v15086_v44 = vpop.permute.xlu0 %1031  ;;  %v2373_v46 = vrot.slane %v2361_v42, %v15059_v0  ;;  %v2380_v12 = vrot.slane %v2363_v24, %v15059_v0  ;;  %v2387_v25 = vrot.slane %v2362_v58, %v15059_v0  ;;  %v2394_v6 = vrot.slane %v2364_v17, %v15059_v0  ;;  %v15108_v42 = vld [vmem:[%s20419_s0 + $0x6d] sm:$0xff] }
 0x26e   :  { %1047 = vrot.lane.b32.xlu1 %v15082_v22, %s20845_s24 }
 0x26f   :  { %v12583_v9 = vcombine.low %v2373_v46, %v2387_v25  ;;  %v12585_v36 = vcombine.high %v2373_v46, %v2387_v25  ;;  %v12587_v51 = vcombine.low %v2380_v12, %v2394_v6  ;;  %v12589_v34 = vcombine.high %v2380_v12, %v2394_v6  ;;  %873 = vrot.lane.b32.xlu0 %v15091_v13, %s20732_s22  ;;  %v12967_v12 = vld [vmem:[%s20419_s0 + $0x47] sm:$0xff] }
 0x270   :  { %v15101_v49 = vpop.permute.xlu1 %915 }
 0x271   :  { %v15103_v35 = vpop.permute.xlu0 %511  ;;  %v4295_v58 = vrot.slane %v12583_v9, %v15059_v0  ;;  %v4309_v24 = vrot.slane %v12585_v36, %v15059_v0  ;;  %v4323_v17 = vrot.slane %v12587_v51, %v15059_v0  ;;  %v4337_v46 = vrot.slane %v12589_v34, %v15059_v0  ;;  %v116_v9 = vld [vmem:[%s20419_s0 + $0x64] sm:$0xff]  ;;  %v79_v34 = vld [vmem:[%s20419_s0 + $0x42] sm:$0x1] }
 0x272   :  { %1217 = vrot.lane.b32.xlu1 %v12967_v12, %s20762_s11 }
 0x273   :  { %v4346_v25 = vcombine.high %v4295_v58, %v4309_v24  ;;  %v4350_v6 = vcombine.high %v4323_v17, %v4337_v46  ;;  %v4345_v23 = vcombine.low %v4295_v58, %v4309_v24  ;;  %v4349_v56 = vcombine.low %v4323_v17, %v4337_v46  ;;  %1105 = vrot.lane.b32.xlu0 %v15108_v42, %s20844_s28  ;;  %v12968_v46 = vld [vmem:[%s20419_s0 + $0x48] sm:$0xff] }
 0x274   :  { %v15123_v36 = vpop.permute.xlu1 %1556 }
 0x275   :  { %20911 = vst [vmem:[#allocation20_spill] sm:$0xff] %v15123_v36  ;;  %v15125_v51 = vpop.permute.xlu0 %1147  ;;  %v4373_v12 = vrot.slane %v4346_v25, %v15059_v0  ;;  %v4401_v58 = vrot.slane %v4350_v6, %v15059_v0  ;;  %v4359_v24 = vrot.slane %v4345_v23, %v15059_v0  ;;  %v4387_v17 = vrot.slane %v4349_v56, %v15059_v0  ;;  %v20913_v25 = vld [vmem:[#allocation42_spill] sm:$0xff]  ;;  %v20914_v56 = vld [vmem:[#allocation48_spill] sm:$0xff] }
 0x276   :  { %v1875_v36 = vsel %vm1257_vm0, %v12968_v46, %v20912_v3  ;;  %527 = vrot.lane.b32.xlu1 %v116_v9, %s20731_s14  ;;  %v15146_v23 = vld [vmem:[%s20419_s0 + $0x6a] sm:$0xff]  ;;  %v20919_v46 = vld [vmem:[#allocation40_spill] sm:$0xff] }
 0x277   :  { %v4412_v4 = vcombine.low %v4373_v12, %v4401_v58  ;;  %v4413_v53 = vcombine.high %v4373_v12, %v4401_v58  ;;  %v4409_v39 = vcombine.low %v4359_v24, %v4387_v17  ;;  %v4410_v48 = vcombine.high %v4359_v24, %v4387_v17  ;;  %381 = vrot.lane.b32.xlu0 %v79_v34, %s20726_s23  ;;  %v20917_v12 = vld [vmem:[#allocation52_spill] sm:$0xff]  ;;  %v20918_v58 = vld [vmem:[#allocation55_spill] sm:$0xff] }
 0x278   :  { %v1881_v6 = vsel %vm1276_vm1, %v1875_v36, %v20913_v25  ;;  %v15150_v3 = vpop.permute.xlu1 %1688  ;;  %v180_v36 = vld [vmem:[%s20419_s0 + $0x48] sm:$0x1] }
 0x279   :  { %v1887_v54 = vsel %vm1295_vm3, %v1881_v6, %v20914_v56  ;;  %20915 = vst [vmem:[#allocation11_spill] sm:$0xff] %v15150_v3  ;;  %v15152_v9 = vpop.permute.xlu0 %1666  ;;  %6657 = vmatprep.mubr.f32.mxu0 %v4412_v4  ;;  %6807 = vmatprep.mubr.f32.mxu1 %v4413_v53  ;;  %v153_v53 = vld [vmem:[%s20419_s0 + $0x6e] sm:$0xff]  ;;  %v20922_v56 = vld [vmem:[#allocation47_spill] sm:$0xff] }
 0x27a   :  { %20916 = vst [vmem:[#allocation18_spill] sm:$0xff] %v15152_v9  ;;  %v1893_v34 = vsel %vm1314_vm5, %v1887_v54, %v20917_v12  ;;  %6658 = vmatmul.mubr.f32.vlgmr.msra.gmra.mxu0 %v4409_v39  ;;  %6808 = vmatmul.mubr.f32.vlgmr.msra.gmra.mxu1 %v4410_v48  ;;  %v20920_v25 = vld [vmem:[#allocation37_spill] sm:$0xff]  ;;  %v20923_v12 = vld [vmem:[#allocation51_spill] sm:$0xff] }
 0x27b   :  { %v1899_v24 = vsel %vm1333_vm7, %v1893_v34, %v20918_v58  ;;  %931 = vrot.lane.b32.xlu1 %v15146_v23, %s20825_s17  ;;  %813 = vrot.lane.b32.xlu0 %v180_v36, %s20777_s16  ;;  %v1911_v54 = vsel %vm1371_vm2, %v20920_v25, %v20919_v46  ;;  %v20921_v39 = vld [vmem:[#allocation41_spill] sm:$0xff]  ;;  %v20924_v46 = vld [vmem:[#allocation60_spill] sm:$0xff] }
 0x27c   :  { %v974_v17 = vpop.permute.xlu1 %973  ;;  %v1905_v48 = vsel %vm1352_vm11, %v1899_v24, %v20920_v25  ;;  %v1917_v6 = vsel %vm1390_vm4, %v1911_v54, %v20921_v39  ;;  %v12969_v24 = vld [vmem:[%s20419_s0 + $0x8] sm:$0xff]  ;;  %v1373_v54 = vsel %vm1371_vm2, %v14976_v18, %v14988_v40 }
 0x27d   :  { %v584_v4 = vpop.permute.xlu0 %583  ;;  %v1923_v36 = vsel %vm1409_vm6, %v1917_v6, %v20922_v56  ;;  %v1259_v25 = vsel %vm1257_vm0, %v12969_v24, %v14954_v37  ;;  %v1392_v6 = vsel %vm1390_vm4, %v1373_v54, %v15026_v5  ;;  %v134_v37 = vld [vmem:[%s20419_s0 + $0x65] sm:$0xff]  ;;  %v97_v5 = vld [vmem:[%s20419_s0 + $0x43] sm:$0x1] }
 0x27e   :  { %v1929_v34 = vsel %vm1428_vm8, %v1923_v36, %v20923_v12  ;;  %v1278_v56 = vsel %vm1276_vm1, %v1259_v25, %v15028_v26  ;;  %v1411_v40 = vsel %vm1409_vm6, %v1392_v6, %v15070_v30  ;;  %v2550_v25 = vcombine.high %v14440_v63, %v14436_v21 }
 0x27f   :  { %2060 = vrot.lane.b32.xlu1 %v1905_v48, %s20855_s8  ;;  %1163 = vrot.lane.b32.xlu0 %v153_v53, %s20807_s30  ;;  %v1935_v3 = vsel %vm1447_vm9, %v1929_v34, %v20924_v46  ;;  %v20925_v48 = vld [vmem:[#allocation65_spill] sm:$0xff]  ;;  %v1430_v26 = vsel %vm1428_vm8, %v1411_v40, %v15101_v49 }
 0x280   :  { %v15180_v58 = vpop.permute.xlu1 %1578  ;;  %v1941_v39 = vsel %vm1466_vm10, %v1935_v3, %v20925_v48  ;;  %v1449_v34 = vsel %vm1447_vm9, %v1430_v26, %v974_v17  ;;  %v1487_v17 = vsel %vm1485_vm12, %v15086_v44, %v15084_v20  ;;  %v2667_v20 = vcombine.low %v14647_v16, %v14664_v60 }
 0x281   :  { %v1206_v9 = vpop.permute.xlu0 %1205  ;;  %v1468_v49 = vsel %vm1466_vm10, %v1449_v34, %v15086_v44  ;;  %v1506_v54 = vsel %vm1504_vm13, %v1487_v17, %v15125_v51  ;;  %v2668_v51 = vcombine.high %v14647_v16, %v14664_v60  ;;  %v2786_v26 = vcombine.high %v14735_v10, %v14752_v15  ;;  %v200_v16 = vld [vmem:[%s20419_s0 + $0x4d] sm:$0x1]  ;;  %v46_v60 = vld [vmem:[%s20419_s0 + $0x70] sm:$0xff] }
 0x282   :  { %v1525_v6 = vsel %vm1523_vm15, %v1506_v54, %v1206_v9  ;;  %v15297_v17 = vrot.slane %v2667_v20, %v15059_v0  ;;  %v2903_v20 = vcombine.low %v14806_v31, %v14802_v19 }
 0x283   :  { %313 = vrot.lane.b32.xlu1 %v15091_v13, %s20836_s26  ;;  %2062 = vrot.lane.b32.xlu0 %v1941_v39, %s20855_s8  ;;  %v1297_v13 = vsel %vm1295_vm3, %v1278_v56, %v15072_v55  ;;  %v15226_v55 = vld [vmem:[%s20419_s0 + $0x6f] sm:$0xff] }
 0x284   :  { %v15208_v36 = vpop.permute.xlu1 %1600  ;;  %v1316_v12 = vsel %vm1314_vm5, %v1297_v13, %v15103_v35 }
 0x285   :  { %20926 = vst [vmem:[#allocation16_spill] sm:$0xff] %v15208_v36  ;;  %v15210_v3 = vpop.permute.xlu0 %1712  ;;  %v1335_v30 = vsel %vm1333_vm7, %v1316_v12, %v584_v4  ;;  %v2549_v4 = vcombine.low %v14440_v63, %v14436_v21  ;;  %v184_v63 = vld [vmem:[%s20419_s0 + $0x49] sm:$0x1]  ;;  %v20952_v36 = vld [vmem:[#allocation66_spill] sm:$0xff] }
 0x286   :  { %20927 = vst [vmem:[#allocation13_spill] sm:$0xff] %v15210_v3  ;;  %v1354_v35 = vsel %vm1352_vm11, %v1335_v30, %v14976_v18  ;;  %v15249_v18 = vld [vmem:[%s20419_s0 + $0x6b] sm:$0xff] }
 0x287   :  { %599 = vrot.lane.b32.xlu1 %v134_v37, %s20833_s18  ;;  %453 = vrot.lane.b32.xlu0 %v97_v5, %s20747_s15  ;;  %v2431_v44 = vcombine.low %v1354_v35, %v1468_v49  ;;  %v2432_v39 = vcombine.high %v1354_v35, %v1468_v49  ;;  %v15271_v5 = vrot.slane %v2549_v4, %v15059_v0 }
 0x288   :  { %v2025_v46 = vpop.permute.xlu1 %2024  ;;  %v15294_v35 = vrot.slane %v2550_v25, %v15059_v0  ;;  %v15300_v4 = vrot.slane %v2668_v51, %v15059_v0  ;;  %v15309_v25 = vrot.slane %v2786_v26, %v15059_v0  ;;  %v2904_v51 = vcombine.high %v14806_v31, %v14802_v19 }
 0x289   :  { %v15228_v24 = vpop.permute.xlu0 %1734  ;;  %v2182_v37 = vsel %vm2126_vm14, %v1525_v6, %v2025_v46  ;;  %v2443_v12 = vrot.slane %v2431_v44, %v15059_v0  ;;  %v2450_v34 = vrot.slane %v2432_v39, %v15059_v0  ;;  %v3021_v31 = vcombine.low %v14848_v41, %v14868_v32 }
 0x28a   :  { %20928 = vst [vmem:[#allocation19_spill] sm:$0xff] %v15228_v24 }
 0x28b   :  { %745 = vrot.lane.b32.xlu1 %v15226_v55, %s20841_s19  ;;  %673 = vrot.lane.b32.xlu0 %v153_v53, %s20790_s12  ;;  %v2785_v53 = vcombine.low %v14735_v10, %v14752_v15  ;;  %v196_v15 = vld [vmem:[%s20419_s0 + $0x4c] sm:$0x1] }
 0x28c   :  { %v15254_v56 = vpop.permute.xlu1 %1091 }
 0x28d   :  { %v15256_v21 = vpop.permute.xlu0 %2026  ;;  %v15303_v54 = vrot.slane %v2785_v53, %v15059_v0 }
 0x28e   :  { %20929 = vst [vmem:[#allocation17_spill] sm:$0xff] %v15256_v21  ;;  %v2129_v40 = vsel %vm2126_vm14, %v2025_v46, %v15256_v21  ;;  %v20937_v21 = vld [vmem:[#allocation49_spill] sm:$0xff] }
 0x28f   :  { %v2433_v9 = vcombine.low %v2182_v37, %v2129_v40  ;;  %v2434_v13 = vcombine.high %v2182_v37, %v2129_v40  ;;  %989 = vrot.lane.b32.xlu1 %v15249_v18, %s20832_s29  ;;  %871 = vrot.lane.b32.xlu0 %v184_v63, %s20732_s22  ;;  %v20932_v37 = vld [vmem:[#allocation43_spill] sm:$0xff] }
 0x290   :  { %v15286_v49 = vpop.permute.xlu1 %1756  ;;  %v1269_v40 = vsel %vm1257_vm0, %v46_v60, %v20932_v37  ;;  %v20936_v37 = vld [vmem:[#allocation50_spill] sm:$0xff] }
 0x291   :  { %v2457_v30 = vrot.slane %v2433_v9, %v15059_v0  ;;  %v2464_v46 = vrot.slane %v2434_v13, %v15059_v0  ;;  %20930 = vst [vmem:[#allocation21_spill] sm:$0xff] %v15286_v49  ;;  %v15288_v10 = vpop.permute.xlu0 %1622  ;;  %v1288_v19 = vsel %vm1276_vm1, %v1269_v40, %v20936_v37  ;;  %v15338_v40 = vrot.slane %v2903_v20, %v15059_v0  ;;  %v20942_v49 = vld [vmem:[#allocation56_spill] sm:$0xff] }
 0x292   :  { %20931 = vst [vmem:[#allocation22_spill] sm:$0xff] %v15288_v10  ;;  %v15341_v37 = vrot.slane %v2904_v51, %v15059_v0  ;;  %v20943_v10 = vld [vmem:[#allocation57_spill] sm:$0xff] }
 0x293   :  { %v2479_v44 = vcombine.low %v2443_v12, %v2457_v30  ;;  %v2480_v39 = vcombine.high %v2443_v12, %v2457_v30  ;;  %v2481_v6 = vcombine.low %v2450_v34, %v2464_v46  ;;  %v2482_v63 = vcombine.high %v2450_v34, %v2464_v46  ;;  %1103 = vrot.lane.b32.xlu1 %v200_v16, %s20844_s28  ;;  %v20934_v34 = vld [vmem:[#allocation45_spill] sm:$0xff]  ;;  %v20935_v30 = vld [vmem:[#allocation46_spill] sm:$0xff] }
 0x294   :  { %1045 = vrot.lane.b32.xlu0 %v196_v15, %s20845_s24  ;;  %v15320_v12 = vpop.permute.xlu1 %1644  ;;  %v1383_v46 = vsel %vm1371_vm2, %v20935_v30, %v20934_v34  ;;  %v3022_v15 = vcombine.high %v14848_v41, %v14868_v32  ;;  %v20938_v34 = vld [vmem:[#allocation54_spill] sm:$0xff] }
 0x295   :  { %v2491_v53 = vrot.slane %v2479_v44, %v15059_v0  ;;  %v2498_v9 = vrot.slane %v2481_v6, %v15059_v0  ;;  %v2505_v13 = vrot.slane %v2480_v39, %v15059_v0  ;;  %v2512_v16 = vrot.slane %v2482_v63, %v15059_v0  ;;  %20933 = vst [vmem:[#allocation23_spill] sm:$0xff] %v15320_v12  ;;  %v1150_v26 = vpop.permute.xlu0 %1149  ;;  %v212_v41 = vld [vmem:[%s20419_s0 + $0x50] sm:$0x1] }
 0x296   :  { %v1402_v48 = vsel %vm1390_vm4, %v1383_v46, %v20937_v21  ;;  %v1307_v12 = vsel %vm1295_vm3, %v1288_v19, %v20938_v34  ;;  %v115_v21 = vld [vmem:[%s20419_s0 + $0x44] sm:$0x1]  ;;  %v15362_v19 = vrot.slane %v3021_v31, %v15059_v0  ;;  %v15365_v34 = vrot.slane %v3022_v15, %v15059_v0 }
 0x297   :  { %385 = vrot.lane.b32.xlu1 %v15146_v23, %s20726_s23  ;;  %v12591_v44 = vcombine.low %v2491_v53, %v2505_v13  ;;  %v12593_v39 = vcombine.high %v2491_v53, %v2505_v13  ;;  %v12595_v6 = vcombine.low %v2498_v9, %v2512_v16  ;;  %v12597_v63 = vcombine.high %v2498_v9, %v2512_v16  ;;  %v20941_v16 = vld [vmem:[#allocation59_spill] sm:$0xff] }
 0x298   :  { %1221 = vrot.lane.b32.xlu0 %v15226_v55, %s20762_s11  ;;  %v1208_v32 = vpop.permute.xlu1 %1207  ;;  %v20940_v55 = vld [vmem:[#allocation53_spill] sm:$0xff]  ;;  %v1326_v46 = vsel %vm1314_vm5, %v1307_v12, %v20941_v16  ;;  %v20945_v12 = vld [vmem:[#allocation62_spill] sm:$0xff]  ;;  %v20946_v16 = vld [vmem:[#allocation67_spill] sm:$0xff] }
 0x299   :  { %v15348_v23 = vpop.permute.xlu0 %1778  ;;  %v4429_v20 = vrot.slane %v12591_v44, %v15059_v0  ;;  %v4443_v53 = vrot.slane %v12593_v39, %v15059_v0  ;;  %v4457_v51 = vrot.slane %v12595_v6, %v15059_v0  ;;  %v4471_v9 = vrot.slane %v12597_v63, %v15059_v0 }
 0x29a   :  { %20939 = vst [vmem:[#allocation24_spill] sm:$0xff] %v15348_v23  ;;  %v1421_v13 = vsel %vm1409_vm6, %v1402_v48, %v20940_v55  ;;  %v1876_v63 = vsel %vm1257_vm0, %v212_v41, %v20942_v49  ;;  %v20944_v48 = vld [vmem:[#allocation58_spill] sm:$0xff]  ;;  %v1345_v15 = vsel %vm1333_vm7, %v1326_v46, %v20946_v16  ;;  %v188_v49 = vld [vmem:[%s20419_s0 + $0x4a] sm:$0x1]  ;;  %v20949_v46 = vld [vmem:[#allocation64_spill] sm:$0xff] }
 0x29b   :  { %817 = vrot.lane.b32.xlu1 %v46_v60, %s20777_s16  ;;  %v4480_v44 = vcombine.high %v4429_v20, %v4443_v53  ;;  %v4484_v39 = vcombine.high %v4457_v51, %v4471_v9  ;;  %v4479_v23 = vcombine.low %v4429_v20, %v4443_v53  ;;  %v4483_v6 = vcombine.low %v4457_v51, %v4471_v9  ;;  %v204_v60 = vld [vmem:[%s20419_s0 + $0x4e] sm:$0x1] }
 0x29c   :  { %v1912_v55 = vsel %vm1371_vm2, %v20944_v48, %v20943_v10  ;;  %v1440_v31 = vsel %vm1428_vm8, %v1421_v13, %v20945_v12  ;;  %525 = vrot.lane.b32.xlu0 %v115_v21, %s20731_s14  ;;  %v2031_v20 = vpop.permute.xlu1 %2030  ;;  %v20948_v21 = vld [vmem:[#allocation63_spill] sm:$0xff]  ;;  %v20950_v12 = vld [vmem:[#allocation61_spill] sm:$0xff] }
 0x29d   :  { %v15381_v53 = vpop.permute.xlu0 %1800  ;;  %v4507_v10 = vrot.slane %v4480_v44, %v15059_v0  ;;  %v4535_v41 = vrot.slane %v4484_v39, %v15059_v0  ;;  %v4493_v51 = vrot.slane %v4479_v23, %v15059_v0  ;;  %v4521_v9 = vrot.slane %v4483_v6, %v15059_v0 }
 0x29e   :  { %20947 = vst [vmem:[#allocation26_spill] sm:$0xff] %v15381_v53  ;;  %v1882_v13 = vsel %vm1276_vm1, %v1876_v63, %v20948_v21  ;;  %v1497_v16 = vsel %vm1485_vm12, %v20950_v12, %v20949_v46  ;;  %v20951_v53 = vld [vmem:[#allocation72_spill] sm:$0xff]  ;;  %v1488_v44 = vsel %vm1485_vm12, %v13343_v7, %v15254_v56  ;;  %v1918_v63 = vsel %vm1390_vm4, %v1912_v55, %v20952_v36  ;;  %v12970_v21 = vld [vmem:[%s20419_s0 + $0x78] sm:$0xff]  ;;  %v20954_v56 = vld [vmem:[#allocation69_spill] sm:$0xff] }
 0x29f   :  { %v1459_v24 = vsel %vm1447_vm9, %v1440_v31, %v20951_v53  ;;  %1161 = vrot.lane.b32.xlu1 %v204_v60, %s20807_s30  ;;  %v4546_v39 = vcombine.low %v4507_v10, %v4535_v41  ;;  %v4547_v23 = vcombine.high %v4507_v10, %v4535_v41  ;;  %v4543_v3 = vcombine.low %v4493_v51, %v4521_v9  ;;  %v20953_v46 = vld [vmem:[#allocation68_spill] sm:$0xff]  ;;  %v20955_v60 = vld [vmem:[#allocation70_spill] sm:$0xff]  ;;  %v20956_v36 = vld [vmem:[#allocation71_spill] sm:$0xff] }
 0x2a0   :  { %v4544_v6 = vcombine.high %v4493_v51, %v4521_v9  ;;  %v1270_v31 = vsel %vm1257_vm0, %v12970_v21, %v20953_v46  ;;  %v1507_v53 = vsel %vm1504_vm13, %v1488_v44, %v1150_v26  ;;  %929 = vrot.lane.b32.xlu0 %v188_v49, %s20825_s17  ;;  %v15412_v7 = vsel %vm1352_vm11, %v1345_v15, %v20935_v30  ;;  %v1094_v51 = vpop.permute.xlu1 %1093  ;;  %v20958_v49 = vld [vmem:[#allocation73_spill] sm:$0xff]  ;;  %v20960_v21 = vld [vmem:[#allocation75_spill] sm:$0xff] }
 0x2a1   :  { %v1384_v10 = vsel %vm1371_vm2, %v20955_v60, %v20954_v56  ;;  %v1516_v55 = vsel %vm1504_vm13, %v1497_v16, %v20956_v36  ;;  %v15420_v41 = vsel %vm1523_vm15, %v1507_v53, %v1208_v32  ;;  %v15422_v9 = vpop.permute.xlu0 %2032  ;;  %6662 = vmatprep.mubr.f32.mxu0 %v4546_v39  ;;  %6812 = vmatprep.mubr.f32.mxu1 %v4547_v23  ;;  %v20959_v16 = vld [vmem:[#allocation74_spill] sm:$0xff]  ;;  %v20962_v46 = vld [vmem:[#allocation77_spill] sm:$0xff] }
 0x2a2   :  { %20957 = vst [vmem:[#allocation25_spill] sm:$0xff] %v15422_v9  ;;  %v2183_v26 = vsel %vm2126_vm14, %v15420_v41, %v2031_v20  ;;  %v2131_v30 = vsel %vm2126_vm14, %v2031_v20, %v15422_v9  ;;  %6663 = vmatmul.mubr.f32.gmra.mxu0 %v4543_v3  ;;  %6813 = vmatmul.mubr.f32.gmra.mxu1 %v4544_v6  ;;  %v20961_v3 = vld [vmem:[#allocation76_spill] sm:$0xff] }
 0x2a3   :  { %v15430_v15 = vsel %vm1466_vm10, %v1459_v24, %v20950_v12  ;;  %v1924_v32 = vsel %vm1409_vm6, %v1918_v63, %v20958_v49  ;;  %v1888_v44 = vsel %vm1295_vm3, %v1882_v13, %v20959_v16  ;;  %v2551_v39 = vcombine.low %v2183_v26, %v2131_v30  ;;  %v20963_v12 = vld [vmem:[#allocation78_spill] sm:$0xff]  ;;  %v20965_v13 = vld [vmem:[#allocation81_spill] sm:$0xff] }
 0x2a4   :  { %v2552_v23 = vcombine.high %v2183_v26, %v2131_v30  ;;  %2074 = vrot.lane.b32.xlu1 %v15430_v15, %s20855_s8  ;;  %v1403_v20 = vsel %vm1390_vm4, %v1384_v10, %v20960_v21  ;;  %v1289_v6 = vsel %vm1276_vm1, %v1270_v31, %v20961_v3  ;;  %v1894_v24 = vsel %vm1314_vm5, %v1888_v44, %v20962_v46  ;;  %v1210_v36 = vpop.permute.xlu1 %1209  ;;  %v20966_v30 = vld [vmem:[#allocation79_spill] sm:$0xff]  ;;  %v20968_v44 = vld [vmem:[#allocation82_spill] sm:$0xff] }
 0x2a5   :  { %v15446_v63 = vsel %vm1523_vm15, %v1516_v55, %v20963_v12  ;;  %2072 = vrot.lane.b32.xlu0 %v15412_v7, %s20855_s8  ;;  %v1900_v53 = vsel %vm1333_vm7, %v1894_v24, %v20965_v13  ;;  %v1489_v56 = vsel %vm1485_vm12, %v13403_v27, %v1094_v51  ;;  %v2575_v10 = vrot.slane %v2551_v39, %v15059_v0  ;;  %v1152_v26 = vpop.permute.xlu0 %1151  ;;  %v20967_v55 = vld [vmem:[#allocation80_spill] sm:$0xff] }
 0x2a6   :  { %20964 = vst [vmem:[#allocation29_spill] sm:$0xff] %v15446_v63  ;;  %v2582_v31 = vrot.slane %v2552_v23, %v15059_v0  ;;  %v1308_v49 = vsel %vm1295_vm3, %v1289_v6, %v20966_v30  ;;  %v1930_v16 = vsel %vm1428_vm8, %v1924_v32, %v20967_v55  ;;  %v1422_v21 = vsel %vm1409_vm6, %v1403_v20, %v20968_v44  ;;  %v20969_v23 = vld [vmem:[#allocation83_spill] sm:$0xff]  ;;  %v20970_v32 = vld [vmem:[#allocation84_spill] sm:$0xff] }
 0x2a7   :  { %v1508_v3 = vsel %vm1504_vm13, %v1489_v56, %v1152_v26  ;;  %v2597_v46 = vcombine.low %v15271_v5, %v2575_v10  ;;  %v2598_v27 = vcombine.high %v15271_v5, %v2575_v10  ;;  %v1327_v6 = vsel %vm1314_vm5, %v1308_v49, %v20969_v23 }
 0x2a8   :  { %v2599_v51 = vcombine.low %v15294_v35, %v2582_v31  ;;  %v2600_v39 = vcombine.high %v15294_v35, %v2582_v31  ;;  %457 = vrot.lane.b32.xlu1 %v15249_v18, %s20747_s15  ;;  %v1936_v24 = vsel %vm1447_vm9, %v1930_v16, %v20970_v32  ;;  %v15474_v20 = vsel %vm1523_vm15, %v1508_v3, %v1210_v36  ;;  %v15486_v56 = vpop.permute.xlu1 %2038  ;;  %v133_v31 = vld [vmem:[%s20419_s0 + $0x45] sm:$0x1]  ;;  %v20972_v36 = vld [vmem:[#allocation86_spill] sm:$0xff]  ;;  %v20976_v32 = vld [vmem:[#allocation87_spill] sm:$0xff] }
 0x2a9   :  { %2076 = vrot.lane.b32.xlu0 %v15446_v63, %s20855_s8  ;;  %v15480_v5 = vsel %vm1352_vm11, %v1900_v53, %v20944_v48  ;;  %v2609_v35 = vrot.slane %v2597_v46, %v15059_v0  ;;  %v2623_v12 = vrot.slane %v2598_v27, %v15059_v0  ;;  %20971 = vst [vmem:[#allocation31_spill] sm:$0xff] %v15486_v56  ;;  %v2037_v10 = vpop.permute.xlu0 %2036  ;;  %v20973_v48 = vld [vmem:[#allocation88_spill] sm:$0xff]  ;;  %v20974_v53 = vld [vmem:[#allocation85_spill] sm:$0xff]  ;;  %v12971_v3 = vld [vmem:[%s20419_s0 + $0x71] sm:$0xff] }
 0x2aa   :  { %v2616_v18 = vrot.slane %v2599_v51, %v15059_v0  ;;  %v2630_v13 = vrot.slane %v2600_v39, %v15059_v0  ;;  %v15493_v26 = vsel %vm1428_vm8, %v1422_v21, %v20972_v36  ;;  %v1498_v30 = vsel %vm1485_vm12, %v20974_v53, %v20973_v48  ;;  %v20975_v27 = vld [vmem:[#allocation89_spill] sm:$0xff]  ;;  %v21077_v63 = vld [vmem:[#allocation22_spill] sm:$0xff] }
 0x2ab   :  { %v2133_v49 = vsel %vm2126_vm14, %v2037_v10, %v15486_v56  ;;  %v2184_v55 = vsel %vm2126_vm14, %v15474_v20, %v2037_v10  ;;  %v12599_v21 = vcombine.low %v2609_v35, %v2623_v12  ;;  %v12601_v46 = vcombine.high %v2609_v35, %v2623_v12  ;;  %v192_v35 = vld [vmem:[%s20419_s0 + $0x4b] sm:$0x1] }
 0x2ac   :  { %v2669_v16 = vcombine.low %v2184_v55, %v2133_v49  ;;  %v2670_v44 = vcombine.high %v2184_v55, %v2133_v49  ;;  %875 = vrot.lane.b32.xlu1 %v12971_v3, %s20732_s22  ;;  %v1346_v51 = vsel %vm1333_vm7, %v1327_v6, %v20975_v27  ;;  %v12603_v39 = vcombine.low %v2616_v18, %v2630_v13  ;;  %v1154_v49 = vpop.permute.xlu1 %1153 }
 0x2ad   :  { %597 = vrot.lane.b32.xlu0 %v133_v31, %s20833_s18  ;;  %v12605_v23 = vcombine.high %v2616_v18, %v2630_v13  ;;  %v15511_v10 = vsel %vm1466_vm10, %v1936_v24, %v20976_v32  ;;  %v1096_v55 = vpop.permute.xlu0 %1095  ;;  %v4563_v6 = vrot.slane %v12599_v21, %v15059_v0  ;;  %v4577_v12 = vrot.slane %v12601_v46, %v15059_v0  ;;  %v12972_v18 = vld [vmem:[%s20419_s0 + $0x80] sm:$0xff]  ;;  %v20977_v24 = vld [vmem:[#allocation90_spill] sm:$0xff] }
 0x2ae   :  { %v2693_v36 = vrot.slane %v2669_v16, %v15059_v0  ;;  %v2700_v48 = vrot.slane %v2670_v44, %v15059_v0  ;;  %v15525_v13 = vsel %vm1257_vm0, %v12972_v18, %v20977_v24  ;;  %v1490_v31 = vsel %vm1485_vm12, %v13469_v59, %v1096_v55  ;;  %v12973_v18 = vld [vmem:[%s20419_s0 + $0x74] sm:$0xff]  ;;  %v208_v59 = vld [vmem:[%s20419_s0 + $0x4f] sm:$0x1] }
 0x2af   :  { %v4591_v16 = vrot.slane %v12603_v39, %v15059_v0  ;;  %v4605_v44 = vrot.slane %v12605_v23, %v15059_v0  ;;  %v4614_v39 = vcombine.high %v4563_v6, %v4577_v12  ;;  %v4613_v55 = vcombine.low %v4563_v6, %v4577_v12 }
 0x2b0   :  { %v2715_v3 = vcombine.low %v15297_v17, %v2693_v36  ;;  %v2716_v21 = vcombine.high %v15297_v17, %v2693_v36  ;;  %v2717_v46 = vcombine.low %v15300_v4, %v2700_v48  ;;  %v2718_v27 = vcombine.high %v15300_v4, %v2700_v48  ;;  %1049 = vrot.lane.b32.xlu1 %v12973_v18, %s20845_s24 }
 0x2b1   :  { %987 = vrot.lane.b32.xlu0 %v192_v35, %s20832_s29  ;;  %v4618_v23 = vcombine.high %v4591_v16, %v4605_v44  ;;  %v15545_v17 = vsel %vm1352_vm11, %v1346_v51, %v20955_v60  ;;  %v2043_v35 = vpop.permute.xlu1 %2042  ;;  %v1212_v18 = vpop.permute.xlu0 %1211  ;;  %v1509_v9 = vsel %vm1504_vm13, %v1490_v31, %v1154_v49  ;;  %v4641_v56 = vrot.slane %v4614_v39, %v15059_v0 }
 0x2b2   :  { %v2727_v4 = vrot.slane %v2715_v3, %v15059_v0  ;;  %v2734_v36 = vrot.slane %v2717_v46, %v15059_v0  ;;  %v2741_v48 = vrot.slane %v2716_v21, %v15059_v0  ;;  %v2748_v24 = vrot.slane %v2718_v27, %v15059_v0  ;;  %v12974_v46 = vld [vmem:[%s20419_s0 + $0x75] sm:$0xff] }
 0x2b3   :  { %v4669_v6 = vrot.slane %v4618_v23, %v15059_v0  ;;  %v4617_v12 = vcombine.low %v4591_v16, %v4605_v44  ;;  %v15555_v60 = vsel %vm1523_vm15, %v1509_v9, %v1212_v18  ;;  %v4627_v51 = vrot.slane %v4613_v55, %v15059_v0  ;;  %v20978_v44 = vld [vmem:[#allocation93_spill] sm:$0xff] }
 0x2b4   :  { %1219 = vrot.lane.b32.xlu1 %v208_v59, %s20762_s11  ;;  %v12607_v3 = vcombine.low %v2727_v4, %v2741_v48  ;;  %v12609_v21 = vcombine.high %v2727_v4, %v2741_v48  ;;  %v12611_v16 = vcombine.low %v2734_v36, %v2748_v24  ;;  %v15566_v9 = vsel %vm1504_vm13, %v1498_v30, %v20978_v44 }
 0x2b5   :  { %1107 = vrot.lane.b32.xlu0 %v12974_v46, %s20844_s28  ;;  %v4680_v49 = vcombine.low %v4641_v56, %v4669_v6  ;;  %v4681_v31 = vcombine.high %v4641_v56, %v4669_v6  ;;  %v4655_v27 = vrot.slane %v4617_v12, %v15059_v0  ;;  %v1098_v59 = vpop.permute.xlu1 %1097  ;;  %v15568_v39 = vpop.permute.xlu0 %2044  ;;  %v12613_v23 = vcombine.high %v2734_v36, %v2748_v24  ;;  %v12975_v24 = vld [vmem:[%s20419_s0 + $0x4d] sm:$0xff] }
 0x2b6   :  { %20979 = vst [vmem:[#allocation33_spill] sm:$0xff] %v15568_v39  ;;  %v4697_v55 = vrot.slane %v12607_v3, %v15059_v0  ;;  %v4711_v4 = vrot.slane %v12609_v21, %v15059_v0  ;;  %v2185_v48 = vsel %vm2126_vm14, %v15555_v60, %v2043_v35  ;;  %v2135_v56 = vsel %vm2126_vm14, %v2043_v35, %v15568_v39  ;;  %v20980_v46 = vld [vmem:[#allocation94_spill] sm:$0xff]  ;;  %v21019_v39 = vld [vmem:[#allocation132_spill] sm:$0xff] }
 0x2b7   :  { %6667 = vmatprep.mubr.f32.mxu0 %v4680_v49  ;;  %6817 = vmatprep.mubr.f32.mxu1 %v4681_v31  ;;  %v4677_v18 = vcombine.low %v4627_v51, %v4655_v27  ;;  %v2787_v6 = vcombine.low %v2185_v48, %v2135_v56  ;;  %v2788_v30 = vcombine.high %v2185_v48, %v2135_v56 }
 0x2b8   :  { %v4678_v12 = vcombine.high %v4627_v51, %v4655_v27  ;;  %529 = vrot.lane.b32.xlu1 %v15082_v22, %s20731_s14  ;;  %v4725_v36 = vrot.slane %v12611_v16, %v15059_v0  ;;  %v4739_v35 = vrot.slane %v12613_v23, %v15059_v0  ;;  %v4748_v3 = vcombine.high %v4697_v55, %v4711_v4 }
 0x2b9   :  { %6668 = vmatmul.mubr.f32.gmra.mxu0 %v4677_v18  ;;  %1812 = vrot.lane.b32.xlu0 %v12975_v24, %s20844_s28  ;;  %v4747_v21 = vcombine.low %v4697_v55, %v4711_v4  ;;  %v15587_v51 = vsel %vm1447_vm9, %v15493_v26, %v20980_v46  ;;  %v1491_v22 = vsel %vm1485_vm12, %v13547_v8, %v1098_v59  ;;  %v1214_v27 = vpop.permute.xlu1 %1213  ;;  %v1156_v16 = vpop.permute.xlu0 %1155  ;;  %v12976_v59 = vld [vmem:[%s20419_s0 + $0x76] sm:$0xff] }
 0x2ba   :  { %v2811_v49 = vrot.slane %v2787_v6, %v15059_v0  ;;  %v2818_v31 = vrot.slane %v2788_v30, %v15059_v0  ;;  %6818 = vmatmul.mubr.f32.gmra.mxu1 %v4678_v12  ;;  %v1510_v44 = vsel %vm1504_vm13, %v1491_v22, %v1156_v16  ;;  %v4752_v23 = vcombine.high %v4725_v36, %v4739_v35  ;;  %v12977_v6 = vld [vmem:[%s20419_s0 + $0x72] sm:$0xff] }
 0x2bb   :  { %v4775_v55 = vrot.slane %v4748_v3, %v15059_v0  ;;  %v4751_v4 = vcombine.low %v4725_v36, %v4739_v35  ;;  %v15604_v18 = vsel %vm1523_vm15, %v1510_v44, %v1214_v27  ;;  %v4761_v30 = vrot.slane %v4747_v21, %v15059_v0 }
 0x2bc   :  { %v2833_v48 = vcombine.low %v15303_v54, %v2811_v49  ;;  %v2834_v26 = vcombine.high %v15303_v54, %v2811_v49  ;;  %v2835_v56 = vcombine.low %v15309_v25, %v2818_v31  ;;  %v2836_v8 = vcombine.high %v15309_v25, %v2818_v31  ;;  %1165 = vrot.lane.b32.xlu1 %v12976_v59, %s20807_s30 }
 0x2bd   :  { %933 = vrot.lane.b32.xlu0 %v12977_v6, %s20825_s17  ;;  %v4803_v54 = vrot.slane %v4752_v23, %v15059_v0  ;;  %v4789_v25 = vrot.slane %v4751_v4, %v15059_v0  ;;  %v15617_v3 = vpop.permute.xlu1 %2050  ;;  %v2049_v46 = vpop.permute.xlu0 %2048 }
 0x2be   :  { %v2845_v12 = vrot.slane %v2833_v48, %v15059_v0  ;;  %v2852_v36 = vrot.slane %v2835_v56, %v15059_v0  ;;  %v2859_v24 = vrot.slane %v2834_v26, %v15059_v0  ;;  %v2866_v35 = vrot.slane %v2836_v8, %v15059_v0  ;;  %20981 = vst [vmem:[#allocation38_spill] sm:$0xff] %v15617_v3 }
 0x2bf   :  { %v2137_v22 = vsel %vm2126_vm14, %v2049_v46, %v15617_v3  ;;  %v2186_v49 = vsel %vm2126_vm14, %v15604_v18, %v2049_v46  ;;  %v4814_v21 = vcombine.low %v4775_v55, %v4803_v54  ;;  %v4815_v31 = vcombine.high %v4775_v55, %v4803_v54  ;;  %v12978_v54 = vld [vmem:[%s20419_s0 + $0x4e] sm:$0xff] }
 0x2c0   :  { %v2905_v27 = vcombine.low %v2186_v49, %v2137_v22  ;;  %v2906_v16 = vcombine.high %v2186_v49, %v2137_v22  ;;  %v4811_v44 = vcombine.low %v4761_v30, %v4789_v25  ;;  %v4812_v23 = vcombine.high %v4761_v30, %v4789_v25  ;;  %2066 = vrot.lane.b32.xlu1 %v15480_v5, %s20855_s8  ;;  %v20982_v22 = vld [vmem:[#allocation96_spill] sm:$0xff] }
 0x2c1   :  { %6672 = vmatprep.mubr.f32.mxu0 %v4814_v21  ;;  %6822 = vmatprep.mubr.f32.mxu1 %v4815_v31  ;;  %v12615_v4 = vcombine.low %v2845_v12, %v2859_v24  ;;  %v12617_v48 = vcombine.high %v2845_v12, %v2859_v24  ;;  %v12619_v26 = vcombine.low %v2852_v36, %v2866_v35  ;;  %v1158_v59 = vpop.permute.xlu1 %1157  ;;  %v1100_v55 = vpop.permute.xlu0 %1099 }
 0x2c2   :  { %v2929_v56 = vrot.slane %v2905_v27, %v15059_v0  ;;  %v2936_v8 = vrot.slane %v2906_v16, %v15059_v0  ;;  %6673 = vmatmul.mubr.f32.gmra.mxu0 %v4811_v44  ;;  %6823 = vmatmul.mubr.f32.gmra.mxu1 %v4812_v23  ;;  %v12621_v6 = vcombine.high %v2852_v36, %v2866_v35 }
 0x2c3   :  { %1834 = vrot.lane.b32.xlu0 %v12978_v54, %s20807_s30  ;;  %v1492_v5 = vsel %vm1485_vm12, %v20879_v2, %v1100_v55  ;;  %v4831_v30 = vrot.slane %v12615_v4, %v15059_v0  ;;  %v4845_v25 = vrot.slane %v12617_v48, %v15059_v0  ;;  %v4859_v12 = vrot.slane %v12619_v26, %v15059_v0 }
 0x2c4   :  { %v2951_v24 = vcombine.low %v15338_v40, %v2929_v56  ;;  %v2952_v46 = vcombine.high %v15338_v40, %v2929_v56  ;;  %v2953_v36 = vcombine.low %v15341_v37, %v2936_v8  ;;  %v2954_v35 = vcombine.high %v15341_v37, %v2936_v8  ;;  %601 = vrot.lane.b32.xlu1 %v15108_v42, %s20833_s18  ;;  %v12979_v56 = vld [vmem:[%s20419_s0 + $0x77] sm:$0xff] }
 0x2c5   :  { %v1290_v2 = vsel %vm1276_vm1, %v15525_v13, %v20982_v22  ;;  %v4873_v49 = vrot.slane %v12621_v6, %v15059_v0  ;;  %v4882_v21 = vcombine.high %v4831_v30, %v4845_v25  ;;  %v4881_v31 = vcombine.low %v4831_v30, %v4845_v25  ;;  %v2055_v37 = vpop.permute.xlu1 %2054  ;;  %v1216_v23 = vpop.permute.xlu0 %1215  ;;  %v20983_v30 = vld [vmem:[#allocation97_spill] sm:$0xff] }
 0x2c6   :  { %v2963_v27 = vrot.slane %v2951_v24, %v15059_v0  ;;  %v2970_v16 = vrot.slane %v2953_v36, %v15059_v0  ;;  %v2977_v40 = vrot.slane %v2952_v46, %v15059_v0  ;;  %v2984_v44 = vrot.slane %v2954_v35, %v15059_v0 }
 0x2c7   :  { %2068 = vrot.lane.b32.xlu0 %v15511_v10, %s20855_s8  ;;  %v1511_v42 = vsel %vm1504_vm13, %v1492_v5, %v1158_v59  ;;  %v4886_v13 = vcombine.high %v4859_v12, %v4873_v49  ;;  %v4909_v4 = vrot.slane %v4882_v21, %v15059_v0  ;;  %v4885_v48 = vcombine.low %v4859_v12, %v4873_v49 }
 0x2c8   :  { %v15655_v26 = vsel %vm1523_vm15, %v1511_v42, %v1216_v23  ;;  %1223 = vrot.lane.b32.xlu1 %v12979_v56, %s20762_s11  ;;  %v4895_v8 = vrot.slane %v4881_v31, %v15059_v0  ;;  %v12623_v55 = vcombine.low %v2963_v27, %v2977_v40  ;;  %v12625_v6 = vcombine.high %v2963_v27, %v2977_v40  ;;  %v20985_v56 = vld [vmem:[#allocation98_spill] sm:$0xff] }
 0x2c9   :  { %v4937_v10 = vrot.slane %v4886_v13, %v15059_v0  ;;  %v4923_v59 = vrot.slane %v4885_v48, %v15059_v0  ;;  %v12627_v54 = vcombine.low %v2970_v16, %v2984_v44  ;;  %v12629_v5 = vcombine.high %v2970_v16, %v2984_v44  ;;  %v15666_v12 = vpop.permute.xlu1 %311  ;;  %v15668_v24 = vpop.permute.xlu0 %2056 }
 0x2ca   :  { %v1309_v25 = vsel %vm1295_vm3, %v1290_v2, %v20983_v30  ;;  %20984 = vst [vmem:[#allocation27_spill] sm:$0xff] %v15668_v24  ;;  %v15673_v46 = vsel %vm1466_vm10, %v15587_v51, %v20974_v53  ;;  %v4965_v36 = vrot.slane %v12623_v55, %v15059_v0  ;;  %v4979_v35 = vrot.slane %v12625_v6, %v15059_v0  ;;  %v12980_v2 = vld [vmem:[%s20419_s0 + $0x73] sm:$0xff] }
 0x2cb   :  { %v2187_v22 = vsel %vm2126_vm14, %v15655_v26, %v2055_v37  ;;  %991 = vrot.lane.b32.xlu0 %v12980_v2, %s20832_s29  ;;  %v2139_v49 = vsel %vm2126_vm14, %v2055_v37, %v15668_v24  ;;  %v4948_v21 = vcombine.low %v4909_v4, %v4937_v10  ;;  %v4949_v31 = vcombine.high %v4909_v4, %v4937_v10  ;;  %v12981_v55 = vld [vmem:[%s20419_s0 + $0x4f] sm:$0xff] }
 0x2cc   :  { %v3023_v53 = vcombine.low %v2187_v22, %v2139_v49  ;;  %v3024_v51 = vcombine.high %v2187_v22, %v2139_v49  ;;  %v4945_v27 = vcombine.low %v4895_v8, %v4923_v59  ;;  %v4946_v16 = vcombine.high %v4895_v8, %v4923_v59  ;;  %2078 = vrot.lane.b32.xlu1 %v15545_v17, %s20855_s8 }
 0x2cd   :  { %6677 = vmatprep.mubr.f32.mxu0 %v4948_v21  ;;  %6827 = vmatprep.mubr.f32.mxu1 %v4949_v31  ;;  %v4993_v40 = vrot.slane %v12627_v54, %v15059_v0  ;;  %v5007_v44 = vrot.slane %v12629_v5, %v15059_v0  ;;  %v5016_v23 = vcombine.high %v4965_v36, %v4979_v35  ;;  %v15691_v13 = vpop.permute.xlu1 %743  ;;  %v15693_v4 = vpop.permute.xlu0 %671 }
 0x2ce   :  { %v3047_v42 = vrot.slane %v3023_v53, %v15059_v0  ;;  %v3054_v37 = vrot.slane %v3024_v51, %v15059_v0  ;;  %6678 = vmatmul.mubr.f32.gmra.mxu0 %v4945_v27  ;;  %6828 = vmatmul.mubr.f32.gmra.mxu1 %v4946_v16  ;;  %v5015_v48 = vcombine.low %v4965_v36, %v4979_v35  ;;  %v20988_v27 = vld [vmem:[#allocation106_spill] sm:$0xff] }
 0x2cf   :  { %v15698_v8 = vsel %vm1523_vm15, %v15566_v9, %v20985_v56  ;;  %1856 = vrot.lane.b32.xlu0 %v12981_v55, %s20762_s11  ;;  %v5020_v6 = vcombine.high %v4993_v40, %v5007_v44  ;;  %v5043_v10 = vrot.slane %v5016_v23, %v15059_v0  ;;  %v5019_v59 = vcombine.low %v4993_v40, %v5007_v44  ;;  %v20987_v9 = vld [vmem:[#allocation99_spill] sm:$0xff] }
 0x2d0   :  { %20986 = vst [vmem:[#allocation28_spill] sm:$0xff] %v15698_v8  ;;  %v3069_v54 = vcombine.low %v15362_v19, %v3047_v42  ;;  %v3070_v5 = vcombine.high %v15362_v19, %v3047_v42  ;;  %v3071_v30 = vcombine.low %v15365_v34, %v3054_v37  ;;  %v3072_v36 = vcombine.high %v15365_v34, %v3054_v37  ;;  %v267_v19 = vld [vmem:[%s20419_s0 + $0x56] sm:$0xff] }
 0x2d1   :  { %2082 = vrot.lane.b32.xlu1 %v15698_v8, %s20855_s8  ;;  %v1328_v35 = vsel %vm1314_vm5, %v1309_v25, %v20987_v9  ;;  %v5071_v22 = vrot.slane %v5020_v6, %v15059_v0  ;;  %v5029_v2 = vrot.slane %v5015_v48, %v15059_v0  ;;  %v5057_v49 = vrot.slane %v5019_v59, %v15059_v0  ;;  %v15723_v51 = vpop.permute.xlu1 %383  ;;  %v15725_v25 = vpop.permute.xlu0 %1101  ;;  %v263_v37 = vld [vmem:[%s20419_s0 + $0x55] sm:$0xff]  ;;  %v21022_v8 = vld [vmem:[#allocation133_spill] sm:$0xff] }
 0x2d2   :  { %v3081_v21 = vrot.slane %v3069_v54, %v15059_v0  ;;  %v3088_v34 = vrot.slane %v3071_v30, %v15059_v0  ;;  %v3095_v31 = vrot.slane %v3070_v5, %v15059_v0  ;;  %v3102_v53 = vrot.slane %v3072_v36, %v15059_v0  ;;  %v20989_v30 = vld [vmem:[#allocation91_spill] sm:$0xff]  ;;  %v20990_v36 = vld [vmem:[#allocation92_spill] sm:$0xff] }
 0x2d3   :  { %v1347_v16 = vsel %vm1333_vm7, %v1328_v35, %v20988_v27  ;;  %2080 = vrot.lane.b32.xlu0 %v15673_v46, %s20855_s8  ;;  %v5082_v40 = vcombine.low %v5043_v10, %v5071_v22  ;;  %v5083_v44 = vcombine.high %v5043_v10, %v5071_v22  ;;  %v5079_v23 = vcombine.low %v5029_v2, %v5057_v49 }
 0x2d4   :  { %v5080_v42 = vcombine.high %v5029_v2, %v5057_v49  ;;  %v12631_v48 = vcombine.low %v3081_v21, %v3095_v31  ;;  %v12633_v56 = vcombine.high %v3081_v21, %v3095_v31  ;;  %v12635_v55 = vcombine.low %v3088_v34, %v3102_v53  ;;  %v20991_v49 = vld [vmem:[#allocation95_spill] sm:$0xff] }
 0x2d5   :  { %1836 = vrot.lane.b32.xlu1 %v267_v19, %s20807_s30  ;;  %6682 = vmatprep.mubr.f32.mxu0 %v5082_v40  ;;  %v12637_v6 = vcombine.high %v3088_v34, %v3102_v53  ;;  %v15735_v59 = vpop.permute.xlu1 %1159  ;;  %v15737_v54 = vpop.permute.xlu0 %815  ;;  %v1385_v9 = vsel %vm1371_vm2, %v20990_v36, %v20989_v30  ;;  %v15747_v35 = vsel %vm1352_vm11, %v1347_v16, %v20990_v36  ;;  %v271_v21 = vld [vmem:[%s20419_s0 + $0x57] sm:$0xff]  ;;  %v20992_v53 = vld [vmem:[#allocation100_spill] sm:$0xff]  ;;  %v20994_v40 = vld [vmem:[#allocation101_spill] sm:$0xff] }
 0x2d6   :  { %6832 = vmatprep.mubr.f32.mxu1 %v5083_v44  ;;  %6683 = vmatmul.mubr.f32.gmra.mxu0 %v5079_v23  ;;  %v5099_v10 = vrot.slane %v12631_v48, %v15059_v0  ;;  %v5113_v5 = vrot.slane %v12633_v56, %v15059_v0  ;;  %v5127_v22 = vrot.slane %v12635_v55, %v15059_v0  ;;  %v20993_v16 = vld [vmem:[#allocation104_spill] sm:$0xff]  ;;  %v20996_v56 = vld [vmem:[#allocation110_spill] sm:$0xff]  ;;  %v20997_v36 = vld [vmem:[#allocation107_spill] sm:$0xff] }
 0x2d7   :  { %6833 = vmatmul.mubr.f32.gmra.mxu1 %v5080_v42  ;;  %1814 = vrot.lane.b32.xlu0 %v263_v37, %s20844_s28  ;;  %v5141_v2 = vrot.slane %v12637_v6, %v15059_v0  ;;  %v1404_v19 = vsel %vm1390_vm4, %v1385_v9, %v20991_v49  ;;  %v1499_v44 = vsel %vm1485_vm12, %v20994_v40, %v20993_v16  ;;  %v20995_v37 = vld [vmem:[#allocation102_spill] sm:$0xff]  ;;  %v20998_v49 = vld [vmem:[#allocation111_spill] sm:$0xff] }
 0x2d8   :  { %v5150_v34 = vcombine.high %v5099_v10, %v5113_v5  ;;  %v5149_v31 = vcombine.low %v5099_v10, %v5113_v5  ;;  %v1423_v27 = vsel %vm1409_vm6, %v1404_v19, %v20992_v53  ;;  %v1518_v55 = vsel %vm1504_vm13, %v1499_v44, %v20996_v56  ;;  %v21000_v53 = vld [vmem:[#allocation108_spill] sm:$0xff] }
 0x2d9   :  { %2084 = vrot.lane.b32.xlu1 %v15747_v35, %s20855_s8  ;;  %v5154_v23 = vcombine.high %v5127_v22, %v5141_v2  ;;  %v5153_v42 = vcombine.low %v5127_v22, %v5141_v2  ;;  %v1442_v48 = vsel %vm1428_vm8, %v1423_v27, %v20995_v37  ;;  %v15767_v6 = vpop.permute.xlu1 %455  ;;  %v15769_v30 = vpop.permute.xlu0 %309  ;;  %v15777_v22 = vsel %vm1523_vm15, %v1518_v55, %v20998_v49  ;;  %v21001_v27 = vld [vmem:[#allocation105_spill] sm:$0xff] }
 0x2da   :  { %v5177_v10 = vrot.slane %v5150_v34, %v15059_v0  ;;  %v5163_v5 = vrot.slane %v5149_v31, %v15059_v0  ;;  %v1461_v9 = vsel %vm1447_vm9, %v1442_v48, %v20997_v36  ;;  %20999 = vst [vmem:[#allocation32_spill] sm:$0xff] %v15777_v22  ;;  %v1386_v16 = vsel %vm1371_vm2, %v21001_v27, %v21000_v53  ;;  %v21002_v48 = vld [vmem:[#allocation112_spill] sm:$0xff]  ;;  %v12982_v55 = vld [vmem:[%s20419_s0 + $0x88] sm:$0xff] }
 0x2db   :  { %1858 = vrot.lane.b32.xlu0 %v271_v21, %s20762_s11  ;;  %v5205_v2 = vrot.slane %v5154_v23, %v15059_v0  ;;  %v5191_v19 = vrot.slane %v5153_v42, %v15059_v0  ;;  %v1405_v56 = vsel %vm1390_vm4, %v1386_v16, %v21002_v48  ;;  %v15791_v21 = vsel %vm1466_vm10, %v1461_v9, %v20994_v40  ;;  %v268_v42 = vld [vmem:[%s20419_s0 + $0x5e] sm:$0x1]  ;;  %v21004_v36 = vld [vmem:[#allocation113_spill] sm:$0xff]  ;;  %v264_v16 = vld [vmem:[%s20419_s0 + $0x5d] sm:$0x1] }
 0x2dc   :  { %v1424_v49 = vsel %vm1409_vm6, %v1405_v56, %v21004_v36  ;;  %v21005_v9 = vld [vmem:[#allocation109_spill] sm:$0xff]  ;;  %v21007_v48 = vld [vmem:[#allocation114_spill] sm:$0xff] }
 0x2dd   :  { %2088 = vrot.lane.b32.xlu1 %v15777_v22, %s20855_s8  ;;  %v5216_v34 = vcombine.low %v5177_v10, %v5205_v2  ;;  %v5217_v31 = vcombine.high %v5177_v10, %v5205_v2  ;;  %v5213_v44 = vcombine.low %v5163_v5, %v5191_v19  ;;  %v5214_v37 = vcombine.high %v5163_v5, %v5191_v19  ;;  %v15793_v23 = vpop.permute.xlu1 %741  ;;  %v21003_v10 = vld [vmem:[#allocation103_spill] sm:$0xff]  ;;  %v15807_v40 = vpop.permute.xlu0 %669 }
 0x2de   :  { %v1272_v5 = vsel %vm1257_vm0, %v12982_v55, %v21003_v10  ;;  %v21006_v19 = vld [vmem:[#allocation115_spill] sm:$0xff]  ;;  %v21008_v55 = vld [vmem:[#allocation124_spill] sm:$0xff] }
 0x2df   :  { %2086 = vrot.lane.b32.xlu0 %v15791_v21, %s20855_s8  ;;  %6687 = vmatprep.mubr.f32.mxu0 %v5216_v34  ;;  %v1291_v2 = vsel %vm1276_vm1, %v1272_v5, %v21005_v9  ;;  %v1443_v53 = vsel %vm1428_vm8, %v1424_v49, %v21006_v19  ;;  %v21009_v34 = vld [vmem:[#allocation116_spill] sm:$0xff]  ;;  %v21011_v9 = vld [vmem:[#allocation118_spill] sm:$0xff]  ;;  %v21012_v19 = vld [vmem:[#allocation121_spill] sm:$0xff] }
 0x2e0   :  { %6837 = vmatprep.mubr.f32.mxu1 %v5217_v31  ;;  %6688 = vmatmul.mubr.f32.gmra.mxu0 %v5213_v44  ;;  %v1310_v56 = vsel %vm1295_vm3, %v1291_v2, %v21007_v48  ;;  %v1462_v10 = vsel %vm1447_vm9, %v1443_v53, %v21008_v55  ;;  %v21010_v31 = vld [vmem:[#allocation119_spill] sm:$0xff]  ;;  %v21014_v53 = vld [vmem:[#allocation125_spill] sm:$0xff] }
 0x2e1   :  { %6838 = vmatmul.mubr.f32.gmra.mxu1 %v5214_v37  ;;  %1838 = vrot.lane.b32.xlu1 %v268_v42, %s20807_s30  ;;  %v1329_v5 = vsel %vm1314_vm5, %v1310_v56, %v21009_v34  ;;  %v15823_v36 = vpop.permute.xlu1 %1047  ;;  %v15828_v49 = vpop.permute.xlu0 %873  ;;  %v15832_v2 = vsel %vm1466_vm10, %v1462_v10, %v21011_v9  ;;  %v21013_v37 = vld [vmem:[#allocation122_spill] sm:$0xff]  ;;  %v272_v55 = vld [vmem:[%s20419_s0 + $0x5f] sm:$0x1]  ;;  %v21015_v34 = vld [vmem:[#allocation120_spill] sm:$0xff] }
 0x2e2   :  { %v1348_v44 = vsel %vm1333_vm7, %v1329_v5, %v21010_v31  ;;  %v1387_v42 = vsel %vm1371_vm2, %v21013_v37, %v21012_v19  ;;  %v12983_v10 = vld [vmem:[%s20419_s0 + $0x90] sm:$0xff]  ;;  %v21020_v22 = vld [vmem:[#allocation123_spill] sm:$0xff] }
 0x2e3   :  { %1816 = vrot.lane.b32.xlu0 %v264_v16, %s20844_s28  ;;  %v1406_v48 = vsel %vm1390_vm4, %v1387_v42, %v21014_v53  ;;  %v15843_v56 = vsel %vm1352_vm11, %v1348_v44, %v21001_v27  ;;  %v1273_v5 = vsel %vm1257_vm0, %v12983_v10, %v21015_v34  ;;  %v21016_v31 = vld [vmem:[#allocation130_spill] sm:$0xff]  ;;  %v21017_v44 = vld [vmem:[#allocation117_spill] sm:$0xff]  ;;  %v21021_v34 = vld [vmem:[#allocation127_spill] sm:$0xff] }
 0x2e4   :  { %v1425_v19 = vsel %vm1409_vm6, %v1406_v48, %v21016_v31  ;;  %v1500_v42 = vsel %vm1485_vm12, %v21011_v9, %v21017_v44  ;;  %v21018_v53 = vld [vmem:[#allocation126_spill] sm:$0xff]  ;;  %v12984_v31 = vld [vmem:[%s20419_s0 + $0x98] sm:$0xff]  ;;  %v21023_v9 = vld [vmem:[#allocation137_spill] sm:$0xff] }
 0x2e5   :  { %2092 = vrot.lane.b32.xlu1 %v15832_v2, %s20855_s8  ;;  %v15845_v16 = vpop.permute.xlu1 %1217  ;;  %v15859_v27 = vpop.permute.xlu0 %1105  ;;  %v1292_v24 = vsel %vm1276_vm1, %v1273_v5, %v21018_v53  ;;  %v1444_v3 = vsel %vm1428_vm8, %v1425_v19, %v21019_v39  ;;  %v1519_v10 = vsel %vm1504_vm13, %v1500_v42, %v21020_v22  ;;  %v1274_v32 = vsel %vm1257_vm0, %v12984_v31, %v21022_v8  ;;  %v21024_v5 = vld [vmem:[#allocation128_spill] sm:$0xff]  ;;  %v21026_v22 = vld [vmem:[#allocation129_spill] sm:$0xff] }
 0x2e6   :  { %v1311_v48 = vsel %vm1295_vm3, %v1292_v24, %v21021_v34  ;;  %v1463_v44 = vsel %vm1447_vm9, %v1444_v3, %v21023_v9  ;;  %v15882_v39 = vsel %vm1523_vm15, %v1519_v10, %v21024_v5  ;;  %v21027_v24 = vld [vmem:[#allocation139_spill] sm:$0xff]  ;;  %v21028_v34 = vld [vmem:[#allocation136_spill] sm:$0xff]  ;;  %v21030_v5 = vld [vmem:[#allocation138_spill] sm:$0xff] }
 0x2e7   :  { %2090 = vrot.lane.b32.xlu0 %v15843_v56, %s20855_s8  ;;  %21025 = vst [vmem:[#allocation34_spill] sm:$0xff] %v15882_v39  ;;  %v1330_v19 = vsel %vm1314_vm5, %v1311_v48, %v21026_v22  ;;  %v1293_v42 = vsel %vm1276_vm1, %v1274_v32, %v21027_v24  ;;  %v21029_v48 = vld [vmem:[#allocation131_spill] sm:$0xff]  ;;  %v21033_v24 = vld [vmem:[#allocation142_spill] sm:$0xff] }
 0x2e8   :  { %v1349_v8 = vsel %vm1333_vm7, %v1330_v19, %v21028_v34  ;;  %v1312_v3 = vsel %vm1295_vm3, %v1293_v42, %v14397_v62  ;;  %v15902_v31 = vsel %vm1466_vm10, %v1463_v44, %v21029_v48  ;;  %v21031_v22 = vld [vmem:[#allocation135_spill] sm:$0xff]  ;;  %v21032_v19 = vld [vmem:[#allocation134_spill] sm:$0xff]  ;;  %v21034_v34 = vld [vmem:[#allocation140_spill] sm:$0xff] }
 0x2e9   :  { %1860 = vrot.lane.b32.xlu1 %v272_v55, %s20762_s11  ;;  %v15888_v53 = vpop.permute.xlu1 %527  ;;  %v15896_v55 = vpop.permute.xlu0 %381  ;;  %v1331_v10 = vsel %vm1314_vm5, %v1312_v3, %v14426_v61  ;;  %v15910_v62 = vsel %vm1352_vm11, %v1349_v8, %v21013_v37  ;;  %v1388_v61 = vsel %vm1371_vm2, %v21031_v22, %v21030_v5  ;;  %v21035_v5 = vld [vmem:[#allocation141_spill] sm:$0xff] }
 0x2ea   :  { %v1350_v32 = vsel %vm1333_vm7, %v1331_v10, %v14476_v43  ;;  %v1501_v43 = vsel %vm1485_vm12, %v21029_v48, %v21032_v19  ;;  %v1407_v42 = vsel %vm1390_vm4, %v1388_v61, %v21033_v24  ;;  %v1913_v10 = vsel %vm1371_vm2, %v14525_v50, %v14523_v47 }
 0x2eb   :  { %2094 = vrot.lane.b32.xlu0 %v15882_v39, %s20855_s8  ;;  %v15928_v37 = vsel %vm1352_vm11, %v1350_v32, %v21031_v22  ;;  %v1520_v8 = vsel %vm1504_vm13, %v1501_v43, %v21034_v34  ;;  %v1426_v3 = vsel %vm1409_vm6, %v1407_v42, %v14395_v28  ;;  %v3139_v48 = vcombine.low %v14920_v14, %v14916_v38  ;;  %v12985_v43 = vld [vmem:[%s20419_s0 + $0xa0] sm:$0xff]  ;;  %v21037_v42 = vld [vmem:[#allocation147_spill] sm:$0xff] }
 0x2ec   :  { %v15943_v32 = vsel %vm1523_vm15, %v1520_v8, %v21035_v5  ;;  %v1445_v22 = vsel %vm1428_vm8, %v1426_v3, %v14424_v11  ;;  %v1502_v28 = vsel %vm1485_vm12, %v14456_v45, %v14454_v29  ;;  %v1919_v47 = vsel %vm1390_vm4, %v1913_v10, %v14570_v52  ;;  %v21038_v34 = vld [vmem:[#allocation143_spill] sm:$0xff]  ;;  %v21039_v8 = vld [vmem:[#allocation144_spill] sm:$0xff]  ;;  %v21041_v10 = vld [vmem:[#allocation149_spill] sm:$0xff] }
 0x2ed   :  { %2098 = vrot.lane.b32.xlu1 %v15902_v31, %s20855_s8  ;;  %v15912_v9 = vpop.permute.xlu1 %931  ;;  %v15919_v44 = vpop.permute.xlu0 %813  ;;  %21036 = vst [vmem:[#allocation36_spill] sm:$0xff] %v15943_v32  ;;  %v1464_v19 = vsel %vm1447_vm9, %v1445_v22, %v14474_v1  ;;  %v1877_v24 = vsel %vm1257_vm0, %v12985_v43, %v14500_v33  ;;  %v1521_v11 = vsel %vm1504_vm13, %v1502_v28, %v14502_v57  ;;  %v21042_v5 = vld [vmem:[#allocation145_spill] sm:$0xff] }
 0x2ee   :  { %v1925_v29 = vsel %vm1409_vm6, %v1919_v47, %v21037_v42  ;;  %v1883_v1 = vsel %vm1276_vm1, %v1877_v24, %v21038_v34  ;;  %v15971_v3 = vsel %vm1523_vm15, %v1521_v11, %v21039_v8  ;;  %v3140_v57 = vcombine.high %v14920_v14, %v14916_v38  ;;  %v12986_v28 = vld [vmem:[%s20419_s0 + $0xa8] sm:$0xff]  ;;  %v21043_v47 = vld [vmem:[#allocation150_spill] sm:$0xff] }
 0x2ef   :  { %2096 = vrot.lane.b32.xlu0 %v15910_v62, %s20855_s8  ;;  %21040 = vst [vmem:[#allocation39_spill] sm:$0xff] %v15971_v3  ;;  %v1931_v33 = vsel %vm1428_vm8, %v1925_v29, %v21041_v10  ;;  %v1889_v22 = vsel %vm1295_vm3, %v1883_v1, %v21042_v5  ;;  %v1878_v43 = vsel %vm1257_vm0, %v12986_v28, %v21043_v47  ;;  %v21044_v24 = vld [vmem:[#allocation154_spill] sm:$0xff]  ;;  %v21048_v5 = vld [vmem:[#allocation153_spill] sm:$0xff]  ;;  %v21049_v28 = vld [vmem:[#allocation160_spill] sm:$0xff] }
 0x2f0   :  { %v1937_v11 = vsel %vm1447_vm9, %v1931_v33, %v21044_v24  ;;  %v21045_v42 = vld [vmem:[#allocation30_spill] sm:$0xff]  ;;  %v15999_v10 = vsel %vm1466_vm10, %v1464_v19, %v14456_v45 }
 0x2f1   :  { %2102 = vrot.lane.b32.xlu1 %v15928_v37, %s20855_s8  ;;  %v2061_v61 = vpop.permute.xlu1 %2060  ;;  %v15965_v52 = vpop.permute.xlu0 %1163  ;;  %v1493_v29 = vsel %vm1485_vm12, %v21045_v42, %v15725_v25  ;;  %v21046_v38 = vld [vmem:[#allocation146_spill] sm:$0xff]  ;;  %v21052_v42 = vld [vmem:[#allocation148_spill] sm:$0xff] }
 0x2f2   :  { %v1895_v14 = vsel %vm1314_vm5, %v1889_v22, %v21046_v38  ;;  %v21047_v34 = vld [vmem:[#allocation158_spill] sm:$0xff]  ;;  %v1512_v8 = vsel %vm1504_vm13, %v1493_v29, %v15735_v59  ;;  %v1943_v29 = vsel %vm1466_vm10, %v1937_v11, %v21052_v42  ;;  %v21053_v38 = vld [vmem:[#allocation155_spill] sm:$0xff] }
 0x2f3   :  { %2100 = vrot.lane.b32.xlu0 %v15943_v32, %s20855_s8  ;;  %v1884_v1 = vsel %vm1276_vm1, %v1878_v43, %v21047_v34  ;;  %v1901_v25 = vsel %vm1333_vm7, %v1895_v14, %v21048_v5  ;;  %v16009_v22 = vsel %vm1523_vm15, %v1512_v8, %v15845_v16  ;;  %v21051_v43 = vld [vmem:[#allocation7_spill] sm:$0xff]  ;;  %v21054_v16 = vld [vmem:[#allocation152_spill] sm:$0xff] }
 0x2f4   :  { %v1890_v47 = vsel %vm1295_vm3, %v1884_v1, %v21049_v28  ;;  %v2188_v19 = vsel %vm2126_vm14, %v16009_v22, %v2061_v61  ;;  %v1914_v14 = vsel %vm1371_vm2, %v21054_v16, %v21053_v38  ;;  %v21055_v34 = vld [vmem:[#allocation4_spill] sm:$0xff]  ;;  %v21056_v28 = vld [vmem:[#allocation157_spill] sm:$0xff]  ;;  %v1907_v11 = vsel %vm1352_vm11, %v1901_v25, %v14525_v50  ;;  %v21057_v38 = vld [vmem:[#allocation151_spill] sm:$0xff] }
 0x2f5   :  { %2106 = vrot.lane.b32.xlu1 %v15971_v3, %s20855_s8  ;;  %v16001_v33 = vpop.permute.xlu1 %313  ;;  %v16013_v59 = vpop.permute.xlu0 %2062  ;;  %v1896_v45 = vsel %vm1314_vm5, %v1890_v47, %v21051_v43  ;;  %v1920_v47 = vsel %vm1390_vm4, %v1914_v14, %v21056_v28  ;;  %v3151_v43 = vrot.slane %v3139_v48, %v15059_v0  ;;  %v21060_v25 = vld [vmem:[#allocation9_spill] sm:$0xff]  ;;  %v21061_v28 = vld [vmem:[#allocation14_spill] sm:$0xff]  ;;  %v21062_v3 = vld [vmem:[#allocation8_spill] sm:$0xff] }
 0x2f6   :  { %21050 = vst [vmem:[#allocation35_spill] sm:$0xff] %v16013_v59  ;;  %v2141_v24 = vsel %vm2126_vm14, %v2061_v61, %v16013_v59  ;;  %v1902_v1 = vsel %vm1333_vm7, %v1896_v45, %v21055_v34  ;;  %v3158_v61 = vrot.slane %v3140_v57, %v15059_v0  ;;  %v1949_v45 = vsel %vm1485_vm12, %v21052_v42, %v21057_v38  ;;  %v21058_v34 = vld [vmem:[#allocation161_spill] sm:$0xff]  ;;  %v21059_v57 = vld [vmem:[#allocation156_spill] sm:$0xff] }
 0x2f7   :  { %2104 = vrot.lane.b32.xlu0 %v15999_v10, %s20855_s8  ;;  %v3141_v8 = vcombine.low %v2188_v19, %v2141_v24  ;;  %v3142_v5 = vcombine.high %v2188_v19, %v2141_v24  ;;  %v1926_v19 = vsel %vm1409_vm6, %v1920_v47, %v21058_v34  ;;  %v1955_v50 = vsel %vm1504_vm13, %v1949_v45, %v21059_v57  ;;  %v21064_v45 = vld [vmem:[#allocation5_spill] sm:$0xff] }
 0x2f8   :  { %v1932_v14 = vsel %vm1428_vm8, %v1926_v19, %v21060_v25  ;;  %v1950_v42 = vsel %vm1485_vm12, %v21062_v3, %v21061_v28  ;;  %v1908_v47 = vsel %vm1352_vm11, %v1902_v1, %v21054_v16  ;;  %v21065_v19 = vld [vmem:[#allocation6_spill] sm:$0xff] }
 0x2f9   :  { %2110 = vrot.lane.b32.xlu1 %v1943_v29, %s20855_s8  ;;  %v16035_v59 = vpop.permute.xlu1 %599  ;;  %v3165_v24 = vrot.slane %v3141_v8, %v15059_v0  ;;  %v3172_v29 = vrot.slane %v3142_v5, %v15059_v0  ;;  %v16045_v48 = vpop.permute.xlu0 %453  ;;  %v1938_v57 = vsel %vm1447_vm9, %v1932_v14, %v21064_v45  ;;  %v1956_v25 = vsel %vm1504_vm13, %v1950_v42, %v21065_v19  ;;  %v70_v19 = vld [vmem:[%s20419_s0 + $0xa1] sm:$0x1] }
 0x2fb   :  { %2108 = vrot.lane.b32.xlu0 %v1907_v11, %s20855_s8  ;;  %v3187_v8 = vcombine.low %v3151_v43, %v3165_v24  ;;  %v3188_v38 = vcombine.high %v3151_v43, %v3165_v24  ;;  %v3189_v5 = vcombine.low %v3158_v61, %v3172_v29  ;;  %v3190_v34 = vcombine.high %v3158_v61, %v3172_v29  ;;  %v21063_v11 = vld [vmem:[#allocation159_spill] sm:$0xff]  ;;  %v21066_v24 = vld [vmem:[#allocation10_spill] sm:$0xff] }
 0x2fc   :  { %v1961_v32 = vsel %vm1523_vm15, %v1955_v50, %v21063_v11  ;;  %v1962_v29 = vsel %vm1523_vm15, %v1956_v25, %v21066_v24 }
 0x2fd   :  { %2114 = vrot.lane.b32.xlu1 %v1908_v47, %s20855_s8  ;;  %v16063_v39 = vpop.permute.xlu1 %745  ;;  %v3199_v28 = vrot.slane %v3187_v8, %v15059_v0  ;;  %v3206_v16 = vrot.slane %v3189_v5, %v15059_v0  ;;  %v3213_v1 = vrot.slane %v3188_v38, %v15059_v0  ;;  %v3220_v43 = vrot.slane %v3190_v34, %v15059_v0  ;;  %v16070_v61 = vpop.permute.xlu0 %673  ;;  %v160_v38 = vld [vmem:[%s20419_s0 + $0xa6] sm:$0x1] }
 0x2fe   :  { %v1944_v8 = vsel %vm1466_vm10, %v1938_v57, %v21062_v3 }
 0x2ff   :  { %2112 = vrot.lane.b32.xlu0 %v1961_v32, %s20855_s8  ;;  %v12639_v50 = vcombine.low %v3199_v28, %v3213_v1  ;;  %v12641_v14 = vcombine.high %v3199_v28, %v3213_v1  ;;  %v12643_v42 = vcombine.low %v3206_v16, %v3220_v43  ;;  %v12645_v47 = vcombine.high %v3206_v16, %v3220_v43  ;;  %v266_v16 = vld [vmem:[%s20419_s0 + $0xbd] sm:$0x1] }
 0x301   :  { %2118 = vrot.lane.b32.xlu1 %v1962_v29, %s20855_s8  ;;  %v990_v5 = vpop.permute.xlu1 %989  ;;  %v16081_v32 = vpop.permute.xlu0 %871  ;;  %v5233_v34 = vrot.slane %v12639_v50, %v15059_v0  ;;  %v5247_v11 = vrot.slane %v12641_v14, %v15059_v0  ;;  %v5261_v45 = vrot.slane %v12643_v42, %v15059_v0  ;;  %v5275_v3 = vrot.slane %v12645_v47, %v15059_v0  ;;  %v178_v14 = vld [vmem:[%s20419_s0 + $0xa7] sm:$0x1] }
 0x303   :  { %2116 = vrot.lane.b32.xlu0 %v1944_v8, %s20855_s8  ;;  %v5284_v57 = vcombine.high %v5233_v34, %v5247_v11  ;;  %v5283_v25 = vcombine.low %v5233_v34, %v5247_v11  ;;  %v5288_v1 = vcombine.high %v5261_v45, %v5275_v3  ;;  %v5287_v43 = vcombine.low %v5261_v45, %v5275_v3  ;;  %v182_v3 = vld [vmem:[%s20419_s0 + $0xa8] sm:$0x1] }
 0x305   :  { %687 = vrot.lane.b32.xlu1 %v160_v38, %s20790_s12  ;;  %v16091_v28 = vpop.permute.xlu1 %1103  ;;  %v5311_v29 = vrot.slane %v5284_v57, %v15059_v0  ;;  %v5297_v50 = vrot.slane %v5283_v25, %v15059_v0  ;;  %v5339_v42 = vrot.slane %v5288_v1, %v15059_v0  ;;  %v5325_v47 = vrot.slane %v5287_v43, %v15059_v0  ;;  %v88_v57 = vld [vmem:[%s20419_s0 + $0xa2] sm:$0x1]  ;;  %s21565_s12 = sld [smem:[#allocation163_spill]] }
 0x306   :  { %v16097_v24 = vpop.permute.xlu0 %1045  ;;  %v44_v25 = vld [vmem:[%s20419_s0 + $0x60] sm:$0xff] }
 0x307   :  { %327 = vrot.lane.b32.xlu0 %v70_v19, %s20836_s26  ;;  %v5350_v38 = vcombine.low %v5311_v29, %v5339_v42  ;;  %v5351_v34 = vcombine.high %v5311_v29, %v5339_v42  ;;  %v5347_v11 = vcombine.low %v5297_v50, %v5325_v47  ;;  %v5348_v45 = vcombine.high %v5297_v50, %v5325_v47  ;;  %v106_v50 = vld [vmem:[%s20419_s0 + $0xa3] sm:$0x1]  ;;  %v270_v42 = vld [vmem:[%s20419_s0 + $0xbe] sm:$0x1]  ;;  %s13009_s26 = smov 16  }
 0x309   :  { %1822 = vrot.lane.b32.xlu1 %v266_v16, %s20844_s28  ;;  %v16107_v8 = vpop.permute.xlu1 %385  ;;  %6692 = vmatprep.mubr.f32.mxu0 %v5350_v38  ;;  %v1381_v16 = vsel %vm1371_vm2, %v15693_v4, %v15691_v13 }
 0x30a   :  { %v1222_v19 = vpop.permute.xlu0 %1221  ;;  %6842 = vmatprep.mubr.f32.mxu1 %v5351_v34  ;;  %6693 = vmatmul.mubr.f32.gmra.mxu0 %v5347_v11  ;;  %v1400_v43 = vsel %vm1390_vm4, %v1381_v16, %v15737_v54 }
 0x30b   :  { %759 = vrot.lane.b32.xlu0 %v178_v14, %s20841_s19  ;;  %6843 = vmatmul.mubr.f32.gmra.mxu1 %v5348_v45  ;;  %v1267_v14 = vsel %vm1257_vm0, %v44_v25, %v15666_v12  ;;  %v1419_v13 = vsel %vm1409_vm6, %v1400_v43, %v15828_v49  ;;  %v202_v43 = vld [vmem:[%s20419_s0 + $0xad] sm:$0x1]  ;;  %s21497_s19 = sld [smem:[#allocation162_spill]] }
 0x30c   :  { %v1286_v54 = vsel %vm1276_vm1, %v1267_v14, %v15723_v51  ;;  %v1438_v47 = vsel %vm1428_vm8, %v1419_v13, %v15912_v9  ;;  %v198_v51 = vld [vmem:[%s20419_s0 + $0xac] sm:$0x1]  ;;  %v186_v9 = vld [vmem:[%s20419_s0 + $0xa9] sm:$0x1] }
 0x30d   :  { %831 = vrot.lane.b32.xlu1 %v182_v3, %s20777_s16  ;;  %v16123_v1 = vpop.permute.xlu1 %817  ;;  %v1305_v38 = vsel %vm1295_vm3, %v1286_v54, %v15767_v6  ;;  %v1457_v34 = vsel %vm1447_vm9, %v1438_v47, %v990_v5  ;;  %v1495_v5 = vsel %vm1485_vm12, %v15823_v36, %v15859_v27  ;;  %v274_v27 = vld [vmem:[%s20419_s0 + $0xbf] sm:$0x1]  ;;  %v190_v47 = vld [vmem:[%s20419_s0 + $0xaa] sm:$0x1] }
 0x30e   :  { %v16128_v29 = vpop.permute.xlu0 %525  ;;  %v1324_v49 = vsel %vm1314_vm5, %v1305_v38, %v15888_v53  ;;  %v1476_v53 = vsel %vm1466_vm10, %v1457_v34, %v15823_v36  ;;  %v1514_v45 = vsel %vm1504_vm13, %v1495_v5, %v15965_v52 }
 0x30f   :  { %399 = vrot.lane.b32.xlu0 %v88_v57, %s20726_s23  ;;  %v1343_v6 = vsel %vm1333_vm7, %v1324_v49, %v16035_v59  ;;  %v1533_v57 = vsel %vm1523_vm15, %v1514_v45, %v1222_v19  ;;  %v124_v49 = vld [vmem:[%s20419_s0 + $0xa4] sm:$0x1] }
 0x310   :  { %v1362_v59 = vsel %vm1352_vm11, %v1343_v6, %v15693_v4  ;;  %v214_v6 = vld [vmem:[%s20419_s0 + $0xb0] sm:$0x1] }
 0x311   :  { %471 = vrot.lane.b32.xlu1 %v106_v50, %s20747_s15  ;;  %v16148_v12 = vpop.permute.xlu1 %1161  ;;  %v3298_v16 = vcombine.high %v1362_v59, %v1476_v53  ;;  %v3297_v50 = vcombine.low %v1362_v59, %v1476_v53  ;;  %s13010_s15 = smov 24  }
 0x312   :  { %v16153_v11 = vpop.permute.xlu0 %929 }
 0x313   :  { %1844 = vrot.lane.b32.xlu0 %v270_v42, %s20807_s30  ;;  %v3316_v38 = vrot.slane %v3298_v16, %v15059_v0 }
 0x315   :  { %1063 = vrot.lane.b32.xlu1 %v198_v51, %s20845_s24  ;;  %v16200_v51 = vrot.slane %v3297_v50, %v15059_v0  ;;  %s13014_s24 = smov 64  }
 0x316   :  { %v2075_v3 = vpop.permute.xlu1 %2074 }
 0x317   :  { %889 = vrot.lane.b32.xlu0 %v186_v9, %s20732_s22  ;;  %v2073_v25 = vpop.permute.xlu0 %2072  ;;  %s13015_s22 = smov 72  }
 0x318   :  { %v2145_v36 = vsel %vm2126_vm14, %v2073_v25, %v2075_v3  ;;  %v2190_v52 = vsel %vm2126_vm14, %v1533_v57, %v2073_v25  ;;  %v142_v57 = vld [vmem:[%s20419_s0 + $0xa5] sm:$0x1] }
 0x319   :  { %v3299_v4 = vcombine.low %v2190_v52, %v2145_v36  ;;  %v3300_v14 = vcombine.high %v2190_v52, %v2145_v36  ;;  %1866 = vrot.lane.b32.xlu1 %v274_v27, %s20762_s11  ;;  %v206_v36 = vld [vmem:[%s20419_s0 + $0xae] sm:$0x1]  ;;  %v21069_v52 = vld [vmem:[#allocation20_spill] sm:$0xff] }
 0x31a   :  { %v16184_v19 = vpop.permute.xlu1 %457 }
 0x31b   :  { %21067 = vst [vmem:[#allocation42_spill] sm:$0xff] %v16184_v19  ;;  %v16187_v13 = vrot.slane %v3299_v4, %v15059_v0  ;;  %v3330_v42 = vrot.slane %v3300_v14, %v15059_v0  ;;  %1121 = vrot.lane.b32.xlu0 %v202_v43, %s20844_s28  ;;  %v2077_v54 = vpop.permute.xlu0 %2076  ;;  %v1879_v43 = vsel %vm1257_vm0, %v214_v6, %v21069_v52 }
 0x31c   :  { %v2146_v34 = vsel %vm2126_vm14, %v2075_v3, %v2077_v54 }
 0x31d   :  { %v3347_v9 = vcombine.low %v3316_v38, %v3330_v42  ;;  %v3301_v5 = vcombine.low %v2146_v34, %v2077_v54  ;;  %v3302_v53 = vcombine.high %v2146_v34, %v2077_v54  ;;  %947 = vrot.lane.b32.xlu1 %v190_v47, %s20825_s17  ;;  %v3346_v3 = vcombine.high %v16200_v51, %v16187_v13  ;;  %v21071_v47 = vld [vmem:[#allocation11_spill] sm:$0xff] }
 0x31e   :  { %v16206_v45 = vpop.permute.xlu1 %875  ;;  %v3348_v25 = vcombine.high %v3316_v38, %v3330_v42  ;;  %v21072_v38 = vld [vmem:[#allocation18_spill] sm:$0xff] }
 0x31f   :  { %21068 = vst [vmem:[#allocation48_spill] sm:$0xff] %v16206_v45  ;;  %543 = vrot.lane.b32.xlu0 %v124_v49, %s20731_s14  ;;  %v16211_v59 = vpop.permute.xlu0 %597  ;;  %v16217_v27 = vrot.slane %v3301_v5, %v15059_v0  ;;  %v3344_v16 = vrot.slane %v3302_v53, %v15059_v0  ;;  %v16226_v50 = vrot.slane %v3347_v9, %v15059_v0  ;;  %v210_v5 = vld [vmem:[%s20419_s0 + $0xaf] sm:$0x1] }
 0x320   :  { %v1915_v34 = vsel %vm1371_vm2, %v21072_v38, %v21071_v47  ;;  %v1885_v49 = vsel %vm1276_vm1, %v1879_v43, %v15180_v58  ;;  %v16242_v6 = vrot.slane %v3346_v3, %v15059_v0  ;;  %v16251_v53 = vrot.slane %v3348_v25, %v15059_v0  ;;  %v194_v3 = vld [vmem:[%s20419_s0 + $0xab] sm:$0x1]  ;;  %v21076_v47 = vld [vmem:[#allocation19_spill] sm:$0xff] }
 0x321   :  { %v3349_v4 = vcombine.high %v16217_v27, %v16217_v27  ;;  %v3350_v14 = vcombine.high %v3344_v16, %v3344_v16  ;;  %v16231_v42 = vrot.slane %v3344_v16, %v15059_v0  ;;  %615 = vrot.lane.b32.xlu1 %v142_v57, %s20833_s18  ;;  %v21075_v43 = vld [vmem:[#allocation13_spill] sm:$0xff] }
 0x322   :  { %v16234_v54 = vpop.permute.xlu1 %1049  ;;  %v1921_v25 = vsel %vm1390_vm4, %v1915_v34, %v21075_v43  ;;  %v21079_v34 = vld [vmem:[#allocation23_spill] sm:$0xff] }
 0x323   :  { %21070 = vst [vmem:[#allocation52_spill] sm:$0xff] %v16234_v54  ;;  %1179 = vrot.lane.b32.xlu0 %v206_v36, %s20807_s30  ;;  %v16245_v9 = vpop.permute.xlu0 %987  ;;  %v16254_v57 = vrot.slane %v3349_v4, %v15059_v0  ;;  %v16257_v16 = vrot.slane %v3350_v14, %v15059_v0  ;;  %v3409_v58 = vcombine.low %v16226_v50, %v16231_v42  ;;  %v21074_v36 = vld [vmem:[#allocation16_spill] sm:$0xff] }
 0x324   :  { %v1891_v52 = vsel %vm1295_vm3, %v1885_v49, %v21074_v36  ;;  %v1927_v4 = vsel %vm1409_vm6, %v1921_v25, %v21076_v47  ;;  %v21078_v49 = vld [vmem:[#allocation21_spill] sm:$0xff]  ;;  %v3534_v54 = vcombine.high %v15412_v7, %v15430_v15 }
 0x325   :  { %21073 = vst [vmem:[#allocation55_spill] sm:$0xff] %v16257_v16  ;;  %v1897_v14 = vsel %vm1314_vm5, %v1891_v52, %v21077_v63  ;;  %v3413_v45 = vcombine.low %v16251_v53, %v16257_v16  ;;  %1237 = vrot.lane.b32.xlu1 %v210_v5, %s20762_s11  ;;  %v1933_v36 = vsel %vm1428_vm8, %v1927_v4, %v21078_v49  ;;  %v21080_v63 = vld [vmem:[#allocation24_spill] sm:$0xff]  ;;  %v21081_v16 = vld [vmem:[#allocation26_spill] sm:$0xff] }
 0x326   :  { %v16277_v19 = vpop.permute.xlu1 %1219  ;;  %v1903_v43 = vsel %vm1333_vm7, %v1897_v14, %v21079_v34  ;;  %v1939_v52 = vsel %vm1447_vm9, %v1933_v36, %v21080_v63  ;;  %v3533_v5 = vcombine.low %v15412_v7, %v15430_v15  ;;  %v12652_v14 = vcombine.high %v16254_v57, %v3409_v58 }
 0x327   :  { %1005 = vrot.lane.b32.xlu0 %v194_v3, %s20832_s29  ;;  %v16284_v25 = vpop.permute.xlu0 %1107  ;;  %v12654_v47 = vcombine.high %v3413_v45, %v16231_v42  ;;  %v1945_v4 = vsel %vm1466_vm10, %v1939_v52, %v21081_v16  ;;  %v3651_v3 = vcombine.low %v15545_v17, %v15673_v46  ;;  %v3652_v49 = vcombine.high %v15545_v17, %v15673_v46  ;;  %v43_v46 = vld [vmem:[%s20419_s0 + $0x40] sm:$0x1]  ;;  %s21567_s29 = sld [smem:[#allocation164_spill]] }
 0x328   :  { %v1909_v45 = vsel %vm1352_vm11, %v1903_v43, %v21072_v38  ;;  %v3769_v15 = vcombine.low %v15747_v35, %v15791_v21  ;;  %v16314_v34 = vrot.slane %v12652_v14, %v15059_v0  ;;  %v16317_v17 = vrot.slane %v3533_v5, %v15059_v0 }
 0x329   :  { %2122 = vrot.lane.b32.xlu1 %v1945_v4, %s20855_s8  ;;  %v16306_v7 = vrot.slane %v12654_v47, %v15059_v0  ;;  %v16327_v63 = vrot.slane %v3534_v54, %v15059_v0  ;;  %v16330_v52 = vrot.slane %v3651_v3, %v15059_v0  ;;  %v16333_v47 = vrot.slane %v3652_v49, %v15059_v0 }
 0x32a   :  { %v16303_v36 = vpop.permute.xlu1 %529  ;;  %21083 = vst [vmem:[#allocation37_spill] sm:$0xff] %v16314_v34  ;;  %v1380_v5 = vsel %vm1371_vm2, %v15807_v40, %v15793_v23  ;;  %v3770_v14 = vcombine.high %v15747_v35, %v15791_v21  ;;  %v16345_v54 = vrot.slane %v3769_v15, %v15059_v0  ;;  %v3887_v3 = vcombine.low %v15843_v56, %v15832_v2 }
 0x32b   :  { %21082 = vst [vmem:[#allocation40_spill] sm:$0xff] %v16306_v7  ;;  %2120 = vrot.lane.b32.xlu0 %v1909_v45, %s20855_s8  ;;  %v16311_v58 = vpop.permute.xlu0 %1812  ;;  %v5424_v38 = vcombine.high %v16314_v34, %v16306_v7  ;;  %v1399_v49 = vsel %vm1390_vm4, %v1380_v5, %v15919_v44  ;;  %v3888_v35 = vcombine.high %v15843_v56, %v15832_v2 }
 0x32c   :  { %v1418_v21 = vsel %vm1409_vm6, %v1399_v49, %v16081_v32  ;;  %v3345_v45 = vcombine.low %v16200_v51, %v16187_v13  ;;  %v4006_v15 = vcombine.high %v15910_v62, %v15902_v31  ;;  %v4123_v2 = vcombine.low %v15928_v37, %v15999_v10 }
 0x32d   :  { %2028 = vrot.lane.b32.xlu1 %v15474_v20, %s20855_s8  ;;  %v1266_v20 = vsel %vm1257_vm0, %v43_v46, %v15769_v30  ;;  %v1437_v30 = vsel %vm1428_vm8, %v1418_v21, %v16153_v11  ;;  %v16377_v32 = vrot.slane %v16217_v27, %v15059_v0  ;;  %v16387_v11 = vrot.slane %v3887_v3, %v15059_v0 }
 0x32e   :  { %v16340_v4 = vpop.permute.xlu1 %1165  ;;  %v1285_v44 = vsel %vm1276_vm1, %v1266_v20, %v15896_v55  ;;  %v1456_v55 = vsel %vm1447_vm9, %v1437_v30, %v16245_v9  ;;  %v3412_v13 = vcombine.high %v16242_v6, %v16254_v57  ;;  %v16396_v51 = vrot.slane %v3888_v35, %v15059_v0 }
 0x32f   :  { %2022 = vrot.lane.b32.xlu0 %v15420_v41, %s20855_s8  ;;  %v16353_v23 = vpop.permute.xlu0 %933  ;;  %v4005_v41 = vcombine.low %v15910_v62, %v15902_v31  ;;  %v1304_v56 = vsel %vm1295_vm3, %v1285_v44, %v16045_v48  ;;  %21084 = vst [vmem:[#allocation41_spill] sm:$0xff] %v16377_v32  ;;  %v16384_v62 = vrot.slane %v3770_v14, %v15059_v0  ;;  %v21086_v44 = vld [vmem:[#allocation48_spill] sm:$0xff] }
 0x330   :  { %v1323_v48 = vsel %vm1314_vm5, %v1304_v56, %v16128_v29  ;;  %v3410_v9 = vcombine.high %v16226_v50, %v16231_v42  ;;  %v4124_v46 = vcombine.high %v15928_v37, %v15999_v10  ;;  %v1475_v5 = vsel %vm1466_vm10, %v1456_v55, %v16097_v24  ;;  %v2278_v55 = vld [vmem:[%s20420_s1 + $0x278] sm:$0xff] }
 0x331   :  { %2040 = vrot.lane.b32.xlu1 %v15604_v18, %s20855_s8  ;;  %v16399_v18 = vrot.slane %v3345_v45, %v15059_v0  ;;  %v1342_v27 = vsel %vm1333_vm7, %v1323_v48, %v16211_v59  ;;  %v16406_v29 = vrot.slane %v4005_v41, %v15059_v0  ;;  %v16418_v3 = vrot.slane %v4123_v2, %v15059_v0  ;;  %v12987_v59 = vld [vmem:[%s20419_s0 + $0x68] sm:$0xff]  ;;  %v21088_v2 = vld [vmem:[#allocation55_spill] sm:$0xff] }
 0x332   :  { %v2067_v31 = vpop.permute.xlu1 %2066  ;;  %v1268_v42 = vsel %vm1257_vm0, %v12987_v59, %v16001_v33  ;;  %v1382_v49 = vsel %vm1371_vm2, %v16070_v61, %v16063_v39  ;;  %v1494_v20 = vsel %vm1485_vm12, %v16097_v24, %v16091_v28  ;;  %v1361_v33 = vsel %vm1352_vm11, %v1342_v27, %v15807_v40  ;;  %6894 = vmatpush1.msra.mxu0 %v2278_v55 }
 0x333   :  { %2034 = vrot.lane.b32.xlu0 %v15555_v60, %s20855_s8  ;;  %v16409_v60 = vrot.slane %v4006_v15, %v15059_v0  ;;  %v3408_v10 = vcombine.high %v16399_v18, %v16377_v32  ;;  %v1287_v35 = vsel %vm1276_vm1, %v1268_v42, %v16107_v8  ;;  %v12651_v39 = vcombine.low %v3412_v13, %v16226_v50  ;;  %v21085_v8 = vld [vmem:[#allocation42_spill] sm:$0xff] }
 0x334   :  { %v1513_v21 = vsel %vm1504_vm13, %v1494_v20, %v16148_v12  ;;  %v3257_v45 = vcombine.low %v1361_v33, %v1475_v5  ;;  %v12653_v28 = vcombine.low %v16251_v53, %v3410_v9  ;;  %v16448_v24 = vrot.slane %v4124_v46, %v15059_v0  ;;  %12854 = vmatpush1.msra.mxu1 %v2278_v55 }
 0x335   :  { %v16415_v14 = vpop.permute.xlu0 %1834  ;;  %2052 = vrot.lane.b32.xlu1 %v16009_v22, %s20855_s8  ;;  %v1401_v22 = vsel %vm1390_vm4, %v1382_v49, %v16123_v1  ;;  %v1306_v40 = vsel %vm1295_vm3, %v1287_v35, %v21085_v8  ;;  %v1532_v50 = vsel %vm1523_vm15, %v1513_v21, %v16277_v19  ;;  %v12649_v30 = vcombine.low %v16242_v6, %v3408_v10  ;;  %v2277_v19 = vld [vmem:[%s20420_s1 + $0x270] sm:$0xff] }
 0x336   :  { %v602_v37 = vpop.permute.xlu1 %601  ;;  %v2189_v1 = vsel %vm2126_vm14, %v1532_v50, %v2067_v31  ;;  %v3414_v56 = vcombine.high %v16251_v53, %v21088_v2  ;;  %v21089_v48 = vcombine.low %v16242_v6, %v16254_v57  ;;  %v5395_v46 = vrot.slane %v12651_v39, %v15059_v0  ;;  %v2276_v6 = vld [vmem:[%s20420_s1 + $0x268] sm:$0xff]  ;;  %v21092_v39 = vld [vmem:[#allocation52_spill] sm:$0xff] }
 0x337   :  { %2046 = vrot.lane.b32.xlu0 %v15655_v26, %s20855_s8  ;;  %v1420_v26 = vsel %vm1409_vm6, %v1401_v22, %v21086_v44  ;;  %v3266_v5 = vrot.slane %v3257_v45, %v15059_v0  ;;  %v5409_v42 = vrot.slane %v12653_v28, %v15059_v0  ;;  %v21091_v49 = vmov 0.0  }
 0x338   :  { %6895 = vmatprep.subr.mxu0 %v21091_v49  ;;  %12835 = vmatprep.subr.mxu1 %v21091_v49  ;;  %v1325_v57 = vsel %vm1314_vm5, %v1306_v40, %v16303_v36  ;;  %v1439_v10 = vsel %vm1428_vm8, %v1420_v26, %v16353_v23  ;;  %v1496_v22 = vsel %vm1485_vm12, %v21092_v39, %v16284_v25  ;;  %v2275_v36 = vld [vmem:[%s20420_s1 + $0x260] sm:$0xff] }
 0x339   :  { %v16456_v41 = vpop.permute.xlu0 %2068  ;;  %6896 = vmatpush1.msra.mxu0 %v2277_v19  ;;  %12855 = vmatpush1.msra.mxu1 %v2277_v19  ;;  %v1344_v21 = vsel %vm1333_vm7, %v1325_v57, %v602_v37  ;;  %v5422_v44 = vcombine.high %v5395_v46, %v5409_v42  ;;  %v21093_v25 = vld [vmem:[#allocation44_spill] sm:$0xff]  ;;  %v5381_v26 = vrot.slane %v12649_v30, %v15059_v0 }
 0x33a   :  { %21087 = vst [vmem:[#allocation47_spill] sm:$0xff] %v16456_v41  ;;  %v2143_v12 = vsel %vm2126_vm14, %v2067_v31, %v16456_v41  ;;  %v16461_v15 = vpop.permute.xlu1 %1223  ;;  %v12650_v31 = vcombine.high %v21089_v48, %v16377_v32  ;;  %v6659_v27 = vpop.f32.mrf.mxu0  ;;  %6897 = vmatprep.subr.mxu0 %v21091_v49  ;;  %12836 = vmatprep.subr.mxu1 %v21091_v49 }
 0x33b   :  { %v3258_v13 = vcombine.low %v2189_v1, %v2143_v12  ;;  %v6809_v9 = vpop.f32.mrf.mxu1  ;;  %6898 = vmatpush1.msra.mxu0 %v2276_v6  ;;  %12856 = vmatpush1.msra.mxu1 %v2276_v6  ;;  %v1946_v37 = vsel %vm1485_vm12, %v21093_v25, %v16311_v58  ;;  %v5421_v50 = vcombine.low %v5395_v46, %v5409_v42  ;;  %v2274_v1 = vld [vmem:[%s20420_s1 + $0x258] sm:$0xff] }
 0x33c   :  { %v16478_v59 = vadd.f32 %v6809_v9, %v6659_v27  ;;  %v6661_v33 = vpop.f32.mrf.mxu0  ;;  %6899 = vmatprep.subr.mxu0 %v21091_v49  ;;  %12837 = vmatprep.subr.mxu1 %v21091_v49  ;;  %v1952_v12 = vsel %vm1504_vm13, %v1946_v37, %v16415_v14  ;;  %v1363_v55 = vsel %vm1352_vm11, %v1344_v21, %v16070_v61  ;;  %v2273_v14 = vld [vmem:[%s20420_s1 + $0x250] sm:$0xff] }
 0x33d   :  { %v3273_v20 = vrot.slane %v3258_v13, %v15059_v0  ;;  %v992_v35 = vpop.permute.xlu0 %991  ;;  %v6811_v28 = vpop.f32.mrf.mxu1  ;;  %6900 = vmatpush1.msra.mxu0 %v2275_v36  ;;  %12857 = vmatpush1.msra.mxu1 %v2275_v36  ;;  %v16524_v27 = vrot.slane %v12650_v31, %v15059_v0  ;;  %v1515_v61 = vsel %vm1504_vm13, %v1496_v22, %v16340_v4 }
 0x33e   :  { %21090 = vst [vmem:[#allocation51_spill] sm:$0xff] %v16478_v59  ;;  %v1458_v45 = vsel %vm1447_vm9, %v1439_v10, %v992_v35  ;;  %v2079_v8 = vpop.permute.xlu1 %2078  ;;  %6901 = vmatprep.subr.mxu0 %v21091_v49  ;;  %12838 = vmatprep.subr.mxu1 %v21091_v49  ;;  %v16531_v46 = vrot.slane %v5422_v44, %v15059_v0 }
 0x33f   :  { %v3281_v23 = vcombine.low %v3266_v5, %v3273_v20  ;;  %v1477_v40 = vsel %vm1466_vm10, %v1458_v45, %v21092_v39  ;;  %21094 = vst [vmem:[#allocation60_spill] sm:$0xff] %v16524_v27  ;;  %6902 = vmatpush1.msra.mxu0 %v2274_v1  ;;  %v1534_v5 = vsel %vm1523_vm15, %v1515_v61, %v16461_v15 }
 0x340   :  { %v3415_v30 = vcombine.low %v1363_v55, %v1477_v40  ;;  %v3416_v42 = vcombine.high %v1363_v55, %v1477_v40  ;;  %v16536_v6 = vrot.slane %v5421_v50, %v15059_v0  ;;  %12858 = vmatpush1.msra.mxu1 %v2274_v1  ;;  %6903 = vmatprep.subr.mxu0 %v21091_v49  ;;  %v21096_v50 = vld [vmem:[#allocation65_spill] sm:$0xff] }
 0x341   :  { %v3288_v19 = vrot.slane %v3281_v23, %v15059_v0  ;;  %v1857_v58 = vpop.permute.xlu0 %1856  ;;  %v2191_v4 = vsel %vm2126_vm14, %v1534_v5, %v2079_v8  ;;  %12839 = vmatprep.subr.mxu1 %v21091_v49  ;;  %6904 = vmatpush1.msra.mxu0 %v2273_v14  ;;  %v16549_v15 = vrot.slane %v5424_v38, %v15059_v0  ;;  %v2271_v38 = vld [vmem:[%s20420_s1 + $0x240] sm:$0xff] }
 0x342   :  { %v1958_v48 = vsel %vm1523_vm15, %v1952_v12, %v1857_v58  ;;  %v3427_v10 = vrot.slane %v3415_v30, %v15059_v0  ;;  %12859 = vmatpush1.msra.mxu1 %v2273_v14  ;;  %6905 = vmatprep.subr.mxu0 %v21091_v49  ;;  %v3434_v28 = vrot.slane %v3416_v42, %v15059_v0 }
 0x343   :  { %v2083_v13 = vpop.permute.xlu1 %2082  ;;  %2058 = vrot.lane.b32.xlu0 %v1958_v48, %s20855_s8  ;;  %v12647_v9 = vcombine.low %v3288_v19, %v16399_v18  ;;  %v2272_v18 = vld [vmem:[%s20420_s1 + $0x248] sm:$0xff]  ;;  %21095 = vst [vmem:[#allocation43_spill] sm:$0xff] %v16549_v15  ;;  %12840 = vmatprep.subr.mxu1 %v21091_v49 }
 0x344   :  { %6906 = vmatpush1.msra.mxu0 %v2272_v18  ;;  %12860 = vmatpush1.msra.mxu1 %v2272_v18 }
 0x345   :  { %v2081_v31 = vpop.permute.xlu0 %2080  ;;  %v5367_v57 = vrot.slane %v12647_v9, %v15059_v0  ;;  %6907 = vmatprep.subr.mxu0 %v21091_v49  ;;  %12841 = vmatprep.subr.mxu1 %v21091_v49 }
 0x346   :  { %v2147_v20 = vsel %vm2126_vm14, %v2079_v8, %v2081_v31  ;;  %v2148_v35 = vsel %vm2126_vm14, %v2081_v31, %v2083_v13  ;;  %6908 = vmatpush1.msra.mxu0 %v2271_v38  ;;  %12861 = vmatpush1.msra.mxu1 %v2271_v38 }
 0x347   :  { %v1837_v33 = vpop.permute.xlu1 %1836  ;;  %v3417_v39 = vcombine.low %v2191_v4, %v2147_v20  ;;  %v3418_v22 = vcombine.high %v2191_v4, %v2147_v20  ;;  %v3419_v21 = vcombine.low %v2148_v35, %v2083_v13  ;;  %v3420_v45 = vcombine.high %v2148_v35, %v2083_v13  ;;  %v2270_v13 = vld [vmem:[%s20420_s1 + $0x238] sm:$0xff]  ;;  %6909 = vmatprep.subr.mxu0 %v21091_v49  ;;  %v21097_v35 = vld [vmem:[#allocation29_spill] sm:$0xff] }
 0x348   :  { %v5418_v36 = vcombine.high %v5367_v57, %v5381_v26  ;;  %v5417_v8 = vcombine.low %v5367_v57, %v5381_v26  ;;  %12842 = vmatprep.subr.mxu1 %v21091_v49  ;;  %6910 = vmatpush1.msra.mxu0 %v2270_v13 }
 0x349   :  { %v3441_v23 = vrot.slane %v3417_v39, %v15059_v0  ;;  %v3448_v40 = vrot.slane %v3418_v22, %v15059_v0  ;;  %v3455_v44 = vrot.slane %v3419_v21, %v15059_v0  ;;  %v3462_v25 = vrot.slane %v3420_v45, %v15059_v0  ;;  %v1815_v37 = vpop.permute.xlu0 %1814  ;;  %12862 = vmatpush1.msra.mxu1 %v2270_v13 }
 0x34a   :  { %v1947_v1 = vsel %vm1485_vm12, %v21096_v50, %v1815_v37  ;;  %v5445_v55 = vrot.slane %v5418_v36, %v15059_v0  ;;  %v5431_v26 = vrot.slane %v5417_v8, %v15059_v0  ;;  %6911 = vmatprep.subr.mxu0 %v21091_v49  ;;  %12843 = vmatprep.subr.mxu1 %v21091_v49 }
 0x34b   :  { %v2085_v12 = vpop.permute.xlu1 %2084  ;;  %v3463_v19 = vcombine.low %v3427_v10, %v3441_v23  ;;  %v3464_v58 = vcombine.high %v3427_v10, %v3441_v23  ;;  %v3465_v30 = vcombine.low %v3434_v28, %v3448_v40  ;;  %v3466_v48 = vcombine.high %v3434_v28, %v3448_v40 }
 0x34c   :  { %v3467_v14 = vcombine.high %v3455_v44, %v3455_v44  ;;  %v3468_v61 = vcombine.high %v3462_v25, %v3462_v25  ;;  %v3503_v9 = vrot.slane %v3455_v44, %v15059_v0  ;;  %v3510_v5 = vrot.slane %v3462_v25, %v15059_v0 }
 0x34d   :  { %v3475_v42 = vrot.slane %v3463_v19, %v15059_v0  ;;  %v3482_v4 = vrot.slane %v3465_v30, %v15059_v0  ;;  %v3489_v31 = vrot.slane %v3464_v58, %v15059_v0  ;;  %v16580_v57 = vrot.slane %v3466_v48, %v15059_v0  ;;  %v1859_v18 = vpop.permute.xlu0 %1858 }
 0x34e   :  { %v3517_v10 = vrot.slane %v3467_v14, %v15059_v0  ;;  %v16585_v20 = vrot.slane %v3468_v61, %v15059_v0  ;;  %v2192_v39 = vsel %vm2126_vm14, %v21097_v35, %v2085_v12  ;;  %v1953_v22 = vsel %vm1504_vm13, %v1947_v1, %v1837_v33  ;;  %v2269_v61 = vld [vmem:[%s20420_s1 + $0x230] sm:$0xff] }
 0x34f   :  { %v2089_v21 = vpop.permute.xlu1 %2088  ;;  %v3525_v45 = vcombine.low %v3475_v42, %v3503_v9  ;;  %v3526_v38 = vcombine.high %v3475_v42, %v3503_v9  ;;  %v3527_v28 = vcombine.low %v3482_v4, %v3510_v5  ;;  %v3528_v36 = vcombine.high %v3482_v4, %v3510_v5  ;;  %6912 = vmatpush1.msra.mxu0 %v2269_v61 }
 0x350   :  { %v3529_v8 = vcombine.low %v3489_v31, %v3517_v10  ;;  %v3531_v23 = vcombine.low %v16580_v57, %v16585_v20  ;;  %v1959_v40 = vsel %vm1523_vm15, %v1953_v22, %v1859_v18  ;;  %v5484_v44 = vcombine.low %v5445_v55, %v16531_v46  ;;  %12863 = vmatpush1.msra.mxu1 %v2269_v61 }
 0x351   :  { %v16596_v25 = vcombine.high %v21088_v2, %v3525_v45  ;;  %v16598_v33 = vcombine.high %v3517_v10, %v3527_v28  ;;  %v5485_v37 = vcombine.high %v5445_v55, %v16531_v46  ;;  %v5481_v50 = vcombine.low %v5431_v26, %v16536_v6  ;;  %2064 = vrot.lane.b32.xlu1 %v1959_v40, %s20855_s8  ;;  %v2087_v1 = vpop.permute.xlu0 %2086 }
 0x352   :  { %v16603_v19 = vcombine.high %v3529_v8, %v3503_v9  ;;  %v16605_v58 = vcombine.high %v3531_v23, %v3510_v5  ;;  %6697 = vmatprep.mubr.f32.mxu0 %v5484_v44  ;;  %v5482_v30 = vcombine.high %v5431_v26, %v16536_v6  ;;  %v2149_v48 = vsel %vm2126_vm14, %v2085_v12, %v2087_v1 }
 0x353   :  { %21098 = vst [vmem:[#allocation45_spill] sm:$0xff] %v16596_v25  ;;  %21099 = vst [vmem:[#allocation46_spill] sm:$0xff] %v16598_v33  ;;  %6847 = vmatprep.mubr.f32.mxu1 %v5485_v37  ;;  %6698 = vmatmul.mubr.f32.gmra.mxu0 %v5481_v50  ;;  %v2150_v13 = vsel %vm2126_vm14, %v2087_v1, %v2089_v21  ;;  %v3535_v14 = vcombine.low %v2192_v39, %v2149_v48  ;;  %v16610_v55 = vpop.permute.xlu1 %1838 }
 0x354   :  { %21100 = vst [vmem:[#allocation50_spill] sm:$0xff] %v16603_v19  ;;  %21101 = vst [vmem:[#allocation49_spill] sm:$0xff] %v16605_v58  ;;  %v3536_v46 = vcombine.high %v2192_v39, %v2149_v48  ;;  %6848 = vmatmul.mubr.f32.gmra.mxu1 %v5482_v30  ;;  %v3537_v9 = vcombine.low %v2150_v13, %v2089_v21  ;;  %v3538_v5 = vcombine.high %v2150_v13, %v2089_v21  ;;  %v21102_v21 = vld [vmem:[#allocation87_spill] sm:$0xff]  ;;  %v21103_v13 = vld [vmem:[#allocation28_spill] sm:$0xff] }
 0x355   :  { %v3530_v18 = vcombine.high %v3489_v31, %v3517_v10  ;;  %v12655_v6 = vcombine.low %v3414_v56, %v3475_v42  ;;  %v3559_v12 = vrot.slane %v3535_v14, %v15059_v0  ;;  %v1817_v35 = vpop.permute.xlu0 %1816  ;;  %v12657_v39 = vcombine.low %v3489_v31, %v3526_v38  ;;  %6913 = vmatprep.subr.mxu0 %v21091_v49 }
 0x356   :  { %v3566_v26 = vrot.slane %v3536_v46, %v15059_v0  ;;  %v12661_v22 = vcombine.low %v16580_v57, %v3528_v36  ;;  %v3573_v45 = vrot.slane %v3537_v9, %v15059_v0  ;;  %v3580_v28 = vrot.slane %v3538_v5, %v15059_v0  ;;  %v2268_v36 = vld [vmem:[%s20420_s1 + $0x228] sm:$0xff]  ;;  %12844 = vmatprep.subr.mxu1 %v21091_v49 }
 0x357   :  { %v16626_v10 = vsel %vm1485_vm12, %v21102_v21, %v1817_v35  ;;  %v12659_v53 = vcombine.low %v3530_v18, %v3482_v4  ;;  %v3581_v2 = vcombine.low %v16317_v17, %v3559_v12  ;;  %v3582_v56 = vcombine.high %v16317_v17, %v3559_v12  ;;  %v16632_v38 = vpop.permute.xlu1 %2092  ;;  %6914 = vmatpush1.msra.mxu0 %v2268_v36  ;;  %v2267_v12 = vld [vmem:[%s20420_s1 + $0x220] sm:$0xff] }
 0x358   :  { %v3583_v42 = vcombine.low %v16327_v63, %v3566_v26  ;;  %v3584_v31 = vcombine.high %v16327_v63, %v3566_v26  ;;  %v3585_v8 = vcombine.high %v3573_v45, %v3573_v45  ;;  %v3586_v23 = vcombine.high %v3580_v28, %v3580_v28  ;;  %12864 = vmatpush1.msra.mxu1 %v2268_v36 }
 0x359   :  { %v16638_v4 = vrot.slane %v3573_v45, %v15059_v0  ;;  %v16641_v40 = vrot.slane %v3580_v28, %v15059_v0  ;;  %v16645_v17 = vrot.slane %v3581_v2, %v15059_v0  ;;  %v16651_v44 = vrot.slane %v3582_v56, %v15059_v0  ;;  %v2091_v50 = vpop.permute.xlu0 %2090  ;;  %6915 = vmatprep.subr.mxu0 %v21091_v49 }
 0x35a   :  { %v16648_v63 = vrot.slane %v3583_v42, %v15059_v0  ;;  %v16654_v37 = vrot.slane %v3584_v31, %v15059_v0  ;;  %v16658_v1 = vrot.slane %v3585_v8, %v15059_v0  ;;  %v16661_v30 = vrot.slane %v3586_v23, %v15059_v0  ;;  %12845 = vmatprep.subr.mxu1 %v21091_v49 }
 0x35b   :  { %v2151_v48 = vsel %vm2126_vm14, %v2091_v50, %v16632_v38  ;;  %v2193_v14 = vsel %vm2126_vm14, %v21103_v13, %v2091_v50  ;;  %v3643_v46 = vcombine.low %v16645_v17, %v16638_v4  ;;  %v1861_v18 = vpop.permute.xlu1 %1860  ;;  %v5501_v23 = vrot.slane %v12655_v6, %v15059_v0  ;;  %6916 = vmatpush1.msra.mxu0 %v2267_v12 }
 0x35c   :  { %v3645_v9 = vcombine.low %v16648_v63, %v16641_v40  ;;  %v3647_v26 = vcombine.low %v16651_v44, %v16658_v1  ;;  %v3649_v45 = vcombine.low %v16654_v37, %v16661_v30  ;;  %v3653_v56 = vcombine.low %v2193_v14, %v2151_v48  ;;  %12865 = vmatpush1.msra.mxu1 %v2267_v12 }
 0x35d   :  { %v16688_v21 = vcombine.high %v16585_v20, %v3643_v46  ;;  %v3654_v42 = vcombine.high %v2193_v14, %v2151_v48  ;;  %v2095_v31 = vpop.permute.xlu0 %2094  ;;  %v5515_v50 = vrot.slane %v12657_v39, %v15059_v0  ;;  %v5543_v48 = vrot.slane %v12661_v22, %v15059_v0  ;;  %6917 = vmatprep.subr.mxu0 %v21091_v49 }
 0x35e   :  { %v16691_v2 = vcombine.high %v16658_v1, %v3645_v9  ;;  %v12666_v36 = vcombine.high %v3647_v26, %v16638_v4  ;;  %v12670_v8 = vcombine.high %v3649_v45, %v16641_v40  ;;  %v3677_v13 = vrot.slane %v3653_v56, %v15059_v0  ;;  %v2266_v26 = vld [vmem:[%s20420_s1 + $0x218] sm:$0xff]  ;;  %12846 = vmatprep.subr.mxu1 %v21091_v49 }
 0x35f   :  { %21104 = vst [vmem:[#allocation54_spill] sm:$0xff] %v16688_v21  ;;  %v3684_v46 = vrot.slane %v3654_v42, %v15059_v0  ;;  %v5529_v9 = vrot.slane %v12659_v53, %v15059_v0  ;;  %v2099_v14 = vpop.permute.xlu1 %2098  ;;  %v5552_v39 = vcombine.high %v5501_v23, %v5515_v50  ;;  %v5551_v56 = vcombine.low %v5501_v23, %v5515_v50 }
 0x360   :  { %21105 = vst [vmem:[#allocation53_spill] sm:$0xff] %v16691_v2  ;;  %v16706_v45 = vrot.slane %v12666_v36, %v15059_v0  ;;  %v16709_v6 = vrot.slane %v12670_v8, %v15059_v0  ;;  %v3699_v53 = vcombine.low %v16330_v52, %v3677_v13  ;;  %v3700_v22 = vcombine.high %v16330_v52, %v3677_v13 }
 0x361   :  { %v3701_v12 = vcombine.low %v16333_v47, %v3684_v46  ;;  %v3702_v42 = vcombine.high %v16333_v47, %v3684_v46  ;;  %v2097_v43 = vpop.permute.xlu0 %2096  ;;  %v5556_v36 = vcombine.high %v5529_v9, %v5543_v48  ;;  %v5579_v28 = vrot.slane %v5552_v39, %v15059_v0  ;;  %6918 = vmatpush1.msra.mxu0 %v2266_v26 }
 0x362   :  { %21106 = vst [vmem:[#allocation59_spill] sm:$0xff] %v16706_v45  ;;  %21107 = vst [vmem:[#allocation56_spill] sm:$0xff] %v16709_v6  ;;  %v5555_v8 = vcombine.low %v5529_v9, %v5543_v48  ;;  %v5565_v5 = vrot.slane %v5551_v56, %v15059_v0  ;;  %v16720_v23 = vrot.slane %v3699_v53, %v15059_v0  ;;  %v16733_v46 = vpop.f32.mrf.mxu0  ;;  %12866 = vmatpush1.msra.mxu1 %v2266_v26  ;;  %v16742_v53 = vpop.f32.mrf.mxu1 }
 0x363   :  { %v16723_v50 = vrot.slane %v3701_v12, %v15059_v0  ;;  %v16726_v52 = vrot.slane %v3700_v22, %v15059_v0  ;;  %v16729_v47 = vrot.slane %v3702_v42, %v15059_v0  ;;  %v16731_v13 = vpop.permute.xlu1 %2102  ;;  %v5607_v9 = vrot.slane %v5556_v36, %v15059_v0  ;;  %6919 = vmatprep.subr.mxu0 %v21091_v49  ;;  %v2265_v22 = vld [vmem:[%s20420_s1 + $0x210] sm:$0xff] }
 0x364   :  { %v5593_v48 = vrot.slane %v5555_v8, %v15059_v0  ;;  %v1954_v39 = vsel %vm1504_vm13, %v16626_v10, %v16610_v55  ;;  %v2152_v56 = vsel %vm2126_vm14, %v16632_v38, %v2095_v31  ;;  %v2153_v36 = vsel %vm2126_vm14, %v2097_v43, %v2099_v14  ;;  %v6666_v55 = vpop.f32.mrf.mxu0  ;;  %12847 = vmatprep.subr.mxu1 %v21091_v49  ;;  %v6816_v59 = vpop.f32.mrf.mxu1 }
 0x365   :  { %v1960_v26 = vsel %vm1523_vm15, %v1954_v39, %v1861_v18  ;;  %v3655_v12 = vcombine.low %v2152_v56, %v2095_v31  ;;  %v3656_v42 = vcombine.high %v2152_v56, %v2095_v31  ;;  %v16750_v8 = vpop.permute.xlu0 %2100  ;;  %v5618_v10 = vcombine.low %v5579_v28, %v5607_v9  ;;  %v21108_v39 = vld [vmem:[#allocation32_spill] sm:$0xff]  ;;  %v21109_v56 = vld [vmem:[#allocation34_spill] sm:$0xff]  ;;  %6920 = vmatpush1.msra.mxu0 %v2265_v22 }
 0x366   :  { %v5619_v38 = vcombine.high %v5579_v28, %v5607_v9  ;;  %v5615_v35 = vcombine.low %v5565_v5, %v5593_v48  ;;  %v5616_v61 = vcombine.high %v5565_v5, %v5593_v48  ;;  %2070 = vrot.lane.b32.xlu0 %v1960_v26, %s20855_s8  ;;  %v2194_v31 = vsel %vm2126_vm14, %v21108_v39, %v2097_v43 }
 0x367   :  { %v3691_v15 = vrot.slane %v3655_v12, %v15059_v0  ;;  %v3698_v18 = vrot.slane %v3656_v42, %v15059_v0  ;;  %v16761_v55 = vsel %vm2126_vm14, %v21109_v56, %v16731_v13  ;;  %v16763_v27 = vpop.permute.xlu1 %2106  ;;  %6702 = vmatprep.mubr.f32.mxu0 %v5618_v10  ;;  %v3771_v5 = vcombine.low %v2194_v31, %v2153_v36 }
 0x368   :  { %6852 = vmatprep.mubr.f32.mxu1 %v5619_v38  ;;  %v3772_v28 = vcombine.high %v2194_v31, %v2153_v36  ;;  %v2154_v59 = vsel %vm2126_vm14, %v2099_v14, %v16750_v8  ;;  %6703 = vmatmul.mubr.f32.gmra.mxu0 %v5615_v35 }
 0x369   :  { %6853 = vmatmul.mubr.f32.gmra.mxu1 %v5616_v61  ;;  %v3703_v9 = vcombine.high %v3691_v15, %v3691_v15  ;;  %v3704_v48 = vcombine.high %v3698_v18, %v3698_v18  ;;  %v16768_v43 = vrot.slane %v3691_v15, %v15059_v0  ;;  %v16770_v26 = vpop.permute.xlu0 %2104  ;;  %v16773_v12 = vrot.slane %v3698_v18, %v15059_v0  ;;  %v2264_v61 = vld [vmem:[%s20420_s1 + $0x208] sm:$0xff] }
 0x36a   :  { %v3795_v42 = vrot.slane %v3771_v5, %v15059_v0  ;;  %v3802_v10 = vrot.slane %v3772_v28, %v15059_v0  ;;  %v3773_v36 = vcombine.low %v2154_v59, %v16750_v8  ;;  %12867 = vmatpush1.msra.mxu1 %v2265_v22  ;;  %6921 = vmatprep.subr.mxu0 %v21091_v49 }
 0x36b   :  { %v16782_v35 = vrot.slane %v3703_v9, %v15059_v0  ;;  %v16785_v15 = vrot.slane %v3704_v48, %v15059_v0  ;;  %v3761_v14 = vcombine.low %v16720_v23, %v16768_v43  ;;  %v16791_v18 = vpop.permute.xlu1 %2110  ;;  %v3763_v22 = vcombine.low %v16723_v50, %v16773_v12  ;;  %12848 = vmatprep.subr.mxu1 %v21091_v49 }
 0x36c   :  { %v3817_v31 = vcombine.low %v16345_v54, %v3795_v42  ;;  %v3818_v56 = vcombine.high %v16345_v54, %v3795_v42  ;;  %v3819_v48 = vcombine.low %v16384_v62, %v3802_v10  ;;  %6922 = vmatpush1.msra.mxu0 %v2264_v61  ;;  %v3820_v54 = vcombine.high %v16384_v62, %v3802_v10 }
 0x36d   :  { %v3765_v5 = vcombine.low %v16726_v52, %v16782_v35  ;;  %v3767_v28 = vcombine.low %v16729_v47, %v16785_v15  ;;  %v16806_v9 = vcombine.high %v16661_v30, %v3761_v14  ;;  %v16809_v38 = vpop.permute.xlu0 %2108  ;;  %v16812_v39 = vcombine.high %v16782_v35, %v3763_v22  ;;  %12868 = vmatpush1.msra.mxu1 %v2264_v61  ;;  %v2263_v14 = vld [vmem:[%s20420_s1 + $0x200] sm:$0xff] }
 0x36e   :  { %v16816_v42 = vrot.slane %v3817_v31, %v15059_v0  ;;  %v16819_v6 = vrot.slane %v3818_v56, %v15059_v0  ;;  %v16831_v22 = vrot.slane %v3819_v48, %v15059_v0  ;;  %v3774_v62 = vcombine.high %v2154_v59, %v16750_v8  ;;  %6923 = vmatprep.subr.mxu0 %v21091_v49 }
 0x36f   :  { %21110 = vst [vmem:[#allocation57_spill] sm:$0xff] %v16806_v9  ;;  %21111 = vst [vmem:[#allocation58_spill] sm:$0xff] %v16812_v39  ;;  %v16825_v9 = vcombine.high %v3765_v5, %v16768_v43  ;;  %v16828_v7 = vcombine.high %v3767_v28, %v16773_v12  ;;  %v16834_v10 = vpop.permute.xlu1 %2114  ;;  %v16838_v61 = vrot.slane %v3820_v54, %v15059_v0  ;;  %12849 = vmatprep.subr.mxu1 %v21091_v49 }
 0x370   :  { %v3809_v31 = vrot.slane %v3773_v36, %v15059_v0  ;;  %v16843_v56 = vadd.f32 %v16742_v53, %v16733_v46  ;;  %v3532_v5 = vcombine.high %v16580_v57, %v16585_v20  ;;  %v3816_v8 = vrot.slane %v3774_v62, %v15059_v0  ;;  %6924 = vmatpush1.msra.mxu0 %v2263_v14 }
 0x371   :  { %21112 = vst [vmem:[#allocation62_spill] sm:$0xff] %v16825_v9  ;;  %21113 = vst [vmem:[#allocation67_spill] sm:$0xff] %v16828_v7  ;;  %v21115_v59 = vcombine.high %v16645_v17, %v16638_v4  ;;  %v21116_v36 = vcombine.high %v16651_v44, %v16658_v1  ;;  %v21117_v46 = vcombine.high %v16648_v63, %v16641_v40  ;;  %v16861_v57 = vpop.permute.xlu0 %2112  ;;  %12869 = vmatpush1.msra.mxu1 %v2263_v14  ;;  %v2282_v40 = vld [vmem:[%s20420_s1 + $0x298] sm:$0xff] }
 0x372   :  { %21114 = vst [vmem:[#allocation63_spill] sm:$0xff] %v16843_v56  ;;  %v3821_v20 = vcombine.high %v3809_v31, %v3809_v31  ;;  %v16864_v54 = vrot.slane %v3809_v31, %v15059_v0  ;;  %v12663_v4 = vcombine.low %v3532_v5, %v16645_v17  ;;  %v2155_v62 = vsel %vm2126_vm14, %v16731_v13, %v16770_v26  ;;  %v2281_v56 = vld [vmem:[%s20420_s1 + $0x290] sm:$0xff] }
 0x373   :  { %v12665_v28 = vcombine.low %v16651_v44, %v21115_v59  ;;  %v12667_v48 = vcombine.low %v21116_v36, %v16648_v63  ;;  %v12669_v53 = vcombine.low %v16654_v37, %v21117_v46  ;;  %v3822_v63 = vcombine.high %v3816_v8, %v3816_v8  ;;  %v16878_v59 = vpop.permute.xlu1 %2118  ;;  %6949 = vmatprep.subr.mxu0 %v21091_v49 }
 0x374   :  { %v16874_v44 = vrot.slane %v3816_v8, %v15059_v0  ;;  %v16882_v17 = vrot.slane %v3821_v20, %v15059_v0  ;;  %v3879_v13 = vcombine.low %v16816_v42, %v16864_v54  ;;  %v5635_v5 = vrot.slane %v12663_v4, %v15059_v0  ;;  %12850 = vmatprep.subr.mxu1 %v21091_v49 }
 0x375   :  { %v5649_v1 = vrot.slane %v12665_v28, %v15059_v0  ;;  %v5663_v31 = vrot.slane %v12667_v48, %v15059_v0  ;;  %v16891_v8 = vrot.slane %v3822_v63, %v15059_v0  ;;  %v5677_v48 = vrot.slane %v12669_v53, %v15059_v0  ;;  %v16898_v46 = vpop.permute.xlu0 %2116  ;;  %6950 = vmatpush2.msra.mxu0 %v2282_v40 }
 0x376   :  { %v3881_v28 = vcombine.low %v16831_v22, %v16874_v44  ;;  %v3883_v20 = vcombine.low %v16819_v6, %v16882_v17  ;;  %v16903_v4 = vcombine.high %v16785_v15, %v3879_v13  ;;  %12870 = vmatpush2.msra.mxu1 %v2282_v40  ;;  %6951 = vmatprep.subr.mxu0 %v21091_v49 }
 0x377   :  { %v5686_v14 = vcombine.high %v5635_v5, %v5649_v1  ;;  %v5685_v63 = vcombine.low %v5635_v5, %v5649_v1  ;;  %v3885_v36 = vcombine.low %v16838_v61, %v16891_v8  ;;  %v5690_v7 = vcombine.high %v5663_v31, %v5677_v48  ;;  %v16913_v9 = vpop.permute.xlu1 %687  ;;  %12851 = vmatprep.subr.mxu1 %v21091_v49 }
 0x378   :  { %21118 = vst [vmem:[#allocation64_spill] sm:$0xff] %v16903_v4  ;;  %v16911_v53 = vcombine.high %v16882_v17, %v3881_v28  ;;  %v5689_v39 = vcombine.low %v5663_v31, %v5677_v48  ;;  %v16917_v13 = vcombine.high %v3883_v20, %v16864_v54  ;;  %v2156_v5 = vsel %vm2126_vm14, %v16770_v26, %v16763_v27 }
 0x379   :  { %v5713_v40 = vrot.slane %v5686_v14, %v15059_v0  ;;  %v5699_v1 = vrot.slane %v5685_v63, %v15059_v0  ;;  %v16926_v28 = vcombine.high %v3885_v36, %v16874_v44  ;;  %v5741_v31 = vrot.slane %v5690_v7, %v15059_v0  ;;  %v16931_v34 = vpop.permute.xlu0 %327  ;;  %v16933_v14 = vpop.f32.mrf.mxu0  ;;  %6952 = vmatpush2.msra.mxu0 %v2281_v56 }
 0x37a   :  { %21119 = vst [vmem:[#allocation61_spill] sm:$0xff] %v16911_v53  ;;  %21120 = vst [vmem:[#allocation72_spill] sm:$0xff] %v16917_v13  ;;  %v5727_v48 = vrot.slane %v5689_v39, %v15059_v0  ;;  %v3889_v20 = vcombine.low %v16761_v55, %v2155_v62  ;;  %v3890_v63 = vcombine.high %v16761_v55, %v2155_v62  ;;  %v16943_v7 = vpop.f32.mrf.mxu1  ;;  %12871 = vmatpush2.msra.mxu1 %v2281_v56  ;;  %v2280_v56 = vld [vmem:[%s20420_s1 + $0x288] sm:$0xff] }
 0x37b   :  { %21121 = vst [vmem:[#allocation66_spill] sm:$0xff] %v16926_v28  ;;  %v3891_v26 = vcombine.low %v2156_v5, %v16763_v27  ;;  %v3892_v45 = vcombine.high %v2156_v5, %v16763_v27  ;;  %v16941_v36 = vsel %vm2126_vm14, %v16809_v38, %v16791_v18  ;;  %v5752_v39 = vcombine.low %v5713_v40, %v5741_v31  ;;  %v6671_v58 = vpop.f32.mrf.mxu0 }
 0x37c   :  { %v5753_v2 = vcombine.high %v5713_v40, %v5741_v31  ;;  %v5749_v32 = vcombine.low %v5699_v1, %v5727_v48  ;;  %v5750_v21 = vcombine.high %v5699_v1, %v5727_v48  ;;  %6953 = vmatprep.subr.mxu0 %v21091_v49  ;;  %v3913_v55 = vrot.slane %v3889_v20, %v15059_v0  ;;  %v6821_v33 = vpop.f32.mrf.mxu1  ;;  %v21122_v58 = vld [vmem:[#allocation36_spill] sm:$0xff]  ;;  %v21123_v1 = vld [vmem:[#allocation39_spill] sm:$0xff] }
 0x37d   :  { %v3920_v62 = vrot.slane %v3890_v63, %v15059_v0  ;;  %v3927_v27 = vrot.slane %v3891_v26, %v15059_v0  ;;  %v3934_v5 = vrot.slane %v3892_v45, %v15059_v0  ;;  %12852 = vmatprep.subr.mxu1 %v21091_v49  ;;  %6707 = vmatprep.mubr.f32.mxu0 %v5752_v39  ;;  %v16965_v45 = vpop.permute.xlu1 %1822 }
 0x37e   :  { %6857 = vmatprep.mubr.f32.mxu1 %v5753_v2  ;;  %v2196_v40 = vsel %vm2126_vm14, %v21122_v58, %v16809_v38  ;;  %v16960_v31 = vsel %vm2126_vm14, %v21123_v1, %v16834_v10  ;;  %v2158_v33 = vsel %vm2126_vm14, %v16791_v18, %v16861_v57  ;;  %6708 = vmatmul.mubr.f32.gmra.mxu0 %v5749_v32  ;;  %v16974_v58 = vpop.permute.xlu0 %759 }
 0x37f   :  { %6858 = vmatmul.mubr.f32.gmra.mxu1 %v5750_v21  ;;  %v3935_v48 = vcombine.low %v16387_v11, %v3913_v55  ;;  %v3936_v2 = vcombine.high %v16387_v11, %v3913_v55  ;;  %v3937_v20 = vcombine.low %v16396_v51, %v3920_v62  ;;  %v3938_v38 = vcombine.high %v16396_v51, %v3920_v62  ;;  %v2279_v51 = vld [vmem:[%s20420_s1 + $0x280] sm:$0xff] }
 0x380   :  { %v3939_v63 = vcombine.high %v3927_v27, %v3927_v27  ;;  %v3940_v26 = vcombine.high %v3934_v5, %v3934_v5  ;;  %v16972_v39 = vrot.slane %v3927_v27, %v15059_v0  ;;  %6954 = vmatpush2.msra.mxu0 %v2280_v56  ;;  %v16986_v21 = vrot.slane %v3934_v5, %v15059_v0 }
 0x381   :  { %v16977_v18 = vrot.slane %v3935_v48, %v15059_v0  ;;  %v16980_v32 = vrot.slane %v3937_v20, %v15059_v0  ;;  %v16983_v11 = vrot.slane %v3936_v2, %v15059_v0  ;;  %12872 = vmatpush2.msra.mxu1 %v2280_v56  ;;  %v16992_v55 = vrot.slane %v3938_v38, %v15059_v0  ;;  %v17023_v25 = vpop.permute.xlu1 %831 }
 0x382   :  { %v16995_v62 = vrot.slane %v3939_v63, %v15059_v0  ;;  %v16998_v27 = vrot.slane %v3940_v26, %v15059_v0  ;;  %v4007_v1 = vcombine.low %v2196_v40, %v16941_v36  ;;  %6955 = vmatprep.subr.mxu0 %v21091_v49  ;;  %v17010_v20 = vpop.f32.mrf.mxu0  ;;  %v17012_v38 = vpop.f32.mrf.mxu1  ;;  %12853 = vmatprep.subr.mxu1 %v21091_v49 }
 0x383   :  { %v3997_v5 = vcombine.low %v16977_v18, %v16972_v39  ;;  %v3999_v48 = vcombine.low %v16980_v32, %v16986_v21  ;;  %21124 = vst [vmem:[#allocation68_spill] sm:$0xff] %v17012_v38  ;;  %6956 = vmatpush2.msra.mxu0 %v2279_v51  ;;  %v4008_v41 = vcombine.high %v2196_v40, %v16941_v36 }
 0x384   :  { %v4001_v63 = vcombine.low %v16983_v11, %v16995_v62  ;;  %v4003_v56 = vcombine.low %v16992_v55, %v16998_v27  ;;  %v4031_v28 = vrot.slane %v4007_v1, %v15059_v0  ;;  %v6676_v26 = vpop.f32.mrf.mxu0  ;;  %v6826_v53 = vpop.f32.mrf.mxu1  ;;  %12873 = vmatpush2.msra.mxu1 %v2279_v51  ;;  %v4009_v4 = vcombine.low %v2158_v33, %v16861_v57 }
 0x385   :  { %v17026_v2 = vcombine.high %v16891_v8, %v3997_v5  ;;  %v17029_v49 = vcombine.high %v16995_v62, %v3999_v48  ;;  %v4010_v38 = vcombine.high %v2158_v33, %v16861_v57  ;;  %v17037_v5 = vpop.permute.xlu0 %399  ;;  %v4038_v48 = vrot.slane %v4008_v41, %v15059_v0 }
 0x386   :  { %v12690_v13 = vcombine.high %v4001_v63, %v16972_v39  ;;  %v12694_v19 = vcombine.high %v4003_v56, %v16986_v21  ;;  %v4054_v36 = vcombine.high %v16406_v29, %v4031_v28  ;;  %v3766_v53 = vcombine.high %v16726_v52, %v16782_v35 }
 0x387   :  { %21125 = vst [vmem:[#allocation69_spill] sm:$0xff] %v17026_v2  ;;  %21126 = vst [vmem:[#allocation70_spill] sm:$0xff] %v17029_v49  ;;  %v4053_v49 = vcombine.low %v16406_v29, %v4031_v28  ;;  %v4045_v1 = vrot.slane %v4009_v4, %v15059_v0  ;;  %v4052_v57 = vrot.slane %v4010_v38, %v15059_v0  ;;  %v17066_v4 = vpop.permute.xlu1 %471 }
 0x388   :  { %v17045_v40 = vrot.slane %v12690_v13, %v15059_v0  ;;  %v17048_v51 = vrot.slane %v12694_v19, %v15059_v0  ;;  %v4055_v33 = vcombine.low %v16409_v60, %v4038_v48  ;;  %v4056_v41 = vcombine.high %v16409_v60, %v4038_v48 }
 0x389   :  { %v17055_v56 = vrot.slane %v4053_v49, %v15059_v0  ;;  %v17058_v29 = vrot.slane %v4054_v36, %v15059_v0  ;;  %v4057_v35 = vcombine.high %v4045_v1, %v4045_v1  ;;  %v4058_v13 = vcombine.high %v4052_v57, %v4052_v57 }
 0x38a   :  { %21127 = vst [vmem:[#allocation71_spill] sm:$0xff] %v17045_v40  ;;  %21128 = vst [vmem:[#allocation73_spill] sm:$0xff] %v17048_v51  ;;  %v17061_v28 = vrot.slane %v4045_v1, %v15059_v0  ;;  %v17064_v19 = vrot.slane %v4052_v57, %v15059_v0  ;;  %v17069_v38 = vrot.slane %v4055_v33, %v15059_v0 }
 0x38b   :  { %v17072_v60 = vrot.slane %v4056_v41, %v15059_v0  ;;  %v21129_v49 = vcombine.high %v16654_v37, %v16661_v30  ;;  %v21130_v26 = vcombine.high %v16720_v23, %v16768_v43  ;;  %v17083_v36 = vrot.slane %v4057_v35, %v15059_v0  ;;  %v17092_v41 = vpop.permute.xlu0 %1844 }
 0x38c   :  { %v17086_v1 = vrot.slane %v4058_v13, %v15059_v0  ;;  %v4115_v57 = vcombine.low %v17055_v56, %v17061_v28  ;;  %v4117_v37 = vcombine.low %v17069_v38, %v17064_v19 }
 0x38d   :  { %v12671_v63 = vcombine.low %v21129_v49, %v16720_v23  ;;  %v12673_v48 = vcombine.low %v16726_v52, %v21130_v26  ;;  %v12675_v23 = vcombine.low %v3766_v53, %v16723_v50  ;;  %v21131_v52 = vcombine.high %v16723_v50, %v16773_v12 }
 0x38e   :  { %v4119_v35 = vcombine.low %v17058_v29, %v17083_v36  ;;  %v4121_v13 = vcombine.low %v17072_v60, %v17086_v1  ;;  %v17108_v49 = vcombine.high %v16998_v27, %v4115_v57  ;;  %v17112_v30 = vcombine.high %v17083_v36, %v4117_v37  ;;  %v17119_v33 = vpop.f32.mrf.mxu1  ;;  %v17133_v37 = vpop.permute.xlu1 %1063 }
 0x38f   :  { %v12677_v43 = vcombine.low %v16729_v47, %v21131_v52  ;;  %v5769_v26 = vrot.slane %v12671_v63, %v15059_v0  ;;  %v5783_v53 = vrot.slane %v12673_v48, %v15059_v0  ;;  %v5797_v50 = vrot.slane %v12675_v23, %v15059_v0  ;;  %v17117_v52 = vpop.f32.mrf.mxu0  ;;  %21135 = vst [vmem:[#allocation77_spill] sm:$0xff] %v17119_v33  ;;  %v17139_v2 = vpop.permute.xlu0 %889 }
 0x390   :  { %21132 = vst [vmem:[#allocation74_spill] sm:$0xff] %v17108_v49  ;;  %21133 = vst [vmem:[#allocation75_spill] sm:$0xff] %v17112_v30  ;;  %v17122_v51 = vcombine.high %v4119_v35, %v17061_v28  ;;  %v17125_v57 = vcombine.high %v4121_v13, %v17064_v19  ;;  %v2159_v63 = vsel %vm2126_vm14, %v16834_v10, %v16898_v46  ;;  %v6831_v35 = vpop.f32.mrf.mxu1 }
 0x391   :  { %v5811_v12 = vrot.slane %v12677_v43, %v15059_v0  ;;  %21134 = vst [vmem:[#allocation76_spill] sm:$0xff] %v17117_v52  ;;  %v2160_v48 = vsel %vm2126_vm14, %v16898_v46, %v16878_v59  ;;  %v5820_v23 = vcombine.high %v5769_v26, %v5783_v53  ;;  %v5819_v30 = vcombine.low %v5769_v26, %v5783_v53  ;;  %v6681_v40 = vpop.f32.mrf.mxu0 }
 0x392   :  { %21136 = vst [vmem:[#allocation78_spill] sm:$0xff] %v17122_v51  ;;  %21137 = vst [vmem:[#allocation81_spill] sm:$0xff] %v17125_v57  ;;  %v4125_v51 = vcombine.low %v16960_v31, %v2159_v63  ;;  %v4126_v13 = vcombine.high %v16960_v31, %v2159_v63  ;;  %v4127_v57 = vcombine.low %v2160_v48, %v16878_v59  ;;  %v17153_v35 = vpop.permute.xlu1 %1866 }
 0x393   :  { %v5824_v43 = vcombine.high %v5797_v50, %v5811_v12  ;;  %v5823_v49 = vcombine.low %v5797_v50, %v5811_v12  ;;  %v4128_v10 = vcombine.high %v2160_v48, %v16878_v59  ;;  %v5847_v46 = vrot.slane %v5820_v23, %v15059_v0 }
 0x394   :  { %v5833_v52 = vrot.slane %v5819_v30, %v15059_v0  ;;  %v4149_v40 = vrot.slane %v4125_v51, %v15059_v0  ;;  %v4156_v53 = vrot.slane %v4126_v13, %v15059_v0  ;;  %v4163_v31 = vrot.slane %v4127_v57, %v15059_v0 }
 0x395   :  { %v5875_v33 = vrot.slane %v5824_v43, %v15059_v0  ;;  %v5861_v26 = vrot.slane %v5823_v49, %v15059_v0  ;;  %v4170_v50 = vrot.slane %v4128_v10, %v15059_v0 }
 0x396   :  { %v4171_v23 = vcombine.low %v16418_v3, %v4149_v40  ;;  %v4172_v43 = vcombine.high %v16418_v3, %v4149_v40  ;;  %v4173_v30 = vcombine.low %v16448_v24, %v4156_v53  ;;  %v4174_v49 = vcombine.high %v16448_v24, %v4156_v53 }
 0x397   :  { %v5886_v12 = vcombine.low %v5847_v46, %v5875_v33  ;;  %v5887_v59 = vcombine.high %v5847_v46, %v5875_v33  ;;  %v5883_v63 = vcombine.low %v5833_v52, %v5861_v26  ;;  %v5884_v48 = vcombine.high %v5833_v52, %v5861_v26  ;;  %v52_v33 = vld [vmem:[%s20419_s0 + $0xa0] sm:$0x1]  ;;  %v17161_v52 = vpop.f32.mrf.mxu0  ;;  %v17163_v3 = vpop.f32.mrf.mxu1  ;;  %s13007_s0 = smov 120  }
 0x398   :  { %v4175_v51 = vcombine.high %v4163_v31, %v4163_v31  ;;  %v4176_v57 = vcombine.high %v4170_v50, %v4170_v50  ;;  %v17156_v13 = vrot.slane %v4163_v31, %v15059_v0  ;;  %v17166_v24 = vrot.slane %v4171_v23, %v15059_v0  ;;  %v17174_v26 = vpop.permute.xlu0 %1121 }
 0x399   :  { %6712 = vmatprep.mubr.f32.mxu0 %v5886_v12  ;;  %6862 = vmatprep.mubr.f32.mxu1 %v5887_v59  ;;  %v17169_v10 = vrot.slane %v4173_v30, %v15059_v0  ;;  %v17172_v46 = vrot.slane %v4172_v43, %v15059_v0  ;;  %v17177_v40 = vrot.slane %v4174_v49, %v15059_v0  ;;  %v6686_v59 = vpop.f32.mrf.mxu0 }
 0x39a   :  { %6713 = vmatmul.mubr.f32.gmra.mxu0 %v5883_v63  ;;  %6863 = vmatmul.mubr.f32.gmra.mxu1 %v5884_v48  ;;  %v17180_v53 = vrot.slane %v4170_v50, %v15059_v0  ;;  %v17183_v31 = vrot.slane %v4175_v51, %v15059_v0  ;;  %v17186_v12 = vrot.slane %v4176_v57, %v15059_v0  ;;  %v6836_v63 = vpop.f32.mrf.mxu1 }
 0x39b   :  { %v4233_v48 = vcombine.low %v17166_v24, %v17156_v13  ;;  %v1275_v43 = vsel %vm1257_vm0, %v52_v33, %v16931_v34  ;;  %v17196_v50 = vadd.f32 %v16943_v7, %v16933_v14  ;;  %v3768_v14 = vcombine.high %v16729_v47, %v16785_v15  ;;  %v17215_v33 = vpop.permute.xlu1 %947 }
 0x39c   :  { %v4235_v30 = vcombine.low %v17169_v10, %v17180_v53  ;;  %v4237_v51 = vcombine.low %v17172_v46, %v17183_v31  ;;  %v4239_v59 = vcombine.low %v17177_v40, %v17186_v12  ;;  %v3884_v7 = vcombine.high %v16819_v6, %v16882_v17 }
 0x39d   :  { %21138 = vst [vmem:[#allocation79_spill] sm:$0xff] %v17196_v50  ;;  %v17209_v34 = vcombine.high %v17086_v1, %v4233_v48  ;;  %v21139_v57 = vcombine.high %v16816_v42, %v16864_v54  ;;  %v21140_v48 = vcombine.high %v16831_v22, %v16874_v44  ;;  %v12679_v17 = vcombine.low %v3768_v14, %v16816_v42 }
 0x39e   :  { %v12706_v63 = vcombine.high %v4237_v51, %v17156_v13  ;;  %v17219_v49 = vcombine.high %v17183_v31, %v4235_v30  ;;  %v12710_v15 = vcombine.high %v4239_v59, %v17180_v53  ;;  %v12683_v50 = vcombine.low %v3884_v7, %v16831_v22 }
 0x39f   :  { %v12681_v23 = vcombine.low %v16819_v6, %v21139_v57  ;;  %v12685_v47 = vcombine.low %v16838_v61, %v21140_v48  ;;  %v1951_v30 = vsel %vm1485_vm12, %v21081_v16, %v16965_v45  ;;  %v1389_v44 = vsel %vm1371_vm2, %v16913_v9, %v16974_v58  ;;  %v17243_v57 = vpop.permute.xlu0 %543 }
 0x3a0   :  { %v17236_v51 = vrot.slane %v12706_v63, %v15059_v0  ;;  %v17246_v42 = vrot.slane %v12710_v15, %v15059_v0  ;;  %v5903_v22 = vrot.slane %v12679_v17, %v15059_v0  ;;  %v5931_v16 = vrot.slane %v12683_v50, %v15059_v0  ;;  %v17266_v48 = vpop.f32.mrf.mxu0  ;;  %v17268_v15 = vpop.permute.xlu1 %615 }
 0x3a1   :  { %v5917_v6 = vrot.slane %v12681_v23, %v15059_v0  ;;  %v5945_v54 = vrot.slane %v12685_v47, %v15059_v0  ;;  %v3886_v45 = vcombine.high %v16838_v61, %v16891_v8  ;;  %v21141_v23 = vcombine.high %v16977_v18, %v16972_v39 }
 0x3a2   :  { %v21142_v58 = vcombine.high %v16983_v11, %v16995_v62  ;;  %v21143_v7 = vcombine.high %v16980_v32, %v16986_v21  ;;  %v1408_v50 = vsel %vm1390_vm4, %v1389_v44, %v17023_v25  ;;  %v17274_v21 = vpop.f32.mrf.mxu1  ;;  %vm6558_vm0 = vcmask 261120  }
 0x3a3   :  { %v12689_v59 = vcombine.low %v16983_v11, %v21141_v23  ;;  %v5954_v61 = vcombine.high %v5903_v22, %v5917_v6  ;;  %v5958_v8 = vcombine.high %v5931_v16, %v5945_v54  ;;  %v5953_v39 = vcombine.low %v5903_v22, %v5917_v6  ;;  %v6691_v23 = vpop.f32.mrf.mxu0 }
 0x3a4   :  { %v12691_v14 = vcombine.low %v21142_v58, %v16980_v32  ;;  %v12693_v63 = vcombine.low %v16992_v55, %v21143_v7  ;;  %v5957_v47 = vcombine.low %v5931_v16, %v5945_v54  ;;  %v12687_v17 = vcombine.low %v3886_v45, %v16977_v18  ;;  %v6841_v58 = vpop.f32.mrf.mxu1 }
 0x3a5   :  { %v6051_v11 = vrot.slane %v12689_v59, %v15059_v0  ;;  %v5981_v25 = vrot.slane %v5954_v61, %v15059_v0  ;;  %v6009_v44 = vrot.slane %v5958_v8, %v15059_v0  ;;  %v5967_v6 = vrot.slane %v5953_v39, %v15059_v0  ;;  %v17283_v59 = vpop.permute.xlu0 %1179 }
 0x3a6   :  { %v6065_v62 = vrot.slane %v12691_v14, %v15059_v0  ;;  %v6079_v32 = vrot.slane %v12693_v63, %v15059_v0  ;;  %v5995_v54 = vrot.slane %v5957_v47, %v15059_v0  ;;  %v6037_v22 = vrot.slane %v12687_v17, %v15059_v0  ;;  %v21144_v17 = vld [vmem:[#allocation68_spill] sm:$0xff] }
 0x3a7   :  { %v1294_v45 = vsel %vm1276_vm1, %v1275_v43, %v17037_v5  ;;  %v6020_v14 = vcombine.low %v5981_v25, %v6009_v44  ;;  %v6021_v7 = vcombine.high %v5981_v25, %v6009_v44  ;;  %v1957_v43 = vsel %vm1504_vm13, %v1951_v30, %v17092_v41 }
 0x3a8   :  { %v6092_v18 = vcombine.high %v6065_v62, %v6079_v32  ;;  %v6091_v16 = vcombine.low %v6065_v62, %v6079_v32  ;;  %v6017_v63 = vcombine.low %v5967_v6, %v5995_v54  ;;  %v6018_v61 = vcombine.high %v5967_v6, %v5995_v54  ;;  %v17297_v32 = vpop.permute.xlu1 %1237 }
 0x3a9   :  { %v6088_v23 = vcombine.high %v6037_v22, %v6051_v11  ;;  %v6087_v39 = vcombine.low %v6037_v22, %v6051_v11  ;;  %6717 = vmatprep.mubr.f32.mxu0 %v6020_v14  ;;  %6867 = vmatprep.mubr.f32.mxu1 %v6021_v7  ;;  %v17289_v62 = vadd.f32 %v21144_v17, %v17010_v20  ;;  %v1006_v58 = vpop.permute.xlu0 %1005  ;;  %vm8862_vm1 = vcmask 64512  }
 0x3aa   :  { %v6143_v8 = vrot.slane %v6092_v18, %v15059_v0  ;;  %v6129_v47 = vrot.slane %v6091_v16, %v15059_v0  ;;  %v17293_v5 = vsel %vm1295_vm3, %v1294_v45, %v17066_v4  ;;  %6718 = vmatmul.mubr.f32.gmra.mxu0 %v6017_v63  ;;  %6868 = vmatmul.mubr.f32.gmra.mxu1 %v6018_v61  ;;  %vm8871_vm2 = vcmask 57344  }
 0x3ab   :  { %v6115_v11 = vrot.slane %v6088_v23, %v15059_v0  ;;  %v6101_v25 = vrot.slane %v6087_v39, %v15059_v0  ;;  %v4120_v44 = vcombine.high %v17058_v29, %v17083_v36  ;;  %v21145_v20 = vcombine.high %v16992_v55, %v16998_v27 }
 0x3ac   :  { %v21146_v6 = vcombine.high %v17055_v56, %v17061_v28  ;;  %v21147_v30 = vcombine.high %v17069_v38, %v17064_v19  ;;  %v1427_v22 = vsel %vm1409_vm6, %v1408_v50, %v17139_v2  ;;  %v4122_v28 = vcombine.high %v17072_v60, %v17086_v1  ;;  %v17332_v61 = vpop.permute.xlu1 %2122 }
 0x3ad   :  { %v12695_v4 = vcombine.low %v21145_v20, %v17055_v56  ;;  %v6154_v18 = vcombine.low %v6115_v11, %v6143_v8  ;;  %v6155_v36 = vcombine.high %v6115_v11, %v6143_v8  ;;  %v6151_v16 = vcombine.low %v6101_v25, %v6129_v47  ;;  %v21151_v20 = vld [vmem:[#allocation76_spill] sm:$0xff] }
 0x3ae   :  { %v12697_v41 = vcombine.low %v17058_v29, %v21146_v6  ;;  %v12701_v54 = vcombine.low %v17072_v60, %v21147_v30  ;;  %v6152_v45 = vcombine.high %v6101_v25, %v6129_v47  ;;  %v12699_v55 = vcombine.low %v4120_v44, %v17069_v38 }
 0x3af   :  { %v6171_v27 = vrot.slane %v12695_v4, %v15059_v0  ;;  %6722 = vmatprep.mubr.f32.mxu0 %v6154_v18  ;;  %6872 = vmatprep.mubr.f32.mxu1 %v6155_v36  ;;  %v21148_v2 = vcombine.high %v17166_v24, %v17156_v13  ;;  %v21149_v38 = vcombine.high %v17172_v46, %v17183_v31  ;;  %v21152_v4 = vld [vmem:[#allocation77_spill] sm:$0xff] }
 0x3b0   :  { %v6185_v56 = vrot.slane %v12697_v41, %v15059_v0  ;;  %v6213_v29 = vrot.slane %v12701_v54, %v15059_v0  ;;  %6723 = vmatmul.mubr.f32.gmra.mxu0 %v6151_v16  ;;  %6873 = vmatmul.mubr.f32.gmra.mxu1 %v6152_v45  ;;  %v6199_v14 = vrot.slane %v12699_v55, %v15059_v0  ;;  %v2029_v45 = vpop.permute.xlu1 %2028 }
 0x3b1   :  { %v12705_v19 = vcombine.low %v17172_v46, %v21148_v2  ;;  %v12707_v50 = vcombine.low %v21149_v38, %v17169_v10  ;;  %v12703_v60 = vcombine.low %v4122_v28, %v17166_v24  ;;  %v21150_v1 = vcombine.high %v17169_v10, %v17180_v53  ;;  %v2121_v53 = vpop.permute.xlu0 %2120 }
 0x3b2   :  { %v6222_v7 = vcombine.high %v6171_v27, %v6185_v56  ;;  %v6221_v63 = vcombine.low %v6171_v27, %v6185_v56  ;;  %v6226_v31 = vcombine.high %v6199_v14, %v6213_v29  ;;  %v6225_v39 = vcombine.low %v6199_v14, %v6213_v29 }
 0x3b3   :  { %v12709_v13 = vcombine.low %v17177_v40, %v21150_v1  ;;  %v6319_v23 = vrot.slane %v12705_v19, %v15059_v0  ;;  %v6333_v46 = vrot.slane %v12707_v50, %v15059_v0  ;;  %v6305_v17 = vrot.slane %v12703_v60, %v15059_v0 }
 0x3b4   :  { %v6249_v8 = vrot.slane %v6222_v7, %v15059_v0  ;;  %v6235_v47 = vrot.slane %v6221_v63, %v15059_v0  ;;  %v1963_v24 = vsel %vm1523_vm15, %v1957_v43, %v17153_v35  ;;  %v1503_v10 = vsel %vm1485_vm12, %v17133_v37, %v17174_v26 }
 0x3b5   :  { %v6347_v11 = vrot.slane %v12709_v13, %v15059_v0  ;;  %v6277_v25 = vrot.slane %v6226_v31, %v15059_v0  ;;  %v6263_v44 = vrot.slane %v6225_v39, %v15059_v0  ;;  %v17354_v6 = vadd.f32 %v21152_v4, %v21151_v20  ;;  %2124 = vrot.lane.b32.xlu1 %v1963_v24, %s20855_s8  ;;  %v2023_v50 = vpop.permute.xlu0 %2022  ;;  %v2041_v13 = vpop.permute.xlu1 %2040  ;;  %v21155_v24 = vld [vmem:[#allocation31_spill] sm:$0xff] }
 0x3b6   :  { %v1446_v41 = vsel %vm1428_vm8, %v1427_v22, %v17215_v33  ;;  %v6356_v30 = vcombine.high %v6305_v17, %v6319_v23  ;;  %v6355_v43 = vcombine.low %v6305_v17, %v6319_v23  ;;  %v1332_v33 = vsel %vm1314_vm5, %v17293_v5, %v17243_v57 }
 0x3b7   :  { %v6360_v35 = vcombine.high %v6333_v46, %v6347_v11  ;;  %v6359_v54 = vcombine.low %v6333_v46, %v6347_v11  ;;  %v6288_v18 = vcombine.low %v6249_v8, %v6277_v25  ;;  %v6289_v26 = vcombine.high %v6249_v8, %v6277_v25 }
 0x3b8   :  { %v6285_v36 = vcombine.low %v6235_v47, %v6263_v44  ;;  %v6286_v16 = vcombine.high %v6235_v47, %v6263_v44  ;;  %v6383_v55 = vrot.slane %v6356_v30, %v15059_v0  ;;  %v6369_v56 = vrot.slane %v6355_v43, %v15059_v0 }
 0x3b9   :  { %v6411_v27 = vrot.slane %v6360_v35, %v15059_v0  ;;  %v6397_v29 = vrot.slane %v6359_v54, %v15059_v0  ;;  %6727 = vmatprep.mubr.f32.mxu0 %v6288_v18  ;;  %6877 = vmatprep.mubr.f32.mxu1 %v6289_v26  ;;  %v1522_v22 = vsel %vm1504_vm13, %v1503_v10, %v17283_v59  ;;  %vm11637_vm8 = vcmask 1040384  }
 0x3ba   :  { %v17370_v28 = vadd.f32 %v17163_v3, %v17161_v52  ;;  %6728 = vmatmul.mubr.f32.gmra.mxu0 %v6285_v36  ;;  %6878 = vmatmul.mubr.f32.gmra.mxu1 %v6286_v16  ;;  %v1351_v7 = vsel %vm1333_vm7, %v1332_v33, %v17268_v15  ;;  %v1541_v57 = vsel %vm1523_vm15, %v1522_v22, %v17297_v32  ;;  %v21153_v15 = vld [vmem:[#allocation17_spill] sm:$0xff]  ;;  %v21154_v32 = vld [vmem:[#allocation15_spill] sm:$0xff]  ;;  %vm12023_vm12 = vcmask 392192  }
 0x3bb   :  { %v6422_v2 = vcombine.low %v6383_v55, %v6411_v27  ;;  %v6423_v19 = vcombine.high %v6383_v55, %v6411_v27  ;;  %v6419_v38 = vcombine.low %v6369_v56, %v6397_v29  ;;  %v6420_v14 = vcombine.high %v6369_v56, %v6397_v29 }
 0x3bc   :  { %v1465_v5 = vsel %vm1447_vm9, %v1446_v41, %v1006_v58  ;;  %v1370_v52 = vsel %vm1352_vm11, %v1351_v7, %v16913_v9  ;;  %v2161_v59 = vsel %vm2126_vm14, %v2121_v53, %v17332_v61  ;;  %v2198_v60 = vsel %vm2126_vm14, %v1541_v57, %v2121_v53 }
 0x3bd   :  { %6732 = vmatprep.mubr.f32.mxu0 %v6422_v2  ;;  %6882 = vmatprep.mubr.f32.mxu1 %v6423_v19  ;;  %v1484_v3 = vsel %vm1466_vm10, %v1465_v5, %v17133_v37  ;;  %v2130_v1 = vsel %vm2126_vm14, %v21153_v15, %v2029_v45  ;;  %v2128_v58 = vsel %vm2126_vm14, %v21154_v32, %v2023_v50  ;;  %vm12013_vm9 = vcmask 130048  }
 0x3be   :  { %v4241_v63 = vcombine.low %v1370_v52, %v1484_v3  ;;  %6733 = vmatmul.mubr.f32.gmra.mxu0 %v6419_v38  ;;  %6883 = vmatmul.mubr.f32.gmra.mxu1 %v6420_v14  ;;  %v4242_v23 = vcombine.low %v2198_v60, %v2161_v59  ;;  %v2435_v9 = vcombine.low %v2130_v1, %v2029_v45  ;;  %v2053_v59 = vpop.permute.xlu1 %2052  ;;  %vm12016_vm10 = vcmask 195584  }
 0x3bf   :  { %v2436_v46 = vcombine.high %v2130_v1, %v2029_v45  ;;  %v2317_v31 = vcombine.low %v2128_v58, %v2023_v50  ;;  %v2318_v8 = vcombine.high %v2128_v58, %v2023_v50  ;;  %v17391_v39 = vadd.f32 %v17274_v21, %v17266_v48  ;;  %v2035_v45 = vpop.permute.xlu0 %2034 }
 0x3c0   :  { %v4250_v37 = vrot.slane %v4241_v63, %v15059_v0  ;;  %v4257_v47 = vrot.slane %v4242_v23, %v15059_v0  ;;  %v2471_v17 = vrot.slane %v2435_v9, %v15059_v0  ;;  %v2134_v10 = vsel %vm2126_vm14, %v21155_v24, %v2041_v13 }
 0x3c1   :  { %v2478_v11 = vrot.slane %v2436_v46, %v15059_v0  ;;  %v2353_v53 = vrot.slane %v2317_v31, %v15059_v0  ;;  %v2360_v25 = vrot.slane %v2318_v8, %v15059_v0  ;;  %v2671_v44 = vcombine.low %v2134_v10, %v2041_v13  ;;  %v21156_v31 = vld [vmem:[#allocation25_spill] sm:$0xff] }
 0x3c2   :  { %v2672_v20 = vcombine.high %v2134_v10, %v2041_v13  ;;  %v4265_v4 = vcombine.low %v4250_v37, %v4257_v47  ;;  %v2483_v41 = vcombine.high %v2471_v17, %v2471_v17  ;;  %v2519_v48 = vrot.slane %v2471_v17, %v15059_v0  ;;  %v21157_v47 = vld [vmem:[#allocation38_spill] sm:$0xff] }
 0x3c3   :  { %v2484_v30 = vcombine.high %v2478_v11, %v2478_v11  ;;  %v2526_v21 = vrot.slane %v2478_v11, %v15059_v0  ;;  %v2365_v35 = vcombine.high %v2353_v53, %v2353_v53  ;;  %v2366_v43 = vcombine.high %v2360_v25, %v2360_v25  ;;  %v17439_v9 = vpop.permute.xlu0 %2046 }
 0x3c4   :  { %v2401_v54 = vrot.slane %v2353_v53, %v15059_v0  ;;  %v17404_v18 = vrot.slane %v4265_v4, %v15059_v0  ;;  %v2533_v26 = vrot.slane %v2483_v41, %v15059_v0  ;;  %v2408_v16 = vrot.slane %v2360_v25, %v15059_v0 }
 0x3c5   :  { %v2540_v36 = vrot.slane %v2484_v30, %v15059_v0  ;;  %v2415_v55 = vrot.slane %v2365_v35, %v15059_v0  ;;  %v2422_v27 = vrot.slane %v2366_v43, %v15059_v0  ;;  %v2707_v56 = vrot.slane %v2671_v44, %v15059_v0 }
 0x3c6   :  { %v2714_v29 = vrot.slane %v2672_v20, %v15059_v0  ;;  %v12592_v33 = vcombine.low %v2519_v48, %v2533_v26  ;;  %v12594_v22 = vcombine.high %v2519_v48, %v2533_v26  ;;  %v2132_v8 = vsel %vm2126_vm14, %v21156_v31, %v2035_v45  ;;  %v21158_v20 = vld [vmem:[#allocation33_spill] sm:$0xff] }
 0x3c7   :  { %v12596_v2 = vcombine.low %v2526_v21, %v2540_v36  ;;  %v12598_v19 = vcombine.high %v2526_v21, %v2540_v36  ;;  %v12584_v38 = vcombine.low %v2401_v54, %v2415_v55  ;;  %v12586_v50 = vcombine.high %v2401_v54, %v2415_v55 }
 0x3c8   :  { %v12588_v14 = vcombine.low %v2408_v16, %v2422_v27  ;;  %v12590_v7 = vcombine.high %v2408_v16, %v2422_v27  ;;  %v17414_v57 = vrot.slane %v12592_v33, %v15059_v0  ;;  %v17417_v5 = vrot.slane %v12594_v22, %v15059_v0 }
 0x3c9   :  { %v17420_v52 = vrot.slane %v12596_v2, %v15059_v0  ;;  %v17423_v3 = vrot.slane %v12598_v19, %v15059_v0  ;;  %v17426_v63 = vrot.slane %v12584_v38, %v15059_v0  ;;  %v17429_v60 = vrot.slane %v12586_v50, %v15059_v0 }
 0x3ca   :  { %v17432_v15 = vrot.slane %v12588_v14, %v15059_v0  ;;  %v17435_v1 = vrot.slane %v12590_v7, %v15059_v0  ;;  %v2719_v32 = vcombine.high %v2707_v56, %v2707_v56  ;;  %v2720_v58 = vcombine.high %v2714_v29, %v2714_v29  ;;  %v17474_v22 = vpop.f32.mrf.mxu0 }
 0x3cb   :  { %v2755_v13 = vrot.slane %v2707_v56, %v15059_v0  ;;  %v2762_v23 = vrot.slane %v2714_v29, %v15059_v0  ;;  %v4347_v46 = vcombine.low %v17426_v63, %v17429_v60  ;;  %v2138_v17 = vsel %vm2126_vm14, %v21157_v47, %v2053_v59  ;;  %v17476_v2 = vpop.f32.mrf.mxu1 }
 0x3cc   :  { %v4351_v37 = vcombine.low %v17432_v15, %v17435_v1  ;;  %v2769_v11 = vrot.slane %v2719_v32, %v15059_v0  ;;  %v2776_v24 = vrot.slane %v2720_v58, %v15059_v0  ;;  %v2553_v10 = vcombine.low %v2132_v8, %v2035_v45 }
 0x3cd   :  { %v2554_v53 = vcombine.high %v2132_v8, %v2035_v45  ;;  %v2907_v25 = vcombine.low %v2138_v17, %v2053_v59  ;;  %v2908_v44 = vcombine.high %v2138_v17, %v2053_v59  ;;  %v2136_v4 = vsel %vm2126_vm14, %v21158_v20, %v17439_v9  ;;  %v21159_v17 = vld [vmem:[#allocation64_spill] sm:$0xff] }
 0x3ce   :  { %v4240_v41 = vcombine.high %v17177_v40, %v17186_v12  ;;  %v12608_v30 = vcombine.low %v2755_v13, %v2769_v11  ;;  %v12610_v48 = vcombine.high %v2755_v13, %v2769_v11  ;;  %v12612_v21 = vcombine.low %v2762_v23, %v2776_v24  ;;  %v6696_v13 = vpop.f32.mrf.mxu0 }
 0x3cf   :  { %v12614_v35 = vcombine.high %v2762_v23, %v2776_v24  ;;  %v2589_v43 = vrot.slane %v2553_v10, %v15059_v0  ;;  %v2596_v54 = vrot.slane %v2554_v53, %v15059_v0  ;;  %v2943_v26 = vrot.slane %v2907_v25, %v15059_v0  ;;  %v6846_v23 = vpop.f32.mrf.mxu1 }
 0x3d0   :  { %v2950_v36 = vrot.slane %v2908_v44, %v15059_v0  ;;  %v17461_v16 = vrot.slane %v12608_v30, %v15059_v0  ;;  %v17464_v45 = vrot.slane %v12610_v48, %v15059_v0  ;;  %v17467_v40 = vrot.slane %v12612_v21, %v15059_v0 }
 0x3d1   :  { %v17470_v55 = vrot.slane %v12614_v35, %v15059_v0  ;;  %v2601_v27 = vcombine.high %v2589_v43, %v2589_v43  ;;  %v2602_v56 = vcombine.high %v2596_v54, %v2596_v54  ;;  %v2637_v29 = vrot.slane %v2589_v43, %v15059_v0  ;;  %v2059_v35 = vpop.permute.xlu0 %2058 }
 0x3d2   :  { %v2644_v33 = vrot.slane %v2596_v54, %v15059_v0  ;;  %v2955_v19 = vcombine.high %v2943_v26, %v2943_v26  ;;  %v2956_v38 = vcombine.high %v2950_v36, %v2950_v36  ;;  %v2991_v50 = vrot.slane %v2943_v26, %v15059_v0 }
 0x3d3   :  { %v2998_v14 = vrot.slane %v2950_v36, %v15059_v0  ;;  %v2651_v7 = vrot.slane %v2601_v27, %v15059_v0  ;;  %v2658_v59 = vrot.slane %v2602_v56, %v15059_v0  ;;  %v2789_v32 = vcombine.low %v2136_v4, %v17439_v9 }
 0x3d4   :  { %v2790_v58 = vcombine.high %v2136_v4, %v17439_v9  ;;  %v3005_v31 = vrot.slane %v2955_v19, %v15059_v0  ;;  %v3012_v8 = vrot.slane %v2956_v38, %v15059_v0  ;;  %v12711_v47 = vcombine.low %v4240_v41, %v17404_v18  ;;  %v21161_v38 = vld [vmem:[#allocation61_spill] sm:$0xff] }
 0x3d5   :  { %v17489_v11 = vrot.slane %v21159_v17, %v15059_v0  ;;  %v12600_v24 = vcombine.low %v2637_v29, %v2651_v7  ;;  %v12602_v10 = vcombine.high %v2637_v29, %v2651_v7  ;;  %v12604_v53 = vcombine.low %v2644_v33, %v2658_v59 }
 0x3d6   :  { %v12606_v25 = vcombine.high %v2644_v33, %v2658_v59  ;;  %v12624_v44 = vcombine.low %v2991_v50, %v3005_v31  ;;  %v12626_v20 = vcombine.high %v2991_v50, %v3005_v31  ;;  %v12628_v30 = vcombine.low %v2998_v14, %v3012_v8  ;;  %v21160_v33 = vld [vmem:[#allocation72_spill] sm:$0xff]  ;;  %v21163_v59 = vld [vmem:[#allocation27_spill] sm:$0xff] }
 0x3d7   :  { %v12630_v9 = vcombine.high %v2998_v14, %v3012_v8  ;;  %v17492_v4 = vrot.slane %v12600_v24, %v15059_v0  ;;  %v17495_v48 = vrot.slane %v12602_v10, %v15059_v0  ;;  %v17498_v41 = vrot.slane %v12604_v53, %v15059_v0  ;;  %v21162_v14 = vld [vmem:[#allocation66_spill] sm:$0xff] }
 0x3d8   :  { %v17501_v21 = vrot.slane %v12606_v25, %v15059_v0  ;;  %v17504_v43 = vrot.slane %v12624_v44, %v15059_v0  ;;  %v17507_v54 = vrot.slane %v12626_v20, %v15059_v0  ;;  %v17510_v26 = vrot.slane %v12628_v30, %v15059_v0 }
 0x3d9   :  { %v17513_v36 = vrot.slane %v12630_v9, %v15059_v0  ;;  %v2825_v27 = vrot.slane %v2789_v32, %v15059_v0  ;;  %v2832_v56 = vrot.slane %v2790_v58, %v15059_v0  ;;  %v6433_v29 = vrot.slane %v12711_v47, %v15059_v0 }
 0x3da   :  { %v5924_v19 = vrot.slane %v21160_v33, %v15059_v0  ;;  %v5938_v50 = vrot.slane %v21161_v38, %v15059_v0  ;;  %v5952_v7 = vrot.slane %v21162_v14, %v15059_v0  ;;  %v2140_v13 = vsel %vm2126_vm14, %v21163_v59, %v2059_v35 }
 0x3db   :  { %v4348_v32 = vcombine.high %v17426_v63, %v17429_v60  ;;  %v2837_v23 = vcombine.high %v2825_v27, %v2825_v27  ;;  %v2838_v58 = vcombine.high %v2832_v56, %v2832_v56  ;;  %v2873_v31 = vrot.slane %v2825_v27, %v15059_v0 }
 0x3dc   :  { %v2880_v8 = vrot.slane %v2832_v56, %v15059_v0  ;;  %v6441_v47 = vcombine.high %v6433_v29, %v6433_v29  ;;  %v6449_v17 = vrot.slane %v6433_v29, %v15059_v0  ;;  %v5955_v24 = vcombine.low %v17489_v11, %v5924_v19 }
 0x3dd   :  { %v5956_v10 = vcombine.high %v17489_v11, %v5924_v19  ;;  %v2887_v53 = vrot.slane %v2837_v23, %v15059_v0  ;;  %v2894_v25 = vrot.slane %v2838_v58, %v15059_v0  ;;  %v5959_v44 = vcombine.low %v5938_v50, %v5952_v7 }
 0x3de   :  { %v5960_v20 = vcombine.high %v5938_v50, %v5952_v7  ;;  %v6463_v30 = vrot.slane %v6441_v47, %v15059_v0  ;;  %v6471_v9 = vcombine.high %v6449_v17, %v6449_v17  ;;  %v3025_v33 = vcombine.low %v2140_v13, %v2059_v35 }
 0x3df   :  { %v5988_v27 = vrot.slane %v5956_v10, %v15059_v0  ;;  %v12616_v56 = vcombine.low %v2873_v31, %v2887_v53  ;;  %v12618_v38 = vcombine.high %v2873_v31, %v2887_v53  ;;  %v12620_v14 = vcombine.low %v2880_v8, %v2894_v25 }
 0x3e0   :  { %v12622_v29 = vcombine.high %v2880_v8, %v2894_v25  ;;  %6737 = vmatprep.mubr.f32.mxu0 %v6463_v30  ;;  %v6472_v59 = vcombine.high %v6463_v30, %v6463_v30  ;;  %v6016_v11 = vrot.slane %v5960_v20, %v15059_v0  ;;  %v3026_v19 = vcombine.high %v2140_v13, %v2059_v35 }
 0x3e1   :  { %v3061_v23 = vrot.slane %v3025_v33, %v15059_v0  ;;  %v17540_v58 = vrot.slane %v12616_v56, %v15059_v0  ;;  %v17543_v50 = vrot.slane %v12618_v38, %v15059_v0  ;;  %v17546_v7 = vrot.slane %v12620_v14, %v15059_v0  ;;  %6738 = vmatmul.mubr.f32.gmra.mxu0 %v6449_v17 }
 0x3e2   :  { %v17549_v31 = vrot.slane %v12622_v29, %v15059_v0  ;;  %6887 = vmatprep.mubr.f32.mxu1 %v6472_v59  ;;  %v6022_v8 = vcombine.low %v5988_v27, %v6016_v11  ;;  %v3068_v47 = vrot.slane %v3026_v19, %v15059_v0  ;;  %v4352_v10 = vcombine.high %v17432_v15, %v17435_v1 }
 0x3e3   :  { %v3073_v35 = vcombine.high %v3061_v23, %v3061_v23  ;;  %v3109_v13 = vrot.slane %v3061_v23, %v15059_v0  ;;  %6888 = vmatmul.mubr.f32.gmra.mxu1 %v6471_v9  ;;  %v4380_v53 = vrot.slane %v4348_v32, %v15059_v0  ;;  %v4366_v25 = vrot.slane %v4347_v46, %v15059_v0 }
 0x3e4   :  { %v4394_v17 = vrot.slane %v4351_v37, %v15059_v0  ;;  %12725 = vmatprep.mubr.msk.f32.mxu1 %vm6558_vm0, %v6022_v8  ;;  %v3074_v20 = vcombine.high %v3068_v47, %v3068_v47  ;;  %v3116_v30 = vrot.slane %v3068_v47, %v15059_v0  ;;  %v5974_v27 = vrot.slane %v5955_v24, %v15059_v0  ;;  %v21164_v24 = vld [vmem:[#allocation69_spill] sm:$0xff]  ;;  %v21165_v8 = vld [vmem:[#allocation70_spill] sm:$0xff] }
 0x3e5   :  { %v3123_v9 = vrot.slane %v3073_v35, %v15059_v0  ;;  %v4408_v32 = vrot.slane %v4352_v10, %v15059_v0  ;;  %v6002_v63 = vrot.slane %v5959_v44, %v15059_v0  ;;  %v4482_v60 = vcombine.high %v17414_v57, %v17417_v5  ;;  %v21166_v35 = vld [vmem:[#allocation71_spill] sm:$0xff] }
 0x3e6   :  { %v4411_v33 = vcombine.low %v4366_v25, %v4394_v17  ;;  %v3130_v15 = vrot.slane %v3074_v20, %v15059_v0  ;;  %v4486_v37 = vcombine.high %v17420_v52, %v17423_v3  ;;  %v6044_v29 = vrot.slane %v21164_v24, %v15059_v0 }
 0x3e7   :  { %v12632_v1 = vcombine.low %v3109_v13, %v3123_v9  ;;  %v12634_v46 = vcombine.high %v3109_v13, %v3123_v9  ;;  %v4414_v56 = vcombine.low %v4380_v53, %v4408_v32  ;;  %v6019_v38 = vcombine.low %v5974_v27, %v6002_v63 }
 0x3e8   :  { %v4514_v14 = vrot.slane %v4482_v60, %v15059_v0  ;;  %v12636_v59 = vcombine.low %v3116_v30, %v3130_v15  ;;  %v12638_v11 = vcombine.high %v3116_v30, %v3130_v15  ;;  %v4542_v23 = vrot.slane %v4486_v37, %v15059_v0  ;;  %v21167_v30 = vld [vmem:[#allocation73_spill] sm:$0xff] }
 0x3e9   :  { %v17579_v44 = vrot.slane %v12632_v1, %v15059_v0  ;;  %v17582_v19 = vrot.slane %v12634_v46, %v15059_v0  ;;  %12713 = vmatprep.mubr.msk.f32.mxu0 %vm6558_vm0, %v4414_v56  ;;  %7018 = vmatmul.mubr.f32.vlgmr.msra.gmra.mxu1 %v6019_v38  ;;  %v6072_v47 = vrot.slane %v21165_v8, %v15059_v0  ;;  %v21169_v38 = vld [vmem:[#allocation78_spill] sm:$0xff]  ;;  %vm11630_vm11 = vcmask 531456  }
 0x3ea   :  { %v6090_v13 = vcombine.high %v6044_v29, %v21166_v35  ;;  %v17590_v10 = vrot.slane %v12636_v59, %v15059_v0  ;;  %v17593_v53 = vrot.slane %v12638_v11, %v15059_v0  ;;  %6958 = vmatmul.mubr.f32.vlgmr.msra.gmra.mxu0 %v4411_v33  ;;  %v4481_v25 = vcombine.low %v17414_v57, %v17417_v5  ;;  %v21170_v59 = vld [vmem:[#allocation75_spill] sm:$0xff] }
 0x3eb   :  { %v4485_v17 = vcombine.low %v17420_v52, %v17423_v3  ;;  %v4548_v20 = vcombine.low %v4514_v14, %v4542_v23  ;;  %v6094_v9 = vcombine.high %v6072_v47, %v21167_v30  ;;  %v6089_v32 = vcombine.low %v6044_v29, %v21166_v35  ;;  %v21168_v3 = vld [vmem:[#allocation74_spill] sm:$0xff]  ;;  %v21171_v23 = vld [vmem:[#allocation81_spill] sm:$0xff] }
 0x3ec   :  { %v6122_v27 = vrot.slane %v6090_v13, %v15059_v0  ;;  %v4500_v63 = vrot.slane %v4481_v25, %v15059_v0  ;;  %v6093_v15 = vcombine.low %v6072_v47, %v21167_v30  ;;  %v4616_v33 = vcombine.high %v17492_v4, %v17495_v48 }
 0x3ed   :  { %v4528_v60 = vrot.slane %v4485_v17, %v15059_v0  ;;  %12714 = vmatprep.mubr.msk.f32.mxu0 %vm6558_vm0, %v4548_v20  ;;  %v6150_v57 = vrot.slane %v6094_v9, %v15059_v0  ;;  %v6108_v5 = vrot.slane %v6089_v32, %v15059_v0  ;;  %v4620_v52 = vcombine.high %v17498_v41, %v17501_v21 }
 0x3ee   :  { %v6178_v1 = vrot.slane %v21168_v3, %v15059_v0  ;;  %v6136_v37 = vrot.slane %v6093_v15, %v15059_v0  ;;  %v4648_v56 = vrot.slane %v4616_v33, %v15059_v0  ;;  %v6192_v14 = vrot.slane %v21169_v38, %v15059_v0 }
 0x3ef   :  { %v4545_v46 = vcombine.low %v4500_v63, %v4528_v60  ;;  %v6156_v24 = vcombine.low %v6122_v27, %v6150_v57  ;;  %v4676_v29 = vrot.slane %v4620_v52, %v15059_v0  ;;  %v6206_v11 = vrot.slane %v21170_v59, %v15059_v0 }
 0x3f0   :  { %v6220_v8 = vrot.slane %v21171_v23, %v15059_v0  ;;  %v6153_v47 = vcombine.low %v6108_v5, %v6136_v37  ;;  %v6224_v35 = vcombine.high %v6178_v1, %v6192_v14  ;;  %v4615_v13 = vcombine.low %v17492_v4, %v17495_v48  ;;  %v2065_v4 = vpop.permute.xlu1 %2064  ;;  %v21172_v37 = vld [vmem:[#allocation35_spill] sm:$0xff] }
 0x3f1   :  { %6963 = vmatmul.mubr.f32.gmra.mxu0 %v4545_v46  ;;  %v4619_v25 = vcombine.low %v17498_v41, %v17501_v21  ;;  %12726 = vmatprep.mubr.msk.f32.mxu1 %vm6558_vm0, %v6156_v24  ;;  %v4682_v17 = vcombine.low %v4648_v56, %v4676_v29  ;;  %v6223_v30 = vcombine.low %v6178_v1, %v6192_v14  ;;  %vm12026_vm13 = vcmask 457728  }
 0x3f2   :  { %v6228_v20 = vcombine.high %v6206_v11, %v6220_v8  ;;  %v6227_v9 = vcombine.low %v6206_v11, %v6220_v8  ;;  %7023 = vmatmul.mubr.f32.gmra.mxu1 %v6153_v47  ;;  %v6256_v27 = vrot.slane %v6224_v35, %v15059_v0  ;;  %v4634_v32 = vrot.slane %v4615_v13, %v15059_v0 }
 0x3f3   :  { %v4662_v63 = vrot.slane %v4619_v25, %v15059_v0  ;;  %v4750_v60 = vcombine.high %v17461_v16, %v17464_v45  ;;  %12715 = vmatprep.mubr.msk.f32.mxu0 %vm6558_vm0, %v4682_v17  ;;  %v6242_v41 = vrot.slane %v6223_v30, %v15059_v0  ;;  %v4754_v15 = vcombine.high %v17467_v40, %v17470_v55 }
 0x3f4   :  { %v6284_v48 = vrot.slane %v6228_v20, %v15059_v0  ;;  %v6270_v21 = vrot.slane %v6227_v9, %v15059_v0  ;;  %v6312_v5 = vrot.slane %v17209_v34, %v15059_v0  ;;  %v6340_v52 = vrot.slane %v17219_v49, %v15059_v0 }
 0x3f5   :  { %v4679_v33 = vcombine.low %v4634_v32, %v4662_v63  ;;  %v4782_v57 = vrot.slane %v4750_v60, %v15059_v0  ;;  %v4810_v46 = vrot.slane %v4754_v15, %v15059_v0  ;;  %v2142_v56 = vsel %vm2126_vm14, %v21172_v37, %v2065_v4 }
 0x3f6   :  { %v6290_v3 = vcombine.low %v6256_v27, %v6284_v48  ;;  %v6287_v1 = vcombine.low %v6242_v41, %v6270_v21  ;;  %v6358_v38 = vcombine.high %v6312_v5, %v17236_v51  ;;  %v6362_v14 = vcombine.high %v6340_v52, %v17246_v42 }
 0x3f7   :  { %6968 = vmatmul.mubr.f32.gmra.mxu0 %v4679_v33  ;;  %v3143_v24 = vcombine.low %v2142_v56, %v2065_v4  ;;  %v3144_v29 = vcombine.high %v2142_v56, %v2065_v4  ;;  %v4816_v34 = vcombine.low %v4782_v57, %v4810_v46  ;;  %v4749_v49 = vcombine.low %v17461_v16, %v17464_v45 }
 0x3f8   :  { %12727 = vmatprep.mubr.msk.f32.mxu1 %vm6558_vm0, %v6290_v3  ;;  %v4753_v59 = vcombine.low %v17467_v40, %v17470_v55  ;;  %v6357_v11 = vcombine.low %v6312_v5, %v17236_v51  ;;  %v6390_v23 = vrot.slane %v6358_v38, %v15059_v0  ;;  %v6418_v8 = vrot.slane %v6362_v14, %v15059_v0 }
 0x3f9   :  { %7028 = vmatmul.mubr.f32.gmra.mxu1 %v6287_v1  ;;  %v3179_v47 = vrot.slane %v3143_v24, %v15059_v0  ;;  %v3186_v35 = vrot.slane %v3144_v29, %v15059_v0  ;;  %12716 = vmatprep.mubr.msk.f32.mxu0 %vm6558_vm0, %v4816_v34  ;;  %v4768_v13 = vrot.slane %v4749_v49, %v15059_v0  ;;  %vm12029_vm15 = vcmask 523264  }
 0x3fa   :  { %v4796_v16 = vrot.slane %v4753_v59, %v15059_v0  ;;  %v6361_v45 = vcombine.low %v6340_v52, %v17246_v42  ;;  %v6376_v40 = vrot.slane %v6357_v11, %v15059_v0  ;;  %v6424_v51 = vcombine.low %v6390_v23, %v6418_v8  ;;  %v2071_v59 = vpop.permute.xlu0 %2070 }
 0x3fb   :  { %v3191_v55 = vcombine.high %v3179_v47, %v3179_v47  ;;  %v3192_v25 = vcombine.high %v3186_v35, %v3186_v35  ;;  %v3227_v17 = vrot.slane %v3179_v47, %v15059_v0  ;;  %v3234_v20 = vrot.slane %v3186_v35, %v15059_v0  ;;  %v21173_v35 = vld [vmem:[#allocation47_spill] sm:$0xff] }
 0x3fc   :  { %v4813_v30 = vcombine.low %v4768_v13, %v4796_v16  ;;  %v6404_v9 = vrot.slane %v6361_v45, %v15059_v0  ;;  %v4884_v27 = vcombine.high %v17540_v58, %v17543_v50  ;;  %12728 = vmatprep.mubr.msk.f32.mxu1 %vm6558_vm0, %v6424_v51  ;;  %v4888_v63 = vcombine.high %v17546_v7, %v17549_v31 }
 0x3fd   :  { %v3241_v32 = vrot.slane %v3191_v55, %v15059_v0  ;;  %v3248_v42 = vrot.slane %v3192_v25, %v15059_v0  ;;  %v4883_v60 = vcombine.low %v17540_v58, %v17543_v50  ;;  %v4887_v41 = vcombine.low %v17546_v7, %v17549_v31 }
 0x3fe   :  { %6973 = vmatmul.mubr.f32.gmra.mxu0 %v4813_v30  ;;  %v6421_v4 = vcombine.low %v6376_v40, %v6404_v9  ;;  %v4916_v48 = vrot.slane %v4884_v27, %v15059_v0  ;;  %v5018_v21 = vcombine.high %v17504_v43, %v17507_v54  ;;  %v4944_v52 = vrot.slane %v4888_v63, %v15059_v0  ;;  %v21175_v9 = vld [vmem:[#allocation50_spill] sm:$0xff] }
 0x3ff   :  { %v12640_v15 = vcombine.low %v3227_v17, %v3241_v32  ;;  %v12642_v33 = vcombine.high %v3227_v17, %v3241_v32  ;;  %v12644_v57 = vcombine.low %v3234_v20, %v3248_v42  ;;  %v12646_v5 = vcombine.high %v3234_v20, %v3248_v42  ;;  %v21174_v20 = vld [vmem:[#allocation45_spill] sm:$0xff]  ;;  %v21176_v63 = vld [vmem:[#allocation46_spill] sm:$0xff] }
 0x400   :  { %7033 = vmatmul.mubr.f32.gmra.mxu1 %v6421_v4  ;;  %v4902_v3 = vrot.slane %v4883_v60, %v15059_v0  ;;  %v4930_v58 = vrot.slane %v4887_v41, %v15059_v0  ;;  %v5022_v50 = vcombine.high %v17510_v26, %v17513_v36  ;;  %v4950_v37 = vcombine.low %v4916_v48, %v4944_v52  ;;  %v21177_v4 = vld [vmem:[#allocation49_spill] sm:$0xff] }
 0x401   :  { %v5240_v1 = vrot.slane %v12640_v15, %v15059_v0  ;;  %v5254_v7 = vrot.slane %v12642_v33, %v15059_v0  ;;  %v5268_v31 = vrot.slane %v12644_v57, %v15059_v0  ;;  %v5282_v46 = vrot.slane %v12646_v5, %v15059_v0 }
 0x402   :  { %v4947_v56 = vcombine.low %v4902_v3, %v4930_v58  ;;  %v5050_v38 = vrot.slane %v5018_v21, %v15059_v0  ;;  %v5078_v14 = vrot.slane %v5022_v50, %v15059_v0  ;;  %v5017_v24 = vcombine.low %v17504_v43, %v17507_v54  ;;  %12717 = vmatprep.mubr.msk.f32.mxu0 %vm6558_vm0, %v4950_v37  ;;  %v21178_v3 = vld [vmem:[#allocation54_spill] sm:$0xff]  ;;  %v21179_v50 = vld [vmem:[#allocation41_spill] sm:$0xff] }
 0x403   :  { %v5021_v29 = vcombine.low %v17510_v26, %v17513_v36  ;;  %v5152_v34 = vcombine.high %v17579_v44, %v17582_v19  ;;  %v5156_v49 = vcombine.high %v17590_v10, %v17593_v53  ;;  %v17703_v23 = vadd.f32 %v17476_v2, %v17474_v22 }
 0x404   :  { %v5084_v11 = vcombine.low %v5050_v38, %v5078_v14  ;;  %v5151_v43 = vcombine.low %v17579_v44, %v17582_v19  ;;  %v5155_v54 = vcombine.low %v17590_v10, %v17593_v53  ;;  %6978 = vmatmul.mubr.f32.gmra.mxu0 %v4947_v56  ;;  %v5036_v26 = vrot.slane %v5017_v24, %v15059_v0  ;;  %v21181_v14 = vld [vmem:[#allocation59_spill] sm:$0xff] }
 0x405   :  { %v5064_v36 = vrot.slane %v5021_v29, %v15059_v0  ;;  %v5184_v8 = vrot.slane %v5152_v34, %v15059_v0  ;;  %v5212_v47 = vrot.slane %v5156_v49, %v15059_v0  ;;  %v2144_v44 = vsel %vm2126_vm14, %v21173_v35, %v2071_v59  ;;  %v21182_v49 = vld [vmem:[#allocation37_spill] sm:$0xff]  ;;  %v21186_v35 = vld [vmem:[#allocation60_spill] sm:$0xff] }
 0x406   :  { %12718 = vmatprep.mubr.msk.f32.mxu0 %vm6558_vm0, %v5084_v11  ;;  %v5170_v22 = vrot.slane %v5151_v43, %v15059_v0  ;;  %v5198_v2 = vrot.slane %v5155_v54, %v15059_v0  ;;  %v5286_v19 = vcombine.high %v5240_v1, %v5254_v7  ;;  %v3259_v13 = vcombine.low %v2144_v44, %v2071_v59  ;;  %v21183_v59 = vld [vmem:[#allocation40_spill] sm:$0xff] }
 0x407   :  { %v5081_v10 = vcombine.low %v5036_v26, %v5064_v36  ;;  %v5218_v53 = vcombine.low %v5184_v8, %v5212_v47  ;;  %v5290_v16 = vcombine.high %v5268_v31, %v5282_v46  ;;  %v5285_v51 = vcombine.low %v5240_v1, %v5254_v7  ;;  %v21185_v54 = vld [vmem:[#allocation56_spill] sm:$0xff] }
 0x408   :  { %v5215_v45 = vcombine.low %v5170_v22, %v5198_v2  ;;  %v5318_v40 = vrot.slane %v5286_v19, %v15059_v0  ;;  %v5289_v55 = vcombine.low %v5268_v31, %v5282_v46  ;;  %v3280_v25 = vrot.slane %v3259_v13, %v15059_v0  ;;  %v21180_v46 = vld [vmem:[#allocation53_spill] sm:$0xff] }
 0x409   :  { %6983 = vmatmul.mubr.f32.gmra.mxu0 %v5081_v10  ;;  %v5346_v17 = vrot.slane %v5290_v16, %v15059_v0  ;;  %v5508_v30 = vrot.slane %v21174_v20, %v15059_v0  ;;  %v5522_v27 = vrot.slane %v21175_v9, %v15059_v0  ;;  %v5304_v32 = vrot.slane %v5285_v51, %v15059_v0  ;;  %v21187_v13 = vld [vmem:[#allocation57_spill] sm:$0xff]  ;;  %v21189_v51 = vld [vmem:[#allocation58_spill] sm:$0xff] }
 0x40a   :  { %12719 = vmatprep.mubr.msk.f32.mxu0 %vm6558_vm0, %v5218_v53  ;;  %v5332_v42 = vrot.slane %v5289_v55, %v15059_v0  ;;  %v5536_v60 = vrot.slane %v21176_v63, %v15059_v0  ;;  %v5550_v48 = vrot.slane %v21177_v4, %v15059_v0  ;;  %v3295_v41 = vrot.slane %v3280_v25, %v15059_v0  ;;  %v21190_v25 = vld [vmem:[#allocation67_spill] sm:$0xff] }
 0x40b   :  { %v5352_v21 = vcombine.low %v5318_v40, %v5346_v17  ;;  %v5554_v15 = vcombine.high %v5508_v30, %v5522_v27  ;;  %v5553_v33 = vcombine.low %v5508_v30, %v5522_v27  ;;  %v5642_v58 = vrot.slane %v21178_v3, %v15059_v0  ;;  %v21191_v4 = vld [vmem:[#allocation43_spill] sm:$0xff] }
 0x40c   :  { %v5349_v57 = vcombine.low %v5304_v32, %v5332_v42  ;;  %v5558_v5 = vcombine.high %v5536_v60, %v5550_v48  ;;  %v5557_v52 = vcombine.low %v5536_v60, %v5550_v48  ;;  %v12648_v1 = vcombine.low %v3295_v41, %v21179_v50 }
 0x40d   :  { %6988 = vmatmul.mubr.f32.gmra.mxu0 %v5215_v45  ;;  %v5586_v7 = vrot.slane %v5554_v15, %v15059_v0  ;;  %v5572_v31 = vrot.slane %v5553_v33, %v15059_v0  ;;  %v5670_v37 = vrot.slane %v21180_v46, %v15059_v0  ;;  %v5688_v24 = vcombine.high %v5642_v58, %v21181_v14  ;;  %v21188_v45 = vld [vmem:[#allocation62_spill] sm:$0xff] }
 0x40e   :  { %12720 = vmatprep.mubr.msk.f32.mxu0 %vm6558_vm0, %v5352_v21  ;;  %v5614_v56 = vrot.slane %v5558_v5, %v15059_v0  ;;  %v5600_v38 = vrot.slane %v5557_v52, %v15059_v0  ;;  %v5687_v29 = vcombine.low %v5642_v58, %v21181_v14  ;;  %v5374_v34 = vrot.slane %v12648_v1, %v15059_v0 }
 0x40f   :  { %v21184_v11 = vcombine.low %v21182_v49, %v21183_v59  ;;  %v5692_v26 = vcombine.high %v5670_v37, %v21185_v54  ;;  %v5691_v36 = vcombine.low %v5670_v37, %v21185_v54  ;;  %v5720_v22 = vrot.slane %v5688_v24, %v15059_v0 }
 0x410   :  { %v5620_v8 = vcombine.low %v5586_v7, %v5614_v56  ;;  %v5617_v47 = vcombine.low %v5572_v31, %v5600_v38  ;;  %v5706_v2 = vrot.slane %v5687_v29, %v15059_v0  ;;  %v5420_v44 = vcombine.high %v5374_v34, %v21186_v35 }
 0x411   :  { %v5466_v43 = vrot.slane %v21184_v11, %v15059_v0  ;;  %6993 = vmatmul.mubr.f32.gmra.mxu0 %v5349_v57  ;;  %v5419_v19 = vcombine.low %v5374_v34, %v21186_v35  ;;  %v5748_v10 = vrot.slane %v5692_v26, %v15059_v0  ;;  %v5734_v53 = vrot.slane %v5691_v36, %v15059_v0 }
 0x412   :  { %v5776_v16 = vrot.slane %v21187_v13, %v15059_v0  ;;  %v5790_v40 = vrot.slane %v21188_v45, %v15059_v0  ;;  %v5804_v55 = vrot.slane %v21189_v51, %v15059_v0  ;;  %v5818_v17 = vrot.slane %v21190_v25, %v15059_v0 }
 0x413   :  { %v5452_v20 = vrot.slane %v5420_v44, %v15059_v0  ;;  %v5438_v30 = vrot.slane %v5419_v19, %v15059_v0  ;;  %v5754_v9 = vcombine.low %v5720_v22, %v5748_v10  ;;  %v5751_v27 = vcombine.low %v5706_v2, %v5734_v53  ;;  %v6699_v3 = vpop.f32.mrf.mxu0 }
 0x414   :  { %v5822_v32 = vcombine.high %v5776_v16, %v5790_v40  ;;  %v5826_v42 = vcombine.high %v5804_v55, %v5818_v17  ;;  %v5821_v63 = vcombine.low %v5776_v16, %v5790_v40  ;;  %v5825_v60 = vcombine.low %v5804_v55, %v5818_v17  ;;  %v6849_v58 = vpop.f32.mrf.mxu1 }
 0x415   :  { %v5486_v48 = vcombine.low %v5452_v20, %v21191_v4  ;;  %v5483_v41 = vcombine.low %v5438_v30, %v5466_v43  ;;  %v17775_v50 = vadd.f32 %v6849_v58, %v6699_v3  ;;  %v6701_v1 = vpop.f32.mrf.mxu0  ;;  %v21193_v58 = vld [vmem:[#allocation51_spill] sm:$0xff] }
 0x416   :  { %v5854_v21 = vrot.slane %v5822_v32, %v15059_v0  ;;  %v5882_v15 = vrot.slane %v5826_v42, %v15059_v0  ;;  %v5840_v33 = vrot.slane %v5821_v63, %v15059_v0  ;;  %v5868_v57 = vrot.slane %v5825_v60, %v15059_v0  ;;  %v6851_v7 = vpop.f32.mrf.mxu1 }
 0x417   :  { %12721 = vmatprep.mubr.msk.f32.mxu0 %vm6558_vm0, %v5486_v48 }
 0x418   :  { %6998 = vmatmul.mubr.f32.gmra.mxu0 %v5483_v41  ;;  %v5888_v5 = vcombine.low %v5854_v21, %v5882_v15  ;;  %v5885_v52 = vcombine.low %v5840_v33, %v5868_v57 }
 0x419   :  { %12722 = vmatprep.mubr.msk.f32.mxu0 %vm6558_vm0, %v5620_v8 }
 0x41c   :  { %7003 = vmatmul.mubr.f32.gmra.mxu0 %v5617_v47 }
 0x41d   :  { %12723 = vmatprep.mubr.msk.f32.mxu0 %vm6558_vm0, %v5754_v9 }
 0x420   :  { %7008 = vmatmul.mubr.f32.gmra.mxu0 %v5751_v27 }
 0x421   :  { %12724 = vmatprep.mubr.msk.f32.mxu0 %vm6558_vm0, %v5888_v5 }
 0x424   :  { %7013 = vmatmul.mubr.f32.gmra.mxu0 %v5885_v52 }
 0x427   :  { %v2125_v31 = vpop.permute.xlu1 %2124 }
 0x428   :  { %v2162_v46 = vsel %vm2126_vm14, %v17332_v61, %v2125_v31  ;;  %v6704_v14 = vpop.f32.mrf.mxu0 }
 0x429   :  { %v4243_v37 = vcombine.low %v2162_v46, %v2125_v31  ;;  %v6854_v24 = vpop.f32.mrf.mxu1 }
 0x42a   :  { %v17783_v29 = vadd.f32 %v6854_v24, %v6704_v14  ;;  %v6706_v49 = vpop.f32.mrf.mxu0 }
 0x42b   :  { %v4264_v56 = vrot.slane %v4243_v37, %v15059_v0  ;;  %v6856_v59 = vpop.f32.mrf.mxu1  ;;  %v21194_v49 = vld [vmem:[#allocation63_spill] sm:$0xff] }
 0x42d   :  { %v4279_v38 = vrot.slane %v4264_v56, %v15059_v0 }
 0x42f   :  { %v4280_v34 = vcombine.low %v17404_v18, %v4279_v38 }
 0x431   :  { %v12712_v11 = vcombine.high %v17186_v12, %v4280_v34 }
 0x433   :  { %v6440_v43 = vrot.slane %v12712_v11, %v15059_v0 }
 0x435   :  { %v6442_v54 = vcombine.high %v6440_v43, %v6440_v43  ;;  %v6456_v26 = vrot.slane %v6440_v43, %v15059_v0 }
 0x437   :  { %v6470_v61 = vrot.slane %v6442_v54, %v15059_v0 }
 0x439   :  { %12729 = vmatprep.mubr.msk.f32.mxu1 %vm6558_vm0, %v6470_v61 }
 0x43a   :  { %7038 = vmatmul.mubr.f32.gmra.mxu1 %v6456_v26 }
 0x43e   :  { %v6709_v36 = vpop.f32.mrf.mxu0 }
 0x43f   :  { %v6859_v8 = vpop.f32.mrf.mxu1 }
 0x440   :  { %v17791_v47 = vadd.f32 %v6859_v8, %v6709_v36  ;;  %v6711_v22 = vpop.f32.mrf.mxu0 }
 0x441   :  { %v6861_v18 = vpop.f32.mrf.mxu1 }
 0x45a   :  { %v6714_v2 = vpop.f32.mrf.mxu0  ;;  %v6864_v35 = vpop.f32.mrf.mxu1 }
 0x45b   :  { %v17793_v44 = vadd.f32 %v6864_v35, %v6714_v2 }
 0x45c   :  { %v6716_v12 = vpop.f32.mrf.mxu0  ;;  %v6866_v19 = vpop.f32.mrf.mxu1 }
 0x46a   :  { %v6719_v10 = vpop.f32.mrf.mxu0  ;;  %v6869_v53 = vpop.f32.mrf.mxu1 }
 0x46b   :  { %v6870_v13 = vadd.f32 %v6869_v53, %v6719_v10 }
 0x46c   :  { %v6721_v16 = vpop.f32.mrf.mxu0  ;;  %v6871_v45 = vpop.f32.mrf.mxu1 }
 0x470   :  { %v6724_v40 = vpop.f32.mrf.mxu0  ;;  %v6874_v51 = vpop.f32.mrf.mxu1 }
 0x471   :  { %v6875_v55 = vadd.f32 %v6874_v51, %v6724_v40 }
 0x472   :  { %v6726_v25 = vpop.f32.mrf.mxu0  ;;  %v6876_v17 = vpop.f32.mrf.mxu1 }
 0x47a   :  { %v6729_v20 = vpop.f32.mrf.mxu0  ;;  %v6879_v30 = vpop.f32.mrf.mxu1 }
 0x47b   :  { %v6880_v9 = vadd.f32 %v6879_v30, %v6729_v20 }
 0x47c   :  { %v6731_v27 = vpop.f32.mrf.mxu0  ;;  %v6881_v32 = vpop.f32.mrf.mxu1 }
 0x47d   :  { %v21201_v32 = vld [vmem:[#allocation79_spill] sm:$0xff] }
 0x47e   :  { %v6734_v42 = vpop.f32.mrf.mxu0  ;;  %v6884_v63 = vpop.f32.mrf.mxu1 }
 0x47f   :  { %v17795_v60 = vadd.f32 %v6884_v63, %v6734_v42 }
 0x480   :  { %v6736_v4 = vpop.f32.mrf.mxu0  ;;  %v6886_v48 = vpop.f32.mrf.mxu1 }
 0x4a1   :  { %v6739_v41 = vpop.f32.mrf.mxu0 }
 0x4a3   :  { %v6741_v21 = vpop.f32.mrf.mxu0  ;;  %v6889_v15 = vpop.f32.mrf.mxu1 }
 0x4a4   :  { %v17797_v33 = vadd.f32 %v6889_v15, %v6739_v41 }
 0x4a5   :  { %v6891_v57 = vpop.f32.mrf.mxu1 }
 0x4a6   :  { %21192 = vst [vmem:[#allocation80_spill] sm:$0xff] %v17797_v33 }
 0x4a9   :  { %v7019_v5 = vpop.f32.mrf.mxu1 }
 0x4aa   :  { %v6959_v52 = vpop.f32.mrf.mxu0  ;;  %v7020_v3 = vadd.f32 %v7019_v5, %v6870_v13 }
 0x4ab   :  { %v6960_v1 = vadd.f32 %v6959_v52, %v21193_v58  ;;  %v7021_v7 = vpop.f32.mrf.mxu1 }
 0x4ac   :  { %v6961_v31 = vpop.f32.mrf.mxu0  ;;  %v7648_v16 = vcombine.high %v7020_v3, %v7020_v3 }
 0x4ad   :  { %v7060_v54 = vcombine.high %v6960_v1, %v6960_v1  ;;  %v7067_v22 = vrot.slane %v6960_v1, %v15059_v0 }
 0x4ae   :  { %v7662_v27 = vrot.slane %v7648_v16, %v15059_v0 }
 0x4af   :  { %v7074_v8 = vrot.slane %v7060_v54, %v15059_v0  ;;  %v7075_v12 = vcombine.high %v7067_v22, %v7067_v22  ;;  %v17823_v51 = vrot.slane %v7067_v22, %v15059_v0 }
 0x4b1   :  { %v6964_v46 = vpop.f32.mrf.mxu0  ;;  %v7076_v2 = vcombine.high %v7074_v8, %v7074_v8  ;;  %v17817_v13 = vrot.slane %v7075_v12, %v15059_v0  ;;  %v17820_v45 = vrot.slane %v7074_v8, %v15059_v0  ;;  %21198 = vst [vmem:[#allocation86_spill] sm:$0xff] %v17823_v51  ;;  %v17848_v41 = vcombine.high %v17823_v51, %v17823_v51 }
 0x4b2   :  { %v7024_v37 = vpop.f32.mrf.mxu1  ;;  %v6965_v59 = vadd.f32 %v6964_v46, %v21194_v49 }
 0x4b3   :  { %v6966_v56 = vpop.f32.mrf.mxu0  ;;  %v17801_v11 = vadd.f32 %v7024_v37, %v6875_v55  ;;  %v17812_v10 = vrot.slane %v7076_v2, %v15059_v0  ;;  %21196 = vst [vmem:[#allocation83_spill] sm:$0xff] %v17817_v13  ;;  %21197 = vst [vmem:[#allocation84_spill] sm:$0xff] %v17820_v45  ;;  %v7655_v55 = vrot.slane %v7020_v3, %v15059_v0 }
 0x4b4   :  { %v7026_v38 = vpop.f32.mrf.mxu1  ;;  %v7109_v25 = vcombine.high %v6965_v59, %v6965_v59  ;;  %v17834_v30 = vcombine.high %v17817_v13, %v17817_v13  ;;  %v17844_v4 = vcombine.high %v17820_v45, %v17820_v45  ;;  %21203 = vst [vmem:[#allocation90_spill] sm:$0xff] %v17848_v41  ;;  %v7116_v5 = vrot.slane %v6965_v59, %v15059_v0 }
 0x4b5   :  { %21195 = vst [vmem:[#allocation82_spill] sm:$0xff] %v17812_v10  ;;  %v17828_v17 = vcombine.high %v17812_v10, %v17812_v10  ;;  %v7663_v21 = vcombine.high %v7655_v55, %v7655_v55  ;;  %v7664_v3 = vcombine.high %v7662_v27, %v7662_v27  ;;  %v8946_v58 = vmul.f32 %v17812_v10, %v17812_v10 }
 0x4b6   :  { %21200 = vst [vmem:[#allocation85_spill] sm:$0xff] %v17834_v30  ;;  %21202 = vst [vmem:[#allocation89_spill] sm:$0xff] %v17844_v4  ;;  %v7123_v15 = vrot.slane %v7109_v25, %v15059_v0  ;;  %v8947_v1 = vmul.f32 %v17844_v4, %v17844_v4  ;;  %v17863_v7 = vrot.slane %v7655_v55, %v15059_v0 }
 0x4b7   :  { %v6969_v14 = vpop.f32.mrf.mxu0  ;;  %21199 = vst [vmem:[#allocation88_spill] sm:$0xff] %v17828_v17  ;;  %v8948_v57 = vmul.f32 %v17828_v17, %v17828_v17  ;;  %v8942_v46 = vmul.f32 %v17817_v13, %v17817_v13  ;;  %v8943_v37 = vmul.f32 %v17848_v41, %v17848_v41  ;;  %v17870_v56 = vrot.slane %v7663_v21, %v15059_v0 }
 0x4b8   :  { %v17838_v42 = vadd.f32 %v6969_v14, %v21201_v32  ;;  %21204 = vst [vmem:[#allocation93_spill] sm:$0xff] %v17863_v7  ;;  %v7125_v38 = vcombine.high %v7123_v15, %v7123_v15  ;;  %v8945_v14 = vmul.f32 %v17820_v45, %v17820_v45  ;;  %v7124_v49 = vcombine.high %v7116_v5, %v7116_v5 }
 0x4b9   :  { %v7029_v24 = vpop.f32.mrf.mxu1  ;;  %v6971_v34 = vpop.f32.mrf.mxu0  ;;  %21205 = vst [vmem:[#allocation94_spill] sm:$0xff] %v17870_v56  ;;  %v8941_v59 = vmul.f32 %v17823_v51, %v17823_v51  ;;  %v17880_v54 = vrot.slane %v7664_v3, %v15059_v0  ;;  %v17884_v22 = vcombine.high %v17863_v7, %v17863_v7  ;;  %v17911_v32 = vrot.slane %v7123_v15, %v15059_v0 }
 0x4ba   :  { %v17840_v63 = vadd.f32 %v7029_v24, %v6880_v9  ;;  %v8944_v9 = vmul.f32 %v17834_v30, %v17834_v30  ;;  %v9204_v24 = vcombine.low %v8947_v1, %v8948_v57  ;;  %v17875_v34 = vrot.slane %v7662_v27, %v15059_v0 }
 0x4bb   :  { %v7031_v43 = vpop.f32.mrf.mxu1  ;;  %21207 = vst [vmem:[#allocation97_spill] sm:$0xff] %v17880_v54  ;;  %v9201_v8 = vcombine.low %v8941_v59, %v8942_v46  ;;  %21208 = vst [vmem:[#allocation98_spill] sm:$0xff] %v17884_v22  ;;  %v17891_v2 = vrot.slane %v7125_v38, %v15059_v0  ;;  %v17906_v25 = vcombine.high %v17880_v54, %v17880_v54 }
 0x4bc   :  { %21206 = vst [vmem:[#allocation96_spill] sm:$0xff] %v17875_v34  ;;  %v9202_v43 = vcombine.low %v8943_v37, %v8944_v9  ;;  %v17898_v16 = vcombine.high %v17875_v34, %v17875_v34  ;;  %v9038_v27 = vmul.f32 %v17870_v56, %v17870_v56  ;;  %21214 = vst [vmem:[#allocation100_spill] sm:$0xff] %v17911_v32 }
 0x4bd   :  { %21210 = vst [vmem:[#allocation106_spill] sm:$0xff] %v17891_v2  ;;  %21213 = vst [vmem:[#allocation95_spill] sm:$0xff] %v17906_v25  ;;  %v17915_v57 = vrot.slane %v7116_v5, %v15059_v0  ;;  %v7697_v9 = vcombine.high %v17801_v11, %v17801_v11  ;;  %v7704_v3 = vrot.slane %v17801_v11, %v15059_v0 }
 0x4be   :  { %v17803_v61 = vpop.f32.mrf.mxu0  ;;  %21211 = vst [vmem:[#allocation91_spill] sm:$0xff] %v17898_v16  ;;  %v9218_v55 = vrot.slane %v9202_v43, %v15059_v0  ;;  %v9039_v1 = vmul.f32 %v17884_v22, %v17884_v22  ;;  %v17948_v59 = vcombine.high %v17911_v32, %v17911_v32 }
 0x4bf   :  { %21215 = vst [vmem:[#allocation104_spill] sm:$0xff] %v17915_v57 }
 0x4c0   :  { %v17805_v26 = vpop.f32.mrf.mxu1  ;;  %v6976_v36 = vpop.f32.mrf.mxu0  ;;  %21218 = vst [vmem:[#allocation110_spill] sm:$0xff] %v17948_v59 }
 0x4c1   :  { %v9203_v36 = vcombine.low %v8945_v14, %v8946_v58  ;;  %v9211_v58 = vrot.slane %v9201_v8, %v15059_v0  ;;  %v17956_v8 = vcombine.high %v17915_v57, %v17915_v57 }
 0x4c2   :  { %v7036_v18 = vpop.f32.mrf.mxu1 }
 0x4c3   :  { %v17888_v18 = vcombine.high %v17870_v56, %v17870_v56  ;;  %v9225_v21 = vrot.slane %v9203_v36, %v15059_v0  ;;  %v9233_v14 = vcombine.low %v9211_v58, %v9218_v55  ;;  %v17952_v36 = vmul.f32 %v17898_v16, %v17898_v16  ;;  %21219 = vst [vmem:[#allocation107_spill] sm:$0xff] %v17956_v8 }
 0x4c4   :  { %v17809_v35 = vpop.f32.mrf.mxu0  ;;  %v7712_v55 = vcombine.high %v7704_v3, %v7704_v3 }
 0x4c5   :  { %21209 = vst [vmem:[#allocation99_spill] sm:$0xff] %v17888_v18  ;;  %v9040_v15 = vmul.f32 %v17888_v18, %v17888_v18 }
 0x4c6   :  { %v6981_v19 = vpop.f32.mrf.mxu0 }
 0x4c7   :  { %v9232_v19 = vrot.slane %v9204_v24, %v15059_v0  ;;  %v9041_v24 = vmul.f32 %v17875_v34, %v17875_v34 }
 0x4c9   :  { %v17814_v53 = vpop.f32.mrf.mxu0  ;;  %v9234_v46 = vcombine.low %v9225_v21, %v9232_v19  ;;  %v7711_v19 = vrot.slane %v7697_v9, %v15059_v0  ;;  %v9804_v21 = vcombine.low %v9040_v15, %v9041_v24  ;;  %v7158_v9 = vcombine.high %v17838_v42, %v17838_v42 }
 0x4ca   :  { %v8955_v15 = vmul.f32 %v17948_v59, %v17948_v59  ;;  %v8951_v24 = vmul.f32 %v17956_v8, %v17956_v8  ;;  %v8953_v59 = vmul.f32 %v17911_v32, %v17911_v32 }
 0x4cb   :  { %v6986_v40 = vpop.f32.mrf.mxu0  ;;  %v9248_v37 = vrot.slane %v9234_v46, %v15059_v0  ;;  %v18007_v34 = vrot.slane %v7711_v19, %v15059_v0 }
 0x4cc   :  { %v17901_v40 = vrot.slane %v7124_v49, %v15059_v0  ;;  %v17944_v49 = vmul.f32 %v17880_v54, %v17880_v54 }
 0x4cd   :  { %v17830_v20 = vpop.f32.mrf.mxu0  ;;  %21224 = vst [vmem:[#allocation103_spill] sm:$0xff] %v18007_v34 }
 0x4ce   :  { %21212 = vst [vmem:[#allocation92_spill] sm:$0xff] %v17901_v40  ;;  %v17938_v38 = vcombine.high %v17901_v40, %v17901_v40 }
 0x4cf   :  { %v6991_v48 = vpop.f32.mrf.mxu0 }
 0x4d0   :  { %21217 = vst [vmem:[#allocation102_spill] sm:$0xff] %v17938_v38  ;;  %v8952_v41 = vmul.f32 %v17938_v38, %v17938_v38  ;;  %v17986_v38 = vrot.slane %v7704_v3, %v15059_v0  ;;  %v7165_v3 = vrot.slane %v17838_v42, %v15059_v0 }
 0x4d1   :  { %v17854_v52 = vpop.f32.mrf.mxu0 }
 0x4d2   :  { %21220 = vst [vmem:[#allocation111_spill] sm:$0xff] %v17986_v38  ;;  %v9251_v30 = vcombine.low %v8951_v24, %v8952_v41  ;;  %v18018_v42 = vcombine.high %v17986_v38, %v17986_v38 }
 0x4d3   :  { %v6996_v31 = vpop.f32.mrf.mxu0 }
 0x4d4   :  { %v17928_v31 = vcombine.high %v17891_v2, %v17891_v2  ;;  %21227 = vst [vmem:[#allocation115_spill] sm:$0xff] %v18018_v42 }
 0x4d6   :  { %21216 = vst [vmem:[#allocation101_spill] sm:$0xff] %v17928_v31  ;;  %v8956_v58 = vmul.f32 %v17928_v31, %v17928_v31  ;;  %v7713_v31 = vcombine.high %v7711_v19, %v7711_v19 }
 0x4d8   :  { %v17893_v12 = vpop.f32.mrf.mxu0  ;;  %v18014_v41 = vrot.slane %v7713_v31, %v15059_v0  ;;  %v9044_v31 = vmul.f32 %v17906_v25, %v17906_v25 }
 0x4da   :  { %v7001_v48 = vpop.f32.mrf.mxu0  ;;  %21226 = vst [vmem:[#allocation109_spill] sm:$0xff] %v18014_v41  ;;  %v18045_v24 = vcombine.high %v18014_v41, %v18014_v41 }
 0x4db   :  { %v9803_v48 = vcombine.low %v9038_v27, %v9039_v1  ;;  %v17974_v27 = vadd.f32 %v17805_v26, %v17795_v60  ;;  %v9241_v1 = vrot.slane %v9233_v14, %v15059_v0  ;;  %v17989_v60 = vrot.slane %v7712_v55, %v15059_v0 }
 0x4dc   :  { %v17930_v5 = vpop.f32.mrf.mxu0  ;;  %v17992_v26 = vrot.slane %v9804_v21, %v15059_v0  ;;  %v8949_v14 = vmul.f32 %v17915_v57, %v17915_v57  ;;  %v7172_v55 = vrot.slane %v7158_v9, %v15059_v0  ;;  %v9267_v9 = vrot.slane %v9251_v30, %v15059_v0  ;;  %21230 = vst [vmem:[#allocation116_spill] sm:$0xff] %v18045_v24 }
 0x4dd   :  { %21221 = vst [vmem:[#allocation108_spill] sm:$0xff] %v17989_v60  ;;  %v9249_v8 = vcombine.low %v9241_v1, %v9248_v37  ;;  %v18004_v17 = vrot.slane %v9803_v48, %v15059_v0  ;;  %v18022_v37 = vcombine.high %v17989_v60, %v17989_v60  ;;  %v7173_v1 = vcombine.high %v7165_v3, %v7165_v3 }
 0x4de   :  { %v7006_v43 = vpop.f32.mrf.mxu0  ;;  %21222 = vst [vmem:[#allocation105_spill] sm:$0xff] %v17992_v26 }
 0x4df   :  { %v17963_v43 = vadd.f32 %v17803_v61, %v17289_v62  ;;  %v8950_v62 = vmul.f32 %v17901_v40, %v17901_v40  ;;  %v8954_v61 = vmul.f32 %v17891_v2, %v17891_v2  ;;  %21223 = vst [vmem:[#allocation112_spill] sm:$0xff] %v18004_v17  ;;  %21228 = vst [vmem:[#allocation114_spill] sm:$0xff] %v18022_v37  ;;  %v18032_v48 = vsel %vm8862_vm1, %v9249_v8, 0.0 }
 0x4e0   :  { %v17965_v11 = vpop.f32.mrf.mxu0  ;;  %v9048_v30 = vmul.f32 %v18022_v37, %v18022_v37  ;;  %v18062_v17 = vrot.slane %v7173_v1, %v15059_v0  ;;  %v18080_v1 = vrot.slane %v7172_v55, %v15059_v0 }
 0x4e1   :  { %v9250_v21 = vcombine.low %v8949_v14, %v8950_v62  ;;  %v9252_v33 = vcombine.low %v8953_v59, %v8954_v61  ;;  %v9805_v59 = vcombine.low %v17944_v49, %v17952_v36  ;;  %v7174_v62 = vcombine.high %v7172_v55, %v7172_v55 }
 0x4e2   :  { %v7011_v46 = vpop.f32.mrf.mxu0  ;;  %v18039_v49 = vcombine.high %v18007_v34, %v18007_v34  ;;  %v7207_v36 = vcombine.high %v17963_v43, %v17963_v43  ;;  %21231 = vst [vmem:[#allocation119_spill] sm:$0xff] %v18062_v17  ;;  %21235 = vst [vmem:[#allocation125_spill] sm:$0xff] %v18080_v1  ;;  %v18097_v55 = vcombine.high %v18062_v17, %v18062_v17 }
 0x4e3   :  { %v9253_v46 = vcombine.low %v8955_v15, %v8956_v58  ;;  %v18011_v58 = vmul.f32 %v17863_v7, %v17863_v7  ;;  %v9260_v61 = vrot.slane %v9250_v21, %v15059_v0  ;;  %v9274_v15 = vrot.slane %v9252_v33, %v15059_v0 }
 0x4e4   :  { %v17998_v4 = vpop.f32.mrf.mxu0  ;;  %21229 = vst [vmem:[#allocation124_spill] sm:$0xff] %v18039_v49  ;;  %v9046_v21 = vmul.f32 %v17989_v60, %v17989_v60  ;;  %v18065_v8 = vrot.slane %v7174_v62, %v15059_v0  ;;  %v7746_v33 = vcombine.high %v17840_v63, %v17840_v63  ;;  %v7753_v62 = vrot.slane %v17840_v63, %v15059_v0 }
 0x4e5   :  { %21225 = vst [vmem:[#allocation113_spill] sm:$0xff] %v18011_v58  ;;  %v9281_v19 = vrot.slane %v9253_v46, %v15059_v0  ;;  %v9045_v46 = vmul.f32 %v17986_v38, %v17986_v38  ;;  %v9282_v26 = vcombine.low %v9260_v61, %v9267_v9  ;;  %v7221_v58 = vrot.slane %v7207_v36, %v15059_v0 }
 0x4e6   :  { %v7016_v18 = vpop.f32.mrf.mxu0  ;;  %21232 = vst [vmem:[#allocation118_spill] sm:$0xff] %v18065_v8  ;;  %v18074_v9 = vmul.f32 %v18014_v41, %v18014_v41  ;;  %v18077_v61 = vrot.slane %v7165_v3, %v15059_v0  ;;  %v18090_v36 = vrot.slane %v9805_v59, %v15059_v0  ;;  %21238 = vst [vmem:[#allocation117_spill] sm:$0xff] %v18097_v55 }
 0x4e7   :  { %v9283_v14 = vcombine.low %v9274_v15, %v9281_v19  ;;  %v9047_v18 = vmul.f32 %v18018_v42, %v18018_v42  ;;  %v9049_v19 = vmul.f32 %v18007_v34, %v18007_v34  ;;  %v9806_v15 = vcombine.low %v9044_v31, %v9045_v46 }
 0x4e8   :  { %21233 = vst [vmem:[#allocation121_spill] sm:$0xff] %v18074_v9  ;;  %21234 = vst [vmem:[#allocation122_spill] sm:$0xff] %v18077_v61  ;;  %v18087_v46 = vmul.f32 %v18039_v49, %v18039_v49  ;;  %v7214_v34 = vrot.slane %v17963_v43, %v15059_v0  ;;  %v9290_v3 = vrot.slane %v9282_v26, %v15059_v0 }
 0x4e9   :  { %v9297_v31 = vrot.slane %v9283_v14, %v15059_v0  ;;  %21237 = vst [vmem:[#allocation130_spill] sm:$0xff] %v18090_v36  ;;  %v9852_v37 = vcombine.low %v9046_v21, %v9047_v18  ;;  %v18101_v63 = vcombine.high %v18065_v8, %v18065_v8  ;;  %v18104_v14 = vrot.slane %v9806_v15, %v15059_v0 }
 0x4ea   :  { %21236 = vst [vmem:[#allocation120_spill] sm:$0xff] %v18087_v46  ;;  %v9853_v42 = vcombine.low %v9048_v30, %v9049_v19  ;;  %v7760_v59 = vrot.slane %v7746_v33, %v15059_v0  ;;  %v7223_v60 = vcombine.high %v7221_v58, %v7221_v58  ;;  %v18109_v43 = vcombine.high %v18077_v61, %v18077_v61 }
 0x4eb   :  { %21239 = vst [vmem:[#allocation126_spill] sm:$0xff] %v18101_v63  ;;  %21240 = vst [vmem:[#allocation132_spill] sm:$0xff] %v18104_v14  ;;  %v18113_v26 = vcombine.high %v18080_v1, %v18080_v1  ;;  %v7761_v18 = vcombine.high %v7753_v62, %v7753_v62  ;;  %v18117_v21 = vadd.f32 %v17809_v35, %v17354_v6 }
 0x4ec   :  { %21241 = vst [vmem:[#allocation123_spill] sm:$0xff] %v18109_v43  ;;  %v9298_v41 = vcombine.low %v9290_v3, %v9297_v31  ;;  %v7222_v19 = vcombine.high %v7214_v34, %v7214_v34  ;;  %v18123_v33 = vadd.f32 %v17814_v53, %v17370_v28  ;;  %v18126_v15 = vrot.slane %v9852_v37, %v15059_v0 }
 0x4ed   :  { %21242 = vst [vmem:[#allocation127_spill] sm:$0xff] %v18113_v26  ;;  %v8958_v49 = vmul.f32 %v18062_v17, %v18062_v17  ;;  %v8960_v7 = vmul.f32 %v18097_v55, %v18097_v55  ;;  %v8964_v6 = vmul.f32 %v18101_v63, %v18101_v63  ;;  %v8957_v35 = vmul.f32 %v18077_v61, %v18077_v61 }
 0x4ee   :  { %21243 = vst [vmem:[#allocation133_spill] sm:$0xff] %v18126_v15  ;;  %v8962_v31 = vmul.f32 %v18065_v8, %v18065_v8  ;;  %v7762_v28 = vcombine.high %v7760_v59, %v7760_v59  ;;  %v18139_v53 = vrot.slane %v7223_v60, %v15059_v0  ;;  %v8959_v37 = vmul.f32 %v18109_v43, %v18109_v43 }
 0x4ef   :  { %v8963_v3 = vmul.f32 %v18113_v26, %v18113_v26  ;;  %v18146_v30 = vrot.slane %v7753_v62, %v15059_v0  ;;  %v18149_v63 = vrot.slane %v7761_v18, %v15059_v0  ;;  %v10032_v55 = vsel %vm8862_vm1, %v9298_v41, 0.0 }
 0x4f0   :  { %21244 = vst [vmem:[#allocation137_spill] sm:$0xff] %v18139_v53  ;;  %v8961_v15 = vmul.f32 %v18080_v1, %v18080_v1  ;;  %v18155_v60 = vrot.slane %v7221_v58, %v15059_v0  ;;  %v18158_v46 = vrot.slane %v7222_v19, %v15059_v0  ;;  %v9299_v43 = vcombine.low %v8957_v35, %v8958_v49 }
 0x4f1   :  { %21245 = vst [vmem:[#allocation128_spill] sm:$0xff] %v18146_v30  ;;  %21246 = vst [vmem:[#allocation129_spill] sm:$0xff] %v18149_v63  ;;  %v9300_v9 = vcombine.low %v8959_v37, %v8960_v7  ;;  %v9302_v26 = vcombine.low %v8963_v3, %v8964_v6  ;;  %v18161_v62 = vrot.slane %v7760_v59, %v15059_v0 }
 0x4f2   :  { %21247 = vst [vmem:[#allocation139_spill] sm:$0xff] %v18155_v60  ;;  %21248 = vst [vmem:[#allocation136_spill] sm:$0xff] %v18158_v46  ;;  %v9301_v38 = vcombine.low %v8961_v15, %v8962_v31  ;;  %v18164_v18 = vrot.slane %v7762_v28, %v15059_v0  ;;  %v18167_v41 = vrot.slane %v7214_v34, %v15059_v0 }
 0x4f3   :  { %21249 = vst [vmem:[#allocation131_spill] sm:$0xff] %v18161_v62  ;;  %v18171_v58 = vcombine.high %v18139_v53, %v18139_v53  ;;  %v18174_v19 = vrot.slane %v9853_v42, %v15059_v0  ;;  %v18178_v7 = vcombine.high %v18146_v30, %v18146_v30  ;;  %v18182_v49 = vcombine.high %v18149_v63, %v18149_v63 }
 0x4f4   :  { %21250 = vst [vmem:[#allocation138_spill] sm:$0xff] %v18164_v18  ;;  %21251 = vst [vmem:[#allocation135_spill] sm:$0xff] %v18167_v41  ;;  %v18186_v59 = vmul.f32 %v18045_v24, %v18045_v24  ;;  %v18189_v34 = vadd.f32 %v10032_v55, %v18032_v48  ;;  %v18195_v42 = vcombine.high %v18155_v60, %v18155_v60 }
 0x4f5   :  { %21252 = vst [vmem:[#allocation134_spill] sm:$0xff] %v18171_v58  ;;  %21253 = vst [vmem:[#allocation142_spill] sm:$0xff] %v18174_v19  ;;  %v18199_v6 = vcombine.high %v18158_v46, %v18158_v46  ;;  %v9309_v35 = vrot.slane %v9299_v43, %v15059_v0  ;;  %v9316_v31 = vrot.slane %v9300_v9, %v15059_v0 }
 0x4f6   :  { %21254 = vst [vmem:[#allocation140_spill] sm:$0xff] %v18178_v7  ;;  %21255 = vst [vmem:[#allocation141_spill] sm:$0xff] %v18182_v49  ;;  %v9330_v28 = vrot.slane %v9302_v26, %v15059_v0  ;;  %v18206_v48 = vcombine.high %v18161_v62, %v18161_v62  ;;  %v9323_v37 = vrot.slane %v9301_v38, %v15059_v0 }
 0x4f7   :  { %21256 = vst [vmem:[#allocation147_spill] sm:$0xff] %v18195_v42  ;;  %21257 = vst [vmem:[#allocation143_spill] sm:$0xff] %v18199_v6  ;;  %v18213_v3 = vcombine.high %v18164_v18, %v18164_v18  ;;  %v18217_v15 = vcombine.high %v18167_v41, %v18167_v41  ;;  %v8972_v9 = vmul.f32 %v18171_v58, %v18171_v58 }
 0x4f8   :  { %21258 = vst [vmem:[#allocation144_spill] sm:$0xff] %v18206_v48  ;;  %v8970_v19 = vmul.f32 %v18139_v53, %v18139_v53  ;;  %v18231_v36 = vmul.f32 %v18146_v30, %v18146_v30  ;;  %v18235_v58 = vmul.f32 %v18149_v63, %v18149_v63  ;;  %v8968_v43 = vmul.f32 %v18199_v6, %v18199_v6 }
 0x4f9   :  { %21260 = vst [vmem:[#allocation145_spill] sm:$0xff] %v18213_v3  ;;  %21261 = vst [vmem:[#allocation150_spill] sm:$0xff] %v18217_v15  ;;  %v8971_v26 = vmul.f32 %v18195_v42, %v18195_v42  ;;  %v9332_v38 = vcombine.low %v9323_v37, %v9330_v28  ;;  %v8969_v24 = vmul.f32 %v18155_v60, %v18155_v60 }
 0x4fa   :  { %v18208_v55 = vpop.f32.mrf.mxu1  ;;  %21262 = vst [vmem:[#allocation154_spill] sm:$0xff] %v18235_v58  ;;  %v18247_v30 = vmul.f32 %v18178_v7, %v18178_v7  ;;  %v8966_v58 = vmul.f32 %v18158_v46, %v18158_v46  ;;  %v8967_v6 = vmul.f32 %v18217_v15, %v18217_v15  ;;  %v7802_v37 = vrot.slane %v17974_v27, %v15059_v0 }
 0x4fb   :  { %21259 = vst [vmem:[#allocation149_spill] sm:$0xff] %v18208_v55  ;;  %v9331_v55 = vcombine.low %v9309_v35, %v9316_v31  ;;  %v9351_v63 = vcombine.low %v8971_v26, %v8972_v9  ;;  %v18255_v35 = vmul.f32 %v18182_v49, %v18182_v49  ;;  %v18259_v31 = vmul.f32 %v18161_v62, %v18161_v62 }
 0x4fc   :  { %v7041_v14 = vpop.f32.mrf.mxu1  ;;  %21263 = vst [vmem:[#allocation30_spill] sm:$0xff] %v18247_v30  ;;  %v9350_v28 = vcombine.low %v8969_v24, %v8970_v19  ;;  %v8965_v42 = vmul.f32 %v18167_v41, %v18167_v41  ;;  %v9349_v30 = vcombine.low %v8967_v6, %v8968_v43  ;;  %v7996_v15 = vcombine.low %v17823_v51, %v17817_v13 }
 0x4fd   :  { %v7795_v14 = vcombine.high %v17974_v27, %v17974_v27  ;;  %21264 = vst [vmem:[#allocation146_spill] sm:$0xff] %v18255_v35  ;;  %21265 = vst [vmem:[#allocation158_spill] sm:$0xff] %v18259_v31  ;;  %v12730_v9 = vcombine.high %v17823_v51, %v17817_v13  ;;  %v9339_v26 = vrot.slane %v9331_v55, %v15059_v0 }
 0x4fe   :  { %v9346_v35 = vrot.slane %v9332_v38, %v15059_v0  ;;  %v18273_v24 = vmul.f32 %v18164_v18, %v18164_v18  ;;  %v9348_v19 = vcombine.low %v8965_v42, %v8966_v58  ;;  %v9379_v31 = vrot.slane %v9351_v63, %v15059_v0 }
 0x4ff   :  { %v7809_v27 = vrot.slane %v7795_v14, %v15059_v0  ;;  %v7998_v6 = vcombine.low %v17820_v45, %v17812_v10  ;;  %v12731_v43 = vcombine.high %v17820_v45, %v17812_v10  ;;  %v9372_v13 = vrot.slane %v9350_v28, %v15059_v0 }
 0x500   :  { %21266 = vst [vmem:[#allocation153_spill] sm:$0xff] %v18273_v24  ;;  %v7810_v55 = vcombine.high %v7802_v37, %v7802_v37  ;;  %v8006_v38 = vrot.slane %v7996_v15, %v15059_v0  ;;  %v8013_v51 = vrot.slane %v12730_v9, %v15059_v0  ;;  %v9365_v24 = vrot.slane %v9349_v30, %v15059_v0 }
 0x501   :  { %v8020_v14 = vrot.slane %v7998_v6, %v15059_v0  ;;  %v8027_v58 = vrot.slane %v12731_v43, %v15059_v0  ;;  %v18289_v63 = vadd.f32 %v17830_v20, %v17391_v39  ;;  %v18293_v42 = vmul.f32 %v18206_v48, %v18206_v48 }
 0x502   :  { %v9855_v28 = vcombine.low %v18186_v59, %v18231_v36  ;;  %v8028_v15 = vcombine.low %v8006_v38, %v8013_v51  ;;  %v8045_v9 = vcombine.low %v17915_v57, %v17901_v40  ;;  %v9347_v30 = vcombine.low %v9339_v26, %v9346_v35 }
 0x503   :  { %21267 = vst [vmem:[#allocation160_spill] sm:$0xff] %v18293_v42  ;;  %v9358_v6 = vrot.slane %v9348_v19, %v15059_v0  ;;  %v9381_v45 = vcombine.low %v9372_v13, %v9379_v31  ;;  %v8029_v43 = vcombine.low %v8020_v14, %v8027_v58  ;;  %v18301_v10 = vrot.slane %v7802_v37, %v15059_v0 }
 0x504   :  { %v18304_v39 = vrot.slane %v7810_v55, %v15059_v0  ;;  %v12732_v20 = vcombine.high %v17915_v57, %v17901_v40  ;;  %v8047_v51 = vcombine.low %v17911_v32, %v17891_v2  ;;  %v7811_v59 = vcombine.high %v7809_v27, %v7809_v27 }
 0x505   :  { %21268 = vst [vmem:[#allocation7_spill] sm:$0xff] %v18301_v10  ;;  %v9380_v36 = vcombine.low %v9358_v6, %v9365_v24  ;;  %v8036_v35 = vrot.slane %v8028_v15, %v15059_v0  ;;  %v8043_v26 = vrot.slane %v8029_v43, %v15059_v0  ;;  %v18313_v13 = vrot.slane %v7809_v27, %v15059_v0 }
 0x506   :  { %21269 = vst [vmem:[#allocation148_spill] sm:$0xff] %v18304_v39  ;;  %v12733_v31 = vcombine.high %v17911_v32, %v17891_v2  ;;  %v8055_v37 = vrot.slane %v8045_v9, %v15059_v0  ;;  %v8062_v19 = vrot.slane %v12732_v20, %v15059_v0  ;;  %v10034_v55 = vsel %vm8862_vm1, %v9347_v30, 0.0 }
 0x507   :  { %21270 = vst [vmem:[#allocation155_spill] sm:$0xff] %v18313_v13  ;;  %v9395_v38 = vrot.slane %v9381_v45, %v15059_v0  ;;  %v7256_v24 = vcombine.high %v18117_v21, %v18117_v21  ;;  %v8044_v14 = vcombine.low %v8036_v35, %v8043_v26  ;;  %v18325_v58 = vcombine.high %v18301_v10, %v18301_v10 }
 0x508   :  { %v18329_v27 = vcombine.high %v18304_v39, %v18304_v39  ;;  %v8069_v15 = vrot.slane %v8047_v51, %v15059_v0  ;;  %v8076_v9 = vrot.slane %v12733_v31, %v15059_v0  ;;  %v18334_v30 = vrot.slane %v9855_v28, %v15059_v0 }
 0x509   :  { %21271 = vst [vmem:[#allocation152_spill] sm:$0xff] %v18325_v58  ;;  %v9388_v45 = vrot.slane %v9380_v36, %v15059_v0  ;;  %v18339_v6 = vmul.f32 %v18213_v3, %v18213_v3  ;;  %v7263_v43 = vrot.slane %v18117_v21, %v15059_v0  ;;  %8808 = vrot.lane.b32.xlu0 %v8044_v14, %s13007_s0 }
 0x50a   :  { %21272 = vst [vmem:[#allocation4_spill] sm:$0xff] %v18329_v27  ;;  %21273 = vst [vmem:[#allocation157_spill] sm:$0xff] %v18334_v30  ;;  %v18345_v20 = vadd.f32 %v10034_v55, %v18189_v34  ;;  %v18348_v51 = vrot.slane %v7811_v59, %v15059_v0  ;;  %v18352_v28 = vcombine.high %v18313_v13, %v18313_v13 }
 0x50b   :  { %21274 = vst [vmem:[#allocation151_spill] sm:$0xff] %v18339_v6  ;;  %v8077_v36 = vcombine.low %v8055_v37, %v8062_v19  ;;  %v9396_v35 = vcombine.low %v9388_v45, %v9395_v38  ;;  %v7270_v21 = vrot.slane %v7256_v24, %v15059_v0  ;;  %v7305_v31 = vcombine.high %v18123_v33, %v18123_v33 }
 0x50c   :  { %21275 = vst [vmem:[#allocation161_spill] sm:$0xff] %v18348_v51  ;;  %21276 = vst [vmem:[#allocation156_spill] sm:$0xff] %v18352_v28  ;;  %v8078_v55 = vcombine.low %v8069_v15, %v8076_v9  ;;  %v8094_v2 = vcombine.low %v18077_v61, %v18062_v17  ;;  %v7271_v37 = vcombine.high %v7263_v43, %v7263_v43 }
 0x50d   :  { %v18366_v19 = vrot.slane %v7263_v43, %v15059_v0  ;;  %v7312_v38 = vrot.slane %v18123_v33, %v15059_v0  ;;  %v12734_v24 = vcombine.high %v18077_v61, %v18062_v17  ;;  %v8085_v45 = vrot.slane %v8077_v36, %v15059_v0 }
 0x50e   :  { %v8092_v34 = vrot.slane %v8078_v55, %v15059_v0  ;;  %v8096_v15 = vcombine.low %v18080_v1, %v18065_v8  ;;  %v12735_v9 = vcombine.high %v18080_v1, %v18065_v8  ;;  %v18379_v59 = vsel %vm8862_vm1, %v9396_v35, 0.0 }
 0x50f   :  { %21277 = vst [vmem:[#allocation9_spill] sm:$0xff] %v18366_v19  ;;  %v7272_v43 = vcombine.high %v7270_v21, %v7270_v21  ;;  %v7319_v26 = vrot.slane %v7305_v31, %v15059_v0  ;;  %v8104_v33 = vrot.slane %v8094_v2, %v15059_v0  ;;  %v8111_v61 = vrot.slane %v12734_v24, %v15059_v0 }
 0x510   :  { %v8093_v32 = vcombine.low %v8085_v45, %v8092_v34  ;;  %v8118_v36 = vrot.slane %v8096_v15, %v15059_v0  ;;  %v8125_v55 = vrot.slane %v12735_v9, %v15059_v0  ;;  %v18387_v17 = vrot.slane %v7271_v37, %v15059_v0 }
 0x511   :  { %v7320_v40 = vcombine.high %v7312_v38, %v7312_v38  ;;  %v8900_v1 = vsel %vm8862_vm1, %v8044_v14, 0.0  ;;  %v8143_v35 = vcombine.low %v18167_v41, %v18158_v46  ;;  %v8126_v31 = vcombine.low %v8104_v33, %v8111_v61 }
 0x512   :  { %21278 = vst [vmem:[#allocation14_spill] sm:$0xff] %v18387_v17  ;;  %8810 = vrot.lane.b32.xlu1 %v8093_v32, %s13007_s0  ;;  %v8901_v2 = vsel %vm8862_vm1, %v8093_v32, 0.0  ;;  %v8127_v34 = vcombine.low %v8118_v36, %v8125_v55  ;;  %v12736_v24 = vcombine.high %v18167_v41, %v18158_v46  ;;  %v18397_v45 = vrot.slane %v7270_v21, %v15059_v0 }
 0x513   :  { %v18401_v37 = vcombine.high %v18366_v19, %v18366_v19  ;;  %v18405_v14 = vmul.f32 %v18366_v19, %v18366_v19  ;;  %v8902_v15 = vadd.f32 %v8901_v2, %v8900_v1  ;;  %v18408_v9 = vrot.slane %v7272_v43, %v15059_v0 }
 0x514   :  { %21279 = vst [vmem:[#allocation8_spill] sm:$0xff] %v18397_v45  ;;  %v8134_v32 = vrot.slane %v8126_v31, %v15059_v0  ;;  %v8141_v61 = vrot.slane %v8127_v34, %v15059_v0  ;;  %v8145_v21 = vcombine.low %v18155_v60, %v18139_v53  ;;  %v18416_v33 = vcombine.high %v18387_v17, %v18387_v17 }
 0x515   :  { %21280 = vst [vmem:[#allocation159_spill] sm:$0xff] %v18401_v37  ;;  %21281 = vst [vmem:[#allocation5_spill] sm:$0xff] %v18408_v9  ;;  %v7321_v36 = vcombine.high %v7319_v26, %v7319_v26  ;;  %v18419_v55 = vrot.slane %v7312_v38, %v15059_v0  ;;  %v12737_v1 = vcombine.high %v18155_v60, %v18139_v53 }
 0x516   :  { %21282 = vst [vmem:[#allocation6_spill] sm:$0xff] %v18416_v33  ;;  %v7354_v43 = vcombine.high %v18289_v63, %v18289_v63  ;;  %v8142_v2 = vcombine.low %v8134_v32, %v8141_v61  ;;  %v8153_v31 = vrot.slane %v8143_v35, %v15059_v0  ;;  %v8160_v34 = vrot.slane %v12736_v24, %v15059_v0 }
 0x517   :  { %21283 = vst [vmem:[#allocation10_spill] sm:$0xff] %v18419_v55  ;;  %v18429_v46 = vcombine.high %v18397_v45, %v18397_v45  ;;  %v18433_v41 = vmul.f32 %v18387_v17, %v18387_v17  ;;  %v8167_v38 = vrot.slane %v8145_v21, %v15059_v0  ;;  %v8174_v53 = vrot.slane %v12737_v1, %v15059_v0 }
 0x518   :  { %v18439_v60 = vcombine.high %v18408_v9, %v18408_v9  ;;  %v18443_v35 = vmul.f32 %v18401_v37, %v18401_v37  ;;  %v18446_v24 = vrot.slane %v7319_v26, %v15059_v0  ;;  %v8903_v32 = vsel %vm8862_vm1, %v8142_v2, 0.0  ;;  %8812 = vrot.lane.b32.xlu0 %v8142_v2, %s13007_s0 }
 0x519   :  { %21284 = vst [vmem:[#allocation20_spill] sm:$0xff] %v18429_v46  ;;  %v18452_v61 = vmul.f32 %v18397_v45, %v18397_v45  ;;  %v18455_v21 = vrot.slane %v7320_v40, %v15059_v0  ;;  %v7361_v1 = vrot.slane %v18289_v63, %v15059_v0  ;;  %v8904_v8 = vadd.f32 %v8903_v32, %v8902_v15 }
 0x51a   :  { %21285 = vst [vmem:[#allocation11_spill] sm:$0xff] %v18439_v60  ;;  %21286 = vst [vmem:[#allocation18_spill] sm:$0xff] %v18446_v24  ;;  %v18461_v37 = vmul.f32 %v18416_v33, %v18416_v33  ;;  %v18465_v26 = vmul.f32 %v18408_v9, %v18408_v9  ;;  %v7368_v2 = vrot.slane %v7354_v43, %v15059_v0 }
 0x51b   :  { %21287 = vst [vmem:[#allocation16_spill] sm:$0xff] %v18455_v21  ;;  %v8175_v57 = vcombine.low %v8153_v31, %v8160_v34  ;;  %v18470_v30 = vmul.f32 %v18429_v46, %v18429_v46  ;;  %v9397_v40 = vcombine.low %v18405_v14, %v18433_v41  ;;  %v18475_v63 = vrot.slane %v7321_v36, %v15059_v0 }
 0x51c   :  { %v8176_v15 = vcombine.low %v8167_v38, %v8174_v53  ;;  %v18479_v32 = vmul.f32 %v18439_v60, %v18439_v60  ;;  %v18483_v33 = vcombine.high %v18419_v55, %v18419_v55  ;;  %v18487_v43 = vcombine.high %v18446_v24, %v18446_v24 }
 0x51d   :  { %21288 = vst [vmem:[#allocation13_spill] sm:$0xff] %v18475_v63  ;;  %v8192_v31 = vcombine.low %v18366_v19, %v18387_v17  ;;  %v7369_v41 = vcombine.high %v7361_v1, %v7361_v1  ;;  %v8183_v14 = vrot.slane %v8175_v57, %v15059_v0  ;;  %v12738_v36 = vcombine.high %v18366_v19, %v18387_v17 }
 0x51e   :  { %21289 = vst [vmem:[#allocation19_spill] sm:$0xff] %v18483_v33  ;;  %21290 = vst [vmem:[#allocation22_spill] sm:$0xff] %v18487_v43  ;;  %v8190_v53 = vrot.slane %v8176_v15, %v15059_v0  ;;  %v9398_v34 = vcombine.low %v18443_v35, %v18461_v37  ;;  %v7370_v38 = vcombine.high %v7368_v2, %v7368_v2 }
 0x51f   :  { %v8194_v60 = vcombine.low %v18397_v45, %v18408_v9  ;;  %v12739_v46 = vcombine.high %v18397_v45, %v18408_v9  ;;  %v18503_v42 = vcombine.high %v18455_v21, %v18455_v21  ;;  %v6995_v57 = vadd.f32 %v17854_v52, %v17703_v23 }
 0x520   :  { %v8191_v15 = vcombine.low %v8183_v14, %v8190_v53  ;;  %v8202_v17 = vrot.slane %v8192_v31, %v15059_v0  ;;  %v18509_v19 = vrot.slane %v7361_v1, %v15059_v0  ;;  %v8209_v37 = vrot.slane %v12738_v36, %v15059_v0 }
 0x521   :  { %21291 = vst [vmem:[#allocation21_spill] sm:$0xff] %v18503_v42  ;;  %v8216_v35 = vrot.slane %v8194_v60, %v15059_v0  ;;  %v8223_v6 = vrot.slane %v12739_v46, %v15059_v0  ;;  %v18515_v45 = vrot.slane %v7369_v41, %v15059_v0  ;;  %v8241_v23 = vcombine.low %v18419_v55, %v18455_v21 }
 0x522   :  { %21292 = vst [vmem:[#allocation23_spill] sm:$0xff] %v18509_v19  ;;  %v8905_v9 = vsel %vm8862_vm1, %v8191_v15, 0.0  ;;  %8814 = vrot.lane.b32.xlu1 %v8191_v15, %s13007_s0  ;;  %v12740_v52 = vcombine.high %v18419_v55, %v18455_v21  ;;  %v18524_v1 = vrot.slane %v7370_v38, %v15059_v0  ;;  %v8224_v60 = vcombine.low %v8202_v17, %v8209_v37 }
 0x523   :  { %21293 = vst [vmem:[#allocation24_spill] sm:$0xff] %v18515_v45  ;;  %v8906_v31 = vadd.f32 %v8905_v9, %v8904_v8  ;;  %v8225_v14 = vcombine.low %v8216_v35, %v8223_v6  ;;  %v7403_v46 = vcombine.high %v6995_v57, %v6995_v57  ;;  %v8243_v41 = vcombine.low %v18446_v24, %v18475_v63 }
 0x524   :  { %21294 = vst [vmem:[#allocation26_spill] sm:$0xff] %v18524_v1  ;;  %v12741_v53 = vcombine.high %v18446_v24, %v18475_v63  ;;  %v8251_v36 = vrot.slane %v8241_v23, %v15059_v0  ;;  %v18532_v15 = vrot.slane %v7368_v2, %v15059_v0  ;;  %v8232_v13 = vrot.slane %v8224_v60, %v15059_v0 }
 0x525   :  { %v8239_v38 = vrot.slane %v8225_v14, %v15059_v0  ;;  %v8258_v8 = vrot.slane %v12740_v52, %v15059_v0  ;;  %v8265_v17 = vrot.slane %v8243_v41, %v15059_v0  ;;  %v8290_v9 = vcombine.low %v18509_v19, %v18515_v45 }
 0x526   :  { %21295 = vst [vmem:[#allocation42_spill] sm:$0xff] %v18532_v15  ;;  %v8272_v6 = vrot.slane %v12741_v53, %v15059_v0  ;;  %v12742_v37 = vcombine.high %v18509_v19, %v18515_v45  ;;  %v8292_v2 = vcombine.low %v18532_v15, %v18524_v1  ;;  %v12743_v60 = vcombine.high %v18532_v15, %v18524_v1 }
 0x527   :  { %v8240_v35 = vcombine.low %v8232_v13, %v8239_v38  ;;  %v8273_v23 = vcombine.low %v8251_v36, %v8258_v8  ;;  %v7417_v52 = vrot.slane %v7403_v46, %v15059_v0  ;;  %v8300_v41 = vrot.slane %v8290_v9, %v15059_v0 }
 0x528   :  { %v8274_v14 = vcombine.low %v8265_v17, %v8272_v6  ;;  %v8307_v53 = vrot.slane %v12742_v37, %v15059_v0  ;;  %v7410_v27 = vrot.slane %v6995_v57, %v15059_v0  ;;  %v8314_v13 = vrot.slane %v8292_v2, %v15059_v0 }
 0x529   :  { %v8907_v58 = vsel %vm8862_vm1, %v8240_v35, 0.0  ;;  %8816 = vrot.lane.b32.xlu0 %v8240_v35, %s13007_s0  ;;  %v8321_v36 = vrot.slane %v12743_v60, %v15059_v0  ;;  %v8281_v8 = vrot.slane %v8273_v23, %v15059_v0  ;;  %v9399_v6 = vcombine.low %v18452_v61, %v18465_v26 }
 0x52a   :  { %v8908_v38 = vadd.f32 %v8907_v58, %v8906_v31  ;;  %v8288_v46 = vrot.slane %v8274_v14, %v15059_v0  ;;  %v8322_v17 = vcombine.low %v8300_v41, %v8307_v53  ;;  %v9407_v9 = vrot.slane %v9397_v40, %v15059_v0 }
 0x52b   :  { %v18562_v57 = vcombine.high %v18475_v63, %v18475_v63  ;;  %v8323_v37 = vcombine.low %v8314_v13, %v8321_v36  ;;  %v9400_v35 = vcombine.low %v18470_v30, %v18479_v32  ;;  %v9414_v58 = vrot.slane %v9398_v34, %v15059_v0 }
 0x52c   :  { %v7419_v31 = vcombine.high %v7417_v52, %v7417_v52  ;;  %v8289_v23 = vcombine.low %v8281_v8, %v8288_v46  ;;  %v8982_v2 = vmul.f32 %v18455_v21, %v18455_v21  ;;  %v8984_v61 = vmul.f32 %v18503_v42, %v18503_v42 }
 0x52d   :  { %21296 = vst [vmem:[#allocation48_spill] sm:$0xff] %v18562_v57  ;;  %v8330_v26 = vrot.slane %v8322_v17, %v15059_v0  ;;  %v8337_v40 = vrot.slane %v8323_v37, %v15059_v0  ;;  %v8981_v60 = vmul.f32 %v18419_v55, %v18419_v55  ;;  %v8986_v30 = vmul.f32 %v18475_v63, %v18475_v63 }
 0x52e   :  { %v7418_v32 = vcombine.high %v7410_v27, %v7410_v27  ;;  %v8909_v34 = vsel %vm8862_vm1, %v8289_v23, 0.0  ;;  %8818 = vrot.lane.b32.xlu1 %v8289_v23, %s13007_s0  ;;  %v18580_v14 = vrot.slane %v9399_v6, %v15059_v0  ;;  %v8983_v41 = vmul.f32 %v18483_v33, %v18483_v33 }
 0x52f   :  { %v8910_v53 = vadd.f32 %v8909_v34, %v8908_v38  ;;  %v8338_v13 = vcombine.low %v8330_v26, %v8337_v40  ;;  %v9428_v36 = vrot.slane %v9400_v35, %v15059_v0  ;;  %v9429_v8 = vcombine.low %v9407_v9, %v9414_v58 }
 0x530   :  { %v8985_v46 = vmul.f32 %v18446_v24, %v18446_v24  ;;  %v18588_v17 = vrot.slane %v7419_v31, %v15059_v0  ;;  %v8988_v37 = vmul.f32 %v18562_v57, %v18562_v57  ;;  %v9446_v23 = vcombine.low %v8981_v60, %v8982_v2 }
 0x531   :  { %v9447_v6 = vcombine.low %v8983_v41, %v8984_v61  ;;  %v8911_v63 = vsel %vm8862_vm1, %v8338_v13, 0.0  ;;  %8820 = vrot.lane.b32.xlu0 %v8338_v13, %s13007_s0  ;;  %v18595_v26 = vrot.slane %v7417_v52, %v15059_v0  ;;  %v18598_v9 = vrot.slane %v7418_v32, %v15059_v0 }
 0x532   :  { %21297 = vst [vmem:[#allocation55_spill] sm:$0xff] %v18588_v17  ;;  %v9448_v38 = vcombine.low %v8985_v46, %v8986_v30  ;;  %v18600_v35 = vadd.f32 %v8911_v63, %v8910_v53  ;;  %v8987_v58 = vmul.f32 %v18487_v43, %v18487_v43  ;;  %v18606_v31 = vcombine.high %v18509_v19, %v18509_v19 }
 0x533   :  { %21298 = vst [vmem:[#allocation52_spill] sm:$0xff] %v18595_v26  ;;  %21299 = vst [vmem:[#allocation44_spill] sm:$0xff] %v18598_v9  ;;  %v18610_v2 = vcombine.high %v18515_v45, %v18515_v45  ;;  %v18614_v52 = vcombine.high %v18524_v1, %v18524_v1  ;;  %v9430_v61 = vcombine.low %v18580_v14, %v9428_v36 }
 0x534   :  { %21300 = vst [vmem:[#allocation65_spill] sm:$0xff] %v18606_v31  ;;  %v18619_v63 = vcombine.high %v18532_v15, %v18532_v15  ;;  %v18622_v40 = vrot.slane %v7410_v27, %v15059_v0  ;;  %v18626_v60 = vcombine.high %v18588_v17, %v18588_v17  ;;  %v18629_v30 = vrot.slane %v9429_v8, %v15059_v0 }
 0x535   :  { %21301 = vst [vmem:[#allocation29_spill] sm:$0xff] %v18610_v2  ;;  %21302 = vst [vmem:[#allocation87_spill] sm:$0xff] %v18614_v52  ;;  %v9449_v32 = vcombine.low %v8987_v58, %v8988_v37  ;;  %v18632_v34 = vrot.slane %v9446_v23, %v15059_v0  ;;  %v18635_v14 = vrot.slane %v9447_v6, %v15059_v0 }
 0x536   :  { %21303 = vst [vmem:[#allocation28_spill] sm:$0xff] %v18619_v63  ;;  %21304 = vst [vmem:[#allocation32_spill] sm:$0xff] %v18622_v40  ;;  %v18638_v41 = vrot.slane %v9448_v38, %v15059_v0  ;;  %v8989_v27 = vmul.f32 %v18509_v19, %v18509_v19  ;;  %v18644_v53 = vcombine.high %v18595_v26, %v18595_v26 }
 0x537   :  { %21305 = vst [vmem:[#allocation34_spill] sm:$0xff] %v18626_v60  ;;  %v18648_v13 = vcombine.high %v18598_v9, %v18598_v9  ;;  %v8991_v36 = vmul.f32 %v18606_v31, %v18606_v31  ;;  %v8992_v8 = vmul.f32 %v18610_v2, %v18610_v2  ;;  %v8994_v46 = vmul.f32 %v18524_v1, %v18524_v1 }
 0x538   :  { %21306 = vst [vmem:[#allocation36_spill] sm:$0xff] %v18644_v53  ;;  %v8996_v37 = vmul.f32 %v18614_v52, %v18614_v52  ;;  %v8993_v23 = vmul.f32 %v18532_v15, %v18532_v15  ;;  %v8995_v6 = vmul.f32 %v18619_v63, %v18619_v63  ;;  %v18664_v38 = vcombine.high %v18622_v40, %v18622_v40 }
 0x539   :  { %21307 = vst [vmem:[#allocation39_spill] sm:$0xff] %v18648_v13  ;;  %v9004_v58 = vmul.f32 %v18626_v60, %v18626_v60  ;;  %v9002_v2 = vmul.f32 %v18588_v17, %v18588_v17  ;;  %v7000_v1 = vadd.f32 %v17893_v12, %v17775_v50  ;;  %v8339_v52 = vcombine.low %v18622_v40, %v18598_v9 }
 0x53a   :  { %21308 = vst [vmem:[#allocation68_spill] sm:$0xff] %v18664_v38  ;;  %v12744_v15 = vcombine.high %v18622_v40, %v18598_v9  ;;  %v9000_v63 = vmul.f32 %v18648_v13, %v18648_v13  ;;  %v9003_v31 = vmul.f32 %v18644_v53, %v18644_v53  ;;  %v8341_v60 = vcombine.low %v18595_v26, %v18588_v17 }
 0x53b   :  { %v12745_v19 = vcombine.high %v18595_v26, %v18588_v17  ;;  %v8990_v50 = vmul.f32 %v18515_v45, %v18515_v45  ;;  %v9496_v12 = vcombine.low %v8991_v36, %v8992_v8  ;;  %v9497_v43 = vcombine.low %v8993_v23, %v8994_v46 }
 0x53c   :  { %v9498_v24 = vcombine.low %v8995_v6, %v8996_v37  ;;  %v8998_v57 = vmul.f32 %v18598_v9, %v18598_v9  ;;  %v8999_v13 = vmul.f32 %v18664_v38, %v18664_v38  ;;  %v9001_v53 = vmul.f32 %v18595_v26, %v18595_v26 }
 0x53d   :  { %v9547_v33 = vcombine.low %v9003_v31, %v9004_v58  ;;  %v8997_v21 = vmul.f32 %v18622_v40, %v18622_v40  ;;  %v7459_v17 = vrot.slane %v7000_v1, %v15059_v0  ;;  %v8349_v45 = vrot.slane %v8339_v52, %v15059_v0 }
 0x53e   :  { %v8356_v36 = vrot.slane %v12744_v15, %v15059_v0  ;;  %v9545_v8 = vcombine.low %v8999_v13, %v9000_v63  ;;  %v9546_v46 = vcombine.low %v9001_v53, %v9002_v2  ;;  %v8363_v37 = vrot.slane %v8341_v60, %v15059_v0 }
 0x53f   :  { %v8370_v23 = vrot.slane %v12745_v19, %v15059_v0  ;;  %v18700_v6 = vrot.slane %v9430_v61, %v15059_v0  ;;  %v9477_v31 = vrot.slane %v9449_v32, %v15059_v0  ;;  %v9495_v58 = vcombine.low %v8989_v27, %v8990_v50 }
 0x540   :  { %v9526_v26 = vrot.slane %v9498_v24, %v15059_v0  ;;  %v9478_v38 = vcombine.low %v18632_v34, %v18635_v14  ;;  %v9519_v52 = vrot.slane %v9497_v43, %v15059_v0  ;;  %v9544_v15 = vcombine.low %v8997_v21, %v8998_v57 }
 0x541   :  { %v9575_v2 = vrot.slane %v9547_v33, %v15059_v0  ;;  %v7452_v63 = vcombine.high %v7000_v1, %v7000_v1  ;;  %v18709_v60 = vrot.slane %v7459_v17, %v15059_v0  ;;  %v7005_v19 = vadd.f32 %v17930_v5, %v17783_v29 }
 0x542   :  { %v8371_v61 = vcombine.low %v8349_v45, %v8356_v36  ;;  %v9512_v32 = vrot.slane %v9496_v12, %v15059_v0  ;;  %v9561_v24 = vrot.slane %v9545_v8, %v15059_v0  ;;  %v9568_v27 = vrot.slane %v9546_v46, %v15059_v0 }
 0x543   :  { %21309 = vst [vmem:[#allocation76_spill] sm:$0xff] %v18709_v60  ;;  %v8372_v34 = vcombine.low %v8363_v37, %v8370_v23  ;;  %v9479_v43 = vcombine.low %v18638_v41, %v9477_v31  ;;  %v9505_v21 = vrot.slane %v9495_v58, %v15059_v0  ;;  %v9528_v33 = vcombine.low %v9519_v52, %v9526_v26 }
 0x544   :  { %v7467_v1 = vcombine.high %v7459_v17, %v7459_v17  ;;  %v9554_v57 = vrot.slane %v9544_v15, %v15059_v0  ;;  %v9577_v14 = vcombine.low %v9568_v27, %v9575_v2  ;;  %v8379_v53 = vrot.slane %v8371_v61, %v15059_v0 }
 0x545   :  { %v8386_v29 = vrot.slane %v8372_v34, %v15059_v0  ;;  %v9445_v5 = vcombine.low %v18629_v30, %v18700_v6  ;;  %v7466_v45 = vrot.slane %v7452_v63, %v15059_v0  ;;  %v7501_v13 = vcombine.high %v7005_v19, %v7005_v19 }
 0x546   :  { %v8394_v41 = vrot.slane %v18709_v60, %v15059_v0  ;;  %v9527_v50 = vcombine.low %v9505_v21, %v9512_v32  ;;  %v9576_v12 = vcombine.low %v9554_v57, %v9561_v24  ;;  %v7010_v17 = vadd.f32 %v17965_v11, %v17791_v47 }
 0x547   :  { %v8387_v26 = vcombine.low %v8379_v53, %v8386_v29  ;;  %v18729_v36 = vrot.slane %v9478_v38, %v15059_v0  ;;  %v18732_v8 = vrot.slane %v9479_v43, %v15059_v0  ;;  %v18735_v46 = vrot.slane %v7467_v1, %v15059_v0 }
 0x548   :  { %v8401_v37 = vrot.slane %v8394_v41, %v15059_v0  ;;  %v18739_v23 = vrot.slane %v9528_v33, %v15059_v0  ;;  %v18742_v31 = vrot.slane %v9577_v14, %v15059_v0  ;;  %v7508_v58 = vrot.slane %v7005_v19, %v15059_v0 }
 0x549   :  { %21310 = vst [vmem:[#allocation77_spill] sm:$0xff] %v18729_v36  ;;  %21311 = vst [vmem:[#allocation17_spill] sm:$0xff] %v18732_v8  ;;  %v8913_v47 = vsel %vm8862_vm1, %v8387_v26, 0.0  ;;  %8822 = vrot.lane.b32.xlu1 %v8387_v26, %s13007_s0  ;;  %v7468_v11 = vcombine.high %v7466_v45, %v7466_v45  ;;  %v18748_v38 = vrot.slane %v7466_v45, %v15059_v0 }
 0x54a   :  { %21312 = vst [vmem:[#allocation15_spill] sm:$0xff] %v18735_v46  ;;  %21313 = vst [vmem:[#allocation31_spill] sm:$0xff] %v18739_v23  ;;  %v7515_v52 = vrot.slane %v7501_v13, %v15059_v0  ;;  %v8914_v15 = vadd.f32 %v8913_v47, %v18600_v35  ;;  %8824 = vrot.lane.b32.xlu0 %v8401_v37, %s13007_s0  ;;  %v18754_v2 = vrot.slane %v9527_v50, %v15059_v0 }
 0x54b   :  { %21314 = vst [vmem:[#allocation25_spill] sm:$0xff] %v18742_v31  ;;  %21315 = vst [vmem:[#allocation38_spill] sm:$0xff] %v18748_v38  ;;  %v18757_v63 = vrot.slane %v9576_v12, %v15059_v0  ;;  %v18761_v19 = vcombine.high %v18709_v60, %v18709_v60  ;;  %v7550_v61 = vcombine.high %v7010_v17, %v7010_v17 }
 0x54c   :  { %21316 = vst [vmem:[#allocation33_spill] sm:$0xff] %v18754_v2  ;;  %v18767_v24 = vcombine.high %v18735_v46, %v18735_v46  ;;  %v7557_v35 = vrot.slane %v7010_v17, %v15059_v0  ;;  %v18776_v43 = vadd.f32 %v18379_v59, %v18345_v20  ;;  %v7516_v21 = vcombine.high %v7508_v58, %v7508_v58 }
 0x54d   :  { %21317 = vst [vmem:[#allocation64_spill] sm:$0xff] %v18757_v63  ;;  %21318 = vst [vmem:[#allocation72_spill] sm:$0xff] %v18761_v19  ;;  %v18779_v33 = vrot.slane %v7468_v11, %v15059_v0  ;;  %v18783_v1 = vcombine.high %v18748_v38, %v18748_v38  ;;  %v7517_v57 = vcombine.high %v7515_v52, %v7515_v52  ;;  %v8915_v59 = vsel %vm8871_vm2, %v8401_v37, 0.0 }
 0x54e   :  { %21319 = vst [vmem:[#allocation61_spill] sm:$0xff] %v18767_v24  ;;  %21320 = vst [vmem:[#allocation66_spill] sm:$0xff] %v18776_v43  ;;  %v7015_v14 = vadd.f32 %v17998_v4, %v17793_v44  ;;  %v9006_v53 = vmul.f32 %v18735_v46, %v18735_v46  ;;  %v9007_v29 = vmul.f32 %v18761_v19, %v18761_v19 }
 0x54f   :  { %21321 = vst [vmem:[#allocation27_spill] sm:$0xff] %v18779_v33  ;;  %21322 = vst [vmem:[#allocation69_spill] sm:$0xff] %v18783_v1  ;;  %v7564_v20 = vrot.slane %v7550_v61, %v15059_v0  ;;  %v18795_v45 = vmul.f32 %v18709_v60, %v18709_v60  ;;  %v9008_v13 = vmul.f32 %v18767_v24, %v18767_v24 }
 0x550   :  { %v7565_v41 = vcombine.high %v7557_v35, %v7557_v35  ;;  %v18799_v50 = vadd.f32 %v8915_v59, %v8914_v15  ;;  %v8402_v44 = vcombine.low %v18735_v46, %v18761_v19  ;;  %v9009_v4 = vmul.f32 %v18748_v38, %v18748_v38 }
 0x551   :  { %21323 = vst [vmem:[#allocation70_spill] sm:$0xff] %v18795_v45  ;;  %v18806_v12 = vrot.slane %v7508_v58, %v15059_v0  ;;  %v18809_v26 = vrot.slane %v7516_v21, %v15059_v0  ;;  %v18813_v17 = vcombine.high %v18779_v33, %v18779_v33  ;;  %v9010_v37 = vmul.f32 %v18779_v33, %v18779_v33 }
 0x552   :  { %v18818_v47 = vrot.slane %v7517_v57, %v15059_v0  ;;  %v7599_v11 = vcombine.high %v7015_v14, %v7015_v14  ;;  %v9011_v15 = vmul.f32 %v18783_v1, %v18783_v1  ;;  %v9607_v61 = vcombine.low %v9006_v53, %v9007_v29 }
 0x553   :  { %21324 = vst [vmem:[#allocation71_spill] sm:$0xff] %v18813_v17  ;;  %v7566_v58 = vcombine.high %v7564_v20, %v7564_v20  ;;  %v18823_v59 = vrot.slane %v7557_v35, %v15059_v0  ;;  %v8403_v21 = vcombine.low %v18767_v24, %v18748_v38  ;;  %v9608_v27 = vcombine.low %v9008_v13, %v9009_v4 }
 0x554   :  { %21325 = vst [vmem:[#allocation73_spill] sm:$0xff] %v18818_v47  ;;  %v18830_v32 = vrot.slane %v7565_v41, %v15059_v0  ;;  %v18833_v57 = vrot.slane %v7515_v52, %v15059_v0  ;;  %v18837_v53 = vcombine.high %v18806_v12, %v18806_v12  ;;  %v18841_v35 = vcombine.high %v18809_v26, %v18809_v26 }
 0x555   :  { %v7606_v29 = vrot.slane %v7015_v14, %v15059_v0  ;;  %v18848_v13 = vsel %vm8862_vm1, %v9445_v5, 0.0  ;;  %v18852_v52 = vcombine.high %v18818_v47, %v18818_v47  ;;  %v18855_v41 = vrot.slane %v7564_v20, %v15059_v0 }
 0x556   :  { %21326 = vst [vmem:[#allocation74_spill] sm:$0xff] %v18830_v32  ;;  %21327 = vst [vmem:[#allocation78_spill] sm:$0xff] %v18848_v13  ;;  %v7613_v4 = vrot.slane %v7599_v11, %v15059_v0  ;;  %v9609_v34 = vcombine.low %v9010_v37, %v9011_v15  ;;  %v18859_v60 = vrot.slane %v9607_v61, %v15059_v0 }
 0x557   :  { %v18862_v14 = vrot.slane %v7566_v58, %v15059_v0  ;;  %v18866_v30 = vcombine.high %v18823_v59, %v18823_v59  ;;  %v18869_v6 = vrot.slane %v9608_v27, %v15059_v0  ;;  %v8405_v5 = vcombine.low %v18813_v17, %v18806_v12 }
 0x558   :  { %v18875_v20 = vmul.f32 %v18813_v17, %v18813_v17  ;;  %v18879_v37 = vcombine.high %v18830_v32, %v18830_v32  ;;  %v18883_v11 = vcombine.high %v18833_v57, %v18833_v57  ;;  %v8451_v15 = vcombine.low %v18809_v26, %v18837_v53 }
 0x559   :  { %21328 = vst [vmem:[#allocation75_spill] sm:$0xff] %v18862_v14  ;;  %21329 = vst [vmem:[#allocation81_spill] sm:$0xff] %v18866_v30  ;;  %v8452_v27 = vcombine.low %v18841_v35, %v18833_v57  ;;  %v7614_v61 = vcombine.high %v7606_v29, %v7606_v29  ;;  %v18891_v58 = vcombine.high %v18855_v41, %v18855_v41 }
 0x55a   :  { %21330 = vst [vmem:[#allocation35_spill] sm:$0xff] %v18879_v37  ;;  %v8454_v9 = vcombine.low %v18852_v52, %v18823_v59  ;;  %v7615_v40 = vcombine.high %v7613_v4, %v7613_v4  ;;  %v8404_v55 = vcombine.low %v18779_v33, %v18783_v1  ;;  %v18899_v42 = vcombine.high %v18862_v14, %v18862_v14 }
 0x55b   :  { %21331 = vst [vmem:[#allocation47_spill] sm:$0xff] %v18891_v58  ;;  %v8500_v17 = vcombine.low %v18830_v32, %v18866_v30  ;;  %v8412_v24 = vrot.slane %v8402_v44, %v15059_v0  ;;  %v8419_v46 = vrot.slane %v8403_v21, %v15059_v0  ;;  %v8501_v38 = vcombine.low %v18879_v37, %v18855_v41 }
 0x55c   :  { %21332 = vst [vmem:[#allocation45_spill] sm:$0xff] %v18899_v42  ;;  %v18908_v19 = vrot.slane %v7606_v29, %v15059_v0  ;;  %v8426_v31 = vrot.slane %v8404_v55, %v15059_v0  ;;  %v8433_v1 = vrot.slane %v8405_v5, %v15059_v0  ;;  %v18913_v33 = vrot.slane %v7613_v4, %v15059_v0 }
 0x55d   :  { %v18916_v63 = vrot.slane %v7614_v61, %v15059_v0  ;;  %v8434_v45 = vcombine.low %v8412_v24, %v8419_v46  ;;  %v8453_v44 = vcombine.low %v18818_v47, %v18883_v11  ;;  %v18921_v21 = vrot.slane %v7615_v40, %v15059_v0 }
 0x55e   :  { %21333 = vst [vmem:[#allocation50_spill] sm:$0xff] %v18908_v19  ;;  %21334 = vst [vmem:[#allocation46_spill] sm:$0xff] %v18913_v33  ;;  %v8435_v23 = vcombine.low %v8426_v31, %v8433_v1  ;;  %v8461_v29 = vrot.slane %v8451_v15, %v15059_v0  ;;  %v8468_v55 = vrot.slane %v8452_v27, %v15059_v0 }
 0x55f   :  { %21335 = vst [vmem:[#allocation49_spill] sm:$0xff] %v18916_v63  ;;  %21336 = vst [vmem:[#allocation54_spill] sm:$0xff] %v18921_v21  ;;  %v18926_v5 = vrot.slane %v9609_v34, %v15059_v0  ;;  %v8503_v4 = vcombine.low %v18899_v42, %v18908_v19  ;;  %v8475_v61 = vrot.slane %v8453_v44, %v15059_v0 }
 0x560   :  { %v8482_v46 = vrot.slane %v8454_v9, %v15059_v0  ;;  %v18934_v24 = vcombine.high %v18908_v19, %v18908_v19  ;;  %v8442_v40 = vrot.slane %v8434_v45, %v15059_v0  ;;  %v8449_v31 = vrot.slane %v8435_v23, %v15059_v0 }
 0x561   :  { %v8483_v1 = vcombine.low %v8461_v29, %v8468_v55  ;;  %v18940_v34 = vcombine.high %v18916_v63, %v18916_v63  ;;  %v8502_v27 = vcombine.low %v18862_v14, %v18891_v58  ;;  %v8517_v44 = vrot.slane %v8501_v38, %v15059_v0 }
 0x562   :  { %21337 = vst [vmem:[#allocation41_spill] sm:$0xff] %v18934_v24  ;;  %v8484_v15 = vcombine.low %v8475_v61, %v8482_v46  ;;  %v18947_v9 = vcombine.high %v18913_v33, %v18913_v33  ;;  %v18951_v45 = vcombine.high %v18921_v21, %v18921_v21  ;;  %v8450_v23 = vcombine.low %v8442_v40, %v8449_v31 }
 0x563   :  { %21338 = vst [vmem:[#allocation53_spill] sm:$0xff] %v18940_v34  ;;  %v8510_v29 = vrot.slane %v8500_v17, %v15059_v0  ;;  %v8491_v55 = vrot.slane %v8483_v1, %v15059_v0  ;;  %v8524_v46 = vrot.slane %v8502_v27, %v15059_v0  ;;  %v8531_v2 = vrot.slane %v8503_v4, %v15059_v0 }
 0x564   :  { %21339 = vst [vmem:[#allocation59_spill] sm:$0xff] %v18947_v9  ;;  %21340 = vst [vmem:[#allocation37_spill] sm:$0xff] %v18951_v45  ;;  %v8498_v61 = vrot.slane %v8484_v15, %v15059_v0  ;;  %v8549_v38 = vcombine.low %v18916_v63, %v18934_v24  ;;  %v8917_v13 = vsel %vm8862_vm1, %v8450_v23, 0.0  ;;  %8826 = vrot.lane.b32.xlu1 %v8450_v23, %s13007_s0  ;;  %v21342_v23 = vld [vmem:[#allocation99_spill] sm:$0xff] }
 0x565   :  { %v8532_v43 = vcombine.low %v8510_v29, %v8517_v44  ;;  %v8600_v40 = vcombine.low %v17880_v54, %v17898_v16  ;;  %v8550_v17 = vcombine.low %v18940_v34, %v18913_v33  ;;  %v8918_v31 = vadd.f32 %v8917_v13, %v18799_v50  ;;  %v21343_v44 = vld [vmem:[#allocation96_spill] sm:$0xff] }
 0x566   :  { %v8499_v1 = vcombine.low %v8491_v55, %v8498_v61  ;;  %v8533_v15 = vcombine.low %v8524_v46, %v8531_v2  ;;  %v21341_v27 = vcombine.low %v17870_v56, %v17884_v22  ;;  %v21344_v29 = vcombine.low %v21342_v23, %v21343_v44 }
 0x567   :  { %v8540_v4 = vrot.slane %v8532_v43, %v15059_v0  ;;  %v8622_v54 = vrot.slane %v8600_v40, %v15059_v0  ;;  %v21345_v43 = vld [vmem:[#allocation111_spill] sm:$0xff]  ;;  %v8551_v55 = vcombine.low %v18921_v21, %v18947_v9  ;;  %v8559_v40 = vrot.slane %v8549_v38, %v15059_v0 }
 0x568   :  { %v8608_v8 = vrot.slane %v21341_v27, %v15059_v0  ;;  %v8615_v36 = vrot.slane %v21344_v29, %v15059_v0  ;;  %v8919_v16 = vsel %vm8862_vm1, %v8499_v1, 0.0  ;;  %8828 = vrot.lane.b32.xlu0 %v8499_v1, %s13007_s0  ;;  %v8547_v2 = vrot.slane %v8533_v15, %v15059_v0  ;;  %v21347_v27 = vld [vmem:[#allocation93_spill] sm:$0xff] }
 0x569   :  { %v21346_v50 = vcombine.low %v17906_v25, %v21345_v43  ;;  %v8920_v61 = vadd.f32 %v8919_v16, %v8918_v31  ;;  %v8552_v29 = vcombine.low %v18951_v45, %v21347_v27  ;;  %v8566_v1 = vrot.slane %v8550_v17, %v15059_v0  ;;  %v21348_v16 = vld [vmem:[#allocation129_spill] sm:$0xff] }
 0x56a   :  { %v8630_v46 = vcombine.low %v8608_v8, %v8615_v36  ;;  %v8548_v56 = vcombine.low %v8540_v4, %v8547_v2  ;;  %v8573_v15 = vrot.slane %v8551_v55, %v15059_v0  ;;  %v8698_v25 = vcombine.low %v18164_v18, %v18206_v48 }
 0x56b   :  { %v8629_v13 = vrot.slane %v21346_v50, %v15059_v0  ;;  %v8580_v50 = vrot.slane %v8552_v29, %v15059_v0  ;;  %v21349_v36 = vcombine.low %v21348_v16, %v18178_v7  ;;  %v8581_v17 = vcombine.low %v8559_v40, %v8566_v1  ;;  %v21353_v40 = vld [vmem:[#allocation109_spill] sm:$0xff] }
 0x56c   :  { %v8638_v23 = vrot.slane %v8630_v46, %v15059_v0  ;;  %v8921_v38 = vsel %vm8862_vm1, %v8548_v56, 0.0  ;;  %8830 = vrot.lane.b32.xlu1 %v8548_v56, %s13007_s0  ;;  %v21350_v31 = vcombine.low %v18182_v49, %v18161_v62  ;;  %v8720_v55 = vrot.slane %v8698_v25, %v15059_v0  ;;  %v21363_v62 = vld [vmem:[#allocation80_spill] sm:$0xff] }
 0x56d   :  { %v8631_v22 = vcombine.low %v8622_v54, %v8629_v13  ;;  %v8706_v8 = vrot.slane %v21349_v36, %v15059_v0  ;;  %v8922_v2 = vadd.f32 %v8921_v38, %v8920_v61  ;;  %v8582_v13 = vcombine.low %v8573_v15, %v8580_v50  ;;  %v21354_v61 = vld [vmem:[#allocation108_spill] sm:$0xff]  ;;  %v21355_v15 = vld [vmem:[#allocation115_spill] sm:$0xff]  ;;  %v21357_v38 = vld [vmem:[#allocation114_spill] sm:$0xff] }
 0x56e   :  { %v8713_v4 = vrot.slane %v21350_v31, %v15059_v0  ;;  %v21351_v46 = vcombine.low %v18213_v3, %v18301_v10  ;;  %v8589_v56 = vrot.slane %v8581_v17, %v15059_v0  ;;  %v21356_v50 = vcombine.low %v21354_v61, %v21355_v15  ;;  %v21358_v31 = vld [vmem:[#allocation103_spill] sm:$0xff]  ;;  %v21360_v17 = vld [vmem:[#allocation116_spill] sm:$0xff] }
 0x56f   :  { %v8645_v54 = vrot.slane %v8631_v22, %v15059_v0  ;;  %v21352_v22 = vld [vmem:[#allocation124_spill] sm:$0xff]  ;;  %v8596_v16 = vrot.slane %v8582_v13, %v15059_v0  ;;  %v21359_v3 = vcombine.low %v21357_v38, %v21358_v31  ;;  %v9021_v15 = vmul.f32 %v18823_v59, %v18823_v59 }
 0x570   :  { %v8727_v29 = vrot.slane %v21351_v46, %v15059_v0  ;;  %v8728_v18 = vcombine.low %v8706_v8, %v8713_v4  ;;  %v8649_v1 = vcombine.low %v21353_v40, %v21352_v22  ;;  %v8657_v25 = vrot.slane %v21356_v50, %v15059_v0  ;;  %v21361_v4 = vld [vmem:[#allocation128_spill] sm:$0xff] }
 0x571   :  { %v8646_v36 = vcombine.low %v8638_v23, %v8645_v54  ;;  %v8664_v46 = vrot.slane %v21359_v3, %v15059_v0  ;;  %v9013_v23 = vmul.f32 %v18806_v12, %v18806_v12  ;;  %v21362_v13 = vcombine.low %v21360_v17, %v21361_v4  ;;  %v21364_v3 = vld [vmem:[#allocation149_spill] sm:$0xff]  ;;  %v21371_v17 = vld [vmem:[#allocation155_spill] sm:$0xff] }
 0x572   :  { %v8729_v49 = vcombine.low %v8720_v55, %v8727_v29  ;;  %v8736_v8 = vrot.slane %v8728_v18, %v15059_v0  ;;  %v8671_v54 = vrot.slane %v8649_v1, %v15059_v0  ;;  %v8597_v29 = vcombine.low %v8589_v56, %v8596_v16 }
 0x573   :  { %8834 = vrot.lane.b32.xlu1 %v8646_v36, %s13007_s0  ;;  %v8678_v55 = vrot.slane %v21362_v13, %v15059_v0  ;;  %v8679_v48 = vcombine.low %v8657_v25, %v8664_v46  ;;  %v7040_v7 = vadd.f32 %v21364_v3, %v21363_v62  ;;  %v19037_v40 = vmul.f32 %v18809_v26, %v18809_v26 }
 0x574   :  { %v8743_v50 = vrot.slane %v8729_v49, %v15059_v0  ;;  %v19041_v18 = vmul.f32 %v18837_v53, %v18837_v53  ;;  %v19045_v1 = vmul.f32 %v18833_v57, %v18833_v57  ;;  %v9610_v16 = vcombine.low %v18875_v20, %v9013_v23  ;;  %8832 = vrot.lane.b32.xlu0 %v8597_v29, %s13007_s0 }
 0x575   :  { %v8680_v13 = vcombine.low %v8671_v54, %v8678_v55  ;;  %v8923_v49 = vsel %vm8862_vm1, %v8597_v29, 0.0  ;;  %v7850_v56 = vrot.slane %v7040_v7, %v15059_v0  ;;  %v19053_v25 = vmul.f32 %v18841_v35, %v18841_v35 }
 0x576   :  { %v8744_v62 = vcombine.low %v8736_v8, %v8743_v50  ;;  %v8924_v46 = vadd.f32 %v8923_v49, %v8922_v2  ;;  %v8687_v3 = vrot.slane %v8679_v48, %v15059_v0  ;;  %v8925_v54 = vsel %vm8862_vm1, %v8646_v36, 0.0 }
 0x577   :  { %v8694_v61 = vrot.slane %v8680_v13, %v15059_v0  ;;  %v19061_v20 = vcombine.high %v18348_v51, %v18348_v51  ;;  %v7851_v23 = vcombine.high %v7850_v56, %v7850_v56  ;;  %v19064_v7 = vrot.slane %v7850_v56, %v15059_v0  ;;  %v21368_v56 = vld [vmem:[#allocation152_spill] sm:$0xff] }
 0x578   :  { %8838 = vrot.lane.b32.xlu1 %v8744_v62, %s13007_s0  ;;  %v9018_v8 = vmul.f32 %v18818_v47, %v18818_v47  ;;  %v8926_v55 = vadd.f32 %v8925_v54, %v8924_v46  ;;  %v8747_v48 = vcombine.low %v18348_v51, %v18352_v28  ;;  %v9019_v36 = vmul.f32 %v18883_v11, %v18883_v11  ;;  %v21370_v54 = vld [vmem:[#allocation4_spill] sm:$0xff] }
 0x579   :  { %21365 = vst [vmem:[#allocation40_spill] sm:$0xff] %v19061_v20  ;;  %21366 = vst [vmem:[#allocation56_spill] sm:$0xff] %v19064_v7  ;;  %v8695_v2 = vcombine.low %v8687_v3, %v8694_v61  ;;  %v9020_v29 = vmul.f32 %v18852_v52, %v18852_v52  ;;  %v19075_v50 = vrot.slane %v7851_v23, %v15059_v0  ;;  %v8929_v31 = vsel %vm8862_vm1, %v8744_v62, 0.0 }
 0x57a   :  { %v8748_v13 = vcombine.low %v19061_v20, %v19064_v7  ;;  %v19080_v49 = vrot.slane %v9610_v16, %v15059_v0  ;;  %v21369_v46 = vcombine.low %v18304_v39, %v21368_v56  ;;  %v21372_v23 = vcombine.low %v21370_v54, %v21371_v17 }
 0x57b   :  { %21367 = vst [vmem:[#allocation60_spill] sm:$0xff] %v19075_v50  ;;  %v8927_v61 = vsel %vm8862_vm1, %v8695_v2, 0.0  ;;  %8836 = vrot.lane.b32.xlu0 %v8695_v2, %s13007_s0  ;;  %v8769_v4 = vrot.slane %v8747_v48, %v15059_v0  ;;  %v9656_v2 = vcombine.low %v19037_v40, %v19041_v18  ;;  %v9659_v43 = vcombine.low %v9020_v29, %v9021_v15 }
 0x57c   :  { %v8755_v3 = vrot.slane %v21369_v46, %v15059_v0  ;;  %v8762_v22 = vrot.slane %v21372_v23, %v15059_v0  ;;  %v8928_v38 = vadd.f32 %v8927_v61, %v8926_v55  ;;  %v8776_v16 = vrot.slane %v8748_v13, %v15059_v0 }
 0x57d   :  { %v8800_v46 = vrot.slane %v19075_v50, %v15059_v0  ;;  %v9657_v23 = vcombine.low %v19053_v25, %v19045_v1  ;;  %v9640_v55 = vcombine.low %v18926_v5, %v19080_v49  ;;  %v9026_v48 = vmul.f32 %v18862_v14, %v18862_v14  ;;  %v8809_v25 = vpop.permute.xlu0 %8808  ;;  %v21416_v14 = vld [vmem:[#allocation104_spill] sm:$0xff] }
 0x57e   :  { %v8777_v44 = vcombine.low %v8755_v3, %v8762_v22  ;;  %v8778_v27 = vcombine.low %v8769_v4, %v8776_v16  ;;  %v8930_v47 = vadd.f32 %v8929_v31, %v8928_v38  ;;  %v9028_v40 = vmul.f32 %v18899_v42, %v18899_v42  ;;  %8863 = vst.msk [vmem:[#allocation2] sm:$0xff] %vm8862_vm1, %v8809_v25  ;;  %v21373_v25 = vld [vmem:[#allocation113_spill] sm:$0xff] }
 0x57f   :  { %v8807_v18 = vrot.slane %v8800_v46, %v15059_v0  ;;  %v9024_v22 = vmul.f32 %v18879_v37, %v18879_v37  ;;  %v9027_v1 = vmul.f32 %v18891_v58, %v18891_v58  ;;  %v9658_v31 = vcombine.low %v9018_v8, %v9019_v36  ;;  %v21425_v37 = vld [vmem:[#allocation117_spill] sm:$0xff] }
 0x580   :  { %v8785_v15 = vrot.slane %v8777_v44, %v15059_v0  ;;  %v8792_v38 = vrot.slane %v8778_v27, %v15059_v0  ;;  %v9022_v5 = vmul.f32 %v18830_v32, %v18830_v32  ;;  %v9029_v4 = vmul.f32 %v18908_v19, %v18908_v19  ;;  %v21427_v19 = vld [vmem:[#allocation122_spill] sm:$0xff] }
 0x581   :  { %v9036_v62 = vmul.f32 %v18951_v45, %v18951_v45  ;;  %8842 = vrot.lane.b32.xlu1 %v8807_v18, %s13007_s0  ;;  %v9023_v29 = vmul.f32 %v18866_v30, %v18866_v30  ;;  %v9025_v44 = vmul.f32 %v18855_v41, %v18855_v41  ;;  %v9687_v27 = vrot.slane %v9659_v43, %v15059_v0  ;;  %v21424_v30 = vld [vmem:[#allocation119_spill] sm:$0xff] }
 0x582   :  { %v8793_v8 = vcombine.low %v8785_v15, %v8792_v38  ;;  %v9032_v36 = vmul.f32 %v18940_v34, %v18940_v34  ;;  %v9034_v13 = vmul.f32 %v18921_v21, %v18921_v21  ;;  %v9035_v49 = vmul.f32 %v18947_v9, %v18947_v9 }
 0x583   :  { %v9708_v61 = vcombine.low %v9028_v40, %v9029_v4  ;;  %v9706_v3 = vcombine.low %v9024_v22, %v9025_v44  ;;  %v9707_v16 = vcombine.low %v9026_v48, %v9027_v1  ;;  %v9030_v46 = vmul.f32 %v18916_v63, %v18916_v63  ;;  %v21375_v63 = vld [vmem:[#allocation17_spill] sm:$0xff] }
 0x584   :  { %v8931_v43 = vsel %vm8862_vm1, %v8793_v8, 0.0  ;;  %8840 = vrot.lane.b32.xlu0 %v8793_v8, %s13007_s0  ;;  %v9031_v15 = vmul.f32 %v18934_v24, %v18934_v24  ;;  %v9033_v38 = vmul.f32 %v18913_v33, %v18913_v33  ;;  %v9757_v45 = vcombine.low %v9036_v62, %v21373_v25  ;;  %v21374_v24 = vld [vmem:[#allocation77_spill] sm:$0xff] }
 0x585   :  { %v8932_v21 = vadd.f32 %v8931_v43, %v8930_v47  ;;  %v9673_v40 = vrot.slane %v9657_v23, %v15059_v0  ;;  %v9680_v48 = vrot.slane %v9658_v31, %v15059_v0  ;;  %v9705_v22 = vcombine.low %v9022_v5, %v9023_v29 }
 0x586   :  { %v8933_v1 = vsel %vm8871_vm2, %v8807_v18, 0.0  ;;  %v9736_v4 = vrot.slane %v9708_v61, %v15059_v0  ;;  %v9755_v44 = vcombine.low %v9032_v36, %v9033_v38  ;;  %v9756_v8 = vcombine.low %v9034_v13, %v9035_v49  ;;  %v21378_v13 = vld [vmem:[#allocation78_spill] sm:$0xff]  ;;  %v21379_v61 = vld [vmem:[#allocation33_spill] sm:$0xff] }
 0x587   :  { %v19148_v9 = vadd.f32 %v8933_v1, %v8932_v21  ;;  %v9639_v34 = vcombine.low %v18859_v60, %v18869_v6  ;;  %v21376_v62 = vcombine.low %v21374_v24, %v21375_v63  ;;  %v9666_v23 = vrot.slane %v9656_v2, %v15059_v0  ;;  %v21377_v21 = vld [vmem:[#allocation66_spill] sm:$0xff]  ;;  %v21380_v60 = vld [vmem:[#allocation31_spill] sm:$0xff]  ;;  %v8811_v2 = vpop.permute.xlu1 %8810 }
 0x588   :  { %v9689_v31 = vcombine.low %v9680_v48, %v9687_v27  ;;  %v9722_v5 = vrot.slane %v9706_v3, %v15059_v0  ;;  %v9729_v18 = vrot.slane %v9707_v16, %v15059_v0  ;;  %v9754_v29 = vcombine.low %v9030_v46, %v9031_v15  ;;  %8864 = vst.msk [vmem:[#allocation2 + $0x8] sm:$0xff] %vm8862_vm1, %v8811_v2 }
 0x589   :  { %v10040_v47 = vsel %vm8862_vm1, %v21376_v62, 0.0  ;;  %v9785_v36 = vrot.slane %v9757_v45, %v15059_v0  ;;  %v10039_v49 = vadd.f32 %v21378_v13, %v21377_v21  ;;  %v21381_v6 = vcombine.low %v21379_v61, %v21380_v60  ;;  %v21382_v45 = vld [vmem:[#allocation70_spill] sm:$0xff] }
 0x58a   :  { %v9654_v24 = vrot.slane %v9640_v55, %v15059_v0  ;;  %v9688_v43 = vcombine.low %v9666_v23, %v9673_v40  ;;  %v9715_v27 = vrot.slane %v9705_v22, %v15059_v0  ;;  %v9738_v3 = vcombine.low %v9729_v18, %v9736_v4  ;;  %v21384_v55 = vld [vmem:[#allocation64_spill] sm:$0xff]  ;;  %v21385_v40 = vld [vmem:[#allocation25_spill] sm:$0xff]  ;;  %v8813_v60 = vpop.permute.xlu0 %8812 }
 0x58b   :  { %v10042_v63 = vsel %vm8862_vm1, %v21381_v6, 0.0  ;;  %v9771_v16 = vrot.slane %v9755_v44, %v15059_v0  ;;  %v9778_v46 = vrot.slane %v9756_v8, %v15059_v0  ;;  %v21383_v15 = vrot.slane %v21382_v45, %v15059_v0  ;;  %8865 = vst.msk [vmem:[#allocation2 + $0x10] sm:$0xff] %vm8862_vm1, %v8813_v60 }
 0x58c   :  { %v9647_v25 = vrot.slane %v9639_v34, %v15059_v0  ;;  %v10041_v48 = vadd.f32 %v10040_v47, %v10039_v49  ;;  %v21386_v1 = vcombine.low %v21384_v55, %v21385_v40  ;;  %v9703_v4 = vrot.slane %v9689_v31, %v15059_v0  ;;  %v21389_v55 = vld [vmem:[#allocation120_spill] sm:$0xff] }
 0x58d   :  { %v9606_v38 = vrot.slane %v21383_v15, %v15059_v0  ;;  %v9737_v44 = vcombine.low %v9715_v27, %v9722_v5  ;;  %v9764_v8 = vrot.slane %v9754_v29, %v15059_v0  ;;  %v9787_v62 = vcombine.low %v9778_v46, %v9785_v36 }
 0x58e   :  { %v10044_v22 = vsel %vm8862_vm1, %v21386_v1, 0.0  ;;  %v9061_v23 = vmul.f32 %v18301_v10, %v18301_v10  ;;  %v9064_v18 = vmul.f32 %v21370_v54, %v21370_v54  ;;  %v10043_v21 = vadd.f32 %v10042_v63, %v10041_v48  ;;  %v21388_v48 = vld [vmem:[#allocation121_spill] sm:$0xff]  ;;  %v21414_v54 = vld [vmem:[#allocation90_spill] sm:$0xff] }
 0x58f   :  { %v9655_v34 = vcombine.low %v9647_v25, %v9654_v24  ;;  %v9696_v47 = vrot.slane %v9688_v43, %v15059_v0  ;;  %v9752_v13 = vrot.slane %v9738_v3, %v15059_v0  ;;  %v9786_v49 = vcombine.low %v9764_v8, %v9771_v16  ;;  %v21387_v16 = vld [vmem:[#allocation151_spill] sm:$0xff]  ;;  %v21393_v8 = vld [vmem:[#allocation160_spill] sm:$0xff] }
 0x590   :  { %v9069_v31 = vmul.f32 %v19064_v7, %v19064_v7  ;;  %v9066_v5 = vmul.f32 %v18348_v51, %v18348_v51  ;;  %v9067_v29 = vmul.f32 %v18352_v28, %v18352_v28  ;;  %v10045_v36 = vadd.f32 %v10044_v22, %v10043_v21  ;;  %v21391_v22 = vld [vmem:[#allocation158_spill] sm:$0xff] }
 0x591   :  { %v10046_v61 = vsel %vm8871_vm2, %v9606_v38, 0.0  ;;  %v9704_v6 = vcombine.low %v9696_v47, %v9703_v4  ;;  %v9745_v63 = vrot.slane %v9737_v44, %v15059_v0  ;;  %v9801_v24 = vrot.slane %v9787_v62, %v15059_v0  ;;  %v21392_v4 = vld [vmem:[#allocation146_spill] sm:$0xff]  ;;  %v21394_v62 = vld [vmem:[#allocation153_spill] sm:$0xff] }
 0x592   :  { %v9068_v43 = vmul.f32 %v19061_v20, %v19061_v20  ;;  %v9062_v2 = vmul.f32 %v18304_v39, %v18304_v39  ;;  %v9063_v27 = vmul.f32 %v21368_v56, %v21368_v56  ;;  %v9065_v3 = vmul.f32 %v21371_v17, %v21371_v17  ;;  %v21415_v56 = vld [vmem:[#allocation84_spill] sm:$0xff] }
 0x593   :  { %v9904_v46 = vcombine.low %v21387_v16, %v9061_v23  ;;  %v10048_v45 = vsel %vm8862_vm1, %v9655_v34, 0.0  ;;  %v9753_v15 = vcombine.low %v9745_v63, %v9752_v13  ;;  %v9794_v38 = vrot.slane %v9786_v49, %v15059_v0  ;;  %v21395_v49 = vld [vmem:[#allocation130_spill] sm:$0xff]  ;;  %v21398_v16 = vld [vmem:[#allocation157_spill] sm:$0xff] }
 0x594   :  { %v9953_v25 = vcombine.low %v9068_v43, %v9069_v31  ;;  %v21390_v40 = vcombine.low %v21388_v48, %v21389_v55  ;;  %v9902_v44 = vcombine.low %v21392_v4, %v21391_v22  ;;  %v9903_v21 = vcombine.low %v21394_v62, %v21393_v8  ;;  %v21396_v31 = vld [vmem:[#allocation132_spill] sm:$0xff]  ;;  %v21399_v55 = vld [vmem:[#allocation30_spill] sm:$0xff] }
 0x595   :  { %v10047_v47 = vadd.f32 %v10046_v61, %v10045_v36  ;;  %v9951_v60 = vcombine.low %v9064_v18, %v9065_v3  ;;  %v9952_v23 = vcombine.low %v9066_v5, %v9067_v29  ;;  %v10050_v34 = vsel %vm8862_vm1, %v9704_v6, 0.0  ;;  %v21401_v29 = vld [vmem:[#allocation112_spill] sm:$0xff]  ;;  %v21402_v36 = vld [vmem:[#allocation105_spill] sm:$0xff] }
 0x596   :  { %v9876_v1 = vrot.slane %v21390_v40, %v15059_v0  ;;  %v9802_v13 = vcombine.low %v9794_v38, %v9801_v24  ;;  %v21397_v63 = vcombine.low %v21395_v49, %v21396_v31  ;;  %v21400_v40 = vld [vmem:[#allocation154_spill] sm:$0xff]  ;;  %v9932_v4 = vrot.slane %v9904_v46, %v15059_v0  ;;  %v21405_v3 = vld [vmem:[#allocation133_spill] sm:$0xff] }
 0x597   :  { %v9901_v39 = vcombine.low %v21400_v40, %v21399_v55  ;;  %v10049_v22 = vadd.f32 %v10048_v45, %v10047_v47  ;;  %v9950_v8 = vcombine.low %v9062_v2, %v9063_v27  ;;  %v10052_v18 = vsel %vm8862_vm1, %v9753_v15, 0.0  ;;  %v21404_v24 = vld [vmem:[#allocation142_spill] sm:$0xff]  ;;  %v8815_v15 = vpop.permute.xlu1 %8814 }
 0x598   :  { %v9850_v43 = vrot.slane %v21397_v63, %v15059_v0  ;;  %v9885_v48 = vcombine.low %v9876_v1, %v21398_v16  ;;  %v9981_v5 = vrot.slane %v9953_v25, %v15059_v0  ;;  %v21403_v61 = vcombine.low %v21401_v29, %v21402_v36  ;;  %8866 = vst.msk [vmem:[#allocation2 + $0x18] sm:$0xff] %vm8862_vm1, %v8815_v15 }
 0x599   :  { %v9884_v38 = vcombine.low %v21405_v3, %v21404_v24  ;;  %v9918_v1 = vrot.slane %v9902_v44, %v15059_v0  ;;  %v10051_v62 = vadd.f32 %v10050_v34, %v10049_v22  ;;  %v9925_v45 = vrot.slane %v9903_v21, %v15059_v0 }
 0x59a   :  { %v9843_v6 = vrot.slane %v21403_v61, %v15059_v0  ;;  %v9967_v46 = vrot.slane %v9951_v60, %v15059_v0  ;;  %v10054_v2 = vsel %vm8862_vm1, %v9802_v13, 0.0  ;;  %v9974_v27 = vrot.slane %v9952_v23, %v15059_v0 }
 0x59b   :  { %v9911_v47 = vrot.slane %v9901_v39, %v15059_v0  ;;  %v10053_v49 = vadd.f32 %v10052_v18, %v10051_v62  ;;  %v9899_v31 = vrot.slane %v9885_v48, %v15059_v0  ;;  %v9934_v63 = vcombine.low %v9925_v45, %v9932_v4  ;;  %v8817_v22 = vpop.permute.xlu0 %8816 }
 0x59c   :  { %v9851_v25 = vcombine.low %v9843_v6, %v9850_v43  ;;  %v9960_v44 = vrot.slane %v9950_v8, %v15059_v0  ;;  %v9983_v34 = vcombine.low %v9974_v27, %v9981_v5  ;;  %v9892_v60 = vrot.slane %v9884_v38, %v15059_v0  ;;  %8867 = vst.msk [vmem:[#allocation2 + $0x20] sm:$0xff] %vm8862_vm1, %v8817_v22 }
 0x59d   :  { %v10055_v21 = vadd.f32 %v10054_v2, %v10053_v49  ;;  %v9933_v16 = vcombine.low %v9911_v47, %v9918_v1  ;;  %v9948_v43 = vrot.slane %v9934_v63, %v15059_v0  ;;  %v9070_v4 = vmul.f32 %v19075_v50, %v19075_v50 }
 0x59e   :  { %v9982_v13 = vcombine.low %v9960_v44, %v9967_v46  ;;  %v10056_v23 = vsel %vm8862_vm1, %v9851_v25, 0.0  ;;  %v9900_v55 = vcombine.low %v9892_v60, %v9899_v31  ;;  %v9997_v39 = vrot.slane %v9983_v34, %v15059_v0 }
 0x59f   :  { %v10057_v40 = vadd.f32 %v10056_v23, %v10055_v21  ;;  %v9941_v48 = vrot.slane %v9933_v16, %v15059_v0  ;;  %v10005_v61 = vrot.slane %v9070_v4, %v15059_v0  ;;  %v8935_v27 = vrot.slane %v19148_v9, 4 }
 0x5a0   :  { %v9990_v8 = vrot.slane %v9982_v13, %v15059_v0  ;;  %v10058_v18 = vsel %vm8862_vm1, %v9900_v55, 0.0  ;;  %v8819_v6 = vpop.permute.xlu1 %8818 }
 0x5a1   :  { %v9949_v5 = vcombine.low %v9941_v48, %v9948_v43  ;;  %v10059_v36 = vadd.f32 %v10058_v18, %v10057_v40  ;;  %8868 = vst.msk [vmem:[#allocation2 + $0x28] sm:$0xff] %vm8862_vm1, %v8819_v6  ;;  %v10012_v62 = vrot.slane %v10005_v61, %v15059_v0  ;;  %v8936_v25 = vadd.f32 %v8935_v27, %v19148_v9  ;;  %v10076_v18 = vld [vmem:[%s20421_s2] sm:$0x1] }
 0x5a2   :  { %v9998_v29 = vcombine.low %v9990_v8, %v9997_v39 }
 0x5a3   :  { %v10060_v24 = vsel %vm8862_vm1, %v9949_v5, 0.0  ;;  %v8821_v1 = vpop.permute.xlu0 %8820  ;;  %v10064_v46 = vsel %vm8871_vm2, %v10012_v62, 0.0  ;;  %v8937_v49 = vrot.slane %v8936_v25, 2 }
 0x5a4   :  { %v10062_v3 = vsel %vm8862_vm1, %v9998_v29, 0.0  ;;  %v10061_v38 = vadd.f32 %v10060_v24, %v10059_v36  ;;  %8869 = vst.msk [vmem:[#allocation2 + $0x30] sm:$0xff] %vm8862_vm1, %v8821_v1  ;;  %v10080_v24 = vld [vmem:[%s20422_s3] sm:$0x1]  ;;  %s21568_s3 = sld [smem:[#allocation165_spill]] }
 0x5a5   :  { %v8938_v63 = vadd.f32 %v8937_v49, %v8936_v25  ;;  %v19284_v25 = vld [vmem:[#allocation2] ss:$4 sm:$0xff] }
 0x5a6   :  { %v10063_v45 = vadd.f32 %v10062_v3, %v10061_v38  ;;  %v21406_v3 = vld [vmem:[#allocation12_spill] sm:$0xff] }
 0x5a7   :  { %v8939_v34 = vrot.slane %v8938_v63, 1  ;;  %v19276_v38 = vsub.s32 0, %v21406_v3 }
 0x5a8   :  { %v10065_v2 = vadd.f32 %v10064_v46, %v10063_v45 }
 0x5a9   :  { %v8940_v13 = vadd.f32 %v8939_v34, %v8938_v63  ;;  %21407 = vst [vmem:[#allocation57_spill] sm:$0xff] %v19276_v38 }
 0x5aa   :  { %v10066_v15 = vrot.slane %v10065_v2, 4 }
 0x5ab   :  { %v10072_v55 = vmul.f32 0.0076923077, %v8940_v13  ;;  %v11797_v13 = vsel %vm8862_vm1, %v19284_v25, 0.0 }
 0x5ac   :  { %v10067_v47 = vadd.f32 %v10066_v15, %v10065_v2 }
 0x5ad   :  { %v10074_v39 = vmul.f32 %v10072_v55, %v10072_v55 }
 0x5ae   :  { %v10068_v31 = vrot.slane %v10067_v47, 2 }
 0x5b0   :  { %v10069_v44 = vadd.f32 %v10068_v31, %v10067_v47 }
 0x5b2   :  { %v10070_v16 = vrot.slane %v10069_v44, 1 }
 0x5b4   :  { %v10071_v23 = vadd.f32 %v10070_v16, %v10069_v44 }
 0x5b6   :  { %v10073_v43 = vmul.f32 0.0076923077, %v10071_v23 }
 0x5b8   :  { %v10075_v40 = vsub.f32 %v10073_v43, %v10074_v39 }
 0x5ba   :  { %v10077_v9 = vadd.f32 1e-05, %v10075_v40 }
 0x5bb   :  { %v8823_v21 = vpop.permute.xlu1 %8822 }
 0x5bc   :  { %8870 = vst.msk [vmem:[#allocation2 + $0x38] sm:$0xff] %vm8862_vm1, %v8823_v21  ;;  %v8825_v60 = vpop.permute.xlu0 %8824  ;;  %12903 = vrsqrt.f32 %v10077_v9  ;;  %v11814_v21 = vmul.f32 %v19284_v25, %v19284_v25 }
 0x5bd   :  { %8872 = vst.msk [vmem:[#allocation2 + $0x40] sm:$0x1] %vm8871_vm2, %v8825_v60 }
 0x5c3   :  { %v19282_v2 = vld [vmem:[#allocation2 + $0x20] ss:$4 sm:$0xff] }
 0x5c4   :  { %v19286_v47 = vld [vmem:[#allocation2 + $0x40] ss:$4 sm:$0x1]  ;;  %v11815_v49 = vmul.f32 %v19282_v2, %v19282_v2  ;;  %v11798_v60 = vsel %vm8862_vm1, %v19282_v2, 0.0 }
 0x5c5   :  { %v11816_v16 = vmul.f32 %v19286_v47, %v19286_v47  ;;  %v11800_v43 = vsel %vm8871_vm2, %v19286_v47, 0.0  ;;  %v11799_v9 = vadd.f32 %v11798_v60, %v11797_v13 }
 0x5c9   :  { %v12904_v8 = vpop.eup %12903 }
 0x5ca   :  { %v10079_v29 = vmul.f32 %v12904_v8, %v10076_v18 }
 0x5cc   :  { %v10081_v61 = vmul.f32 %v10079_v29, %v10072_v55  ;;  %v10087_v45 = vrot.slane %v10079_v29, %v19276_v38  ;;  %v11821_v55 = vsel %vm8862_vm1, %v11815_v49, 0.0  ;;  %v11801_v29 = vadd.f32 %v11800_v43, %v11799_v9 }
 0x5ce   :  { %v10082_v62 = vsub.f32 %v10080_v24, %v10081_v61  ;;  %v10088_v27 = vcombine.high %v10087_v45, %v10087_v45  ;;  %v10095_v23 = vrot.slane %v10087_v45, %v15059_v0 }
 0x5d0   :  { %v10279_v46 = vrot.slane %v10082_v62, %v19276_v38  ;;  %v10102_v34 = vrot.slane %v10088_v27, %v15059_v0  ;;  %v10103_v61 = vcombine.high %v10095_v23, %v10095_v23  ;;  %v19342_v9 = vrot.slane %v10095_v23, %v15059_v0 }
 0x5d2   :  { %v10280_v31 = vcombine.high %v10279_v46, %v10279_v46  ;;  %v10287_v18 = vrot.slane %v10279_v46, %v15059_v0  ;;  %v19333_v60 = vrot.slane %v10103_v61, %v15059_v0 }
 0x5d4   :  { %v10294_v40 = vrot.slane %v10280_v31, %v15059_v0  ;;  %v10295_v49 = vcombine.high %v10287_v18, %v10287_v18  ;;  %v19361_v23 = vcombine.high %v19333_v60, %v19333_v60  ;;  %v19364_v61 = vrot.slane %v10287_v18, %v15059_v0 }
 0x5d6   :  { %v8827_v22 = vpop.permute.xlu1 %8826  ;;  %v10296_v24 = vcombine.high %v10294_v40, %v10294_v40  ;;  %v19396_v50 = vcombine.high %v19364_v61, %v19364_v61 }
 0x5d7   :  { %8873 = vst.msk [vmem:[#allocation2 + $0x48] sm:$0xff] %vm8862_vm1, %v8827_v22  ;;  %v10104_v22 = vcombine.high %v10102_v34, %v10102_v34 }
 0x5d9   :  { %v19321_v45 = vrot.slane %v10104_v22, %v15059_v0 }
 0x5da   :  { %v8829_v48 = vpop.permute.xlu0 %8828 }
 0x5db   :  { %8874 = vst.msk [vmem:[#allocation2 + $0x50] sm:$0xff] %vm8862_vm1, %v8829_v48  ;;  %v11820_v48 = vsel %vm8862_vm1, %v11814_v21, 0.0  ;;  %v19330_v21 = vrot.slane %v10102_v34, %v15059_v0  ;;  %v19347_v34 = vcombine.high %v19321_v45, %v19321_v45 }
 0x5de   :  { %v8831_v4 = vpop.permute.xlu1 %8830 }
 0x5df   :  { %8875 = vst.msk [vmem:[#allocation2 + $0x58] sm:$0xff] %vm8862_vm1, %v8831_v4  ;;  %v11823_v4 = vsel %vm8871_vm2, %v11816_v16, 0.0 }
 0x5e5   :  { %v8835_v5 = vpop.permute.xlu1 %8834 }
 0x5e6   :  { %8877 = vst.msk [vmem:[#allocation2 + $0x68] sm:$0xff] %vm8862_vm1, %v8835_v5  ;;  %v8833_v36 = vpop.permute.xlu0 %8832  ;;  %v11822_v5 = vadd.f32 %v11821_v55, %v11820_v48  ;;  %v19339_v55 = vrot.slane %v10296_v24, %v15059_v0  ;;  %v19350_v48 = vrot.slane %v10294_v40, %v15059_v0 }
 0x5e7   :  { %8876 = vst.msk [vmem:[#allocation2 + $0x60] sm:$0xff] %vm8862_vm1, %v8833_v36 }
 0x5e8   :  { %v11824_v3 = vadd.f32 %v11823_v4, %v11822_v5  ;;  %v19353_v4 = vrot.slane %v10295_v49, %v15059_v0  ;;  %v19368_v40 = vcombine.high %v19339_v55, %v19339_v55  ;;  %v19380_v18 = vcombine.high %v19350_v48, %v19350_v48 }
 0x5ea   :  { %v8839_v6 = vpop.permute.xlu1 %8838 }
 0x5eb   :  { %8879 = vst.msk [vmem:[#allocation2 + $0x78] sm:$0xff] %vm8862_vm1, %v8839_v6 }
 0x5ed   :  { %v8837_v1 = vpop.permute.xlu0 %8836 }
 0x5ee   :  { %8878 = vst.msk [vmem:[#allocation2 + $0x70] sm:$0xff] %vm8862_vm1, %v8837_v1  ;;  %v19291_v63 = vld [vmem:[#allocation2 + $0x48] ss:$4 sm:$0xff] }
 0x5ef   :  { %v11817_v39 = vmul.f32 %v19291_v63, %v19291_v63  ;;  %v11802_v8 = vsel %vm8862_vm1, %v19291_v63, 0.0 }
 0x5f0   :  { %v11803_v1 = vadd.f32 %v11802_v8, %v11801_v29  ;;  %v19357_v29 = vcombine.high %v19330_v21, %v19330_v21 }
 0x5f1   :  { %v11825_v6 = vsel %vm8862_vm1, %v11817_v39, 0.0 }
 0x5f2   :  { %v11826_v31 = vadd.f32 %v11825_v6, %v11824_v3  ;;  %v19372_v3 = vcombine.high %v19342_v9, %v19342_v9 }
 0x5f3   :  { %v8843_v15 = vpop.permute.xlu1 %8842 }
 0x5f4   :  { %8881 = vst.msk [vmem:[#allocation2 + $0x88] sm:$0x1] %vm8871_vm2, %v8843_v15 }
 0x5f6   :  { %v8841_v44 = vpop.permute.xlu0 %8840 }
 0x5f7   :  { %8880 = vst.msk [vmem:[#allocation2 + $0x80] sm:$0xff] %vm8862_vm1, %v8841_v44 }
 0x5fb   :  { %v19315_v36 = vld [vmem:[#allocation2 + $0x88] ss:$4 sm:$0x1] }
 0x5fc   :  { %v11819_v27 = vmul.f32 %v19315_v36, %v19315_v36  ;;  %v11806_v16 = vsel %vm8871_vm2, %v19315_v36, 0.0 }
 0x5fe   :  { %v19318_v62 = vld [vmem:[#allocation2 + $0x68] ss:$4 sm:$0xff]  ;;  %v11829_v22 = vsel %vm8871_vm2, %v11819_v27, 0.0  ;;  %vm12032_vm2 = vcmask 588800  }
 0x5ff   :  { %v11804_v46 = vsel %vm8862_vm1, %v19318_v62, 0.0  ;;  %v11818_v15 = vmul.f32 %v19318_v62, %v19318_v62 }
 0x600   :  { %v11805_v44 = vadd.f32 %v11804_v46, %v11803_v1  ;;  %v21408_v1 = vld [vmem:[#allocation86_spill] sm:$0xff]  ;;  %v21409_v46 = vld [vmem:[#allocation88_spill] sm:$0xff] }
 0x601   :  { %v11827_v13 = vsel %vm8862_vm1, %v11818_v15, 0.0  ;;  %v10145_v27 = vmul.f32 %v19342_v9, %v21408_v1  ;;  %v10152_v15 = vmul.f32 %v19347_v34, %v21409_v46  ;;  %v21413_v1 = vld [vmem:[#allocation89_spill] sm:$0xff] }
 0x602   :  { %v11807_v43 = vadd.f32 %v11806_v16, %v11805_v44  ;;  %v11828_v39 = vadd.f32 %v11827_v13, %v11826_v31  ;;  %v19384_v44 = vcombine.high %v19353_v4, %v19353_v4  ;;  %v21410_v16 = vld [vmem:[#allocation83_spill] sm:$0xff] }
 0x603   :  { %v10146_v13 = vmul.f32 %v19333_v60, %v21410_v16  ;;  %v10344_v51 = vadd.f32 %v19368_v40, %v10152_v15  ;;  %v10147_v16 = vmul.f32 %v19372_v3, %v21414_v54  ;;  %v10337_v17 = vadd.f32 %v19364_v61, %v10145_v27 }
 0x604   :  { %v11808_v8 = vrot.slane %v11807_v43, 4  ;;  %v11830_v5 = vadd.f32 %v11829_v22, %v11828_v39  ;;  %v21412_v22 = vld [vmem:[#allocation82_spill] sm:$0xff] }
 0x605   :  { %v10338_v20 = vadd.f32 %v19353_v4, %v10146_v13  ;;  %v10339_v54 = vadd.f32 %v19396_v50, %v10147_v16  ;;  %v10474_v33 = vmul.f32 %v10344_v51, %v10344_v51  ;;  %v21417_v51 = vld [vmem:[#allocation92_spill] sm:$0xff] }
 0x606   :  { %v11809_v6 = vadd.f32 %v11808_v8, %v11807_v43  ;;  %v11831_v24 = vrot.slane %v11830_v5, 4  ;;  %v21411_v43 = vld [vmem:[#allocation85_spill] sm:$0xff]  ;;  %v10150_v8 = vmul.f32 %v19321_v45, %v21412_v22 }
 0x607   :  { %v10148_v39 = vmul.f32 %v19361_v23, %v21411_v43  ;;  %v10149_v43 = vmul.f32 %v19330_v21, %v21415_v56  ;;  %v10468_v56 = vmul.f32 %v10338_v20, %v10338_v20  ;;  %v10154_v20 = vmul.f32 %v19333_v60, %v21417_v51 }
 0x608   :  { %v11810_v49 = vrot.slane %v11809_v6, 2  ;;  %v11832_v31 = vadd.f32 %v11831_v24, %v11830_v5  ;;  %v10151_v5 = vmul.f32 %v19357_v29, %v21413_v1  ;;  %v10342_v22 = vadd.f32 %v19339_v55, %v10150_v8 }
 0x609   :  { %v10341_v15 = vadd.f32 %v19350_v48, %v10149_v43 }
 0x60a   :  { %v11811_v24 = vadd.f32 %v11810_v49, %v11809_v6  ;;  %v11833_v46 = vrot.slane %v11832_v31, 2  ;;  %v10340_v6 = vadd.f32 %v19384_v44, %v10148_v39  ;;  %v10343_v49 = vadd.f32 %v19380_v18, %v10151_v5 }
 0x60b   :  { %v10472_v58 = vmul.f32 %v10342_v22, %v10342_v22  ;;  %v10471_v39 = vmul.f32 %v10341_v15, %v10341_v15  ;;  %v10153_v5 = vmul.f32 %v19342_v9, %v21416_v14  ;;  %v21419_v22 = vld [vmem:[#allocation102_spill] sm:$0xff]  ;;  %v21420_v14 = vld [vmem:[#allocation100_spill] sm:$0xff] }
 0x60c   :  { %v11812_v28 = vrot.slane %v11811_v24, 1  ;;  %v11834_v1 = vadd.f32 %v11833_v46, %v11832_v31  ;;  %v10470_v8 = vmul.f32 %v10340_v6, %v10340_v6  ;;  %v10473_v31 = vmul.f32 %v10343_v49, %v10343_v49 }
 0x60d   :  { %v10467_v46 = vmul.f32 %v10337_v17, %v10337_v17  ;;  %v10156_v17 = vmul.f32 %v19361_v23, %v21419_v22  ;;  %v10729_v49 = vcombine.low %v10471_v39, %v10472_v58  ;;  %v10157_v15 = vmul.f32 %v19330_v21, %v21420_v14 }
 0x60e   :  { %v11813_v7 = vadd.f32 %v11812_v28, %v11811_v24  ;;  %v11835_v10 = vrot.slane %v11834_v1, 1  ;;  %v10469_v24 = vmul.f32 %v10339_v54, %v10339_v54  ;;  %v10730_v43 = vcombine.low %v10473_v31, %v10474_v33  ;;  %v21422_v33 = vld [vmem:[#allocation110_spill] sm:$0xff]  ;;  %v21423_v31 = vld [vmem:[#allocation101_spill] sm:$0xff] }
 0x60f   :  { %v10727_v16 = vcombine.low %v10467_v46, %v10468_v56  ;;  %v10159_v56 = vmul.f32 %v19357_v29, %v21422_v33  ;;  %v10160_v46 = vmul.f32 %v19347_v34, %v21423_v31  ;;  %v10348_v51 = vadd.f32 %v19384_v44, %v10156_v17 }
 0x610   :  { %v11836_v13 = vadd.f32 %v11835_v10, %v11834_v1  ;;  %v19410_v42 = vmul.f32 0.029411765, %v11813_v7  ;;  %v21418_v10 = vld [vmem:[#allocation107_spill] sm:$0xff]  ;;  %v10728_v6 = vcombine.low %v10469_v24, %v10470_v8  ;;  %v10758_v22 = vrot.slane %v10730_v43, %v15059_v0 }
 0x611   :  { %v10155_v7 = vmul.f32 %v19372_v3, %v21418_v10  ;;  %v10345_v8 = vadd.f32 %v19364_v61, %v10153_v5  ;;  %v10346_v58 = vadd.f32 %v19353_v4, %v10154_v20  ;;  %v10751_v24 = vrot.slane %v10729_v49, %v15059_v0 }
 0x612   :  { %v11838_v27 = vmul.f32 0.029411765, %v11836_v13  ;;  %v11839_v28 = vmul.f32 %v19410_v42, %v19410_v42  ;;  %v21421_v13 = vld [vmem:[#allocation106_spill] sm:$0xff]  ;;  %v10351_v17 = vadd.f32 %v19380_v18, %v10159_v56  ;;  %v10478_v43 = vmul.f32 %v10348_v51, %v10348_v51 }
 0x613   :  { %v10158_v54 = vmul.f32 %v19321_v45, %v21421_v13  ;;  %v10347_v39 = vadd.f32 %v19396_v50, %v10155_v7  ;;  %v10744_v5 = vrot.slane %v10728_v6, %v15059_v0  ;;  %v10760_v13 = vcombine.low %v10751_v24, %v10758_v22  ;;  %v21426_v56 = vld [vmem:[#allocation118_spill] sm:$0xff] }
 0x614   :  { %v11840_v1 = vsub.f32 %v11838_v27, %v11839_v28  ;;  %v10349_v27 = vadd.f32 %v19350_v48, %v10157_v15  ;;  %v10352_v28 = vadd.f32 %v19368_v40, %v10160_v46  ;;  %v10475_v20 = vmul.f32 %v10345_v8, %v10345_v8  ;;  %v21428_v22 = vld [vmem:[#allocation126_spill] sm:$0xff] }
 0x615   :  { %v10350_v14 = vadd.f32 %v19339_v55, %v10158_v54  ;;  %v10476_v33 = vmul.f32 %v10346_v58, %v10346_v58  ;;  %v10477_v7 = vmul.f32 %v10347_v39, %v10347_v39  ;;  %v10162_v46 = vmul.f32 %v19333_v60, %v21424_v30  ;;  %v21429_v39 = vld [vmem:[#allocation123_spill] sm:$0xff] }
 0x616   :  { %v11842_v10 = vadd.f32 1e-05, %v11840_v1  ;;  %v10737_v1 = vrot.slane %v10727_v16, %v15059_v0  ;;  %v10479_v31 = vmul.f32 %v10349_v27, %v10349_v27  ;;  %v10482_v15 = vmul.f32 %v10352_v28, %v10352_v28  ;;  %v21430_v27 = vld [vmem:[#allocation125_spill] sm:$0xff] }
 0x617   :  { %v10481_v49 = vmul.f32 %v10351_v17, %v10351_v17  ;;  %v10164_v54 = vmul.f32 %v19361_v23, %v21425_v37  ;;  %v10166_v16 = vmul.f32 %v19321_v45, %v21426_v56  ;;  %v10777_v51 = vcombine.low %v10477_v7, %v10478_v43  ;;  %v21431_v17 = vld [vmem:[#allocation127_spill] sm:$0xff] }
 0x618   :  { %12905 = vrsqrt.f32 %v11842_v10  ;;  %v10480_v10 = vmul.f32 %v10350_v14, %v10350_v14  ;;  %v10161_v6 = vmul.f32 %v19342_v9, %v21427_v19  ;;  %v10168_v8 = vmul.f32 %v19347_v34, %v21428_v22 }
 0x619   :  { %v10354_v58 = vadd.f32 %v19353_v4, %v10162_v46  ;;  %v10163_v30 = vmul.f32 %v19372_v3, %v21429_v39  ;;  %v10165_v28 = vmul.f32 %v19330_v21, %v21430_v27  ;;  %v10356_v37 = vadd.f32 %v19384_v44, %v10164_v54 }
 0x61a   :  { %v10358_v24 = vadd.f32 %v19339_v55, %v10166_v16  ;;  %v10779_v14 = vcombine.low %v10481_v49, %v10482_v15  ;;  %v10167_v43 = vmul.f32 %v19357_v29, %v21431_v17  ;;  %v10353_v19 = vadd.f32 %v19364_v61, %v10161_v6  ;;  %v11841_v6 = vld [vmem:[%s20423_s4] sm:$0x1] }
 0x61b   :  { %v10360_v7 = vadd.f32 %v19368_v40, %v10168_v8  ;;  %v10759_v56 = vcombine.low %v10737_v1, %v10744_v5  ;;  %v10355_v46 = vadd.f32 %v19396_v50, %v10163_v30  ;;  %v10357_v22 = vadd.f32 %v19350_v48, %v10165_v28 }
 0x61c   :  { %v10776_v39 = vcombine.low %v10475_v20, %v10476_v33  ;;  %v10778_v32 = vcombine.low %v10479_v31, %v10480_v10  ;;  %v10359_v27 = vadd.f32 %v19380_v18, %v10167_v43  ;;  %v10484_v54 = vmul.f32 %v10354_v58, %v10354_v58  ;;  %v11845_v43 = vld [vmem:[%s20424_s5] sm:$0x1]  ;;  %s13008_s5 = smov 8  }
 0x61d   :  { %v19467_v16 = vrot.slane %v10760_v13, %v15059_v0  ;;  %v10486_v15 = vmul.f32 %v10356_v37, %v10356_v37  ;;  %v10488_v49 = vmul.f32 %v10358_v24, %v10358_v24  ;;  %v19473_v1 = vrot.slane %v10777_v51, %v15059_v0  ;;  %v21441_v24 = vld [vmem:[#allocation134_spill] sm:$0xff] }
 0x61e   :  { %v19476_v5 = vrot.slane %v10779_v14, %v15059_v0  ;;  %v10483_v20 = vmul.f32 %v10353_v19, %v10353_v19  ;;  %v10490_v33 = vmul.f32 %v10360_v7, %v10360_v7  ;;  %v19479_v31 = vrot.slane %v10759_v56, %v15059_v0  ;;  %v21434_v56 = vld [vmem:[#allocation135_spill] sm:$0xff] }
 0x61f   :  { %21432 = vst [vmem:[#allocation62_spill] sm:$0xff] %v19467_v16  ;;  %v10485_v10 = vmul.f32 %v10355_v46, %v10355_v46  ;;  %v10487_v13 = vmul.f32 %v10357_v22, %v10357_v22  ;;  %v19482_v58 = vrot.slane %v10776_v39, %v15059_v0  ;;  %v19485_v30 = vrot.slane %v10778_v32, %v15059_v0 }
 0x620   :  { %21433 = vst [vmem:[#allocation58_spill] sm:$0xff] %v19479_v31  ;;  %v10489_v28 = vmul.f32 %v10359_v27, %v10359_v27  ;;  %v10825_v51 = vcombine.low %v10483_v20, %v10484_v54  ;;  %v10169_v46 = vmul.f32 %v19342_v9, %v21434_v56  ;;  %v21435_v27 = vld [vmem:[#allocation136_spill] sm:$0xff]  ;;  %v21437_v20 = vld [vmem:[#allocation143_spill] sm:$0xff] }
 0x621   :  { %v10826_v14 = vcombine.low %v10485_v10, %v10486_v15  ;;  %v10827_v17 = vcombine.low %v10487_v13, %v10488_v49  ;;  %v10170_v54 = vmul.f32 %v19333_v60, %v21435_v27  ;;  %v21436_v15 = vld [vmem:[#allocation150_spill] sm:$0xff]  ;;  %v10172_v10 = vmul.f32 %v19361_v23, %v21437_v20  ;;  %v21440_v27 = vld [vmem:[#allocation147_spill] sm:$0xff] }
 0x622   :  { %v10828_v32 = vcombine.low %v10489_v28, %v10490_v33  ;;  %v10171_v49 = vmul.f32 %v19372_v3, %v21436_v15  ;;  %v21438_v33 = vld [vmem:[#allocation139_spill] sm:$0xff] }
 0x623   :  { %v10173_v13 = vmul.f32 %v19330_v21, %v21438_v33  ;;  %v19517_v56 = vrot.slane %v10827_v17, %v15059_v0  ;;  %v10176_v33 = vmul.f32 %v19347_v34, %v21441_v24 }
 0x624   :  { %v19523_v20 = vrot.slane %v10828_v32, %v15059_v0  ;;  %v10362_v32 = vadd.f32 %v19353_v4, %v10170_v54  ;;  %v10363_v7 = vadd.f32 %v19396_v50, %v10171_v49 }
 0x625   :  { %v12906_v8 = vpop.eup %12905  ;;  %v10365_v54 = vadd.f32 %v19350_v48, %v10173_v13 }
 0x626   :  { %v11844_v37 = vmul.f32 %v12906_v8, %v11841_v6  ;;  %v19505_v6 = vrot.slane %v10825_v51, %v15059_v0  ;;  %v21439_v8 = vld [vmem:[#allocation137_spill] sm:$0xff]  ;;  %v10175_v51 = vmul.f32 %v19357_v29, %v21440_v27  ;;  %v10492_v13 = vmul.f32 %v10362_v32, %v10362_v32 }
 0x627   :  { %v10217_v32 = vmul.f32 %v19347_v34, %v18806_v12 }
 0x628   :  { %v11846_v22 = vmul.f32 %v11844_v37, %v19410_v42  ;;  %v11852_v39 = vrot.slane %v11844_v37, %v19276_v38  ;;  %v10174_v42 = vmul.f32 %v19321_v45, %v21439_v8  ;;  %v19514_v37 = vrot.slane %v10826_v14, %v15059_v0 }
 0x629   :  { %v10361_v8 = vadd.f32 %v19364_v61, %v10169_v46 }
 0x62a   :  { %v11847_v28 = vsub.f32 %v11845_v43, %v11846_v22  ;;  %v11856_v15 = vmul.f32 %v11852_v39, %v19286_v47  ;;  %v11858_v43 = vmul.f32 %v11852_v39, %v19318_v62  ;;  %v11859_v14 = vmul.f32 %v11852_v39, %v19315_v36 }
 0x62b   :  { %v11854_v22 = vmul.f32 %v11852_v39, %v19284_v25  ;;  %v11855_v27 = vmul.f32 %v11852_v39, %v19282_v2  ;;  %v11857_v47 = vmul.f32 %v11852_v39, %v19291_v63  ;;  %v10857_v25 = vcombine.low %v19505_v6, %v19514_v37 }
 0x62c   :  { %v11864_v17 = vrot.slane %v11847_v28, %v19276_v38  ;;  %v10364_v2 = vadd.f32 %v19384_v44, %v10172_v10  ;;  %v10858_v39 = vcombine.low %v19517_v56, %v19523_v20  ;;  %v10366_v49 = vadd.f32 %v19339_v55, %v10174_v42  ;;  %v21442_v38 = vld [vmem:[#allocation72_spill] sm:$0xff] }
 0x62d   :  { %v10211_v31 = vmul.f32 %v19333_v60, %v21442_v38 }
 0x62e   :  { %v11868_v19 = vadd.f32 %v11864_v17, %v11856_v15  ;;  %v19536_v24 = vadd.f32 %v11864_v17, %v11858_v43  ;;  %v11871_v46 = vadd.f32 %v11864_v17, %v11859_v14  ;;  %v19538_v16 = vadd.f32 %v11864_v17, %v11854_v22 }
 0x62f   :  { %v19540_v62 = vadd.f32 %v11864_v17, %v11855_v27  ;;  %v19542_v36 = vadd.f32 %v11864_v17, %v11857_v47  ;;  %v10367_v43 = vadd.f32 %v19380_v18, %v10175_v51  ;;  %v10368_v14 = vadd.f32 %v19368_v40, %v10176_v33 }
 0x630   :  { %v11880_v63 = vmin.f32 %v11868_v19, 0.0  ;;  %v11882_v28 = vmin.f32 %v19536_v24, 0.0  ;;  %v11883_v15 = vmin.f32 %v11871_v46, 0.0  ;;  %v11878_v6 = vmin.f32 %v19538_v16, 0.0 }
 0x631   :  { %v11879_v10 = vmin.f32 %v19540_v62, 0.0  ;;  %v10491_v19 = vmul.f32 %v10361_v8, %v10361_v8  ;;  %v11881_v56 = vmin.f32 %v19542_v36, 0.0  ;;  %v10493_v27 = vmul.f32 %v10363_v7, %v10363_v7  ;;  %v21444_v7 = vld [vmem:[#allocation15_spill] sm:$0xff] }
 0x632   :  { %v11888_v17 = vmul.f32 1.442695, %v11880_v63  ;;  %v11892_v37 = vmul.f32 1.442695, %v11882_v28  ;;  %v11894_v22 = vmul.f32 1.442695, %v11883_v15  ;;  %v10494_v51 = vmul.f32 %v10364_v2, %v10364_v2 }
 0x633   :  { %v11884_v42 = vmul.f32 1.442695, %v11878_v6  ;;  %v11886_v20 = vmul.f32 1.442695, %v11879_v10  ;;  %v11890_v47 = vmul.f32 1.442695, %v11881_v56  ;;  %v10495_v46 = vmul.f32 %v10365_v54, %v10365_v54 }
 0x634   :  { %12907 = vpow2.f32 %v11888_v17  ;;  %v10496_v33 = vmul.f32 %v10366_v49, %v10366_v49  ;;  %v10497_v63 = vmul.f32 %v10367_v43, %v10367_v43  ;;  %v10498_v8 = vmul.f32 %v10368_v14, %v10368_v14  ;;  %v21443_v28 = vld [vmem:[#allocation38_spill] sm:$0xff]  ;;  %v21445_v2 = vld [vmem:[#allocation61_spill] sm:$0xff]  ;;  %v21446_v43 = vld [vmem:[#allocation71_spill] sm:$0xff] }
 0x635   :  { %12909 = vpow2.f32 %v11892_v37  ;;  %v10213_v15 = vmul.f32 %v19361_v23, %v21443_v28  ;;  %v10210_v17 = vmul.f32 %v19342_v9, %v21444_v7  ;;  %v10212_v54 = vmul.f32 %v19372_v3, %v21445_v2  ;;  %v21447_v37 = vld [vmem:[#allocation27_spill] sm:$0xff] }
 0x636   :  { %12911 = vpow2.f32 %v11894_v22  ;;  %v10403_v49 = vadd.f32 %v19353_v4, %v10211_v31  ;;  %v10216_v38 = vmul.f32 %v19357_v29, %v21446_v43  ;;  %v10409_v6 = vadd.f32 %v19368_v40, %v10217_v32  ;;  %v21448_v22 = vld [vmem:[#allocation69_spill] sm:$0xff] }
 0x637   :  { %12913 = vpow2.f32 %v11884_v42  ;;  %v10405_v14 = vadd.f32 %v19384_v44, %v10213_v15  ;;  %v10874_v10 = vcombine.low %v10491_v19, %v10492_v13  ;;  %v10214_v12 = vmul.f32 %v19330_v21, %v21447_v37 }
 0x638   :  { %12915 = vpow2.f32 %v11886_v20  ;;  %v10215_v56 = vmul.f32 %v19321_v45, %v21448_v22  ;;  %v10402_v42 = vadd.f32 %v19364_v61, %v10210_v17  ;;  %v10875_v20 = vcombine.low %v10493_v27, %v10494_v51 }
 0x639   :  { %12917 = vpow2.f32 %v11890_v47  ;;  %v10876_v28 = vcombine.low %v10495_v46, %v10496_v33  ;;  %v10404_v31 = vadd.f32 %v19396_v50, %v10212_v54  ;;  %v10408_v47 = vadd.f32 %v19380_v18, %v10216_v38 }
 0x63a   :  { %v10877_v7 = vcombine.low %v10497_v63, %v10498_v8  ;;  %v10406_v15 = vadd.f32 %v19350_v48, %v10214_v12  ;;  %v10407_v32 = vadd.f32 %v19339_v55, %v10215_v56  ;;  %v19581_v19 = vmul.f32 %v10403_v49, %v10403_v49  ;;  %v21452_v12 = vld [vmem:[#allocation14_spill] sm:$0xff] }
 0x63b   :  { %v21449_v13 = vcombine.low %v19482_v58, %v19473_v1  ;;  %v21450_v27 = vcombine.low %v19485_v30, %v19476_v5  ;;  %v10535_v46 = vmul.f32 %v10405_v14, %v10405_v14  ;;  %v19595_v33 = vmul.f32 %v10409_v6, %v10409_v6 }
 0x63c   :  { %v19598_v63 = vrot.slane %v10857_v25, %v15059_v0  ;;  %v19601_v8 = vrot.slane %v10858_v39, %v15059_v0  ;;  %v19604_v17 = vrot.slane %v10874_v10, %v15059_v0  ;;  %v10532_v1 = vmul.f32 %v10402_v42, %v10402_v42  ;;  %v21451_v10 = vld [vmem:[#allocation9_spill] sm:$0xff]  ;;  %v21453_v42 = vld [vmem:[#allocation159_spill] sm:$0xff] }
 0x63d   :  { %v19587_v2 = vrot.slane %v21449_v13, %v15059_v0  ;;  %v19593_v51 = vrot.slane %v21450_v27, %v15059_v0  ;;  %v19607_v58 = vrot.slane %v10875_v20, %v15059_v0  ;;  %v19610_v5 = vrot.slane %v10876_v28, %v15059_v0  ;;  %v21454_v28 = vld [vmem:[#allocation6_spill] sm:$0xff]  ;;  %v21457_v27 = vld [vmem:[#allocation11_spill] sm:$0xff] }
 0x63e   :  { %v10534_v30 = vmul.f32 %v10404_v31, %v10404_v31  ;;  %v10538_v54 = vmul.f32 %v10408_v47, %v10408_v47  ;;  %v10905_v49 = vrot.slane %v10877_v7, %v15059_v0  ;;  %v10536_v43 = vmul.f32 %v10406_v15, %v10406_v15  ;;  %v21455_v47 = vld [vmem:[#allocation5_spill] sm:$0xff] }
 0x63f   :  { %v10537_v25 = vmul.f32 %v10407_v32, %v10407_v32  ;;  %v11133_v38 = vcombine.low %v10532_v1, %v19581_v19  ;;  %v10177_v37 = vmul.f32 %v19342_v9, %v21451_v10  ;;  %v10178_v22 = vmul.f32 %v19333_v60, %v21452_v12  ;;  %v21456_v19 = vld [vmem:[#allocation20_spill] sm:$0xff] }
 0x640   :  { %v11134_v14 = vcombine.low %v10534_v30, %v10535_v46  ;;  %v11136_v6 = vcombine.low %v10538_v54, %v19595_v33  ;;  %v10179_v20 = vmul.f32 %v19372_v3, %v21453_v42  ;;  %v10180_v31 = vmul.f32 %v19361_v23, %v21454_v28 }
 0x641   :  { %v12908_v39 = vpop.eup %12907  ;;  %v10182_v7 = vmul.f32 %v19321_v45, %v21455_v47  ;;  %v10183_v13 = vmul.f32 %v19357_v29, %v21456_v19  ;;  %v10184_v46 = vmul.f32 %v19347_v34, %v21457_v27  ;;  %vm11876_vm3 = vcmp.gt.f32.partialorder %v19536_v24, 0.0 }
 0x642   :  { %v12910_v56 = vpop.eup %12909  ;;  %v10369_v1 = vadd.f32 %v19364_v61, %v10177_v37  ;;  %v10370_v10 = vadd.f32 %v19353_v4, %v10178_v22  ;;  %vm11872_vm5 = vcmp.gt.f32.partialorder %v19538_v16, 0.0  ;;  %v10372_v42 = vadd.f32 %v19384_v44, %v10180_v31  ;;  %v21458_v22 = vld [vmem:[#allocation8_spill] sm:$0xff] }
 0x643   :  { %v12912_v15 = vpop.eup %12911  ;;  %v12753_v32 = vadd.f32 -1.0, %v12910_v56  ;;  %vm11873_vm6 = vcmp.gt.f32.partialorder %v19540_v62, 0.0  ;;  %v10376_v37 = vadd.f32 %v19368_v40, %v10184_v46  ;;  %vm11875_vm7 = vcmp.gt.f32.partialorder %v19542_v36, 0.0 }
 0x644   :  { %v12914_v33 = vpop.eup %12913  ;;  %v10181_v15 = vmul.f32 %v19330_v21, %v21458_v22  ;;  %v10375_v19 = vadd.f32 %v19380_v18, %v10183_v13  ;;  %v10500_v27 = vmul.f32 %v10370_v10, %v10370_v10  ;;  %v10907_v46 = vcombine.low %v19610_v5, %v10905_v49  ;;  %v21488_v13 = vld [vmem:[#allocation42_spill] sm:$0xff] }
 0x645   :  { %v12916_v30 = vpop.eup %12915  ;;  %v11906_v54 = vsel %vm11876_vm3, %v19536_v24, %v12753_v32  ;;  %v12749_v39 = vadd.f32 -1.0, %v12914_v33  ;;  %v10374_v32 = vadd.f32 %v19339_v55, %v10182_v7  ;;  %v11135_v33 = vcombine.low %v10536_v43, %v10537_v25 }
 0x646   :  { %v12918_v12 = vpop.eup %12917  ;;  %11912 = vst.msk [vmem:[#allocation3 + $0x20] sm:$0xff] %vm8862_vm1, %v11906_v54  ;;  %v12750_v56 = vadd.f32 -1.0, %v12916_v30  ;;  %v10373_v30 = vadd.f32 %v19350_v48, %v10181_v15  ;;  %v11150_v7 = vrot.slane %v11134_v14, %v15059_v0  ;;  %v10499_v54 = vmul.f32 %v10369_v1, %v10369_v1 }
 0x647   :  { %v11902_v28 = vsel %vm11872_vm5, %v19538_v16, %v12749_v39  ;;  %v12752_v47 = vadd.f32 -1.0, %v12918_v12  ;;  %v10371_v16 = vadd.f32 %v19396_v50, %v10179_v20  ;;  %v10502_v39 = vmul.f32 %v10372_v42, %v10372_v42 }
 0x648   :  { %v11903_v24 = vsel %vm11873_vm6, %v19540_v62, %v12750_v56  ;;  %11908 = vst.msk [vmem:[#allocation3] sm:$0xff] %vm8862_vm1, %v11902_v28  ;;  %v10906_v62 = vcombine.low %v19604_v17, %v19607_v58  ;;  %v11164_v10 = vrot.slane %v11136_v6, %v15059_v0  ;;  %v10504_v12 = vmul.f32 %v10374_v32, %v10374_v32 }
 0x649   :  { %11909 = vst.msk [vmem:[#allocation3 + $0x8] sm:$0xff] %vm8862_vm1, %v11903_v24  ;;  %v11905_v31 = vsel %vm11875_vm7, %v19542_v36, %v12752_v47  ;;  %v10506_v36 = vmul.f32 %v10376_v37, %v10376_v37  ;;  %v11143_v17 = vrot.slane %v11133_v38, %v15059_v0  ;;  %v10501_v58 = vmul.f32 %v10371_v16, %v10371_v16 }
 0x64a   :  { %11911 = vst.msk [vmem:[#allocation3 + $0x18] sm:$0xff] %vm8862_vm1, %v11905_v31  ;;  %v10505_v5 = vmul.f32 %v10375_v19, %v10375_v19  ;;  %v10923_v49 = vcombine.low %v10499_v54, %v10500_v27  ;;  %v19662_v43 = vrot.slane %v10906_v62, %v15059_v0  ;;  %v19665_v25 = vrot.slane %v10907_v46, %v15059_v0  ;;  %v21461_v46 = vld [vmem:[#allocation73_spill] sm:$0xff] }
 0x64b   :  { %v11157_v14 = vrot.slane %v11135_v33, %v15059_v0  ;;  %v10503_v1 = vmul.f32 %v10373_v30, %v10373_v30  ;;  %v11165_v56 = vcombine.low %v11143_v17, %v11150_v7  ;;  %v10924_v42 = vcombine.low %v10501_v58, %v10502_v39  ;;  %v21484_v58 = vld [vmem:[#allocation29_spill] sm:$0xff] }
 0x64c   :  { %21459 = vst [vmem:[#allocation67_spill] sm:$0xff] %v19662_v43  ;;  %21460 = vst [vmem:[#allocation43_spill] sm:$0xff] %v19665_v25  ;;  %v10926_v28 = vcombine.low %v10505_v5, %v10506_v36  ;;  %v10219_v6 = vmul.f32 %v19333_v60, %v18837_v53  ;;  %v10218_v22 = vmul.f32 %v19342_v9, %v18809_v26  ;;  %vm12037_vm3 = vcmask 719872  }
 0x64d   :  { %v11166_v37 = vcombine.low %v11157_v14, %v11164_v10  ;;  %v10925_v24 = vcombine.low %v10503_v1, %v10504_v12  ;;  %v10225_v15 = vmul.f32 %v19347_v34, %v18823_v59  ;;  %v19682_v53 = vrot.slane %v10923_v49, %v15059_v0 }
 0x64e   :  { %v10220_v31 = vmul.f32 %v19372_v3, %v18841_v35  ;;  %v10411_v16 = vadd.f32 %v19353_v4, %v10219_v6  ;;  %v10221_v26 = vmul.f32 %v19361_v23, %v18833_v57  ;;  %v10223_v59 = vmul.f32 %v19321_v45, %v18883_v11 }
 0x64f   :  { %v10224_v19 = vmul.f32 %v19357_v29, %v18852_v52  ;;  %v10417_v27 = vadd.f32 %v19368_v40, %v10225_v15  ;;  %v10940_v62 = vrot.slane %v10924_v42, %v15059_v0  ;;  %v10954_v35 = vrot.slane %v10926_v28, %v15059_v0 }
 0x650   :  { %v19670_v47 = vld [vmem:[#allocation3 + $0x1] ss:$2 sm:$0xff]  ;;  %v19672_v38 = vld [vmem:[#allocation3] ss:$2 sm:$0xff]  ;;  %v10222_v33 = vmul.f32 %v19330_v21, %v21461_v46  ;;  %v10410_v57 = vadd.f32 %v19364_v61, %v10218_v22  ;;  %v10412_v52 = vadd.f32 %v19396_v50, %v10220_v31  ;;  %v10413_v7 = vadd.f32 %v19384_v44, %v10221_v26 }
 0x651   :  { %11923 = vrot.lane.b32.xlu0 %v19670_v47, %s13008_s5  ;;  %v11931_v32 = vrot.slane %v19672_v38, 1  ;;  %v19700_v30 = vld [vmem:[#allocation3 + $0x19] ss:$2 sm:$0xff]  ;;  %v19702_v11 = vld [vmem:[#allocation3 + $0x18] ss:$2 sm:$0xff]  ;;  %v10415_v54 = vadd.f32 %v19339_v55, %v10223_v59  ;;  %v10416_v39 = vadd.f32 %v19380_v18, %v10224_v19  ;;  %v11939_v36 = vrot.slane %v19670_v47, 1 }
 0x652   :  { %21462 = vst [vmem:[#allocation51_spill] sm:$0xff] %v19702_v11  ;;  %v10947_v10 = vrot.slane %v10925_v24, %v15059_v0  ;;  %v10414_v12 = vadd.f32 %v19350_v48, %v10222_v33  ;;  %v10541_v17 = vmul.f32 %v10411_v16, %v10411_v16  ;;  %v19716_v5 = vrot.slane %v11165_v56, %v15059_v0  ;;  %v21463_v16 = vld [vmem:[#allocation21_spill] sm:$0xff]  ;;  %v21464_v19 = vld [vmem:[#allocation10_spill] sm:$0xff] }
 0x653   :  { %11933 = vrot.lane.b32.xlu1 %v11931_v32, %s13009_s26  ;;  %v19719_v49 = vrot.slane %v11166_v37, %v15059_v0  ;;  %v10547_v14 = vmul.f32 %v10417_v27, %v10417_v27  ;;  %v11932_v1 = vrot.slane %v19702_v11, 1  ;;  %v10955_v42 = vcombine.low %v19682_v53, %v10940_v62  ;;  %v21465_v53 = vld [vmem:[#allocation16_spill] sm:$0xff] }
 0x654   :  { %v10956_v28 = vcombine.low %v10947_v10, %v10954_v35  ;;  %v10540_v6 = vmul.f32 %v10410_v57, %v10410_v57  ;;  %v10542_v24 = vmul.f32 %v10412_v52, %v10412_v52  ;;  %v10543_v22 = vmul.f32 %v10413_v7, %v10413_v7  ;;  %v21466_v35 = vld [vmem:[#allocation13_spill] sm:$0xff]  ;;  %v21467_v57 = vld [vmem:[#allocation19_spill] sm:$0xff]  ;;  %v21468_v7 = vld [vmem:[#allocation48_spill] sm:$0xff] }
 0x655   :  { %11925 = vrot.lane.b32.xlu0 %v19700_v30, %s13008_s5  ;;  %v10545_v15 = vmul.f32 %v10415_v54, %v10415_v54  ;;  %v10546_v32 = vmul.f32 %v10416_v39, %v10416_v39  ;;  %v11947_v56 = vrot.slane %v19672_v38, 2  ;;  %v10544_v31 = vmul.f32 %v10414_v12, %v10414_v12  ;;  %v21469_v10 = vld [vmem:[#allocation18_spill] sm:$0xff] }
 0x656   :  { %v11182_v37 = vcombine.low %v10540_v6, %v10541_v17  ;;  %v10188_v26 = vmul.f32 %v19361_v23, %v21463_v16  ;;  %v10185_v27 = vmul.f32 %v19342_v9, %v21464_v19  ;;  %v10186_v62 = vmul.f32 %v19333_v60, %v21465_v53  ;;  %v21470_v6 = vld [vmem:[#allocation22_spill] sm:$0xff] }
 0x657   :  { %11941 = vrot.lane.b32.xlu1 %v11939_v36, %s13010_s15  ;;  %v11185_v59 = vcombine.low %v10546_v32, %v10547_v14  ;;  %v10190_v46 = vmul.f32 %v19321_v45, %v21466_v35  ;;  %v11940_v33 = vrot.slane %v19700_v30, 1  ;;  %v10187_v52 = vmul.f32 %v19372_v3, %v21467_v57 }
 0x658   :  { %v10192_v54 = vmul.f32 %v19347_v34, %v21468_v7  ;;  %v10380_v39 = vadd.f32 %v19384_v44, %v10188_v26  ;;  %v11184_v36 = vcombine.low %v10544_v31, %v10545_v15  ;;  %v10189_v12 = vmul.f32 %v19330_v21, %v21469_v10 }
 0x659   :  { %11935 = vrot.lane.b32.xlu0 %v11932_v1, %s13009_s26  ;;  %v10378_v17 = vadd.f32 %v19353_v4, %v10186_v62  ;;  %v10382_v14 = vadd.f32 %v19339_v55, %v10190_v46  ;;  %v11955_v1 = vrot.slane %v19670_v47, 2  ;;  %v10191_v32 = vmul.f32 %v19357_v29, %v21470_v6 }
 0x65a   :  { %v10384_v16 = vadd.f32 %v19368_v40, %v10192_v54  ;;  %v11183_v19 = vcombine.low %v10542_v24, %v10543_v22  ;;  %v11213_v15 = vrot.slane %v11185_v59, %v15059_v0  ;;  %v10377_v31 = vadd.f32 %v19364_v61, %v10185_v27 }
 0x65b   :  { %11949 = vrot.lane.b32.xlu1 %v11947_v56, %s13011_s9  ;;  %v10379_v56 = vadd.f32 %v19396_v50, %v10187_v52  ;;  %v10381_v26 = vadd.f32 %v19350_v48, %v10189_v12  ;;  %v11948_v53 = vrot.slane %v19702_v11, 2  ;;  %v19754_v62 = vrot.slane %v10955_v42, %v15059_v0 }
 0x65c   :  { %v10383_v35 = vadd.f32 %v19380_v18, %v10191_v32  ;;  %v10510_v46 = vmul.f32 %v10380_v39, %v10380_v39  ;;  %v11206_v24 = vrot.slane %v11184_v36, %v15059_v0  ;;  %v10508_v22 = vmul.f32 %v10378_v17, %v10378_v17  ;;  %v21474_v32 = vld [vmem:[#allocation50_spill] sm:$0xff] }
 0x65d   :  { %11943 = vrot.lane.b32.xlu0 %v11940_v33, %s13010_s15  ;;  %21471 = vst [vmem:[#allocation63_spill] sm:$0xff] %v19754_v62  ;;  %v19758_v33 = vrot.slane %v10956_v28, %v15059_v0  ;;  %v10512_v59 = vmul.f32 %v10382_v14, %v10382_v14  ;;  %v11963_v27 = vrot.slane %v19672_v38, 3  ;;  %v19763_v57 = vrot.slane %v11182_v37, %v15059_v0 }
 0x65e   :  { %v10509_v52 = vmul.f32 %v10379_v56, %v10379_v56  ;;  %v10514_v7 = vmul.f32 %v10384_v16, %v10384_v16  ;;  %v19766_v42 = vrot.slane %v11183_v19, %v15059_v0  ;;  %v11215_v54 = vcombine.low %v11206_v24, %v11213_v15  ;;  %v21475_v15 = vld [vmem:[#allocation35_spill] sm:$0xff]  ;;  %v21478_v24 = vld [vmem:[#allocation45_spill] sm:$0xff] }
 0x65f   :  { %11957 = vrot.lane.b32.xlu1 %v11955_v1, %s20777_s16  ;;  %21472 = vst [vmem:[#allocation79_spill] sm:$0xff] %v19758_v33  ;;  %v10507_v39 = vmul.f32 %v10377_v31, %v10377_v31  ;;  %v10511_v10 = vmul.f32 %v10381_v26, %v10381_v26  ;;  %v11956_v28 = vrot.slane %v19700_v30, 2  ;;  %v10513_v36 = vmul.f32 %v10383_v35, %v10383_v35  ;;  %v21473_v1 = vld [vmem:[#allocation74_spill] sm:$0xff]  ;;  %v21477_v35 = vld [vmem:[#allocation75_spill] sm:$0xff] }
 0x660   :  { %v10973_v12 = vcombine.low %v10509_v52, %v10510_v46  ;;  %v10229_v17 = vmul.f32 %v19361_v23, %v18855_v41  ;;  %v10226_v6 = vmul.f32 %v19342_v9, %v21473_v1  ;;  %v10233_v56 = vmul.f32 %v19347_v34, %v21474_v32  ;;  %v21518_v33 = vld [vmem:[#allocation94_spill] sm:$0xff] }
 0x661   :  { %11951 = vrot.lane.b32.xlu0 %v11948_v53, %s13011_s9  ;;  %v10972_v14 = vcombine.low %v10507_v39, %v10508_v22  ;;  %v10974_v37 = vcombine.low %v10511_v10, %v10512_v59  ;;  %v11971_v16 = vrot.slane %v19670_v47, 3  ;;  %v10975_v19 = vcombine.low %v10513_v36, %v10514_v7  ;;  %v21476_v53 = vld [vmem:[#allocation81_spill] sm:$0xff]  ;;  %v21479_v7 = vld [vmem:[#allocation47_spill] sm:$0xff] }
 0x662   :  { %v10228_v31 = vmul.f32 %v19372_v3, %v21475_v15  ;;  %v10421_v26 = vadd.f32 %v19384_v44, %v10229_v17  ;;  %v10227_v41 = vmul.f32 %v19333_v60, %v21476_v53  ;;  %v10230_v46 = vmul.f32 %v19330_v21, %v21477_v35  ;;  %v21496_v15 = vld [vmem:[#allocation37_spill] sm:$0xff] }
 0x663   :  { %11965 = vrot.lane.b32.xlu1 %v11963_v27, %s13012_s27  ;;  %v10232_v22 = vmul.f32 %v19357_v29, %v21478_v24  ;;  %v10425_v59 = vadd.f32 %v19368_v40, %v10233_v56  ;;  %v11964_v27 = vrot.slane %v19702_v11, 3  ;;  %v19789_v52 = vrot.slane %v10973_v12, %v15059_v0 }
 0x664   :  { %v10231_v39 = vmul.f32 %v19321_v45, %v21479_v7  ;;  %v10420_v10 = vadd.f32 %v19396_v50, %v10228_v31  ;;  %v10419_v36 = vadd.f32 %v19353_v4, %v10227_v41  ;;  %v10422_v17 = vadd.f32 %v19350_v48, %v10230_v46  ;;  %v21481_v7 = vld [vmem:[#allocation23_spill] sm:$0xff] }
 0x665   :  { %11959 = vrot.lane.b32.xlu0 %v11956_v28, %s20777_s16  ;;  %s13013_s16 = smov 56   ;;  %v10418_v28 = vadd.f32 %v19364_v61, %v10226_v6  ;;  %v10424_v1 = vadd.f32 %v19380_v18, %v10232_v22  ;;  %v11979_v32 = vrot.slane %v19672_v38, 4  ;;  %v19800_v56 = vrot.slane %v10972_v14, %v15059_v0 }
 0x666   :  { %v10423_v12 = vadd.f32 %v19339_v55, %v10231_v39  ;;  %v19806_v6 = vrot.slane %v11215_v54, %v15059_v0  ;;  %v19809_v31 = vrot.slane %v10974_v37, %v15059_v0  ;;  %v10555_v53 = vmul.f32 %v10425_v59, %v10425_v59 }
 0x667   :  { %11973 = vrot.lane.b32.xlu1 %v11971_v16, %s13013_s16  ;;  %v10551_v16 = vmul.f32 %v10421_v26, %v10421_v26  ;;  %v11972_v41 = vrot.slane %v19700_v30, 3  ;;  %v19813_v14 = vrot.slane %v10975_v19, %v15059_v0  ;;  %v10550_v35 = vmul.f32 %v10420_v10, %v10420_v10 }
 0x668   :  { %21480 = vst [vmem:[#allocation80_spill] sm:$0xff] %v19806_v6  ;;  %v19817_v46 = vmul.f32 %v10418_v28, %v10418_v28  ;;  %v19819_v24 = vmul.f32 %v10419_v36, %v10419_v36  ;;  %v19821_v54 = vmul.f32 %v10422_v17, %v10422_v17  ;;  %v10554_v37 = vmul.f32 %v10424_v1, %v10424_v1  ;;  %v21483_v28 = vld [vmem:[#allocation65_spill] sm:$0xff] }
 0x669   :  { %11967 = vrot.lane.b32.xlu0 %v11964_v27, %s13012_s27  ;;  %v11987_v22 = vrot.slane %v19670_v47, 4  ;;  %v19824_v59 = vmul.f32 %v10423_v12, %v10423_v12  ;;  %v11232_v27 = vcombine.low %v10550_v35, %v10551_v16  ;;  %v10193_v19 = vmul.f32 %v19342_v9, %v21481_v7  ;;  %v21485_v12 = vld [vmem:[#allocation26_spill] sm:$0xff] }
 0x66a   :  { %v11234_v39 = vcombine.low %v10554_v37, %v10555_v53  ;;  %v10195_v36 = vmul.f32 %v19372_v3, %v21483_v28  ;;  %v10196_v17 = vmul.f32 %v19361_v23, %v21484_v58  ;;  %v11980_v1 = vrot.slane %v19702_v11, 4  ;;  %v21487_v53 = vld [vmem:[#allocation87_spill] sm:$0xff] }
 0x66b   :  { %11981 = vrot.lane.b32.xlu1 %v11979_v32, %s13014_s24  ;;  %v21482_v32 = vld [vmem:[#allocation24_spill] sm:$0xff]  ;;  %v10198_v16 = vmul.f32 %v19321_v45, %v21485_v12  ;;  %v10200_v37 = vmul.f32 %v19347_v34, %v21487_v53  ;;  %v10385_v7 = vadd.f32 %v19364_v61, %v10193_v19  ;;  %v10197_v12 = vmul.f32 %v19330_v21, %v21488_v13 }
 0x66c   :  { %v10194_v10 = vmul.f32 %v19333_v60, %v21482_v32  ;;  %v10387_v28 = vadd.f32 %v19396_v50, %v10195_v36  ;;  %v10388_v58 = vadd.f32 %v19384_v44, %v10196_v17  ;;  %v11231_v19 = vcombine.low %v19817_v46, %v19819_v24 }
 0x66d   :  { %11975 = vrot.lane.b32.xlu0 %v11972_v41, %s13013_s16  ;;  %v21486_v41 = vld [vmem:[#allocation28_spill] sm:$0xff]  ;;  %v10390_v20 = vadd.f32 %v19339_v55, %v10198_v16  ;;  %v10392_v36 = vadd.f32 %v19368_v40, %v10200_v37  ;;  %v19860_v13 = vrot.slane %v11232_v27, %v15059_v0  ;;  %v19863_v17 = vrot.slane %v11234_v39, %v15059_v0  ;;  %v21490_v39 = vld [vmem:[#allocation49_spill] sm:$0xff] }
 0x66e   :  { %v10199_v35 = vmul.f32 %v19357_v29, %v21486_v41  ;;  %v10386_v32 = vadd.f32 %v19353_v4, %v10194_v10  ;;  %v11233_v10 = vcombine.low %v19821_v54, %v19824_v59  ;;  %v19866_v16 = vmul.f32 %v10385_v7, %v10385_v7 }
 0x66f   :  { %11989 = vrot.lane.b32.xlu1 %v11987_v22, %s13015_s22  ;;  %v11995_v22 = vrot.slane %v19672_v38, 5  ;;  %v11988_v38 = vrot.slane %v19700_v30, 4  ;;  %v10517_v24 = vmul.f32 %v10387_v28, %v10387_v28  ;;  %v10518_v54 = vmul.f32 %v10388_v58, %v10388_v58 }
 0x670   :  { %v10391_v41 = vadd.f32 %v19380_v18, %v10199_v35  ;;  %v19868_v46 = vmul.f32 %v10386_v32, %v10386_v32  ;;  %v12003_v59 = vrot.slane %v19670_v47, 5  ;;  %v19871_v35 = vmul.f32 %v10390_v20, %v10390_v20  ;;  %v21492_v32 = vld [vmem:[#allocation53_spill] sm:$0xff]  ;;  %v21493_v20 = vld [vmem:[#allocation59_spill] sm:$0xff] }
 0x671   :  { %11983 = vrot.lane.b32.xlu0 %v11980_v1, %s13014_s24  ;;  %v10389_v1 = vadd.f32 %v19350_v48, %v10197_v12  ;;  %v10522_v53 = vmul.f32 %v10392_v36, %v10392_v36  ;;  %v10234_v26 = vmul.f32 %v19342_v9, %v21490_v39  ;;  %v21491_v12 = vld [vmem:[#allocation41_spill] sm:$0xff]  ;;  %v10236_v28 = vmul.f32 %v19372_v3, %v21492_v32 }
 0x672   :  { %v10521_v37 = vmul.f32 %v10391_v41, %v10391_v41  ;;  %v10235_v7 = vmul.f32 %v19333_v60, %v21491_v12  ;;  %v11996_v47 = vrot.slane %v19702_v11, 5  ;;  %v10239_v58 = vmul.f32 %v19321_v45, %v21493_v20  ;;  %v21494_v41 = vld [vmem:[#allocation93_spill] sm:$0xff] }
 0x673   :  { %11997 = vrot.lane.b32.xlu1 %v11995_v22, %s20855_s8  ;;  %v21489_v22 = vld [vmem:[#allocation46_spill] sm:$0xff]  ;;  %v10240_v12 = vmul.f32 %v19357_v29, %v21496_v15  ;;  %v12004_v11 = vrot.slane %v19700_v30, 5  ;;  %v11022_v25 = vcombine.low %v10517_v24, %v10518_v54  ;;  %v11629_v15 = vld [vmem:[%s21497_s19 + $0x40] sm:$0x1] }
 0x674   :  { %v10237_v27 = vmul.f32 %v19361_v23, %v21489_v22  ;;  %v21495_v22 = vld [vmem:[#allocation54_spill] sm:$0xff]  ;;  %v10427_v32 = vadd.f32 %v19353_v4, %v10235_v7  ;;  %v10431_v20 = vadd.f32 %v19339_v55, %v10239_v58  ;;  %v11024_v43 = vcombine.low %v10521_v37, %v10522_v53  ;;  %v11628_v7 = vld [vmem:[%s21497_s19 + $0x38] sm:$0xff]  ;;  %12786 = vmatprep.subr.msk.mxu1 %vm11637_vm8, %v11629_v15 }
 0x675   :  { %11991 = vrot.lane.b32.xlu0 %v11988_v38, %s13015_s22  ;;  %v10241_v38 = vmul.f32 %v19347_v34, %v21494_v41  ;;  %v10238_v39 = vmul.f32 %v19330_v21, %v21495_v22  ;;  %v10426_v22 = vadd.f32 %v19364_v61, %v10234_v26  ;;  %v11241_v53 = vrot.slane %v11231_v19, %v15059_v0 }
 0x676   :  { %v10429_v36 = vadd.f32 %v19384_v44, %v10237_v27  ;;  %v10519_v27 = vmul.f32 %v10389_v1, %v10389_v1  ;;  %v11255_v26 = vrot.slane %v11233_v10, %v15059_v0  ;;  %v11021_v1 = vcombine.low %v19866_v16, %v19868_v46  ;;  %12787 = vmatpush3.msk.msra.mxu1 %vm11637_vm8, %v11629_v15  ;;  %v11626_v46 = vld [vmem:[%s21497_s19 + $0x28] sm:$0xff] }
 0x677   :  { %12005 = vrot.lane.b32.xlu1 %v12003_v59, %s13016_s7  ;;  %v10428_v59 = vadd.f32 %v19396_v50, %v10236_v28  ;;  %v10433_v41 = vadd.f32 %v19368_v40, %v10241_v38  ;;  %v10430_v30 = vadd.f32 %v19350_v48, %v10238_v39  ;;  %v10432_v28 = vadd.f32 %v19380_v18, %v10240_v12 }
 0x678   :  { %v10557_v24 = vmul.f32 %v10427_v32, %v10427_v32  ;;  %v11023_v54 = vcombine.low %v10519_v27, %v19871_v35  ;;  %v10561_v58 = vmul.f32 %v10431_v20, %v10431_v20  ;;  %12788 = vmatprep.subr.mxu1 %v11628_v7  ;;  %v11263_v19 = vcombine.low %v11241_v53, %v19860_v13  ;;  %v11624_v53 = vld [vmem:[%s21497_s19 + $0x18] sm:$0xff]  ;;  %v21515_v13 = vld [vmem:[#allocation97_spill] sm:$0xff] }
 0x679   :  { %11999 = vrot.lane.b32.xlu0 %v11996_v47, %s20855_s8  ;;  %v10559_v47 = vmul.f32 %v10429_v36, %v10429_v36  ;;  %v10558_v37 = vmul.f32 %v10428_v59, %v10428_v59  ;;  %v10563_v38 = vmul.f32 %v10433_v41, %v10433_v41  ;;  %v11264_v10 = vcombine.low %v11255_v26, %v19863_v17 }
 0x67a   :  { %v19919_v36 = vrot.slane %v11022_v25, %v15059_v0  ;;  %v10556_v16 = vmul.f32 %v10426_v22, %v10426_v22  ;;  %12789 = vmatpush3.msra.mxu1 %v11628_v7  ;;  %v19925_v39 = vrot.slane %v11024_v43, %v15059_v0  ;;  %v10560_v35 = vmul.f32 %v10430_v30, %v10430_v30  ;;  %v11625_v43 = vld [vmem:[%s21497_s19 + $0x20] sm:$0xff] }
 0x67b   :  { %12007 = vrot.lane.b32.xlu1 %v12004_v11, %s13016_s7  ;;  %v11627_v11 = vld [vmem:[%s21497_s19 + $0x30] sm:$0xff]  ;;  %v10562_v12 = vmul.f32 %v10432_v28, %v10432_v28  ;;  %v11281_v32 = vcombine.low %v10558_v37, %v10559_v47  ;;  %v21498_v17 = vcombine.low %v19763_v57, %v19766_v42  ;;  %v19941_v41 = vrot.slane %v11021_v1, %v15059_v0  ;;  %v21502_v1 = vld [vmem:[#allocation32_spill] sm:$0xff]  ;;  %v21514_v57 = vld [vmem:[#allocation99_spill] sm:$0xff] }
 0x67c   :  { %12790 = vmatprep.subr.mxu1 %v11627_v11  ;;  %v11280_v20 = vcombine.low %v10556_v16, %v10557_v24  ;;  %v19944_v27 = vrot.slane %v11023_v54, %v15059_v0  ;;  %v11282_v22 = vcombine.low %v10560_v35, %v10561_v58  ;;  %v21500_v42 = vcombine.low %v19800_v56, %v19789_v52  ;;  %v21504_v37 = vld [vmem:[#allocation34_spill] sm:$0xff]  ;;  %v21505_v16 = vld [vmem:[#allocation68_spill] sm:$0xff]  ;;  %v21506_v35 = vld [vmem:[#allocation39_spill] sm:$0xff] }
 0x67d   :  { %v19935_v59 = vrot.slane %v21498_v17, %v15059_v0  ;;  %12791 = vmatpush3.msra.mxu1 %v11627_v11  ;;  %v11283_v15 = vcombine.low %v10562_v12, %v10563_v38  ;;  %v21501_v30 = vcombine.low %v19809_v31, %v19813_v14  ;;  %v19961_v47 = vrot.slane %v11263_v19, %v15059_v0  ;;  %v21503_v11 = vld [vmem:[#allocation44_spill] sm:$0xff]  ;;  %v11623_v38 = vld [vmem:[%s21497_s19 + $0x10] sm:$0xff] }
 0x67e   :  { %12792 = vmatprep.subr.mxu1 %v11626_v46  ;;  %v19952_v7 = vrot.slane %v21500_v42, %v15059_v0  ;;  %v19967_v26 = vrot.slane %v11264_v10, %v15059_v0  ;;  %v19974_v31 = vrot.slane %v11281_v32, %v15059_v0  ;;  %v19977_v14 = vrot.slane %v11280_v20, %v15059_v0  ;;  %v21507_v32 = vld [vmem:[#allocation55_spill] sm:$0xff]  ;;  %v21508_v20 = vld [vmem:[#allocation36_spill] sm:$0xff] }
 0x67f   :  { %21499 = vst [vmem:[#allocation149_spill] sm:$0xff] %v19935_v59  ;;  %v19958_v28 = vrot.slane %v21501_v30, %v15059_v0  ;;  %12793 = vmatpush3.msra.mxu1 %v11626_v46  ;;  %v10201_v24 = vmul.f32 %v19342_v9, %v21502_v1  ;;  %v10202_v54 = vmul.f32 %v19333_v60, %v21503_v11  ;;  %v21509_v1 = vld [vmem:[#allocation52_spill] sm:$0xff]  ;;  %v21517_v59 = vmov 0.0  }
 0x680   :  { %12794 = vmatprep.subr.mxu1 %v11625_v43  ;;  %v10208_v58 = vmul.f32 %v19347_v34, %v21504_v37  ;;  %v19989_v19 = vrot.slane %v11282_v22, %v15059_v0  ;;  %v19992_v10 = vrot.slane %v11283_v15, %v15059_v0  ;;  %v10203_v46 = vmul.f32 %v19372_v3, %v21505_v16  ;;  %v11622_v15 = vld [vmem:[%s21497_s19 + $0x8] sm:$0xff]  ;;  %v21510_v16 = vld [vmem:[#allocation111_spill] sm:$0xff] }
 0x681   :  { %12795 = vmatpush3.msra.mxu1 %v11625_v43  ;;  %v10204_v12 = vmul.f32 %v19361_v23, %v21506_v35  ;;  %v10206_v17 = vmul.f32 %v19321_v45, %v21507_v32  ;;  %v10207_v43 = vmul.f32 %v19357_v29, %v21508_v20  ;;  %v10393_v42 = vadd.f32 %v19364_v61, %v10201_v24  ;;  %v21512_v20 = vld [vmem:[#allocation91_spill] sm:$0xff] }
 0x682   :  { %12796 = vmatprep.subr.mxu1 %v11624_v53  ;;  %v10400_v22 = vadd.f32 %v19368_v40, %v10208_v58  ;;  %v11312_v30 = vcombine.low %v19977_v14, %v19974_v31  ;;  %v10205_v11 = vmul.f32 %v19330_v21, %v21509_v1  ;;  %v10394_v37 = vadd.f32 %v19353_v4, %v10202_v54  ;;  %v11621_v31 = vld [vmem:[%s21497_s19] sm:$0xff] }
 0x683   :  { %12797 = vmatpush3.msra.mxu1 %v11624_v53  ;;  %v10249_v35 = vmul.f32 %v19347_v34, %v21510_v16  ;;  %v10395_v24 = vadd.f32 %v19396_v50, %v10203_v46  ;;  %v10396_v53 = vadd.f32 %v19384_v44, %v10204_v12  ;;  %v10398_v58 = vadd.f32 %v19339_v55, %v10206_v17  ;;  %v21511_v14 = vld [vmem:[#allocation96_spill] sm:$0xff]  ;;  %v21513_v16 = vld [vmem:[#allocation95_spill] sm:$0xff] }
 0x684   :  { %12798 = vmatprep.subr.mxu1 %v11623_v38  ;;  %v10399_v32 = vadd.f32 %v19380_v18, %v10207_v43  ;;  %v10245_v54 = vmul.f32 %v19361_v23, %v21511_v14  ;;  %v10247_v1 = vmul.f32 %v19321_v45, %v21512_v20  ;;  %v10248_v46 = vmul.f32 %v19357_v29, %v21513_v16 }
 0x685   :  { %12799 = vmatpush3.msra.mxu1 %v11623_v38  ;;  %v10441_v12 = vadd.f32 %v19368_v40, %v10249_v35  ;;  %v10397_v17 = vadd.f32 %v19350_v48, %v10205_v11  ;;  %v10523_v43 = vmul.f32 %v10393_v42, %v10393_v42  ;;  %v10530_v38 = vmul.f32 %v10400_v22, %v10400_v22  ;;  %v21516_v11 = vld [vmem:[#allocation98_spill] sm:$0xff] }
 0x686   :  { %12800 = vmatprep.subr.mxu1 %v11622_v15  ;;  %v10244_v25 = vmul.f32 %v19372_v3, %v21514_v57  ;;  %v10246_v14 = vmul.f32 %v19330_v21, %v21515_v13  ;;  %v10437_v56 = vadd.f32 %v19384_v44, %v10245_v54  ;;  %v10439_v20 = vadd.f32 %v19339_v55, %v10247_v1 }
 0x687   :  { %12801 = vmatpush3.msra.mxu1 %v11622_v15  ;;  %v10440_v16 = vadd.f32 %v19380_v18, %v10248_v46  ;;  %v10524_v35 = vmul.f32 %v10394_v37, %v10394_v37  ;;  %v10528_v52 = vmul.f32 %v10398_v58, %v10398_v58  ;;  %v10529_v6 = vmul.f32 %v10399_v32, %v10399_v32 }
 0x688   :  { %12802 = vmatprep.subr.mxu1 %v11621_v31  ;;  %v10243_v42 = vmul.f32 %v19333_v60, %v21516_v11  ;;  %v10526_v22 = vmul.f32 %v10396_v53, %v10396_v53  ;;  %v10436_v57 = vadd.f32 %v19396_v50, %v10244_v25  ;;  %v10438_v15 = vadd.f32 %v19350_v48, %v10246_v14 }
 0x689   :  { %12803 = vmatpush3.msra.mxu1 %v11621_v31  ;;  %v10571_v13 = vmul.f32 %v10441_v12, %v10441_v12  ;;  %v10527_v54 = vmul.f32 %v10397_v17, %v10397_v17  ;;  %v11073_v1 = vcombine.low %v10529_v6, %v10530_v38  ;;  %v10242_v46 = vmul.f32 %v19342_v9, %v21518_v33 }
 0x68a   :  { %12807 = vmatprep.subr.mxu1 %v21517_v59  ;;  %v10435_v37 = vadd.f32 %v19353_v4, %v10243_v42  ;;  %v10525_v58 = vmul.f32 %v10395_v24, %v10395_v24  ;;  %v10567_v32 = vmul.f32 %v10437_v56, %v10437_v56  ;;  %v10569_v62 = vmul.f32 %v10439_v20, %v10439_v20 }
 0x68b   :  { %v10570_v11 = vmul.f32 %v10440_v16, %v10440_v16  ;;  %v11313_v53 = vcombine.low %v19989_v19, %v19992_v10  ;;  %v11070_v25 = vcombine.low %v10523_v43, %v10524_v35  ;;  %v11072_v31 = vcombine.low %v10527_v54, %v10528_v52  ;;  %v21523_v54 = vld [vmem:[#allocation128_spill] sm:$0xff] }
 0x68c   :  { %v10434_v12 = vadd.f32 %v19364_v61, %v10242_v46  ;;  %v11071_v14 = vcombine.low %v10525_v58, %v10526_v22  ;;  %v10566_v59 = vmul.f32 %v10436_v57, %v10436_v57  ;;  %v10568_v17 = vmul.f32 %v10438_v15, %v10438_v15  ;;  %v21522_v15 = vld [vmem:[#allocation76_spill] sm:$0xff]  ;;  %v21524_v46 = vld [vmem:[#allocation58_spill] sm:$0xff] }
 0x68d   :  { %v11332_v6 = vcombine.low %v10570_v11, %v10571_v13  ;;  %v11020_v33 = vcombine.low %v19952_v7, %v19958_v28  ;;  %v11279_v24 = vcombine.low %v19961_v47, %v19967_v26  ;;  %v11101_v56 = vrot.slane %v11073_v1, %v15059_v0 }
 0x68e   :  { %v10565_v38 = vmul.f32 %v10435_v37, %v10435_v37  ;;  %v21519_v19 = vcombine.low %v19941_v41, %v19919_v36  ;;  %v21520_v10 = vcombine.low %v19944_v27, %v19925_v39  ;;  %v11330_v20 = vcombine.low %v10566_v59, %v10567_v32  ;;  %v21521_v27 = vld [vmem:[#allocation103_spill] sm:$0xff]  ;;  %v21525_v37 = vld [vmem:[#allocation62_spill] sm:$0xff] }
 0x68f   :  { %v11331_v16 = vcombine.low %v10568_v17, %v10569_v62  ;;  %v20065_v35 = vrot.slane %v11312_v30, %v15059_v0  ;;  %v20068_v42 = vrot.slane %v11313_v53, %v15059_v0  ;;  %v11094_v22 = vrot.slane %v11072_v31, %v15059_v0  ;;  %v21527_v53 = vld [vmem:[#allocation114_spill] sm:$0xff]  ;;  %v21529_v17 = vld [vmem:[#allocation124_spill] sm:$0xff] }
 0x690   :  { %v20056_v52 = vrot.slane %v21519_v19, %v15059_v0  ;;  %v20062_v43 = vrot.slane %v21520_v10, %v15059_v0  ;;  %v10564_v57 = vmul.f32 %v10434_v12, %v10434_v12  ;;  %v20072_v36 = vrot.slane %v11070_v25, %v15059_v0  ;;  %v21528_v12 = vld [vmem:[#allocation115_spill] sm:$0xff] }
 0x691   :  { %v20075_v41 = vrot.slane %v11071_v14, %v15059_v0  ;;  %v11360_v39 = vrot.slane %v11332_v6, %v15059_v0  ;;  %v10253_v62 = vmul.f32 %v19361_v23, %v21521_v27  ;;  %v11103_v59 = vcombine.low %v11094_v22, %v11101_v56  ;;  %v21530_v56 = vld [vmem:[#allocation116_spill] sm:$0xff]  ;;  %v21532_v27 = vld [vmem:[#allocation109_spill] sm:$0xff] }
 0x692   :  { %v11329_v30 = vcombine.low %v10564_v57, %v10565_v38  ;;  %v10209_v13 = vmul.f32 %v19342_v9, %v21522_v15  ;;  %v10257_v1 = vmul.f32 %v19347_v34, %v21523_v54  ;;  %v21526_v58 = vcombine.low %v21524_v46, %v21525_v37 }
 0x693   :  { %v20088_v32 = vrot.slane %v11330_v20, %v15059_v0  ;;  %v11353_v11 = vrot.slane %v11331_v16, %v15059_v0  ;;  %v10252_v25 = vmul.f32 %v19372_v3, %v21527_v53  ;;  %v10445_v31 = vadd.f32 %v19384_v44, %v10253_v62  ;;  %v21531_v16 = vld [vmem:[#allocation108_spill] sm:$0xff] }
 0x694   :  { %v10251_v14 = vmul.f32 %v19333_v60, %v21528_v12  ;;  %v10255_v6 = vmul.f32 %v19321_v45, %v21529_v17  ;;  %v10256_v38 = vmul.f32 %v19357_v29, %v21530_v56  ;;  %v10449_v19 = vadd.f32 %v19368_v40, %v10257_v1 }
 0x695   :  { %v11362_v10 = vcombine.low %v11353_v11, %v11360_v39  ;;  %v10401_v20 = vadd.f32 %v19364_v61, %v10209_v13  ;;  %v10250_v22 = vmul.f32 %v19342_v9, %v21531_v16  ;;  %v10444_v57 = vadd.f32 %v19396_v50, %v10252_v25  ;;  %v21549_v13 = vld [vmem:[#allocation156_spill] sm:$0xff] }
 0x696   :  { %v10254_v62 = vmul.f32 %v19330_v21, %v21532_v27  ;;  %v10443_v15 = vadd.f32 %v19353_v4, %v10251_v14  ;;  %v10447_v54 = vadd.f32 %v19339_v55, %v10255_v6  ;;  %v10448_v46 = vadd.f32 %v19380_v18, %v10256_v38  ;;  %v21537_v27 = vld [vmem:[#allocation7_spill] sm:$0xff] }
 0x697   :  { %11557 = vxpose.xlu0.b32.start [1/9] (short) (narrow) %v21526_v58, 8  ;;  %v21533_v1 = vcombine.low %v19587_v2, %v19593_v51  ;;  %v11069_v39 = vcombine.low %v20056_v52, %v20062_v43  ;;  %v20118_v37 = vrot.slane %v11329_v30, %v15059_v0  ;;  %v10575_v58 = vmul.f32 %v10445_v31, %v10445_v31 }
 0x698   :  { %v11102_v11 = vcombine.low %v20072_v36, %v20075_v41  ;;  %v10442_v53 = vadd.f32 %v19364_v61, %v10250_v22  ;;  %v10446_v25 = vadd.f32 %v19350_v48, %v10254_v62  ;;  %v10579_v12 = vmul.f32 %v10449_v19, %v10449_v19  ;;  %v21536_v22 = vld [vmem:[#allocation131_spill] sm:$0xff] }
 0x699   :  { %v20125_v2 = vrot.slane %v11103_v59, %v15059_v0  ;;  %v20129_v14 = vmul.f32 %v10401_v20, %v10401_v20  ;;  %v10574_v17 = vmul.f32 %v10444_v57, %v10444_v57  ;;  %v20132_v30 = vrot.slane %v11362_v10, %v15059_v0  ;;  %v21535_v59 = vld [vmem:[#allocation140_spill] sm:$0xff] }
 0x69a   :  { %v20134_v31 = vmul.f32 %v10443_v15, %v10443_v15  ;;  %v10577_v6 = vmul.f32 %v10447_v54, %v10447_v54  ;;  %v10578_v56 = vmul.f32 %v10448_v46, %v10448_v46  ;;  %v21534_v38 = vcombine.low %v19598_v63, %v19601_v8  ;;  %v21539_v46 = vld [vmem:[#allocation145_spill] sm:$0xff] }
 0x69b   :  { %11558 = vxpose.xlu0.b32.cont [2/9] (short) (narrow) %v21533_v1, 8  ;;  %v11379_v19 = vcombine.low %v10574_v17, %v10575_v58  ;;  %v10259_v16 = vmul.f32 %v19333_v60, %v21535_v59  ;;  %v10261_v20 = vmul.f32 %v19361_v23, %v21536_v22  ;;  %v10265_v57 = vmul.f32 %v19347_v34, %v21537_v27  ;;  %v21538_v1 = vld [vmem:[#allocation144_spill] sm:$0xff]  ;;  %v21540_v22 = vld [vmem:[#allocation129_spill] sm:$0xff]  ;;  %v21543_v27 = vld [vmem:[#allocation43_spill] sm:$0xff] }
 0x69c   :  { %v10572_v10 = vmul.f32 %v10442_v53, %v10442_v53  ;;  %v10576_v62 = vmul.f32 %v10446_v25, %v10446_v25  ;;  %v11381_v15 = vcombine.low %v10578_v56, %v10579_v12  ;;  %v10263_v54 = vmul.f32 %v19321_v45, %v21538_v1  ;;  %v21541_v25 = vld [vmem:[#allocation141_spill] sm:$0xff]  ;;  %v21542_v56 = vld [vmem:[#allocation67_spill] sm:$0xff] }
 0x69d   :  { %v10264_v63 = vmul.f32 %v19357_v29, %v21539_v46  ;;  %v10451_v8 = vadd.f32 %v19353_v4, %v10259_v16  ;;  %v10453_v58 = vadd.f32 %v19384_v44, %v10261_v20  ;;  %v10457_v17 = vadd.f32 %v19368_v40, %v10265_v57  ;;  %v21545_v16 = vld [vmem:[#allocation138_spill] sm:$0xff] }
 0x69e   :  { %v11380_v59 = vcombine.low %v10576_v62, %v10577_v6  ;;  %v10258_v53 = vmul.f32 %v19342_v9, %v21540_v22  ;;  %v10260_v12 = vmul.f32 %v19372_v3, %v21541_v25  ;;  %v21544_v1 = vcombine.low %v21542_v56, %v21543_v27  ;;  %v21547_v25 = vld [vmem:[#allocation56_spill] sm:$0xff] }
 0x69f   :  { %11559 = vxpose.xlu0.b32.cont [3/9] (short) (narrow) %v21534_v38, 8  ;;  %v11378_v38 = vcombine.low %v10572_v10, %v20134_v31  ;;  %v20161_v46 = vrot.slane %v11379_v19, %v15059_v0  ;;  %v10262_v20 = vmul.f32 %v19330_v21, %v21545_v16  ;;  %v10455_v57 = vadd.f32 %v19339_v55, %v10263_v54  ;;  %v21548_v16 = vld [vmem:[#allocation155_spill] sm:$0xff] }
 0x6a0   :  { %v10456_v31 = vadd.f32 %v19380_v18, %v10264_v63  ;;  %v21546_v6 = vcombine.low %v19716_v5, %v19719_v49  ;;  %v11409_v10 = vrot.slane %v11381_v15, %v15059_v0  ;;  %v10450_v62 = vadd.f32 %v19364_v61, %v10258_v53  ;;  %v21550_v49 = vld [vmem:[#allocation40_spill] sm:$0xff] }
 0x6a1   :  { %v10452_v22 = vadd.f32 %v19396_v50, %v10260_v12  ;;  %v10273_v19 = vmul.f32 %v19347_v34, %v21547_v25  ;;  %v10454_v56 = vadd.f32 %v19350_v48, %v10262_v20  ;;  %v10581_v27 = vmul.f32 %v10451_v8, %v10451_v8  ;;  %v21551_v12 = vld [vmem:[#allocation63_spill] sm:$0xff]  ;;  %v21554_v8 = vld [vmem:[#allocation152_spill] sm:$0xff]  ;;  %v21556_v25 = vld [vmem:[#allocation149_spill] sm:$0xff] }
 0x6a2   :  { %v10587_v54 = vmul.f32 %v10457_v17, %v10457_v17  ;;  %v10269_v63 = vmul.f32 %v19361_v23, %v21548_v16  ;;  %v10271_v5 = vmul.f32 %v19321_v45, %v21549_v13  ;;  %v10272_v15 = vmul.f32 %v19357_v29, %v21550_v49  ;;  %v21555_v17 = vld [vmem:[#allocation4_spill] sm:$0xff]  ;;  %v21559_v13 = vld [vmem:[#allocation161_spill] sm:$0xff] }
 0x6a3   :  { %11560 = vxpose.xlu0.b32.cont [4/9] (short) (narrow) %v21544_v1, 8  ;;  %v10583_v1 = vmul.f32 %v10453_v58, %v10453_v58  ;;  %v10465_v53 = vadd.f32 %v19368_v40, %v10273_v19  ;;  %v10585_v34 = vmul.f32 %v10455_v57, %v10455_v57  ;;  %v10586_v20 = vmul.f32 %v10456_v31, %v10456_v31  ;;  %v21557_v16 = vld [vmem:[#allocation80_spill] sm:$0xff] }
 0x6a4   :  { %11589 = vxpose.xlu1.b32.start [1/9] (short) (narrow) %v21546_v6, 8  ;;  %v21552_v6 = vld [vmem:[#allocation79_spill] sm:$0xff]  ;;  %v10267_v58 = vmul.f32 %v19333_v60, %v21554_v8  ;;  %v10268_v23 = vmul.f32 %v19372_v3, %v21555_v17  ;;  %v21558_v45 = vcombine.low %v21556_v25, %v21557_v16  ;;  %v10270_v29 = vmul.f32 %v19330_v21, %v21559_v13  ;;  %v21560_v60 = vld [vmem:[#allocation148_spill] sm:$0xff] }
 0x6a5   :  { %v21553_v51 = vcombine.low %v21551_v12, %v21552_v6  ;;  %v10461_v40 = vadd.f32 %v19384_v44, %v10269_v63  ;;  %v10463_v19 = vadd.f32 %v19339_v55, %v10271_v5  ;;  %v10582_v57 = vmul.f32 %v10452_v22, %v10452_v22 }
 0x6a6   :  { %v10584_v31 = vmul.f32 %v10454_v56, %v10454_v56  ;;  %v11430_v49 = vcombine.low %v10586_v20, %v10587_v54  ;;  %v10266_v12 = vmul.f32 %v19342_v9, %v21560_v60  ;;  %v10459_v3 = vadd.f32 %v19353_v4, %v10267_v58 }
 0x6a7   :  { %11561 = vxpose.xlu0.b32.cont [5/9] (short) (narrow) %v21553_v51, 8  ;;  %v10464_v51 = vadd.f32 %v19380_v18, %v10272_v15  ;;  %v10460_v6 = vadd.f32 %v19396_v50, %v10268_v23  ;;  %v10462_v8 = vadd.f32 %v19350_v48, %v10270_v29  ;;  %v10595_v17 = vmul.f32 %v10465_v53, %v10465_v53  ;;  %v21563_v53 = vld [vmem:[#allocation60_spill] sm:$0xff] }
 0x6a8   :  { %11590 = vxpose.xlu1.b32.cont [2/9] (short) (narrow) %v21558_v45, 8  ;;  %v11402_v21 = vrot.slane %v11380_v59, %v15059_v0  ;;  %v10580_v55 = vmul.f32 %v10450_v62, %v10450_v62  ;;  %v11428_v18 = vcombine.low %v10582_v57, %v10583_v1  ;;  %v11429_v44 = vcombine.low %v10584_v31, %v10585_v34 }
 0x6a9   :  { %v10458_v4 = vadd.f32 %v19364_v61, %v10266_v12  ;;  %v10591_v22 = vmul.f32 %v10461_v40, %v10461_v40  ;;  %v10593_v50 = vmul.f32 %v10463_v19, %v10463_v19  ;;  %v10594_v56 = vmul.f32 %v10464_v51, %v10464_v51 }
 0x6aa   :  { %v11388_v48 = vrot.slane %v11378_v38, %v15059_v0  ;;  %v11411_v54 = vcombine.low %v11402_v21, %v11409_v10  ;;  %v11427_v63 = vcombine.low %v10580_v55, %v10581_v27  ;;  %v11458_v7 = vrot.slane %v11430_v49, %v15059_v0 }
 0x6ab   :  { %11562 = vxpose.xlu0.b32.cont [6/9] (short) (narrow) %v11020_v33, 8  ;;  %v10589_v28 = vmul.f32 %v10459_v3, %v10459_v3  ;;  %v10590_v33 = vmul.f32 %v10460_v6, %v10460_v6  ;;  %v10592_v59 = vmul.f32 %v10462_v8, %v10462_v8  ;;  %v11479_v62 = vcombine.low %v10594_v56, %v10595_v17 }
 0x6ac   :  { %11591 = vxpose.xlu1.b32.cont [3/9] (short) (narrow) %v11279_v24, 8  ;;  %v11110_v47 = vrot.slane %v11102_v11, %v15059_v0  ;;  %v21561_v26 = vcombine.low %v20118_v37, %v20088_v32  ;;  %v11410_v38 = vcombine.low %v11388_v48, %v20161_v46  ;;  %v11444_v10 = vrot.slane %v11428_v18, %v15059_v0 }
 0x6ad   :  { %v21562_v27 = vcombine.low %v20065_v35, %v20068_v42  ;;  %v11451_v52 = vrot.slane %v11429_v44, %v15059_v0  ;;  %v10588_v43 = vmul.f32 %v10458_v4, %v10458_v4  ;;  %v11478_v1 = vcombine.low %v10592_v59, %v10593_v50  ;;  %v21564_v59 = vld [vmem:[#allocation51_spill] sm:$0xff] }
 0x6ae   :  { %v11369_v24 = vrot.slane %v21561_v26, %v15059_v0  ;;  %v11118_v36 = vcombine.low %v11110_v47, %v20125_v2  ;;  %v11125_v32 = vrot.slane %v20129_v14, %v15059_v0  ;;  %v11425_v37 = vrot.slane %v11411_v54, %v15059_v0 }
 0x6af   :  { %11563 = vxpose.xlu0.b32.cont [7/9] (short) (narrow) %v11069_v39, 8  ;;  %v11477_v39 = vcombine.low %v10590_v33, %v10591_v22  ;;  %v11437_v11 = vrot.slane %v11427_v63, %v15059_v0  ;;  %v11460_v46 = vcombine.low %v11451_v52, %v11458_v7  ;;  %v11476_v5 = vcombine.low %v10588_v43, %v10589_v28  ;;  %v12988_v7 = vld [vmem:[#allocation3] ss:$2 sm:$0xff] }
 0x6b0   :  { %11592 = vxpose.xlu1.b32.cont [4/9] (short) (narrow) %v21562_v27, 8  ;;  %v11377_v41 = vcombine.low %v11369_v24, %v20132_v30  ;;  %v11507_v35 = vrot.slane %v11479_v62, %v15059_v0  ;;  %v11418_v42 = vrot.slane %v11410_v38, %v15059_v0  ;;  %v11500_v30 = vrot.slane %v11478_v1, %v15059_v0 }
 0x6b1   :  { %v11459_v15 = vcombine.low %v11437_v11, %v11444_v10  ;;  %v11493_v2 = vrot.slane %v11477_v39, %v15059_v0  ;;  %v10274_v14 = vmul.f32 %v19342_v9, %v21563_v53  ;;  %v11132_v34 = vrot.slane %v11125_v32, %v15059_v0 }
 0x6b2   :  { %v11426_v20 = vcombine.low %v11418_v42, %v11425_v37  ;;  %v11474_v58 = vrot.slane %v11460_v46, %v15059_v0  ;;  %v11486_v23 = vrot.slane %v11476_v5, %v15059_v0  ;;  %v11509_v25 = vcombine.low %v11500_v30, %v11507_v35 }
 0x6b3   :  { %11564 = vxpose.xlu0.b32.cont [8/9] (short) (narrow) %v11118_v36, 8  ;;  %v10466_v16 = vadd.f32 %v19364_v61, %v10274_v14  ;;  %v11467_v45 = vrot.slane %v11459_v15, %v15059_v0 }
 0x6b4   :  { %11593 = vxpose.xlu1.b32.cont [5/9] (short) (narrow) %v11377_v41, 8  ;;  %v11508_v13 = vcombine.low %v11486_v23, %v11493_v2  ;;  %v11523_v40 = vrot.slane %v11509_v25, %v15059_v0 }
 0x6b5   :  { %v11475_v29 = vcombine.low %v11467_v45, %v11474_v58  ;;  %v10596_v19 = vmul.f32 %v10466_v16, %v10466_v16  ;;  %v12050_v16 = vld [vmem:[%s21565_s12 + $0x50] sm:$0xff]  ;;  %v21566_v45 = vmov 0.0  }
 0x6b6   :  { %v11516_v9 = vrot.slane %v11508_v13, %v15059_v0 }
 0x6b7   :  { %11565 = vxpose.xlu0.b32.end [9/9] (short) (narrow) %v11132_v34, 8  ;;  %v11531_v57 = vrot.slane %v10596_v19, %v15059_v0 }
 0x6b8   :  { %11594 = vxpose.xlu1.b32.cont [6/9] (short) (narrow) %v11426_v20, 8  ;;  %v11524_v51 = vcombine.low %v11516_v9, %v11523_v40  ;;  %v12051_v20 = vld [vmem:[%s21565_s12 + $0x58] sm:$0xff]  ;;  %v12049_v40 = vld [vmem:[%s21565_s12 + $0x48] sm:$0xff] }
 0x6b9   :  { %v11538_v31 = vrot.slane %v11531_v57, %v15059_v0 }
 0x6bc   :  { %11595 = vxpose.xlu1.b32.cont [7/9] (short) (narrow) %v11475_v29, 8 }
 0x6c0   :  { %11596 = vxpose.xlu1.b32.cont [8/9] (short) (narrow) %v11524_v51, 8  ;;  %v12048_v51 = vld [vmem:[%s21565_s12 + $0x40] sm:$0xff] }
 0x6c3   :  { %v11924_v61 = vpop.permute.xlu0 %11923 }
 0x6c4   :  { %11597 = vxpose.xlu1.b32.end [9/9] (short) (narrow) %v11538_v31, 8  ;;  %v12011_v28 = vsel %vm8862_vm1, %v12988_v7, %v11924_v61 }
 0x6c5   :  { %v11934_v60 = vpop.permute.xlu1 %11933 }
 0x6c6   :  { %v12014_v47 = vsel %vm12013_vm9, %v12011_v28, %v11934_v60 }
 0x6c7   :  { %v11926_v49 = vpop.permute.xlu0 %11925 }
 0x6c8   :  { %v12012_v62 = vsel %vm8862_vm1, %v21564_v59, %v11926_v49  ;;  %v12047_v49 = vld [vmem:[%s21565_s12 + $0x38] sm:$0xff] }
 0x6c9   :  { %v11942_v3 = vpop.permute.xlu1 %11941 }
 0x6ca   :  { %v12017_v24 = vsel %vm12016_vm10, %v12014_v47, %v11942_v3 }
 0x6cb   :  { %v11936_v12 = vpop.permute.xlu0 %11935 }
 0x6cc   :  { %v12015_v26 = vsel %vm12013_vm9, %v12012_v62, %v11936_v12  ;;  %v12046_v12 = vld [vmem:[%s21565_s12 + $0x30] sm:$0xff] }
 0x6cd   :  { %v11950_v8 = vpop.permute.xlu1 %11949 }
 0x6ce   :  { %v12019_v10 = vsel %vm6558_vm0, %v12017_v24, %v11950_v8  ;;  %v12045_v8 = vld [vmem:[%s21565_s12 + $0x28] sm:$0xff] }
 0x6cf   :  { %v11944_v6 = vpop.permute.xlu0 %11943 }
 0x6d0   :  { %v12018_v38 = vsel %vm12016_vm10, %v12015_v26, %v11944_v6 }
 0x6d1   :  { %v11958_v21 = vpop.permute.xlu1 %11957 }
 0x6d2   :  { %v12021_v39 = vsel %vm1390_vm4, %v12019_v10, %v11958_v21  ;;  %v12044_v21 = vld [vmem:[%s21565_s12 + $0x20] sm:$0xff] }
 0x6d3   :  { %v11952_v17 = vpop.permute.xlu0 %11951 }
 0x6d4   :  { %v12020_v27 = vsel %vm6558_vm0, %v12018_v38, %v11952_v17  ;;  %vm12315_vm0 = vcmask 124928  }
 0x6d5   :  { %v11966_v18 = vpop.permute.xlu1 %11965 }
 0x6d6   :  { %v12024_v36 = vsel %vm12023_vm12, %v12021_v39, %v11966_v18 }
 0x6d7   :  { %v11960_v55 = vpop.permute.xlu0 %11959 }
 0x6d8   :  { %v12022_v1 = vsel %vm1390_vm4, %v12020_v27, %v11960_v55  ;;  %vm13017_vm4 = vmmov 0  }
 0x6d9   :  { %v11974_v4 = vpop.permute.xlu1 %11973 }
 0x6da   :  { %v12027_v32 = vsel %vm12026_vm13, %v12024_v36, %v11974_v4  ;;  %v12042_v4 = vld [vmem:[%s21565_s12 + $0x10] sm:$0xff] }
 0x6db   :  { %v11968_v44 = vpop.permute.xlu0 %11967 }
 0x6dc   :  { %v12025_v41 = vsel %vm12023_vm12, %v12022_v1, %v11968_v44  ;;  %v12043_v44 = vld [vmem:[%s21565_s12 + $0x18] sm:$0xff] }
 0x6dd   :  { %v11982_v50 = vpop.permute.xlu1 %11981 }
 0x6de   :  { %v12030_v11 = vsel %vm12029_vm15, %v12027_v32, %v11982_v50 }
 0x6df   :  { %v11976_v22 = vpop.permute.xlu0 %11975 }
 0x6e0   :  { %v12028_v37 = vsel %vm12026_vm13, %v12025_v41, %v11976_v22 }
 0x6e1   :  { %v11990_v48 = vpop.permute.xlu1 %11989 }
 0x6e2   :  { %v12033_v5 = vsel %vm12032_vm2, %v12030_v11, %v11990_v48  ;;  %v12040_v48 = vld [vmem:[%s21565_s12] sm:$0xff] }
 0x6e3   :  { %v11984_v56 = vpop.permute.xlu0 %11983 }
 0x6e4   :  { %v12031_v46 = vsel %vm12029_vm15, %v12028_v37, %v11984_v56  ;;  %v12041_v56 = vld [vmem:[%s21565_s12 + $0x8] sm:$0xff]  ;;  %s21570_s12 = sld [smem:[#allocation166_spill]] }
 0x6e5   :  { %v11998_v63 = vpop.permute.xlu1 %11997 }
 0x6e6   :  { %v12035_v42 = vsel %vm2126_vm14, %v12033_v5, %v11998_v63 }
 0x6e7   :  { %v11992_v54 = vpop.permute.xlu0 %11991 }
 0x6e8   :  { %v12034_v35 = vsel %vm12032_vm2, %v12031_v46, %v11992_v54 }
 0x6e9   :  { %v12006_v52 = vpop.permute.xlu1 %12005 }
 0x6ea   :  { %v12038_v30 = vsel %vm12037_vm3, %v12035_v42, %v12006_v52 }
 0x6eb   :  { %v12000_v33 = vpop.permute.xlu0 %11999  ;;  %v12060_v14 = vrot.slane %v12038_v30, %v15059_v0 }
 0x6ec   :  { %v12036_v15 = vsel %vm2126_vm14, %v12034_v35, %v12000_v33  ;;  %vm12140_vm14 = vcmask 785408  }
 0x6ed   :  { %v12008_v2 = vpop.permute.xlu1 %12007  ;;  %v12061_v23 = vcombine.high %v12060_v14, %v12060_v14  ;;  %v12068_v25 = vrot.slane %v12060_v14, %v15059_v0 }
 0x6ee   :  { %v12039_v53 = vsel %vm12037_vm3, %v12036_v15, %v12008_v2 }
 0x6ef   :  { %v12083_v34 = vrot.slane %v12039_v53, %v15059_v0  ;;  %v12075_v19 = vrot.slane %v12061_v23, %v15059_v0  ;;  %v12076_v9 = vcombine.high %v12068_v25, %v12068_v25 }
 0x6f1   :  { %v12084_v13 = vcombine.high %v12083_v34, %v12083_v34  ;;  %v12091_v29 = vrot.slane %v12083_v34, %v15059_v0  ;;  %v12100_v60 = vcombine.low %v12068_v25, %v12075_v19 }
 0x6f3   :  { %v12098_v57 = vrot.slane %v12084_v13, %v15059_v0  ;;  %v12099_v31 = vcombine.high %v12091_v29, %v12091_v29  ;;  %v12101_v61 = vcombine.low %v12076_v9, %v12091_v29  ;;  %v12109_v17 = vrot.slane %v12100_v60, %v15059_v0 }
 0x6f5   :  { %v12102_v3 = vcombine.low %v12098_v57, %v12099_v31  ;;  %v12116_v6 = vrot.slane %v12101_v61, %v15059_v0 }
 0x6f7   :  { %v12123_v55 = vrot.slane %v12102_v3, %v15059_v0  ;;  %v12124_v18 = vcombine.low %v12109_v17, %v12116_v6 }
 0x6f9   :  { %v12131_v22 = vrot.slane %v12124_v18, %v15059_v0  ;;  %v12138_v50 = vrot.slane %v12123_v55, %v15059_v0 }
 0x6fb   :  { %v12139_v54 = vcombine.low %v12131_v22, %v12138_v50 }
 0x713   :  { %v11573_v43 = vpop.trf.xlu0 }
 0x714   :  { %12804 = vmatprep.mubr.msk.f32.mxu1 %vm11630_vm11, %v11573_v43 }
 0x720   :  { %v11605_v58 = vpop.trf.xlu1 }
 0x721   :  { %12805 = vmatmul.mubr.msk.f32.vlgmr.msra.gmra.mxu1 %vm11630_vm11, %v11605_v58 }
 0x722   :  { %12808 = vmatpush3.msra.mxu1 %v12051_v20  ;;  %12831 = vmatprep.mubr.msk.f32.mxu1 %vm13017_vm4, %v21566_v45 }
 0x723   :  { %12809 = vmatprep.subr.mxu1 %v21566_v45 }
 0x724   :  { %12810 = vmatpush3.msra.mxu1 %v12050_v16 }
 0x725   :  { %12811 = vmatprep.subr.mxu1 %v21566_v45 }
 0x726   :  { %12812 = vmatpush3.msra.mxu1 %v12049_v40 }
 0x727   :  { %12813 = vmatprep.subr.mxu1 %v21566_v45 }
 0x728   :  { %12814 = vmatpush3.msra.mxu1 %v12048_v51 }
 0x729   :  { %12815 = vmatprep.subr.mxu1 %v21566_v45 }
 0x72a   :  { %12816 = vmatpush3.msra.mxu1 %v12047_v49 }
 0x72b   :  { %12817 = vmatprep.subr.mxu1 %v21566_v45 }
 0x72c   :  { %12818 = vmatpush3.msra.mxu1 %v12046_v12 }
 0x72d   :  { %12819 = vmatprep.subr.mxu1 %v21566_v45 }
 0x72e   :  { %12820 = vmatpush3.msra.mxu1 %v12045_v8 }
 0x72f   :  { %12821 = vmatprep.subr.mxu1 %v21566_v45 }
 0x730   :  { %12822 = vmatpush3.msra.mxu1 %v12044_v21 }
 0x731   :  { %12823 = vmatprep.subr.mxu1 %v21566_v45 }
 0x732   :  { %12824 = vmatpush3.msra.mxu1 %v12043_v44 }
 0x733   :  { %12825 = vmatprep.subr.mxu1 %v21566_v45 }
 0x734   :  { %12826 = vmatpush3.msra.mxu1 %v12042_v4 }
 0x735   :  { %12827 = vmatprep.subr.mxu1 %v21566_v45 }
 0x736   :  { %12828 = vmatpush3.msra.mxu1 %v12041_v56 }
 0x737   :  { %12829 = vmatprep.subr.mxu1 %v21566_v45 }
 0x738   :  { %12830 = vmatpush3.msra.mxu1 %v12040_v48 }
 0x739   :  { %12832 = vmatmul.mubr.msk.f32.vlgmr.msra.gmra.mxu1 %vm12140_vm14, %v12139_v54 }
 0x7e1   :  { %v20323_v63 = vpop.f32.mrf.mxu1 }
 0x7e3   :  { %v20325_v7 = vpop.f32.mrf.mxu1 }
 0x7f9   :  { %v12209_v28 = vpop.f32.mrf.mxu1 }
 0x7fa   :  { %v12214_v33 = vcombine.high %v12209_v28, %v12209_v28  ;;  %v12221_v59 = vrot.slane %v12209_v28, %v15059_v0 }
 0x7fb   :  { %v12833_v62 = vpop.f32.mrf.mxu1 }
 0x7fc   :  { %v12228_v47 = vrot.slane %v12214_v33, %v15059_v0  ;;  %v12229_v26 = vcombine.high %v12221_v59, %v12221_v59  ;;  %v20330_v24 = vrot.slane %v12221_v59, %v15059_v0  ;;  %v12398_v33 = vld [vmem:[%s21567_s29] sm:$0x1] }
 0x7fe   :  { %v12230_v38 = vcombine.high %v12228_v47, %v12228_v47  ;;  %v20333_v10 = vrot.slane %v12228_v47, %v15059_v0  ;;  %v20336_v27 = vrot.slane %v12229_v26, %v15059_v0  ;;  %v20340_v52 = vcombine.high %v20330_v24, %v20330_v24  ;;  %v12402_v47 = vld [vmem:[%s21568_s3] sm:$0x1] }
 0x7ff   :  { %v12325_v41 = vmul.f32 %v20330_v24, %v20330_v24 }
 0x800   :  { %v20343_v43 = vrot.slane %v12230_v38, %v15059_v0  ;;  %v20347_v39 = vcombine.high %v20336_v27, %v20336_v27  ;;  %v12267_v1 = vcombine.low %v20330_v24, %v20336_v27  ;;  %v12281_v36 = vrot.slane %v20340_v52, %v15059_v0  ;;  %v21569_v38 = vld [vmem:[#allocation57_spill] sm:$0xff] }
 0x801   :  { %v12326_v32 = vmul.f32 %v20336_v27, %v20336_v27  ;;  %v12327_v37 = vmul.f32 %v20340_v52, %v20340_v52  ;;  %v12329_v35 = vmul.f32 %v20333_v10, %v20333_v10 }
 0x802   :  { %v12274_v11 = vrot.slane %v12267_v1, %v15059_v0  ;;  %v12290_v46 = vcombine.low %v20347_v39, %v20333_v10  ;;  %v12328_v5 = vmul.f32 %v20347_v39, %v20347_v39  ;;  %v12330_v42 = vmul.f32 %v20343_v43, %v20343_v43 }
 0x803   :  { %v12337_v15 = vcombine.low %v12325_v41, %v12326_v32  ;;  %v12304_v53 = vrot.slane %v20343_v43, %v15059_v0  ;;  %v12351_v20 = vrot.slane %v12327_v37, %v15059_v0 }
 0x804   :  { %v12282_v2 = vcombine.low %v12274_v11, %v12281_v36  ;;  %v12297_v30 = vrot.slane %v12290_v46, %v15059_v0  ;;  %v12360_v14 = vcombine.low %v12328_v5, %v12329_v35  ;;  %v12374_v16 = vrot.slane %v12330_v42, %v15059_v0 }
 0x805   :  { %v12344_v34 = vrot.slane %v12337_v15, %v15059_v0 }
 0x806   :  { %v12289_v58 = vrot.slane %v12282_v2, %v15059_v0  ;;  %v12305_v23 = vcombine.low %v12297_v30, %v12304_v53  ;;  %v12367_v25 = vrot.slane %v12360_v14, %v15059_v0 }
 0x807   :  { %v12352_v45 = vcombine.low %v12344_v34, %v12351_v20 }
 0x808   :  { %v12312_v13 = vrot.slane %v12305_v23, %v15059_v0  ;;  %v12375_v29 = vcombine.low %v12367_v25, %v12374_v16  ;;  %v12316_v19 = vsel %vm12315_vm0, %v12289_v58, 0.0 }
 0x809   :  { %v12359_v40 = vrot.slane %v12352_v45, %v15059_v0 }
 0x80a   :  { %v12317_v9 = vsel %vm12315_vm0, %v12312_v13, 0.0  ;;  %v12382_v51 = vrot.slane %v12375_v29, %v15059_v0 }
 0x80b   :  { %v12318_v57 = vadd.f32 %v12317_v9, %v12316_v19  ;;  %v12385_v31 = vsel %vm12315_vm0, %v12359_v40, 0.0 }
 0x80c   :  { %v12386_v61 = vsel %vm12315_vm0, %v12382_v51, 0.0 }
 0x80d   :  { %v12319_v49 = vrot.slane %v12318_v57, 4  ;;  %v12387_v60 = vadd.f32 %v12386_v61, %v12385_v31 }
 0x80f   :  { %v12320_v12 = vadd.f32 %v12319_v49, %v12318_v57  ;;  %v12388_v3 = vrot.slane %v12387_v60, 4 }
 0x811   :  { %v12321_v6 = vrot.slane %v12320_v12, 2  ;;  %v12389_v8 = vadd.f32 %v12388_v3, %v12387_v60 }
 0x813   :  { %v12322_v17 = vadd.f32 %v12321_v6, %v12320_v12  ;;  %v12390_v21 = vrot.slane %v12389_v8, 2 }
 0x815   :  { %v12323_v55 = vrot.slane %v12322_v17, 1  ;;  %v12391_v18 = vadd.f32 %v12390_v21, %v12389_v8 }
 0x817   :  { %v12324_v44 = vadd.f32 %v12323_v55, %v12322_v17  ;;  %v12392_v4 = vrot.slane %v12391_v18, 1 }
 0x819   :  { %v12393_v22 = vadd.f32 %v12392_v4, %v12391_v18  ;;  %v12394_v50 = vmul.f32 0.16666667, %v12324_v44 }
 0x81b   :  { %v12395_v56 = vmul.f32 0.16666667, %v12393_v22  ;;  %v12396_v48 = vmul.f32 %v12394_v50, %v12394_v50 }
 0x81d   :  { %v12397_v54 = vsub.f32 %v12395_v56, %v12396_v48 }
 0x81f   :  { %v12399_v28 = vadd.f32 1e-05, %v12397_v54 }
 0x821   :  { %12919 = vrsqrt.f32 %v12399_v28 }
 0x82e   :  { %v12920_v59 = vpop.eup %12919 }
 0x82f   :  { %v12401_v62 = vmul.f32 %v12920_v59, %v12398_v33 }
 0x831   :  { %v12403_v26 = vmul.f32 %v12401_v62, %v12394_v50  ;;  %v12409_v1 = vrot.slane %v12401_v62, %v21569_v38 }
 0x833   :  { %v12404_v36 = vsub.f32 %v12402_v47, %v12403_v26  ;;  %v12416_v41 = vrot.slane %v12409_v1, %v15059_v0 }
 0x835   :  { %v12417_v32 = vcombine.high %v12416_v41, %v12416_v41  ;;  %v12424_v37 = vrot.slane %v12416_v41, %v15059_v0  ;;  %v12446_v11 = vrot.slane %v12404_v36, %v21569_v38 }
 0x837   :  { %v12431_v46 = vrot.slane %v12417_v32, %v15059_v0  ;;  %v12432_v5 = vcombine.high %v12424_v37, %v12424_v37  ;;  %v12453_v35 = vrot.slane %v12446_v11, %v15059_v0  ;;  %v12436_v42 = vmul.f32 %v12424_v37, %v20330_v24 }
 0x838   :  { %v12439_v15 = vmul.f32 %v12424_v37, %v20347_v39 }
 0x839   :  { %v12454_v2 = vcombine.high %v12453_v35, %v12453_v35  ;;  %v12461_v30 = vrot.slane %v12453_v35, %v15059_v0  ;;  %v12437_v53 = vmul.f32 %v12431_v46, %v20336_v27  ;;  %v12440_v14 = vmul.f32 %v12431_v46, %v20333_v10 }
 0x83a   :  { %v12441_v34 = vmul.f32 %v12432_v5, %v20343_v43  ;;  %v12438_v16 = vmul.f32 %v12432_v5, %v20340_v52 }
 0x83b   :  { %v12468_v20 = vrot.slane %v12454_v2, %v15059_v0  ;;  %v12469_v58 = vcombine.high %v12461_v30, %v12461_v30  ;;  %v12473_v23 = vadd.f32 %v12461_v30, %v12436_v42  ;;  %v12476_v25 = vadd.f32 %v12461_v30, %v12439_v15 }
 0x83d   :  { %v12474_v45 = vadd.f32 %v12468_v20, %v12437_v53  ;;  %v12477_v24 = vadd.f32 %v12468_v20, %v12440_v14  ;;  %v12478_v13 = vadd.f32 %v12469_v58, %v12441_v34  ;;  %v12485_v39 = vmin.f32 %v12473_v23, 0.0 }
 0x83e   :  { %v12488_v29 = vmin.f32 %v12476_v25, 0.0  ;;  %v12475_v40 = vadd.f32 %v12469_v58, %v12438_v16  ;;  %vm12482_vm5 = vcmp.gt.f32.partialorder %v12476_v25, 0.0  ;;  %vm12479_vm7 = vcmp.gt.f32.partialorder %v12473_v23, 0.0 }
 0x83f   :  { %v12486_v19 = vmin.f32 %v12474_v45, 0.0  ;;  %v12489_v9 = vmin.f32 %v12477_v24, 0.0  ;;  %v12490_v27 = vmin.f32 %v12478_v13, 0.0  ;;  %v12491_v51 = vmul.f32 1.442695, %v12485_v39 }
 0x840   :  { %v12497_v10 = vmul.f32 1.442695, %v12488_v29  ;;  %v12487_v61 = vmin.f32 %v12475_v40, 0.0  ;;  %vm12483_vm6 = vcmp.gt.f32.partialorder %v12477_v24, 0.0  ;;  %vm12480_vm8 = vcmp.gt.f32.partialorder %v12474_v45, 0.0 }
 0x841   :  { %12921 = vpow2.f32 %v12491_v51  ;;  %v12493_v43 = vmul.f32 1.442695, %v12486_v19  ;;  %v12499_v57 = vmul.f32 1.442695, %v12489_v9  ;;  %v12501_v31 = vmul.f32 1.442695, %v12490_v27 }
 0x842   :  { %12923 = vpow2.f32 %v12497_v10  ;;  %v12495_v52 = vmul.f32 1.442695, %v12487_v61  ;;  %vm12484_vm9 = vcmp.gt.f32.partialorder %v12478_v13, 0.0  ;;  %vm12481_vm11 = vcmp.gt.f32.partialorder %v12475_v40, 0.0 }
 0x843   :  { %12925 = vpow2.f32 %v12493_v43 }
 0x844   :  { %12927 = vpow2.f32 %v12499_v57 }
 0x845   :  { %12929 = vpow2.f32 %v12501_v31 }
 0x846   :  { %12931 = vpow2.f32 %v12495_v52 }
 0x84e   :  { %v12922_v49 = vpop.eup %12921 }
 0x84f   :  { %v12924_v60 = vpop.eup %12923  ;;  %v12756_v12 = vadd.f32 -1.0, %v12922_v49 }
 0x850   :  { %v12926_v3 = vpop.eup %12925  ;;  %v12759_v6 = vadd.f32 -1.0, %v12924_v60 }
 0x851   :  { %v12928_v8 = vpop.eup %12927  ;;  %v12757_v17 = vadd.f32 -1.0, %v12926_v3  ;;  %v12509_v4 = vsel %vm12479_vm7, %v12473_v23, %v12756_v12 }
 0x852   :  { %v12930_v21 = vpop.eup %12929  ;;  %v12760_v55 = vadd.f32 -1.0, %v12928_v8  ;;  %v12512_v50 = vsel %vm12482_vm5, %v12476_v25, %v12759_v6 }
 0x853   :  { %v12932_v18 = vpop.eup %12931  ;;  %v12761_v44 = vadd.f32 -1.0, %v12930_v21  ;;  %v12510_v22 = vsel %vm12480_vm8, %v12474_v45, %v12757_v17 }
 0x854   :  { %v12513_v56 = vsel %vm12483_vm6, %v12477_v24, %v12760_v55  ;;  %v12758_v48 = vadd.f32 -1.0, %v12932_v18  ;;  %v12521_v54 = vcombine.low %v12509_v4, %v12510_v22 }
 0x855   :  { %v12514_v28 = vsel %vm12484_vm9, %v12478_v13, %v12761_v44  ;;  %v12544_v33 = vcombine.low %v12512_v50, %v12513_v56 }
 0x856   :  { %v12511_v59 = vsel %vm12481_vm11, %v12475_v40, %v12758_v48  ;;  %v12528_v62 = vrot.slane %v12521_v54, %v15059_v0  ;;  %v12558_v26 = vrot.slane %v12514_v28, %v15059_v0 }
 0x857   :  { %v12551_v47 = vrot.slane %v12544_v33, %v15059_v0  ;;  %v12535_v38 = vrot.slane %v12511_v59, %v15059_v0 }
 0x859   :  { %v12559_v1 = vcombine.low %v12551_v47, %v12558_v26  ;;  %v12536_v36 = vcombine.low %v12528_v62, %v12535_v38 }
 0x85b   :  { %v12566_v41 = vrot.slane %v12559_v1, %v15059_v0  ;;  %v12543_v32 = vrot.slane %v12536_v36, %v15059_v0 }
 0x85d   :  { %12569 = vrot.lane.b32.xlu1 %v12566_v41, %s13008_s5  ;;  %12567 = vrot.lane.b32.xlu0 %v12543_v32, %s13008_s5 }
 0x87b   :  { %11716 = vxpose.xlu0.b32.start.end [1/1] (short) (narrow) %v20325_v7, 8 }
 0x886   :  { %11748 = vxpose.xlu1.b32.start.end [1/1] (short) (narrow) %v20323_v63, 8 }
 0x8cf   :  { %v12568_v37 = vpop.permute.xlu0 %12567  ;;  %v12570_v5 = vpop.permute.xlu1 %12569 }
 0x8f7   :  { %v11732_v11 = vpop.trf.xlu0 }
 0x8f8   :  { %v11780_v46 = vmax.f32 %v11732_v11, 1e-06 }
 0x8fa   :  { %12933 = vlog2.f32 %v11780_v46 }
 0x902   :  { %v11764_v35 = vpop.trf.xlu1 }
 0x903   :  { %v11781_v42 = vmax.f32 %v11764_v35, 1e-06 }
 0x905   :  { %12935 = vlog2.f32 %v11781_v42 }
 0x907   :  { %v12934_v15 = vpop.eup %12933 }
 0x908   :  { %v11783_v2 = vmul.f32 0.6931472, %v12934_v15 }
 0x90a   :  { %v12573_v0 = vsel %vm8862_vm1, %v11783_v2, %v12568_v37 }
 0x90b   :  { %v12575_v30 = vsel %vm12016_vm10, %v12573_v0, 0.0 }
 0x90c   :  { %12577 = vst [vmem:[%s21570_s12] sm:$0x7] %v12575_v30 }
 0x912   :  { %v12936_v7 = vpop.eup %12935 }
 0x913   :  { %v11785_v63 = vmul.f32 0.6931472, %v12936_v7 }
 0x915   :  { %v12574_v53 = vsel %vm8862_vm1, %v11785_v63, %v12570_v5 }
 0x916   :  { %v12576_v14 = vsel %vm12016_vm10, %v12574_v53, 0.0 }
 0x917   :  { %12578 = vst [vmem:[%s21570_s12 + $0x4] sm:$0x7] %v12576_v14 }

</bundles_post_ra>
